<compile_context>
chip_gen: v5e
topology: v5e:2x2
jax: 0.10.0
libtpu: 0.0.40
codegen_flags: <defaults>
</compile_context>

<pallas_src>
import functools
import math

import jax
import jax.numpy as jnp
from jax.experimental import pallas as pl
from jax.experimental.pallas import tpu as pltpu


# ---------------------------------------------------------------------------
# Pallas kernels
# ---------------------------------------------------------------------------
def _conv_matmul_kernel(x_ref, w_ref, bst_ref, o_ref):
    """o = (relu(x @ w + bias)) * scale + shift ; bst rows = bias, scale, shift."""
    acc = jnp.dot(x_ref[...], w_ref[...], preferred_element_type=jnp.float32)
    acc = jnp.maximum(acc + bst_ref[0:1, :], 0.0)
    acc = acc * bst_ref[1:2, :] + bst_ref[2:3, :]
    o_ref[...] = acc.astype(o_ref.dtype)


def conv_matmul(x, w, bst, *, out_dtype):
    """Fused im2col-conv matmul + bias + ReLU + folded-BN affine.

    x: (M, K), w: (K, N), bst: (3, N) f32 -> (M, N) out_dtype.
    Fixed-size row tiles (512 f32 / 1024 bf16) => many "parallel" grid blocks
    for pipelining + megacore, batch-independent VMEM.  No pad / slice copies:
    single exact block when M <= tm, ragged last block otherwise (row-local
    compute, OOB writes dropped).
    """
    M, K = x.shape
    _, N = w.shape
    tm_max = 1024 if w.dtype == jnp.bfloat16 else 512
    tm = M if M <= tm_max else tm_max
    return pl.pallas_call(
        _conv_matmul_kernel,
        out_shape=jax.ShapeDtypeStruct((M, N), out_dtype),
        grid=(pl.cdiv(M, tm),),
        in_specs=[
            pl.BlockSpec((tm, K), lambda i: (i, 0)),
            pl.BlockSpec((K, N), lambda i: (0, 0)),   # constant block -> fetched once
            pl.BlockSpec((3, N), lambda i: (0, 0)),
        ],
        out_specs=pl.BlockSpec((tm, N), lambda i: (i, 0)),
        compiler_params=pltpu.CompilerParams(dimension_semantics=("parallel",)),
    )(x, w, bst)


def _pool_pairlane_kernel(x_ref, o_ref, *, ho, c):
    """2x2/2 max pool; input has W-pairs folded into lanes: (1, 2*ho, wo, 2c)."""
    for i in range(ho):                                   # static unroll (<=15)
        v = jnp.maximum(x_ref[0, 2 * i], x_ref[0, 2 * i + 1])   # (wo, 2c)
        o_ref[0, i] = jnp.maximum(v[:, :c], v[:, c:])            # (wo, c)


def maxpool_pairlane(x):
    """x: (B, H, wo, 2C) with H even (W-pairs already in lanes) -> (B, H//2, wo, C)."""
    B, H, wo, twoc = x.shape
    ho, c = H // 2, twoc // 2
    return pl.pallas_call(
        functools.partial(_pool_pairlane_kernel, ho=ho, c=c),
        out_shape=jax.ShapeDtypeStruct((B, ho, wo, c), x.dtype),
        grid=(B,),
        in_specs=[pl.BlockSpec((1, H, wo, twoc), lambda b: (b, 0, 0, 0))],
        out_specs=pl.BlockSpec((1, ho, wo, c), lambda b: (b, 0, 0, 0)),
        compiler_params=pltpu.CompilerParams(dimension_semantics=("parallel",)),
    )(x)


def _pool_nhwc_kernel(x_ref, o_ref, *, ho, wo):
    """2x2/2 max pool (floor mode) on a (1, Ho, Wo, C) NHWC block."""
    for i in range(ho):                                   # static unroll (<=6)
        v = jnp.maximum(x_ref[0, 2 * i], x_ref[0, 2 * i + 1])   # (Wo, C)
        cols = [jnp.maximum(v[2 * j:2 * j + 1, :], v[2 * j + 1:2 * j + 2, :])
                for j in range(wo)]
        o_ref[0, i] = jnp.concatenate(cols, axis=0)              # (wo, C)


def maxpool_nhwc(x):
    """x: (B, H, W, C) -> (B, H//2, W//2, C), floor mode like nn.MaxPool2d."""
    B, H, W, C = x.shape
    ho, wo = H // 2, W // 2
    return pl.pallas_call(
        functools.partial(_pool_nhwc_kernel, ho=ho, wo=wo),
        out_shape=jax.ShapeDtypeStruct((B, ho, wo, C), x.dtype),
        grid=(B,),
        in_specs=[pl.BlockSpec((1, H, W, C), lambda b: (b, 0, 0, 0))],
        out_specs=pl.BlockSpec((1, ho, wo, C), lambda b: (b, 0, 0, 0)),
        compiler_params=pltpu.CompilerParams(dimension_semantics=("parallel",)),
    )(x)


def _fc_head_kernel(h_ref, w1_ref, bst1_ref, w2_ref, b2_ref, w3_ref, b3_ref, o_ref):
    """fc1 -> ReLU -> BN1d -> (dropout=id) -> fc2 -> ReLU -> fc3 -> sigmoid."""
    dt = w1_ref.dtype
    a = jnp.dot(h_ref[...], w1_ref[...], preferred_element_type=jnp.float32)
    a = jnp.maximum(a + bst1_ref[0:1, :], 0.0)
    a = a * bst1_ref[1:2, :] + bst1_ref[2:3, :]
    # TODO(synk): Dropout(0.5) is identity at inference time.
    a = jnp.dot(a.astype(dt), w2_ref[...],
                preferred_element_type=jnp.float32) + b2_ref[...]
    a = jnp.maximum(a, 0.0)
    z = jnp.dot(a.astype(dt), w3_ref[...],
                preferred_element_type=jnp.float32) + b3_ref[...]
    o_ref[...] = pl.reciprocal(1.0 + jnp.exp(-z), approx=True)   # EUP sigmoid denom


def fc_head(h, w1, bst1, w2, b2, w3, b3):
    """Batch-row-tiled fused FC head; weights live at a constant block index."""
    B, K = h.shape
    tb_max = 256 if w1.dtype == jnp.bfloat16 else 128
    tb = B if B <= tb_max else tb_max
    out = pl.pallas_call(
        _fc_head_kernel,
        out_shape=jax.ShapeDtypeStruct((B, w3.shape[1]), jnp.float32),
        grid=(pl.cdiv(B, tb),),
        in_specs=[
            pl.BlockSpec((tb, K), lambda i: (i, 0)),
            pl.BlockSpec(w1.shape, lambda i: (0, 0)),
            pl.BlockSpec(bst1.shape, lambda i: (0, 0)),
            pl.BlockSpec(w2.shape, lambda i: (0, 0)),
            pl.BlockSpec(b2.shape, lambda i: (0, 0)),
            pl.BlockSpec(w3.shape, lambda i: (0, 0)),
            pl.BlockSpec(b3.shape, lambda i: (0, 0)),
        ],
        out_specs=pl.BlockSpec((tb, w3.shape[1]), lambda i: (i, 0)),
        compiler_params=pltpu.CompilerParams(dimension_semantics=("parallel",)),
    )(h, w1, bst1, w2, b2, w3, b3)
    return out[:, :1]            # real logit lives in lane 0 (w3 zero-padded)


# ---------------------------------------------------------------------------
# Glue: im2col (NHWC), BN folding, one-time weight prep, forward
# ---------------------------------------------------------------------------
def im2col_3x3_nhwc(x):
    """(B, H, W, C) -> (B*(H-2)*(W-2), 9*C); K ordered (kh, kw, cin)."""
    B, H, W, C = x.shape
    ho, wo = H - 2, W - 2
    cols = [x[:, di:di + ho, dj:dj + wo, :]
            for di in range(3) for dj in range(3)]
    p = jnp.concatenate(cols, axis=-1)
    return p.reshape(B * ho * wo, 9 * C), ho, wo


def fold_bn(bn, eps=1e-5):
    gamma, beta, mean, var = bn
    scale = gamma / jnp.sqrt(var + eps)
    shift = beta - mean * scale
    return scale, shift


def prepare_params(p, dtype=jnp.bfloat16):
    """One-time weight prep: transpose / permute / pair / cast so the
    per-forward path pays no weight transposes, casts or big pads."""
    def conv_prep(conv, bn, pair_cols=False):
        w, b = conv                                        # (Cout, Cin, 3, 3)
        cout = w.shape[0]
        wm = jnp.transpose(w, (2, 3, 1, 0)).reshape(-1, cout)   # (9*Cin, Cout)
        s, t = fold_bn(bn)
        if pair_cols:
            # block-diagonal weight: two adjacent output columns per matmul row,
            # making the conv output 2*Cout (=128) lanes wide (no masked stores).
            k = wm.shape[0]
            wb = jnp.zeros((2 * k, 2 * cout), wm.dtype)
            wb = wb.at[:k, :cout].set(wm).at[k:, cout:].set(wm)
            wm = wb
            b, s, t = (jnp.concatenate([v, v]) for v in (b, s, t))
        bst = jnp.stack([b, s, t]).astype(jnp.float32)     # (3, N)
        return wm.astype(dtype), bst

    w1, b1 = p["fc1"]                                      # (256, 4096)
    nout, nin = w1.shape
    c3 = p["conv3"][0].shape[0]
    hw = int(round(math.sqrt(nin // c3)))
    # permute fc1 columns from NCHW-flatten (c,h,w) to NHWC-flatten (h,w,c)
    w1m = (w1.reshape(nout, c3, hw, hw).transpose(2, 3, 1, 0)
             .reshape(nin, nout).astype(dtype))
    s1, t1 = fold_bn(p["bn4"])
    bst1 = jnp.stack([b1, s1, t1]).astype(jnp.float32)

    w2, b2 = p["fc2"]
    w2m = w2.T.astype(dtype)
    b2m = b2.reshape(1, -1).astype(jnp.float32)

    w3, b3 = p["fc3"]                                      # (1, 128), (1,)
    # pad fc3's N=1 output to 128 lanes; only column 0 is real
    w3m = jnp.zeros((w3.shape[1], 128), dtype).at[:, 0].set(w3[0].astype(dtype))
    b3m = jnp.zeros((1, 128), jnp.float32).at[0, 0].set(b3[0])

    return dict(conv1=conv_prep(p["conv1"], p["bn1"], pair_cols=True),
                conv2=conv_prep(p["conv2"], p["bn2"]),
                conv3=conv_prep(p["conv3"], p["bn3"]),
                fc=(w1m, bst1, w2m, b2m, w3m, b3m))


def fake_net2_forward(x, prep):
    """x: (B, 3, 32, 32) NCHW float32 -> (B, 1) values in (0, 1)."""
    dt = prep["conv2"][0].dtype
    B = x.shape[0]
    h = jnp.transpose(x, (0, 2, 3, 1)).astype(dt)          # NCHW -> NHWC, once

    # conv1 (+ W-pairs folded into 128 lanes; valid since Wo=30 is even) -> pool1
    p, ho, wo = im2col_3x3_nhwc(h)                         # (B*900, 27)
    p = p.reshape(-1, 2 * p.shape[1])                      # (B*450, 54)
    y = conv_matmul(p, *prep["conv1"], out_dtype=dt)       # (B*450, 128)
    y = y.reshape(B, ho, wo // 2, -1)                      # (B, 30, 15, 128)
    h = maxpool_pairlane(y)                                # (B, 15, 15, 64)

    # conv2 -> pool2 (floor mode drops the 13th row/col)
    p, ho, wo = im2col_3x3_nhwc(h)                         # (B*169, 576)
    y = conv_matmul(p, *prep["conv2"], out_dtype=dt)       # (B*169, 128)
    h = maxpool_nhwc(y.reshape(B, ho, wo, -1))             # (B, 6, 6, 128)

    # conv3 -> flatten -> fused fc head
    p, ho, wo = im2col_3x3_nhwc(h)                         # (B*16, 1152)
    y = conv_matmul(p, *prep["conv3"], out_dtype=dt)       # (B*16, 256)
    # TODO(synk): conv3 + flatten + fc head could be fused into one kernel
    # (conv3's (4,4,256) tile is exactly one K=4096 row of fc1).
    return fc_head(y.reshape(B, -1), *prep["fc"])


# ---------------------------------------------------------------------------
# Deterministic parameter init (synthetic; shapes per FakeNet2.__init__)
# ---------------------------------------------------------------------------
def init_params(key):
    ks = jax.random.split(key, 10)

    def conv(k, cout, cin):
        k1, k2 = jax.random.split(k)
        w = jax.random.normal(k1, (cout, cin, 3, 3), jnp.float32) / math.sqrt(cin * 9)
        b = 0.05 * jax.random.normal(k2, (cout,), jnp.float32)
        return w, b

    def bn(k, n):
        k1, k2, k3, k4 = jax.random.split(k, 4)
        gamma = 1.0 + 0.1 * jax.random.normal(k1, (n,), jnp.float32)
        beta = 0.1 * jax.random.normal(k2, (n,), jnp.float32)
        mean = 0.1 * jax.random.normal(k3, (n,), jnp.float32)
        var = 1.0 + 0.1 * jnp.abs(jax.random.normal(k4, (n,), jnp.float32))
        return gamma, beta, mean, var

    def lin(k, cout, cin):
        k1, k2 = jax.random.split(k)
        w = jax.random.normal(k1, (cout, cin), jnp.float32) / math.sqrt(cin)
        b = 0.05 * jax.random.normal(k2, (cout,), jnp.float32)
        return w, b

    return dict(
        conv1=conv(ks[0], 64, 3), bn1=bn(ks[1], 64),
        conv2=conv(ks[2], 128, 64), bn2=bn(ks[3], 128),
        conv3=conv(ks[4], 256, 128), bn3=bn(ks[5], 256),
        fc1=lin(ks[6], 256, 4096), bn4=bn(ks[7], 256),
        fc2=lin(ks[8], 128, 256),
        fc3=lin(ks[9], 1, 128),
    )


# ---------------------------------------------------------------------------
# Pure-JAX reference (PyTorch-faithful NCHW, f32) for correctness check
# ---------------------------------------------------------------------------
def reference_forward(x, p):
    def conv(x, wp, bnp):
        w, b = wp
        y = jax.lax.conv_general_dilated(
            x, w, window_strides=(1, 1), padding="VALID",
            dimension_numbers=("NCHW", "OIHW", "NCHW"))
        y = jnp.maximum(y + b[None, :, None, None], 0.0)
        s, t = fold_bn(bnp)
        return y * s[None, :, None, None] + t[None, :, None, None]

    def pool(x):
        B, C, H, W = x.shape
        ho, wo = H // 2, W // 2
        return x[:, :, :ho * 2, :wo * 2].reshape(B, C, ho, 2, wo, 2).max(axis=(3, 5))

    h = pool(conv(x, p["conv1"], p["bn1"]))
    h = pool(conv(h, p["conv2"], p["bn2"]))
    h = conv(h, p["conv3"], p["bn3"])
    h = h.reshape(h.shape[0], -1)
    w1, b1 = p["fc1"]
    s1, t1 = fold_bn(p["bn4"])
    h = jnp.maximum(h @ w1.T + b1, 0.0) * s1 + t1
    w2, b2 = p["fc2"]
    h = jnp.maximum(h @ w2.T + b2, 0.0)
    w3, b3 = p["fc3"]
    return jax.nn.sigmoid(h @ w3.T + b3)


if __name__ == "__main__":
    key = jax.random.PRNGKey(0)
    kx, kp = jax.random.split(key)
    x = jax.random.normal(kx, (2, 3, 32, 32), jnp.float32)   # (B, 3, 32, 32)
    params = init_params(kp)
    ref = reference_forward(x, params)

    fwd = jax.jit(fake_net2_forward)

    # f32 configuration: validates the Pallas kernels against the pure-JAX
    # reference.  The only intentional delta is the EUP approximate reciprocal
    # in the sigmoid (~1e-4 relative), hence atol/rtol 2e-3.
    out_f32 = jax.block_until_ready(fwd(x, prepare_params(params, jnp.float32)))
    assert out_f32.shape == (2, 1), out_f32.shape
    assert jnp.allclose(out_f32, ref, atol=2e-3, rtol=2e-3), (out_f32, ref)

    # bf16 configuration (performance path): bf16 MXU operands / activations,
    # f32 accumulation + f32 epilogue.  Tolerance widened to a few bf16 eps
    # accumulated over ~9 rounding stages vs the f32 reference.
    out_bf16 = jax.block_until_ready(fwd(x, prepare_params(params, jnp.bfloat16)))
    assert out_bf16.shape == (2, 1), out_bf16.shape
    assert jnp.allclose(out_bf16, ref, atol=2e-2, rtol=2e-2), (out_bf16, ref)

    print("KERNEL_OK")
</pallas_src>

<mosaic_0001>
module attributes {stable_mosaic.version = 11 : i64} {
  func.func @_conv_matmul_kernel(%arg0: i32, %arg1: memref<512x54xf32, #tpu.memory_space<vmem>>, %arg2: memref<54x128xf32, #tpu.memory_space<vmem>>, %arg3: memref<3x128xf32, #tpu.memory_space<vmem>>, %arg4: memref<512x128xf32, #tpu.memory_space<vmem>>) attributes {dimension_semantics = [#tpu.dimension_semantics<parallel>], iteration_bounds = array<i64: 2>, scalar_prefetch = 0 : i64, scratch_operands = 0 : i64, tpu.core_type = #tpu.core_type<tc>, window_params = [{transform_indices = @transform_0, window_bounds = array<i64: 512, 54>}, {pipeline_mode = #tpu.pipeline_mode<synchronous>, transform_indices = @transform_1, window_bounds = array<i64: 54, 128>}, {pipeline_mode = #tpu.pipeline_mode<synchronous>, transform_indices = @transform_2, window_bounds = array<i64: 3, 128>}, {transform_indices = @transform_3, window_bounds = array<i64: 512, 128>}]} {
    %c0 = arith.constant 0 : index
    %c0_0 = arith.constant 0 : index
    %0 = vector.load %arg1[%c0, %c0_0] : memref<512x54xf32, #tpu.memory_space<vmem>>, vector<512x54xf32>
    %c0_1 = arith.constant 0 : index
    %c0_2 = arith.constant 0 : index
    %1 = vector.load %arg2[%c0_1, %c0_2] : memref<54x128xf32, #tpu.memory_space<vmem>>, vector<54x128xf32>
    %cst = arith.constant dense<0.000000e+00> : vector<512x128xf32>
    %2 = tpu.matmul %0, %1, %cst {dimension_numbers = #tpu.dot_dimension_numbers<[1], [0], [0], [1], [0, 0, 1, 1], [], []>} : vector<512x54xf32>, vector<54x128xf32>, vector<512x128xf32> -> vector<512x128xf32>
    %c0_3 = arith.constant 0 : index
    %c0_4 = arith.constant 0 : index
    %3 = vector.load %arg3[%c0_3, %c0_4] : memref<3x128xf32, #tpu.memory_space<vmem>>, vector<1x128xf32>
    %4 = vector.broadcast %3 : vector<1x128xf32> to vector<512x128xf32>
    %5 = arith.addf %2, %4 : vector<512x128xf32>
    %cst_5 = arith.constant 0.000000e+00 : f32
    %6 = vector.broadcast %cst_5 : f32 to vector<512x128xf32>
    %7 = arith.maximumf %5, %6 : vector<512x128xf32>
    %c1 = arith.constant 1 : index
    %c0_6 = arith.constant 0 : index
    %8 = vector.load %arg3[%c1, %c0_6] : memref<3x128xf32, #tpu.memory_space<vmem>>, vector<1x128xf32>
    %9 = vector.broadcast %8 : vector<1x128xf32> to vector<512x128xf32>
    %10 = arith.mulf %7, %9 : vector<512x128xf32>
    %c2 = arith.constant 2 : index
    %c0_7 = arith.constant 0 : index
    %11 = vector.load %arg3[%c2, %c0_7] : memref<3x128xf32, #tpu.memory_space<vmem>>, vector<1x128xf32>
    %12 = vector.broadcast %11 : vector<1x128xf32> to vector<512x128xf32>
    %13 = arith.addf %10, %12 : vector<512x128xf32>
    %c0_8 = arith.constant 0 : index
    %c0_9 = arith.constant 0 : index
    %14 = vector.load %arg4[%c0_8, %c0_9] : memref<512x128xf32, #tpu.memory_space<vmem>>, vector<512x128xf32>
    tpu.vector_store %arg4[%c0_8, %c0_9], %13 {strides = array<i32>} : memref<512x128xf32, #tpu.memory_space<vmem>>, vector<512x128xf32>,
    return
  }
  func.func @transform_0(%arg0: i32) -> (i32, i32) {
    %c0_i32 = arith.constant 0 : i32
    %c0_i32_0 = arith.constant 0 : i32
    return %arg0, %c0_i32 : i32, i32
  }
  func.func @transform_1(%arg0: i32) -> (i32, i32) {
    %c0_i32 = arith.constant 0 : i32
    %c0_i32_0 = arith.constant 0 : i32
    %c0_i32_1 = arith.constant 0 : i32
    return %c0_i32, %c0_i32_0 : i32, i32
  }
  func.func @transform_2(%arg0: i32) -> (i32, i32) {
    %c0_i32 = arith.constant 0 : i32
    %c0_i32_0 = arith.constant 0 : i32
    %c0_i32_1 = arith.constant 0 : i32
    return %c0_i32, %c0_i32_0 : i32, i32
  }
  func.func @transform_3(%arg0: i32) -> (i32, i32) {
    %c0_i32 = arith.constant 0 : i32
    %c0_i32_0 = arith.constant 0 : i32
    return %arg0, %c0_i32 : i32, i32
  }
}

module attributes {stable_mosaic.version = 11 : i64} {
  func.func @_pool_pairlane_kernel(%arg0: i32, %arg1: memref<1x30x15x128xf32, #tpu.memory_space<vmem>>, %arg2: memref<1x15x15x64xf32, #tpu.memory_space<vmem>>) attributes {dimension_semantics = [#tpu.dimension_semantics<parallel>], iteration_bounds = array<i64: 2>, scalar_prefetch = 0 : i64, scratch_operands = 0 : i64, tpu.core_type = #tpu.core_type<tc>, window_params = [{transform_indices = @transform_0, window_bounds = array<i64: 1, 30, 15, 128>}, {transform_indices = @transform_1, window_bounds = array<i64: 1, 15, 15, 64>}]} {
    %c0 = arith.constant 0 : index
    %c0_0 = arith.constant 0 : index
    %c0_1 = arith.constant 0 : index
    %c0_2 = arith.constant 0 : index
    %0 = vector.load %arg1[%c0, %c0_0, %c0_1, %c0_2] : memref<1x30x15x128xf32, #tpu.memory_space<vmem>>, vector<1x1x15x128xf32>
    %1 = vector.shape_cast %0 : vector<1x1x15x128xf32> to vector<15x128xf32>
    %c0_3 = arith.constant 0 : index
    %c1 = arith.constant 1 : index
    %c0_4 = arith.constant 0 : index
    %c0_5 = arith.constant 0 : index
    %2 = vector.load %arg1[%c0_3, %c1, %c0_4, %c0_5] : memref<1x30x15x128xf32, #tpu.memory_space<vmem>>, vector<1x1x15x128xf32>
    %3 = vector.shape_cast %2 : vector<1x1x15x128xf32> to vector<15x128xf32>
    %4 = arith.maximumf %1, %3 : vector<15x128xf32>
    %5 = vector.extract_strided_slice %4 {offsets = [0, 0], sizes = [15, 64], strides = [1, 1]} : vector<15x128xf32> to vector<15x64xf32>
    %6 = vector.extract_strided_slice %4 {offsets = [0, 64], sizes = [15, 64], strides = [1, 1]} : vector<15x128xf32> to vector<15x64xf32>
    %7 = arith.maximumf %5, %6 : vector<15x64xf32>
    %c0_6 = arith.constant 0 : index
    %c0_7 = arith.constant 0 : index
    %c0_8 = arith.constant 0 : index
    %c0_9 = arith.constant 0 : index
    %8 = vector.load %arg2[%c0_6, %c0_7, %c0_8, %c0_9] : memref<1x15x15x64xf32, #tpu.memory_space<vmem>>, vector<1x1x15x64xf32>
    %9 = vector.shape_cast %8 : vector<1x1x15x64xf32> to vector<15x64xf32>
    %10 = vector.shape_cast %7 : vector<15x64xf32> to vector<1x1x15x64xf32>
    tpu.vector_store %arg2[%c0_6, %c0_7, %c0_8, %c0_9], %10 {strides = array<i32>} : memref<1x15x15x64xf32, #tpu.memory_space<vmem>>, vector<1x1x15x64xf32>,
    %c0_10 = arith.constant 0 : index
    %c2 = arith.constant 2 : index
    %c0_11 = arith.constant 0 : index
    %c0_12 = arith.constant 0 : index
    %11 = vector.load %arg1[%c0_10, %c2, %c0_11, %c0_12] : memref<1x30x15x128xf32, #tpu.memory_space<vmem>>, vector<1x1x15x128xf32>
    %12 = vector.shape_cast %11 : vector<1x1x15x128xf32> to vector<15x128xf32>
    %c0_13 = arith.constant 0 : index
    %c3 = arith.constant 3 : index
    %c0_14 = arith.constant 0 : index
    %c0_15 = arith.constant 0 : index
    %13 = vector.load %arg1[%c0_13, %c3, %c0_14, %c0_15] : memref<1x30x15x128xf32, #tpu.memory_space<vmem>>, vector<1x1x15x128xf32>
    %14 = vector.shape_cast %13 : vector<1x1x15x128xf32> to vector<15x128xf32>
    %15 = arith.maximumf %12, %14 : vector<15x128xf32>
    %16 = vector.extract_strided_slice %15 {offsets = [0, 0], sizes = [15, 64], strides = [1, 1]} : vector<15x128xf32> to vector<15x64xf32>
    %17 = vector.extract_strided_slice %15 {offsets = [0, 64], sizes = [15, 64], strides = [1, 1]} : vector<15x128xf32> to vector<15x64xf32>
    %18 = arith.maximumf %16, %17 : vector<15x64xf32>
    %c0_16 = arith.constant 0 : index
    %c1_17 = arith.constant 1 : index
    %c0_18 = arith.constant 0 : index
    %c0_19 = arith.constant 0 : index
    %19 = vector.load %arg2[%c0_16, %c1_17, %c0_18, %c0_19] : memref<1x15x15x64xf32, #tpu.memory_space<vmem>>, vector<1x1x15x64xf32>
    %20 = vector.shape_cast %19 : vector<1x1x15x64xf32> to vector<15x64xf32>
    %21 = vector.shape_cast %18 : vector<15x64xf32> to vector<1x1x15x64xf32>
    tpu.vector_store %arg2[%c0_16, %c1_17, %c0_18, %c0_19], %21 {strides = array<i32>} : memref<1x15x15x64xf32, #tpu.memory_space<vmem>>, vector<1x1x15x64xf32>,
    %c0_20 = arith.constant 0 : index
    %c4 = arith.constant 4 : index
    %c0_21 = arith.constant 0 : index
    %c0_22 = arith.constant 0 : index
    %22 = vector.load %arg1[%c0_20, %c4, %c0_21, %c0_22] : memref<1x30x15x128xf32, #tpu.memory_space<vmem>>, vector<1x1x15x128xf32>
    %23 = vector.shape_cast %22 : vector<1x1x15x128xf32> to vector<15x128xf32>
    %c0_23 = arith.constant 0 : index
    %c5 = arith.constant 5 : index
    %c0_24 = arith.constant 0 : index
    %c0_25 = arith.constant 0 : index
    %24 = vector.load %arg1[%c0_23, %c5, %c0_24, %c0_25] : memref<1x30x15x128xf32, #tpu.memory_space<vmem>>, vector<1x1x15x128xf32>
    %25 = vector.shape_cast %24 : vector<1x1x15x128xf32> to vector<15x128xf32>
    %26 = arith.maximumf %23, %25 : vector<15x128xf32>
    %27 = vector.extract_strided_slice %26 {offsets = [0, 0], sizes = [15, 64], strides = [1, 1]} : vector<15x128xf32> to vector<15x64xf32>
    %28 = vector.extract_strided_slice %26 {offsets = [0, 64], sizes = [15, 64], strides = [1, 1]} : vector<15x128xf32> to vector<15x64xf32>
    %29 = arith.maximumf %27, %28 : vector<15x64xf32>
    %c0_26 = arith.constant 0 : index
    %c2_27 = arith.constant 2 : index
    %c0_28 = arith.constant 0 : index
    %c0_29 = arith.constant 0 : index
    %30 = vector.load %arg2[%c0_26, %c2_27, %c0_28, %c0_29] : memref<1x15x15x64xf32, #tpu.memory_space<vmem>>, vector<1x1x15x64xf32>
    %31 = vector.shape_cast %30 : vector<1x1x15x64xf32> to vector<15x64xf32>
    %32 = vector.shape_cast %29 : vector<15x64xf32> to vector<1x1x15x64xf32>
    tpu.vector_store %arg2[%c0_26, %c2_27, %c0_28, %c0_29], %32 {strides = array<i32>} : memref<1x15x15x64xf32, #tpu.memory_space<vmem>>, vector<1x1x15x64xf32>,
    %c0_30 = arith.constant 0 : index
    %c6 = arith.constant 6 : index
    %c0_31 = arith.constant 0 : index
    %c0_32 = arith.constant 0 : index
    %33 = vector.load %arg1[%c0_30, %c6, %c0_31, %c0_32] : memref<1x30x15x128xf32, #tpu.memory_space<vmem>>, vector<1x1x15x128xf32>
    %34 = vector.shape_cast %33 : vector<1x1x15x128xf32> to vector<15x128xf32>
    %c0_33 = arith.constant 0 : index
    %c7 = arith.constant 7 : index
    %c0_34 = arith.constant 0 : index
    %c0_35 = arith.constant 0 : index
    %35 = vector.load %arg1[%c0_33, %c7, %c0_34, %c0_35] : memref<1x30x15x128xf32, #tpu.memory_space<vmem>>, vector<1x1x15x128xf32>
    %36 = vector.shape_cast %35 : vector<1x1x15x128xf32> to vector<15x128xf32>
    %37 = arith.maximumf %34, %36 : vector<15x128xf32>
    %38 = vector.extract_strided_slice %37 {offsets = [0, 0], sizes = [15, 64], strides = [1, 1]} : vector<15x128xf32> to vector<15x64xf32>
    %39 = vector.extract_strided_slice %37 {offsets = [0, 64], sizes = [15, 64], strides = [1, 1]} : vector<15x128xf32> to vector<15x64xf32>
    %40 = arith.maximumf %38, %39 : vector<15x64xf32>
    %c0_36 = arith.constant 0 : index
    %c3_37 = arith.constant 3 : index
    %c0_38 = arith.constant 0 : index
    %c0_39 = arith.constant 0 : index
    %41 = vector.load %arg2[%c0_36, %c3_37, %c0_38, %c0_39] : memref<1x15x15x64xf32, #tpu.memory_space<vmem>>, vector<1x1x15x64xf32>
    %42 = vector.shape_cast %41 : vector<1x1x15x64xf32> to vector<15x64xf32>
    %43 = vector.shape_cast %40 : vector<15x64xf32> to vector<1x1x15x64xf32>
    tpu.vector_store %arg2[%c0_36, %c3_37, %c0_38, %c0_39], %43 {strides = array<i32>} : memref<1x15x15x64xf32, #tpu.memory_space<vmem>>, vector<1x1x15x64xf32>,
    %c0_40 = arith.constant 0 : index
    %c8 = arith.constant 8 : index
    %c0_41 = arith.constant 0 : index
    %c0_42 = arith.constant 0 : index
    %44 = vector.load %arg1[%c0_40, %c8, %c0_41, %c0_42] : memref<1x30x15x128xf32, #tpu.memory_space<vmem>>, vector<1x1x15x128xf32>
    %45 = vector.shape_cast %44 : vector<1x1x15x128xf32> to vector<15x128xf32>
    %c0_43 = arith.constant 0 : index
    %c9 = arith.constant 9 : index
    %c0_44 = arith.constant 0 : index
    %c0_45 = arith.constant 0 : index
    %46 = vector.load %arg1[%c0_43, %c9, %c0_44, %c0_45] : memref<1x30x15x128xf32, #tpu.memory_space<vmem>>, vector<1x1x15x128xf32>
    %47 = vector.shape_cast %46 : vector<1x1x15x128xf32> to vector<15x128xf32>
    %48 = arith.maximumf %45, %47 : vector<15x128xf32>
    %49 = vector.extract_strided_slice %48 {offsets = [0, 0], sizes = [15, 64], strides = [1, 1]} : vector<15x128xf32> to vector<15x64xf32>
    %50 = vector.extract_strided_slice %48 {offsets = [0, 64], sizes = [15, 64], strides = [1, 1]} : vector<15x128xf32> to vector<15x64xf32>
    %51 = arith.maximumf %49, %50 : vector<15x64xf32>
    %c0_46 = arith.constant 0 : index
    %c4_47 = arith.constant 4 : index
    %c0_48 = arith.constant 0 : index
    %c0_49 = arith.constant 0 : index
    %52 = vector.load %arg2[%c0_46, %c4_47, %c0_48, %c0_49] : memref<1x15x15x64xf32, #tpu.memory_space<vmem>>, vector<1x1x15x64xf32>
    %53 = vector.shape_cast %52 : vector<1x1x15x64xf32> to vector<15x64xf32>
    %54 = vector.shape_cast %51 : vector<15x64xf32> to vector<1x1x15x64xf32>
    tpu.vector_store %arg2[%c0_46, %c4_47, %c0_48, %c0_49], %54 {strides = array<i32>} : memref<1x15x15x64xf32, #tpu.memory_space<vmem>>, vector<1x1x15x64xf32>,
    %c0_50 = arith.constant 0 : index
    %c10 = arith.constant 10 : index
    %c0_51 = arith.constant 0 : index
    %c0_52 = arith.constant 0 : index
    %55 = vector.load %arg1[%c0_50, %c10, %c0_51, %c0_52] : memref<1x30x15x128xf32, #tpu.memory_space<vmem>>, vector<1x1x15x128xf32>
    %56 = vector.shape_cast %55 : vector<1x1x15x128xf32> to vector<15x128xf32>
    %c0_53 = arith.constant 0 : index
    %c11 = arith.constant 11 : index
    %c0_54 = arith.constant 0 : index
    %c0_55 = arith.constant 0 : index
    %57 = vector.load %arg1[%c0_53, %c11, %c0_54, %c0_55] : memref<1x30x15x128xf32, #tpu.memory_space<vmem>>, vector<1x1x15x128xf32>
    %58 = vector.shape_cast %57 : vector<1x1x15x128xf32> to vector<15x128xf32>
    %59 = arith.maximumf %56, %58 : vector<15x128xf32>
    %60 = vector.extract_strided_slice %59 {offsets = [0, 0], sizes = [15, 64], strides = [1, 1]} : vector<15x128xf32> to vector<15x64xf32>
    %61 = vector.extract_strided_slice %59 {offsets = [0, 64], sizes = [15, 64], strides = [1, 1]} : vector<15x128xf32> to vector<15x64xf32>
    %62 = arith.maximumf %60, %61 : vector<15x64xf32>
    %c0_56 = arith.constant 0 : index
    %c5_57 = arith.constant 5 : index
    %c0_58 = arith.constant 0 : index
    %c0_59 = arith.constant 0 : index
    %63 = vector.load %arg2[%c0_56, %c5_57, %c0_58, %c0_59] : memref<1x15x15x64xf32, #tpu.memory_space<vmem>>, vector<1x1x15x64xf32>
    %64 = vector.shape_cast %63 : vector<1x1x15x64xf32> to vector<15x64xf32>
    %65 = vector.shape_cast %62 : vector<15x64xf32> to vector<1x1x15x64xf32>
    tpu.vector_store %arg2[%c0_56, %c5_57, %c0_58, %c0_59], %65 {strides = array<i32>} : memref<1x15x15x64xf32, #tpu.memory_space<vmem>>, vector<1x1x15x64xf32>,
    %c0_60 = arith.constant 0 : index
    %c12 = arith.constant 12 : index
    %c0_61 = arith.constant 0 : index
    %c0_62 = arith.constant 0 : index
    %66 = vector.load %arg1[%c0_60, %c12, %c0_61, %c0_62] : memref<1x30x15x128xf32, #tpu.memory_space<vmem>>, vector<1x1x15x128xf32>
    %67 = vector.shape_cast %66 : vector<1x1x15x128xf32> to vector<15x128xf32>
    %c0_63 = arith.constant 0 : index
    %c13 = arith.constant 13 : index
    %c0_64 = arith.constant 0 : index
    %c0_65 = arith.constant 0 : index
    %68 = vector.load %arg1[%c0_63, %c13, %c0_64, %c0_65] : memref<1x30x15x128xf32, #tpu.memory_space<vmem>>, vector<1x1x15x128xf32>
    %69 = vector.shape_cast %68 : vector<1x1x15x128xf32> to vector<15x128xf32>
    %70 = arith.maximumf %67, %69 : vector<15x128xf32>
    %71 = vector.extract_strided_slice %70 {offsets = [0, 0], sizes = [15, 64], strides = [1, 1]} : vector<15x128xf32> to vector<15x64xf32>
    %72 = vector.extract_strided_slice %70 {offsets = [0, 64], sizes = [15, 64], strides = [1, 1]} : vector<15x128xf32> to vector<15x64xf32>
    %73 = arith.maximumf %71, %72 : vector<15x64xf32>
    %c0_66 = arith.constant 0 : index
    %c6_67 = arith.constant 6 : index
    %c0_68 = arith.constant 0 : index
    %c0_69 = arith.constant 0 : index
    %74 = vector.load %arg2[%c0_66, %c6_67, %c0_68, %c0_69] : memref<1x15x15x64xf32, #tpu.memory_space<vmem>>, vector<1x1x15x64xf32>
    %75 = vector.shape_cast %74 : vector<1x1x15x64xf32> to vector<15x64xf32>
    %76 = vector.shape_cast %73 : vector<15x64xf32> to vector<1x1x15x64xf32>
    tpu.vector_store %arg2[%c0_66, %c6_67, %c0_68, %c0_69], %76 {strides = array<i32>} : memref<1x15x15x64xf32, #tpu.memory_space<vmem>>, vector<1x1x15x64xf32>,
    %c0_70 = arith.constant 0 : index
    %c14 = arith.constant 14 : index
    %c0_71 = arith.constant 0 : index
    %c0_72 = arith.constant 0 : index
    %77 = vector.load %arg1[%c0_70, %c14, %c0_71, %c0_72] : memref<1x30x15x128xf32, #tpu.memory_space<vmem>>, vector<1x1x15x128xf32>
    %78 = vector.shape_cast %77 : vector<1x1x15x128xf32> to vector<15x128xf32>
    %c0_73 = arith.constant 0 : index
    %c15 = arith.constant 15 : index
    %c0_74 = arith.constant 0 : index
    %c0_75 = arith.constant 0 : index
    %79 = vector.load %arg1[%c0_73, %c15, %c0_74, %c0_75] : memref<1x30x15x128xf32, #tpu.memory_space<vmem>>, vector<1x1x15x128xf32>
    %80 = vector.shape_cast %79 : vector<1x1x15x128xf32> to vector<15x128xf32>
    %81 = arith.maximumf %78, %80 : vector<15x128xf32>
    %82 = vector.extract_strided_slice %81 {offsets = [0, 0], sizes = [15, 64], strides = [1, 1]} : vector<15x128xf32> to vector<15x64xf32>
    %83 = vector.extract_strided_slice %81 {offsets = [0, 64], sizes = [15, 64], strides = [1, 1]} : vector<15x128xf32> to vector<15x64xf32>
    %84 = arith.maximumf %82, %83 : vector<15x64xf32>
    %c0_76 = arith.constant 0 : index
    %c7_77 = arith.constant 7 : index
    %c0_78 = arith.constant 0 : index
    %c0_79 = arith.constant 0 : index
    %85 = vector.load %arg2[%c0_76, %c7_77, %c0_78, %c0_79] : memref<1x15x15x64xf32, #tpu.memory_space<vmem>>, vector<1x1x15x64xf32>
    %86 = vector.shape_cast %85 : vector<1x1x15x64xf32> to vector<15x64xf32>
    %87 = vector.shape_cast %84 : vector<15x64xf32> to vector<1x1x15x64xf32>
    tpu.vector_store %arg2[%c0_76, %c7_77, %c0_78, %c0_79], %87 {strides = array<i32>} : memref<1x15x15x64xf32, #tpu.memory_space<vmem>>, vector<1x1x15x64xf32>,
    %c0_80 = arith.constant 0 : index
    %c16 = arith.constant 16 : index
    %c0_81 = arith.constant 0 : index
    %c0_82 = arith.constant 0 : index
    %88 = vector.load %arg1[%c0_80, %c16, %c0_81, %c0_82] : memref<1x30x15x128xf32, #tpu.memory_space<vmem>>, vector<1x1x15x128xf32>
    %89 = vector.shape_cast %88 : vector<1x1x15x128xf32> to vector<15x128xf32>
    %c0_83 = arith.constant 0 : index
    %c17 = arith.constant 17 : index
    %c0_84 = arith.constant 0 : index
    %c0_85 = arith.constant 0 : index
    %90 = vector.load %arg1[%c0_83, %c17, %c0_84, %c0_85] : memref<1x30x15x128xf32, #tpu.memory_space<vmem>>, vector<1x1x15x128xf32>
    %91 = vector.shape_cast %90 : vector<1x1x15x128xf32> to vector<15x128xf32>
    %92 = arith.maximumf %89, %91 : vector<15x128xf32>
    %93 = vector.extract_strided_slice %92 {offsets = [0, 0], sizes = [15, 64], strides = [1, 1]} : vector<15x128xf32> to vector<15x64xf32>
    %94 = vector.extract_strided_slice %92 {offsets = [0, 64], sizes = [15, 64], strides = [1, 1]} : vector<15x128xf32> to vector<15x64xf32>
    %95 = arith.maximumf %93, %94 : vector<15x64xf32>
    %c0_86 = arith.constant 0 : index
    %c8_87 = arith.constant 8 : index
    %c0_88 = arith.constant 0 : index
    %c0_89 = arith.constant 0 : index
    %96 = vector.load %arg2[%c0_86, %c8_87, %c0_88, %c0_89] : memref<1x15x15x64xf32, #tpu.memory_space<vmem>>, vector<1x1x15x64xf32>
    %97 = vector.shape_cast %96 : vector<1x1x15x64xf32> to vector<15x64xf32>
    %98 = vector.shape_cast %95 : vector<15x64xf32> to vector<1x1x15x64xf32>
    tpu.vector_store %arg2[%c0_86, %c8_87, %c0_88, %c0_89], %98 {strides = array<i32>} : memref<1x15x15x64xf32, #tpu.memory_space<vmem>>, vector<1x1x15x64xf32>,
    %c0_90 = arith.constant 0 : index
    %c18 = arith.constant 18 : index
    %c0_91 = arith.constant 0 : index
    %c0_92 = arith.constant 0 : index
    %99 = vector.load %arg1[%c0_90, %c18, %c0_91, %c0_92] : memref<1x30x15x128xf32, #tpu.memory_space<vmem>>, vector<1x1x15x128xf32>
    %100 = vector.shape_cast %99 : vector<1x1x15x128xf32> to vector<15x128xf32>
    %c0_93 = arith.constant 0 : index
    %c19 = arith.constant 19 : index
    %c0_94 = arith.constant 0 : index
    %c0_95 = arith.constant 0 : index
    %101 = vector.load %arg1[%c0_93, %c19, %c0_94, %c0_95] : memref<1x30x15x128xf32, #tpu.memory_space<vmem>>, vector<1x1x15x128xf32>
    %102 = vector.shape_cast %101 : vector<1x1x15x128xf32> to vector<15x128xf32>
    %103 = arith.maximumf %100, %102 : vector<15x128xf32>
    %104 = vector.extract_strided_slice %103 {offsets = [0, 0], sizes = [15, 64], strides = [1, 1]} : vector<15x128xf32> to vector<15x64xf32>
    %105 = vector.extract_strided_slice %103 {offsets = [0, 64], sizes = [15, 64], strides = [1, 1]} : vector<15x128xf32> to vector<15x64xf32>
    %106 = arith.maximumf %104, %105 : vector<15x64xf32>
    %c0_96 = arith.constant 0 : index
    %c9_97 = arith.constant 9 : index
    %c0_98 = arith.constant 0 : index
    %c0_99 = arith.constant 0 : index
    %107 = vector.load %arg2[%c0_96, %c9_97, %c0_98, %c0_99] : memref<1x15x15x64xf32, #tpu.memory_space<vmem>>, vector<1x1x15x64xf32>
    %108 = vector.shape_cast %107 : vector<1x1x15x64xf32> to vector<15x64xf32>
    %109 = vector.shape_cast %106 : vector<15x64xf32> to vector<1x1x15x64xf32>
    tpu.vector_store %arg2[%c0_96, %c9_97, %c0_98, %c0_99], %109 {strides = array<i32>} : memref<1x15x15x64xf32, #tpu.memory_space<vmem>>, vector<1x1x15x64xf32>,
    %c0_100 = arith.constant 0 : index
    %c20 = arith.constant 20 : index
    %c0_101 = arith.constant 0 : index
    %c0_102 = arith.constant 0 : index
    %110 = vector.load %arg1[%c0_100, %c20, %c0_101, %c0_102] : memref<1x30x15x128xf32, #tpu.memory_space<vmem>>, vector<1x1x15x128xf32>
    %111 = vector.shape_cast %110 : vector<1x1x15x128xf32> to vector<15x128xf32>
    %c0_103 = arith.constant 0 : index
    %c21 = arith.constant 21 : index
    %c0_104 = arith.constant 0 : index
    %c0_105 = arith.constant 0 : index
    %112 = vector.load %arg1[%c0_103, %c21, %c0_104, %c0_105] : memref<1x30x15x128xf32, #tpu.memory_space<vmem>>, vector<1x1x15x128xf32>
    %113 = vector.shape_cast %112 : vector<1x1x15x128xf32> to vector<15x128xf32>
    %114 = arith.maximumf %111, %113 : vector<15x128xf32>
    %115 = vector.extract_strided_slice %114 {offsets = [0, 0], sizes = [15, 64], strides = [1, 1]} : vector<15x128xf32> to vector<15x64xf32>
    %116 = vector.extract_strided_slice %114 {offsets = [0, 64], sizes = [15, 64], strides = [1, 1]} : vector<15x128xf32> to vector<15x64xf32>
    %117 = arith.maximumf %115, %116 : vector<15x64xf32>
    %c0_106 = arith.constant 0 : index
    %c10_107 = arith.constant 10 : index
    %c0_108 = arith.constant 0 : index
    %c0_109 = arith.constant 0 : index
    %118 = vector.load %arg2[%c0_106, %c10_107, %c0_108, %c0_109] : memref<1x15x15x64xf32, #tpu.memory_space<vmem>>, vector<1x1x15x64xf32>
    %119 = vector.shape_cast %118 : vector<1x1x15x64xf32> to vector<15x64xf32>
    %120 = vector.shape_cast %117 : vector<15x64xf32> to vector<1x1x15x64xf32>
    tpu.vector_store %arg2[%c0_106, %c10_107, %c0_108, %c0_109], %120 {strides = array<i32>} : memref<1x15x15x64xf32, #tpu.memory_space<vmem>>, vector<1x1x15x64xf32>,
    %c0_110 = arith.constant 0 : index
    %c22 = arith.constant 22 : index
    %c0_111 = arith.constant 0 : index
    %c0_112 = arith.constant 0 : index
    %121 = vector.load %arg1[%c0_110, %c22, %c0_111, %c0_112] : memref<1x30x15x128xf32, #tpu.memory_space<vmem>>, vector<1x1x15x128xf32>
    %122 = vector.shape_cast %121 : vector<1x1x15x128xf32> to vector<15x128xf32>
    %c0_113 = arith.constant 0 : index
    %c23 = arith.constant 23 : index
    %c0_114 = arith.constant 0 : index
    %c0_115 = arith.constant 0 : index
    %123 = vector.load %arg1[%c0_113, %c23, %c0_114, %c0_115] : memref<1x30x15x128xf32, #tpu.memory_space<vmem>>, vector<1x1x15x128xf32>
    %124 = vector.shape_cast %123 : vector<1x1x15x128xf32> to vector<15x128xf32>
    %125 = arith.maximumf %122, %124 : vector<15x128xf32>
    %126 = vector.extract_strided_slice %125 {offsets = [0, 0], sizes = [15, 64], strides = [1, 1]} : vector<15x128xf32> to vector<15x64xf32>
    %127 = vector.extract_strided_slice %125 {offsets = [0, 64], sizes = [15, 64], strides = [1, 1]} : vector<15x128xf32> to vector<15x64xf32>
    %128 = arith.maximumf %126, %127 : vector<15x64xf32>
    %c0_116 = arith.constant 0 : index
    %c11_117 = arith.constant 11 : index
    %c0_118 = arith.constant 0 : index
    %c0_119 = arith.constant 0 : index
    %129 = vector.load %arg2[%c0_116, %c11_117, %c0_118, %c0_119] : memref<1x15x15x64xf32, #tpu.memory_space<vmem>>, vector<1x1x15x64xf32>
    %130 = vector.shape_cast %129 : vector<1x1x15x64xf32> to vector<15x64xf32>
    %131 = vector.shape_cast %128 : vector<15x64xf32> to vector<1x1x15x64xf32>
    tpu.vector_store %arg2[%c0_116, %c11_117, %c0_118, %c0_119], %131 {strides = array<i32>} : memref<1x15x15x64xf32, #tpu.memory_space<vmem>>, vector<1x1x15x64xf32>,
    %c0_120 = arith.constant 0 : index
    %c24 = arith.constant 24 : index
    %c0_121 = arith.constant 0 : index
    %c0_122 = arith.constant 0 : index
    %132 = vector.load %arg1[%c0_120, %c24, %c0_121, %c0_122] : memref<1x30x15x128xf32, #tpu.memory_space<vmem>>, vector<1x1x15x128xf32>
    %133 = vector.shape_cast %132 : vector<1x1x15x128xf32> to vector<15x128xf32>
    %c0_123 = arith.constant 0 : index
    %c25 = arith.constant 25 : index
    %c0_124 = arith.constant 0 : index
    %c0_125 = arith.constant 0 : index
    %134 = vector.load %arg1[%c0_123, %c25, %c0_124, %c0_125] : memref<1x30x15x128xf32, #tpu.memory_space<vmem>>, vector<1x1x15x128xf32>
    %135 = vector.shape_cast %134 : vector<1x1x15x128xf32> to vector<15x128xf32>
    %136 = arith.maximumf %133, %135 : vector<15x128xf32>
    %137 = vector.extract_strided_slice %136 {offsets = [0, 0], sizes = [15, 64], strides = [1, 1]} : vector<15x128xf32> to vector<15x64xf32>
    %138 = vector.extract_strided_slice %136 {offsets = [0, 64], sizes = [15, 64], strides = [1, 1]} : vector<15x128xf32> to vector<15x64xf32>
    %139 = arith.maximumf %137, %138 : vector<15x64xf32>
    %c0_126 = arith.constant 0 : index
    %c12_127 = arith.constant 12 : index
    %c0_128 = arith.constant 0 : index
    %c0_129 = arith.constant 0 : index
    %140 = vector.load %arg2[%c0_126, %c12_127, %c0_128, %c0_129] : memref<1x15x15x64xf32, #tpu.memory_space<vmem>>, vector<1x1x15x64xf32>
    %141 = vector.shape_cast %140 : vector<1x1x15x64xf32> to vector<15x64xf32>
    %142 = vector.shape_cast %139 : vector<15x64xf32> to vector<1x1x15x64xf32>
    tpu.vector_store %arg2[%c0_126, %c12_127, %c0_128, %c0_129], %142 {strides = array<i32>} : memref<1x15x15x64xf32, #tpu.memory_space<vmem>>, vector<1x1x15x64xf32>,
    %c0_130 = arith.constant 0 : index
    %c26 = arith.constant 26 : index
    %c0_131 = arith.constant 0 : index
    %c0_132 = arith.constant 0 : index
    %143 = vector.load %arg1[%c0_130, %c26, %c0_131, %c0_132] : memref<1x30x15x128xf32, #tpu.memory_space<vmem>>, vector<1x1x15x128xf32>
    %144 = vector.shape_cast %143 : vector<1x1x15x128xf32> to vector<15x128xf32>
    %c0_133 = arith.constant 0 : index
    %c27 = arith.constant 27 : index
    %c0_134 = arith.constant 0 : index
    %c0_135 = arith.constant 0 : index
    %145 = vector.load %arg1[%c0_133, %c27, %c0_134, %c0_135] : memref<1x30x15x128xf32, #tpu.memory_space<vmem>>, vector<1x1x15x128xf32>
    %146 = vector.shape_cast %145 : vector<1x1x15x128xf32> to vector<15x128xf32>
    %147 = arith.maximumf %144, %146 : vector<15x128xf32>
    %148 = vector.extract_strided_slice %147 {offsets = [0, 0], sizes = [15, 64], strides = [1, 1]} : vector<15x128xf32> to vector<15x64xf32>
    %149 = vector.extract_strided_slice %147 {offsets = [0, 64], sizes = [15, 64], strides = [1, 1]} : vector<15x128xf32> to vector<15x64xf32>
    %150 = arith.maximumf %148, %149 : vector<15x64xf32>
    %c0_136 = arith.constant 0 : index
    %c13_137 = arith.constant 13 : index
    %c0_138 = arith.constant 0 : index
    %c0_139 = arith.constant 0 : index
    %151 = vector.load %arg2[%c0_136, %c13_137, %c0_138, %c0_139] : memref<1x15x15x64xf32, #tpu.memory_space<vmem>>, vector<1x1x15x64xf32>
    %152 = vector.shape_cast %151 : vector<1x1x15x64xf32> to vector<15x64xf32>
    %153 = vector.shape_cast %150 : vector<15x64xf32> to vector<1x1x15x64xf32>
    tpu.vector_store %arg2[%c0_136, %c13_137, %c0_138, %c0_139], %153 {strides = array<i32>} : memref<1x15x15x64xf32, #tpu.memory_space<vmem>>, vector<1x1x15x64xf32>,
    %c0_140 = arith.constant 0 : index
    %c28 = arith.constant 28 : index
    %c0_141 = arith.constant 0 : index
    %c0_142 = arith.constant 0 : index
    %154 = vector.load %arg1[%c0_140, %c28, %c0_141, %c0_142] : memref<1x30x15x128xf32, #tpu.memory_space<vmem>>, vector<1x1x15x128xf32>
    %155 = vector.shape_cast %154 : vector<1x1x15x128xf32> to vector<15x128xf32>
    %c0_143 = arith.constant 0 : index
    %c29 = arith.constant 29 : index
    %c0_144 = arith.constant 0 : index
    %c0_145 = arith.constant 0 : index
    %156 = vector.load %arg1[%c0_143, %c29, %c0_144, %c0_145] : memref<1x30x15x128xf32, #tpu.memory_space<vmem>>, vector<1x1x15x128xf32>
    %157 = vector.shape_cast %156 : vector<1x1x15x128xf32> to vector<15x128xf32>
    %158 = arith.maximumf %155, %157 : vector<15x128xf32>
    %159 = vector.extract_strided_slice %158 {offsets = [0, 0], sizes = [15, 64], strides = [1, 1]} : vector<15x128xf32> to vector<15x64xf32>
    %160 = vector.extract_strided_slice %158 {offsets = [0, 64], sizes = [15, 64], strides = [1, 1]} : vector<15x128xf32> to vector<15x64xf32>
    %161 = arith.maximumf %159, %160 : vector<15x64xf32>
    %c0_146 = arith.constant 0 : index
    %c14_147 = arith.constant 14 : index
    %c0_148 = arith.constant 0 : index
    %c0_149 = arith.constant 0 : index
    %162 = vector.load %arg2[%c0_146, %c14_147, %c0_148, %c0_149] : memref<1x15x15x64xf32, #tpu.memory_space<vmem>>, vector<1x1x15x64xf32>
    %163 = vector.shape_cast %162 : vector<1x1x15x64xf32> to vector<15x64xf32>
    %164 = vector.shape_cast %161 : vector<15x64xf32> to vector<1x1x15x64xf32>
    tpu.vector_store %arg2[%c0_146, %c14_147, %c0_148, %c0_149], %164 {strides = array<i32>} : memref<1x15x15x64xf32, #tpu.memory_space<vmem>>, vector<1x1x15x64xf32>,
    return
  }
  func.func @transform_0(%arg0: i32) -> (i32, i32, i32, i32) {
    %c0_i32 = arith.constant 0 : i32
    %c0_i32_0 = arith.constant 0 : i32
    %c0_i32_1 = arith.constant 0 : i32
    %c0_i32_2 = arith.constant 0 : i32
    return %arg0, %c0_i32, %c0_i32_0, %c0_i32_1 : i32, i32, i32, i32
  }
  func.func @transform_1(%arg0: i32) -> (i32, i32, i32, i32) {
    %c0_i32 = arith.constant 0 : i32
    %c0_i32_0 = arith.constant 0 : i32
    %c0_i32_1 = arith.constant 0 : i32
    %c0_i32_2 = arith.constant 0 : i32
    return %arg0, %c0_i32, %c0_i32_0, %c0_i32_1 : i32, i32, i32, i32
  }
}

module attributes {stable_mosaic.version = 11 : i64} {
  func.func @_conv_matmul_kernel(%arg0: i32, %arg1: memref<338x576xf32, #tpu.memory_space<vmem>>, %arg2: memref<576x128xf32, #tpu.memory_space<vmem>>, %arg3: memref<3x128xf32, #tpu.memory_space<vmem>>, %arg4: memref<338x128xf32, #tpu.memory_space<vmem>>) attributes {dimension_semantics = [#tpu.dimension_semantics<parallel>], iteration_bounds = array<i64: 1>, scalar_prefetch = 0 : i64, scratch_operands = 0 : i64, tpu.core_type = #tpu.core_type<tc>, window_params = [{transform_indices = @transform_0, window_bounds = array<i64: 338, 576>}, {pipeline_mode = #tpu.pipeline_mode<synchronous>, transform_indices = @transform_1, window_bounds = array<i64: 576, 128>}, {pipeline_mode = #tpu.pipeline_mode<synchronous>, transform_indices = @transform_2, window_bounds = array<i64: 3, 128>}, {transform_indices = @transform_3, window_bounds = array<i64: 338, 128>}]} {
    %c0 = arith.constant 0 : index
    %c0_0 = arith.constant 0 : index
    %0 = vector.load %arg1[%c0, %c0_0] : memref<338x576xf32, #tpu.memory_space<vmem>>, vector<338x576xf32>
    %c0_1 = arith.constant 0 : index
    %c0_2 = arith.constant 0 : index
    %1 = vector.load %arg2[%c0_1, %c0_2] : memref<576x128xf32, #tpu.memory_space<vmem>>, vector<576x128xf32>
    %cst = arith.constant dense<0.000000e+00> : vector<338x128xf32>
    %2 = tpu.matmul %0, %1, %cst {dimension_numbers = #tpu.dot_dimension_numbers<[1], [0], [0], [1], [0, 0, 1, 1], [], []>} : vector<338x576xf32>, vector<576x128xf32>, vector<338x128xf32> -> vector<338x128xf32>
    %c0_3 = arith.constant 0 : index
    %c0_4 = arith.constant 0 : index
    %3 = vector.load %arg3[%c0_3, %c0_4] : memref<3x128xf32, #tpu.memory_space<vmem>>, vector<1x128xf32>
    %4 = vector.broadcast %3 : vector<1x128xf32> to vector<338x128xf32>
    %5 = arith.addf %2, %4 : vector<338x128xf32>
    %cst_5 = arith.constant 0.000000e+00 : f32
    %6 = vector.broadcast %cst_5 : f32 to vector<338x128xf32>
    %7 = arith.maximumf %5, %6 : vector<338x128xf32>
    %c1 = arith.constant 1 : index
    %c0_6 = arith.constant 0 : index
    %8 = vector.load %arg3[%c1, %c0_6] : memref<3x128xf32, #tpu.memory_space<vmem>>, vector<1x128xf32>
    %9 = vector.broadcast %8 : vector<1x128xf32> to vector<338x128xf32>
    %10 = arith.mulf %7, %9 : vector<338x128xf32>
    %c2 = arith.constant 2 : index
    %c0_7 = arith.constant 0 : index
    %11 = vector.load %arg3[%c2, %c0_7] : memref<3x128xf32, #tpu.memory_space<vmem>>, vector<1x128xf32>
    %12 = vector.broadcast %11 : vector<1x128xf32> to vector<338x128xf32>
    %13 = arith.addf %10, %12 : vector<338x128xf32>
    %c0_8 = arith.constant 0 : index
    %c0_9 = arith.constant 0 : index
    %14 = vector.load %arg4[%c0_8, %c0_9] : memref<338x128xf32, #tpu.memory_space<vmem>>, vector<338x128xf32>
    tpu.vector_store %arg4[%c0_8, %c0_9], %13 {strides = array<i32>} : memref<338x128xf32, #tpu.memory_space<vmem>>, vector<338x128xf32>,
    return
  }
  func.func @transform_0(%arg0: i32) -> (i32, i32) {
    %c0_i32 = arith.constant 0 : i32
    %c0_i32_0 = arith.constant 0 : i32
    return %arg0, %c0_i32 : i32, i32
  }
  func.func @transform_1(%arg0: i32) -> (i32, i32) {
    %c0_i32 = arith.constant 0 : i32
    %c0_i32_0 = arith.constant 0 : i32
    %c0_i32_1 = arith.constant 0 : i32
    return %c0_i32, %c0_i32_0 : i32, i32
  }
  func.func @transform_2(%arg0: i32) -> (i32, i32) {
    %c0_i32 = arith.constant 0 : i32
    %c0_i32_0 = arith.constant 0 : i32
    %c0_i32_1 = arith.constant 0 : i32
    return %c0_i32, %c0_i32_0 : i32, i32
  }
  func.func @transform_3(%arg0: i32) -> (i32, i32) {
    %c0_i32 = arith.constant 0 : i32
    %c0_i32_0 = arith.constant 0 : i32
    return %arg0, %c0_i32 : i32, i32
  }
}

module attributes {stable_mosaic.version = 11 : i64} {
  func.func @_pool_nhwc_kernel(%arg0: i32, %arg1: memref<1x13x13x128xf32, #tpu.memory_space<vmem>>, %arg2: memref<1x6x6x128xf32, #tpu.memory_space<vmem>>) attributes {dimension_semantics = [#tpu.dimension_semantics<parallel>], iteration_bounds = array<i64: 2>, scalar_prefetch = 0 : i64, scratch_operands = 0 : i64, tpu.core_type = #tpu.core_type<tc>, window_params = [{transform_indices = @transform_0, window_bounds = array<i64: 1, 13, 13, 128>}, {transform_indices = @transform_1, window_bounds = array<i64: 1, 6, 6, 128>}]} {
    %c0 = arith.constant 0 : index
    %c0_0 = arith.constant 0 : index
    %c0_1 = arith.constant 0 : index
    %c0_2 = arith.constant 0 : index
    %0 = vector.load %arg1[%c0, %c0_0, %c0_1, %c0_2] : memref<1x13x13x128xf32, #tpu.memory_space<vmem>>, vector<1x1x13x128xf32>
    %1 = vector.shape_cast %0 : vector<1x1x13x128xf32> to vector<13x128xf32>
    %c0_3 = arith.constant 0 : index
    %c1 = arith.constant 1 : index
    %c0_4 = arith.constant 0 : index
    %c0_5 = arith.constant 0 : index
    %2 = vector.load %arg1[%c0_3, %c1, %c0_4, %c0_5] : memref<1x13x13x128xf32, #tpu.memory_space<vmem>>, vector<1x1x13x128xf32>
    %3 = vector.shape_cast %2 : vector<1x1x13x128xf32> to vector<13x128xf32>
    %4 = arith.maximumf %1, %3 : vector<13x128xf32>
    %5 = vector.extract_strided_slice %4 {offsets = [0, 0], sizes = [1, 128], strides = [1, 1]} : vector<13x128xf32> to vector<1x128xf32>
    %6 = vector.extract_strided_slice %4 {offsets = [1, 0], sizes = [1, 128], strides = [1, 1]} : vector<13x128xf32> to vector<1x128xf32>
    %7 = arith.maximumf %5, %6 : vector<1x128xf32>
    %8 = vector.extract_strided_slice %4 {offsets = [2, 0], sizes = [1, 128], strides = [1, 1]} : vector<13x128xf32> to vector<1x128xf32>
    %9 = vector.extract_strided_slice %4 {offsets = [3, 0], sizes = [1, 128], strides = [1, 1]} : vector<13x128xf32> to vector<1x128xf32>
    %10 = arith.maximumf %8, %9 : vector<1x128xf32>
    %11 = vector.extract_strided_slice %4 {offsets = [4, 0], sizes = [1, 128], strides = [1, 1]} : vector<13x128xf32> to vector<1x128xf32>
    %12 = vector.extract_strided_slice %4 {offsets = [5, 0], sizes = [1, 128], strides = [1, 1]} : vector<13x128xf32> to vector<1x128xf32>
    %13 = arith.maximumf %11, %12 : vector<1x128xf32>
    %14 = vector.extract_strided_slice %4 {offsets = [6, 0], sizes = [1, 128], strides = [1, 1]} : vector<13x128xf32> to vector<1x128xf32>
    %15 = vector.extract_strided_slice %4 {offsets = [7, 0], sizes = [1, 128], strides = [1, 1]} : vector<13x128xf32> to vector<1x128xf32>
    %16 = arith.maximumf %14, %15 : vector<1x128xf32>
    %17 = vector.extract_strided_slice %4 {offsets = [8, 0], sizes = [1, 128], strides = [1, 1]} : vector<13x128xf32> to vector<1x128xf32>
    %18 = vector.extract_strided_slice %4 {offsets = [9, 0], sizes = [1, 128], strides = [1, 1]} : vector<13x128xf32> to vector<1x128xf32>
    %19 = arith.maximumf %17, %18 : vector<1x128xf32>
    %20 = vector.extract_strided_slice %4 {offsets = [10, 0], sizes = [1, 128], strides = [1, 1]} : vector<13x128xf32> to vector<1x128xf32>
    %21 = vector.extract_strided_slice %4 {offsets = [11, 0], sizes = [1, 128], strides = [1, 1]} : vector<13x128xf32> to vector<1x128xf32>
    %22 = arith.maximumf %20, %21 : vector<1x128xf32>
    %23 = tpu.concatenate %7, %10, %13, %16, %19, %22 in 0 : vector<1x128xf32>, vector<1x128xf32>, vector<1x128xf32>, vector<1x128xf32>, vector<1x128xf32>, vector<1x128xf32> -> vector<6x128xf32>
    %c0_6 = arith.constant 0 : index
    %c0_7 = arith.constant 0 : index
    %c0_8 = arith.constant 0 : index
    %c0_9 = arith.constant 0 : index
    %24 = vector.load %arg2[%c0_6, %c0_7, %c0_8, %c0_9] : memref<1x6x6x128xf32, #tpu.memory_space<vmem>>, vector<1x1x6x128xf32>
    %25 = vector.shape_cast %24 : vector<1x1x6x128xf32> to vector<6x128xf32>
    %26 = vector.shape_cast %23 : vector<6x128xf32> to vector<1x1x6x128xf32>
    tpu.vector_store %arg2[%c0_6, %c0_7, %c0_8, %c0_9], %26 {strides = array<i32>} : memref<1x6x6x128xf32, #tpu.memory_space<vmem>>, vector<1x1x6x128xf32>,
    %c0_10 = arith.constant 0 : index
    %c2 = arith.constant 2 : index
    %c0_11 = arith.constant 0 : index
    %c0_12 = arith.constant 0 : index
    %27 = vector.load %arg1[%c0_10, %c2, %c0_11, %c0_12] : memref<1x13x13x128xf32, #tpu.memory_space<vmem>>, vector<1x1x13x128xf32>
    %28 = vector.shape_cast %27 : vector<1x1x13x128xf32> to vector<13x128xf32>
    %c0_13 = arith.constant 0 : index
    %c3 = arith.constant 3 : index
    %c0_14 = arith.constant 0 : index
    %c0_15 = arith.constant 0 : index
    %29 = vector.load %arg1[%c0_13, %c3, %c0_14, %c0_15] : memref<1x13x13x128xf32, #tpu.memory_space<vmem>>, vector<1x1x13x128xf32>
    %30 = vector.shape_cast %29 : vector<1x1x13x128xf32> to vector<13x128xf32>
    %31 = arith.maximumf %28, %30 : vector<13x128xf32>
    %32 = vector.extract_strided_slice %31 {offsets = [0, 0], sizes = [1, 128], strides = [1, 1]} : vector<13x128xf32> to vector<1x128xf32>
    %33 = vector.extract_strided_slice %31 {offsets = [1, 0], sizes = [1, 128], strides = [1, 1]} : vector<13x128xf32> to vector<1x128xf32>
    %34 = arith.maximumf %32, %33 : vector<1x128xf32>
    %35 = vector.extract_strided_slice %31 {offsets = [2, 0], sizes = [1, 128], strides = [1, 1]} : vector<13x128xf32> to vector<1x128xf32>
    %36 = vector.extract_strided_slice %31 {offsets = [3, 0], sizes = [1, 128], strides = [1, 1]} : vector<13x128xf32> to vector<1x128xf32>
    %37 = arith.maximumf %35, %36 : vector<1x128xf32>
    %38 = vector.extract_strided_slice %31 {offsets = [4, 0], sizes = [1, 128], strides = [1, 1]} : vector<13x128xf32> to vector<1x128xf32>
    %39 = vector.extract_strided_slice %31 {offsets = [5, 0], sizes = [1, 128], strides = [1, 1]} : vector<13x128xf32> to vector<1x128xf32>
    %40 = arith.maximumf %38, %39 : vector<1x128xf32>
    %41 = vector.extract_strided_slice %31 {offsets = [6, 0], sizes = [1, 128], strides = [1, 1]} : vector<13x128xf32> to vector<1x128xf32>
    %42 = vector.extract_strided_slice %31 {offsets = [7, 0], sizes = [1, 128], strides = [1, 1]} : vector<13x128xf32> to vector<1x128xf32>
    %43 = arith.maximumf %41, %42 : vector<1x128xf32>
    %44 = vector.extract_strided_slice %31 {offsets = [8, 0], sizes = [1, 128], strides = [1, 1]} : vector<13x128xf32> to vector<1x128xf32>
    %45 = vector.extract_strided_slice %31 {offsets = [9, 0], sizes = [1, 128], strides = [1, 1]} : vector<13x128xf32> to vector<1x128xf32>
    %46 = arith.maximumf %44, %45 : vector<1x128xf32>
    %47 = vector.extract_strided_slice %31 {offsets = [10, 0], sizes = [1, 128], strides = [1, 1]} : vector<13x128xf32> to vector<1x128xf32>
    %48 = vector.extract_strided_slice %31 {offsets = [11, 0], sizes = [1, 128], strides = [1, 1]} : vector<13x128xf32> to vector<1x128xf32>
    %49 = arith.maximumf %47, %48 : vector<1x128xf32>
    %50 = tpu.concatenate %34, %37, %40, %43, %46, %49 in 0 : vector<1x128xf32>, vector<1x128xf32>, vector<1x128xf32>, vector<1x128xf32>, vector<1x128xf32>, vector<1x128xf32> -> vector<6x128xf32>
    %c0_16 = arith.constant 0 : index
    %c1_17 = arith.constant 1 : index
    %c0_18 = arith.constant 0 : index
    %c0_19 = arith.constant 0 : index
    %51 = vector.load %arg2[%c0_16, %c1_17, %c0_18, %c0_19] : memref<1x6x6x128xf32, #tpu.memory_space<vmem>>, vector<1x1x6x128xf32>
    %52 = vector.shape_cast %51 : vector<1x1x6x128xf32> to vector<6x128xf32>
    %53 = vector.shape_cast %50 : vector<6x128xf32> to vector<1x1x6x128xf32>
    tpu.vector_store %arg2[%c0_16, %c1_17, %c0_18, %c0_19], %53 {strides = array<i32>} : memref<1x6x6x128xf32, #tpu.memory_space<vmem>>, vector<1x1x6x128xf32>,
    %c0_20 = arith.constant 0 : index
    %c4 = arith.constant 4 : index
    %c0_21 = arith.constant 0 : index
    %c0_22 = arith.constant 0 : index
    %54 = vector.load %arg1[%c0_20, %c4, %c0_21, %c0_22] : memref<1x13x13x128xf32, #tpu.memory_space<vmem>>, vector<1x1x13x128xf32>
    %55 = vector.shape_cast %54 : vector<1x1x13x128xf32> to vector<13x128xf32>
    %c0_23 = arith.constant 0 : index
    %c5 = arith.constant 5 : index
    %c0_24 = arith.constant 0 : index
    %c0_25 = arith.constant 0 : index
    %56 = vector.load %arg1[%c0_23, %c5, %c0_24, %c0_25] : memref<1x13x13x128xf32, #tpu.memory_space<vmem>>, vector<1x1x13x128xf32>
    %57 = vector.shape_cast %56 : vector<1x1x13x128xf32> to vector<13x128xf32>
    %58 = arith.maximumf %55, %57 : vector<13x128xf32>
    %59 = vector.extract_strided_slice %58 {offsets = [0, 0], sizes = [1, 128], strides = [1, 1]} : vector<13x128xf32> to vector<1x128xf32>
    %60 = vector.extract_strided_slice %58 {offsets = [1, 0], sizes = [1, 128], strides = [1, 1]} : vector<13x128xf32> to vector<1x128xf32>
    %61 = arith.maximumf %59, %60 : vector<1x128xf32>
    %62 = vector.extract_strided_slice %58 {offsets = [2, 0], sizes = [1, 128], strides = [1, 1]} : vector<13x128xf32> to vector<1x128xf32>
    %63 = vector.extract_strided_slice %58 {offsets = [3, 0], sizes = [1, 128], strides = [1, 1]} : vector<13x128xf32> to vector<1x128xf32>
    %64 = arith.maximumf %62, %63 : vector<1x128xf32>
    %65 = vector.extract_strided_slice %58 {offsets = [4, 0], sizes = [1, 128], strides = [1, 1]} : vector<13x128xf32> to vector<1x128xf32>
    %66 = vector.extract_strided_slice %58 {offsets = [5, 0], sizes = [1, 128], strides = [1, 1]} : vector<13x128xf32> to vector<1x128xf32>
    %67 = arith.maximumf %65, %66 : vector<1x128xf32>
    %68 = vector.extract_strided_slice %58 {offsets = [6, 0], sizes = [1, 128], strides = [1, 1]} : vector<13x128xf32> to vector<1x128xf32>
    %69 = vector.extract_strided_slice %58 {offsets = [7, 0], sizes = [1, 128], strides = [1, 1]} : vector<13x128xf32> to vector<1x128xf32>
    %70 = arith.maximumf %68, %69 : vector<1x128xf32>
    %71 = vector.extract_strided_slice %58 {offsets = [8, 0], sizes = [1, 128], strides = [1, 1]} : vector<13x128xf32> to vector<1x128xf32>
    %72 = vector.extract_strided_slice %58 {offsets = [9, 0], sizes = [1, 128], strides = [1, 1]} : vector<13x128xf32> to vector<1x128xf32>
    %73 = arith.maximumf %71, %72 : vector<1x128xf32>
    %74 = vector.extract_strided_slice %58 {offsets = [10, 0], sizes = [1, 128], strides = [1, 1]} : vector<13x128xf32> to vector<1x128xf32>
    %75 = vector.extract_strided_slice %58 {offsets = [11, 0], sizes = [1, 128], strides = [1, 1]} : vector<13x128xf32> to vector<1x128xf32>
    %76 = arith.maximumf %74, %75 : vector<1x128xf32>
    %77 = tpu.concatenate %61, %64, %67, %70, %73, %76 in 0 : vector<1x128xf32>, vector<1x128xf32>, vector<1x128xf32>, vector<1x128xf32>, vector<1x128xf32>, vector<1x128xf32> -> vector<6x128xf32>
    %c0_26 = arith.constant 0 : index
    %c2_27 = arith.constant 2 : index
    %c0_28 = arith.constant 0 : index
    %c0_29 = arith.constant 0 : index
    %78 = vector.load %arg2[%c0_26, %c2_27, %c0_28, %c0_29] : memref<1x6x6x128xf32, #tpu.memory_space<vmem>>, vector<1x1x6x128xf32>
    %79 = vector.shape_cast %78 : vector<1x1x6x128xf32> to vector<6x128xf32>
    %80 = vector.shape_cast %77 : vector<6x128xf32> to vector<1x1x6x128xf32>
    tpu.vector_store %arg2[%c0_26, %c2_27, %c0_28, %c0_29], %80 {strides = array<i32>} : memref<1x6x6x128xf32, #tpu.memory_space<vmem>>, vector<1x1x6x128xf32>,
    %c0_30 = arith.constant 0 : index
    %c6 = arith.constant 6 : index
    %c0_31 = arith.constant 0 : index
    %c0_32 = arith.constant 0 : index
    %81 = vector.load %arg1[%c0_30, %c6, %c0_31, %c0_32] : memref<1x13x13x128xf32, #tpu.memory_space<vmem>>, vector<1x1x13x128xf32>
    %82 = vector.shape_cast %81 : vector<1x1x13x128xf32> to vector<13x128xf32>
    %c0_33 = arith.constant 0 : index
    %c7 = arith.constant 7 : index
    %c0_34 = arith.constant 0 : index
    %c0_35 = arith.constant 0 : index
    %83 = vector.load %arg1[%c0_33, %c7, %c0_34, %c0_35] : memref<1x13x13x128xf32, #tpu.memory_space<vmem>>, vector<1x1x13x128xf32>
    %84 = vector.shape_cast %83 : vector<1x1x13x128xf32> to vector<13x128xf32>
    %85 = arith.maximumf %82, %84 : vector<13x128xf32>
    %86 = vector.extract_strided_slice %85 {offsets = [0, 0], sizes = [1, 128], strides = [1, 1]} : vector<13x128xf32> to vector<1x128xf32>
    %87 = vector.extract_strided_slice %85 {offsets = [1, 0], sizes = [1, 128], strides = [1, 1]} : vector<13x128xf32> to vector<1x128xf32>
    %88 = arith.maximumf %86, %87 : vector<1x128xf32>
    %89 = vector.extract_strided_slice %85 {offsets = [2, 0], sizes = [1, 128], strides = [1, 1]} : vector<13x128xf32> to vector<1x128xf32>
    %90 = vector.extract_strided_slice %85 {offsets = [3, 0], sizes = [1, 128], strides = [1, 1]} : vector<13x128xf32> to vector<1x128xf32>
    %91 = arith.maximumf %89, %90 : vector<1x128xf32>
    %92 = vector.extract_strided_slice %85 {offsets = [4, 0], sizes = [1, 128], strides = [1, 1]} : vector<13x128xf32> to vector<1x128xf32>
    %93 = vector.extract_strided_slice %85 {offsets = [5, 0], sizes = [1, 128], strides = [1, 1]} : vector<13x128xf32> to vector<1x128xf32>
    %94 = arith.maximumf %92, %93 : vector<1x128xf32>
    %95 = vector.extract_strided_slice %85 {offsets = [6, 0], sizes = [1, 128], strides = [1, 1]} : vector<13x128xf32> to vector<1x128xf32>
    %96 = vector.extract_strided_slice %85 {offsets = [7, 0], sizes = [1, 128], strides = [1, 1]} : vector<13x128xf32> to vector<1x128xf32>
    %97 = arith.maximumf %95, %96 : vector<1x128xf32>
    %98 = vector.extract_strided_slice %85 {offsets = [8, 0], sizes = [1, 128], strides = [1, 1]} : vector<13x128xf32> to vector<1x128xf32>
    %99 = vector.extract_strided_slice %85 {offsets = [9, 0], sizes = [1, 128], strides = [1, 1]} : vector<13x128xf32> to vector<1x128xf32>
    %100 = arith.maximumf %98, %99 : vector<1x128xf32>
    %101 = vector.extract_strided_slice %85 {offsets = [10, 0], sizes = [1, 128], strides = [1, 1]} : vector<13x128xf32> to vector<1x128xf32>
    %102 = vector.extract_strided_slice %85 {offsets = [11, 0], sizes = [1, 128], strides = [1, 1]} : vector<13x128xf32> to vector<1x128xf32>
    %103 = arith.maximumf %101, %102 : vector<1x128xf32>
    %104 = tpu.concatenate %88, %91, %94, %97, %100, %103 in 0 : vector<1x128xf32>, vector<1x128xf32>, vector<1x128xf32>, vector<1x128xf32>, vector<1x128xf32>, vector<1x128xf32> -> vector<6x128xf32>
    %c0_36 = arith.constant 0 : index
    %c3_37 = arith.constant 3 : index
    %c0_38 = arith.constant 0 : index
    %c0_39 = arith.constant 0 : index
    %105 = vector.load %arg2[%c0_36, %c3_37, %c0_38, %c0_39] : memref<1x6x6x128xf32, #tpu.memory_space<vmem>>, vector<1x1x6x128xf32>
    %106 = vector.shape_cast %105 : vector<1x1x6x128xf32> to vector<6x128xf32>
    %107 = vector.shape_cast %104 : vector<6x128xf32> to vector<1x1x6x128xf32>
    tpu.vector_store %arg2[%c0_36, %c3_37, %c0_38, %c0_39], %107 {strides = array<i32>} : memref<1x6x6x128xf32, #tpu.memory_space<vmem>>, vector<1x1x6x128xf32>,
    %c0_40 = arith.constant 0 : index
    %c8 = arith.constant 8 : index
    %c0_41 = arith.constant 0 : index
    %c0_42 = arith.constant 0 : index
    %108 = vector.load %arg1[%c0_40, %c8, %c0_41, %c0_42] : memref<1x13x13x128xf32, #tpu.memory_space<vmem>>, vector<1x1x13x128xf32>
    %109 = vector.shape_cast %108 : vector<1x1x13x128xf32> to vector<13x128xf32>
    %c0_43 = arith.constant 0 : index
    %c9 = arith.constant 9 : index
    %c0_44 = arith.constant 0 : index
    %c0_45 = arith.constant 0 : index
    %110 = vector.load %arg1[%c0_43, %c9, %c0_44, %c0_45] : memref<1x13x13x128xf32, #tpu.memory_space<vmem>>, vector<1x1x13x128xf32>
    %111 = vector.shape_cast %110 : vector<1x1x13x128xf32> to vector<13x128xf32>
    %112 = arith.maximumf %109, %111 : vector<13x128xf32>
    %113 = vector.extract_strided_slice %112 {offsets = [0, 0], sizes = [1, 128], strides = [1, 1]} : vector<13x128xf32> to vector<1x128xf32>
    %114 = vector.extract_strided_slice %112 {offsets = [1, 0], sizes = [1, 128], strides = [1, 1]} : vector<13x128xf32> to vector<1x128xf32>
    %115 = arith.maximumf %113, %114 : vector<1x128xf32>
    %116 = vector.extract_strided_slice %112 {offsets = [2, 0], sizes = [1, 128], strides = [1, 1]} : vector<13x128xf32> to vector<1x128xf32>
    %117 = vector.extract_strided_slice %112 {offsets = [3, 0], sizes = [1, 128], strides = [1, 1]} : vector<13x128xf32> to vector<1x128xf32>
    %118 = arith.maximumf %116, %117 : vector<1x128xf32>
    %119 = vector.extract_strided_slice %112 {offsets = [4, 0], sizes = [1, 128], strides = [1, 1]} : vector<13x128xf32> to vector<1x128xf32>
    %120 = vector.extract_strided_slice %112 {offsets = [5, 0], sizes = [1, 128], strides = [1, 1]} : vector<13x128xf32> to vector<1x128xf32>
    %121 = arith.maximumf %119, %120 : vector<1x128xf32>
    %122 = vector.extract_strided_slice %112 {offsets = [6, 0], sizes = [1, 128], strides = [1, 1]} : vector<13x128xf32> to vector<1x128xf32>
    %123 = vector.extract_strided_slice %112 {offsets = [7, 0], sizes = [1, 128], strides = [1, 1]} : vector<13x128xf32> to vector<1x128xf32>
    %124 = arith.maximumf %122, %123 : vector<1x128xf32>
    %125 = vector.extract_strided_slice %112 {offsets = [8, 0], sizes = [1, 128], strides = [1, 1]} : vector<13x128xf32> to vector<1x128xf32>
    %126 = vector.extract_strided_slice %112 {offsets = [9, 0], sizes = [1, 128], strides = [1, 1]} : vector<13x128xf32> to vector<1x128xf32>
    %127 = arith.maximumf %125, %126 : vector<1x128xf32>
    %128 = vector.extract_strided_slice %112 {offsets = [10, 0], sizes = [1, 128], strides = [1, 1]} : vector<13x128xf32> to vector<1x128xf32>
    %129 = vector.extract_strided_slice %112 {offsets = [11, 0], sizes = [1, 128], strides = [1, 1]} : vector<13x128xf32> to vector<1x128xf32>
    %130 = arith.maximumf %128, %129 : vector<1x128xf32>
    %131 = tpu.concatenate %115, %118, %121, %124, %127, %130 in 0 : vector<1x128xf32>, vector<1x128xf32>, vector<1x128xf32>, vector<1x128xf32>, vector<1x128xf32>, vector<1x128xf32> -> vector<6x128xf32>
    %c0_46 = arith.constant 0 : index
    %c4_47 = arith.constant 4 : index
    %c0_48 = arith.constant 0 : index
    %c0_49 = arith.constant 0 : index
    %132 = vector.load %arg2[%c0_46, %c4_47, %c0_48, %c0_49] : memref<1x6x6x128xf32, #tpu.memory_space<vmem>>, vector<1x1x6x128xf32>
    %133 = vector.shape_cast %132 : vector<1x1x6x128xf32> to vector<6x128xf32>
    %134 = vector.shape_cast %131 : vector<6x128xf32> to vector<1x1x6x128xf32>
    tpu.vector_store %arg2[%c0_46, %c4_47, %c0_48, %c0_49], %134 {strides = array<i32>} : memref<1x6x6x128xf32, #tpu.memory_space<vmem>>, vector<1x1x6x128xf32>,
    %c0_50 = arith.constant 0 : index
    %c10 = arith.constant 10 : index
    %c0_51 = arith.constant 0 : index
    %c0_52 = arith.constant 0 : index
    %135 = vector.load %arg1[%c0_50, %c10, %c0_51, %c0_52] : memref<1x13x13x128xf32, #tpu.memory_space<vmem>>, vector<1x1x13x128xf32>
    %136 = vector.shape_cast %135 : vector<1x1x13x128xf32> to vector<13x128xf32>
    %c0_53 = arith.constant 0 : index
    %c11 = arith.constant 11 : index
    %c0_54 = arith.constant 0 : index
    %c0_55 = arith.constant 0 : index
    %137 = vector.load %arg1[%c0_53, %c11, %c0_54, %c0_55] : memref<1x13x13x128xf32, #tpu.memory_space<vmem>>, vector<1x1x13x128xf32>
    %138 = vector.shape_cast %137 : vector<1x1x13x128xf32> to vector<13x128xf32>
    %139 = arith.maximumf %136, %138 : vector<13x128xf32>
    %140 = vector.extract_strided_slice %139 {offsets = [0, 0], sizes = [1, 128], strides = [1, 1]} : vector<13x128xf32> to vector<1x128xf32>
    %141 = vector.extract_strided_slice %139 {offsets = [1, 0], sizes = [1, 128], strides = [1, 1]} : vector<13x128xf32> to vector<1x128xf32>
    %142 = arith.maximumf %140, %141 : vector<1x128xf32>
    %143 = vector.extract_strided_slice %139 {offsets = [2, 0], sizes = [1, 128], strides = [1, 1]} : vector<13x128xf32> to vector<1x128xf32>
    %144 = vector.extract_strided_slice %139 {offsets = [3, 0], sizes = [1, 128], strides = [1, 1]} : vector<13x128xf32> to vector<1x128xf32>
    %145 = arith.maximumf %143, %144 : vector<1x128xf32>
    %146 = vector.extract_strided_slice %139 {offsets = [4, 0], sizes = [1, 128], strides = [1, 1]} : vector<13x128xf32> to vector<1x128xf32>
    %147 = vector.extract_strided_slice %139 {offsets = [5, 0], sizes = [1, 128], strides = [1, 1]} : vector<13x128xf32> to vector<1x128xf32>
    %148 = arith.maximumf %146, %147 : vector<1x128xf32>
    %149 = vector.extract_strided_slice %139 {offsets = [6, 0], sizes = [1, 128], strides = [1, 1]} : vector<13x128xf32> to vector<1x128xf32>
    %150 = vector.extract_strided_slice %139 {offsets = [7, 0], sizes = [1, 128], strides = [1, 1]} : vector<13x128xf32> to vector<1x128xf32>
    %151 = arith.maximumf %149, %150 : vector<1x128xf32>
    %152 = vector.extract_strided_slice %139 {offsets = [8, 0], sizes = [1, 128], strides = [1, 1]} : vector<13x128xf32> to vector<1x128xf32>
    %153 = vector.extract_strided_slice %139 {offsets = [9, 0], sizes = [1, 128], strides = [1, 1]} : vector<13x128xf32> to vector<1x128xf32>
    %154 = arith.maximumf %152, %153 : vector<1x128xf32>
    %155 = vector.extract_strided_slice %139 {offsets = [10, 0], sizes = [1, 128], strides = [1, 1]} : vector<13x128xf32> to vector<1x128xf32>
    %156 = vector.extract_strided_slice %139 {offsets = [11, 0], sizes = [1, 128], strides = [1, 1]} : vector<13x128xf32> to vector<1x128xf32>
    %157 = arith.maximumf %155, %156 : vector<1x128xf32>
    %158 = tpu.concatenate %142, %145, %148, %151, %154, %157 in 0 : vector<1x128xf32>, vector<1x128xf32>, vector<1x128xf32>, vector<1x128xf32>, vector<1x128xf32>, vector<1x128xf32> -> vector<6x128xf32>
    %c0_56 = arith.constant 0 : index
    %c5_57 = arith.constant 5 : index
    %c0_58 = arith.constant 0 : index
    %c0_59 = arith.constant 0 : index
    %159 = vector.load %arg2[%c0_56, %c5_57, %c0_58, %c0_59] : memref<1x6x6x128xf32, #tpu.memory_space<vmem>>, vector<1x1x6x128xf32>
    %160 = vector.shape_cast %159 : vector<1x1x6x128xf32> to vector<6x128xf32>
    %161 = vector.shape_cast %158 : vector<6x128xf32> to vector<1x1x6x128xf32>
    tpu.vector_store %arg2[%c0_56, %c5_57, %c0_58, %c0_59], %161 {strides = array<i32>} : memref<1x6x6x128xf32, #tpu.memory_space<vmem>>, vector<1x1x6x128xf32>,
    return
  }
  func.func @transform_0(%arg0: i32) -> (i32, i32, i32, i32) {
    %c0_i32 = arith.constant 0 : i32
    %c0_i32_0 = arith.constant 0 : i32
    %c0_i32_1 = arith.constant 0 : i32
    %c0_i32_2 = arith.constant 0 : i32
    return %arg0, %c0_i32, %c0_i32_0, %c0_i32_1 : i32, i32, i32, i32
  }
  func.func @transform_1(%arg0: i32) -> (i32, i32, i32, i32) {
    %c0_i32 = arith.constant 0 : i32
    %c0_i32_0 = arith.constant 0 : i32
    %c0_i32_1 = arith.constant 0 : i32
    %c0_i32_2 = arith.constant 0 : i32
    return %arg0, %c0_i32, %c0_i32_0, %c0_i32_1 : i32, i32, i32, i32
  }
}

module attributes {stable_mosaic.version = 11 : i64} {
  func.func @_conv_matmul_kernel(%arg0: i32, %arg1: memref<32x1152xf32, #tpu.memory_space<vmem>>, %arg2: memref<1152x256xf32, #tpu.memory_space<vmem>>, %arg3: memref<3x256xf32, #tpu.memory_space<vmem>>, %arg4: memref<32x256xf32, #tpu.memory_space<vmem>>) attributes {dimension_semantics = [#tpu.dimension_semantics<parallel>], iteration_bounds = array<i64: 1>, scalar_prefetch = 0 : i64, scratch_operands = 0 : i64, tpu.core_type = #tpu.core_type<tc>, window_params = [{transform_indices = @transform_0, window_bounds = array<i64: 32, 1152>}, {pipeline_mode = #tpu.pipeline_mode<synchronous>, transform_indices = @transform_1, window_bounds = array<i64: 1152, 256>}, {pipeline_mode = #tpu.pipeline_mode<synchronous>, transform_indices = @transform_2, window_bounds = array<i64: 3, 256>}, {transform_indices = @transform_3, window_bounds = array<i64: 32, 256>}]} {
    %c0 = arith.constant 0 : index
    %c0_0 = arith.constant 0 : index
    %0 = vector.load %arg1[%c0, %c0_0] : memref<32x1152xf32, #tpu.memory_space<vmem>>, vector<32x1152xf32>
    %c0_1 = arith.constant 0 : index
    %c0_2 = arith.constant 0 : index
    %1 = vector.load %arg2[%c0_1, %c0_2] : memref<1152x256xf32, #tpu.memory_space<vmem>>, vector<1152x256xf32>
    %cst = arith.constant dense<0.000000e+00> : vector<32x256xf32>
    %2 = tpu.matmul %0, %1, %cst {dimension_numbers = #tpu.dot_dimension_numbers<[1], [0], [0], [1], [0, 0, 1, 1], [], []>} : vector<32x1152xf32>, vector<1152x256xf32>, vector<32x256xf32> -> vector<32x256xf32>
    %c0_3 = arith.constant 0 : index
    %c0_4 = arith.constant 0 : index
    %3 = vector.load %arg3[%c0_3, %c0_4] : memref<3x256xf32, #tpu.memory_space<vmem>>, vector<1x256xf32>
    %4 = vector.broadcast %3 : vector<1x256xf32> to vector<32x256xf32>
    %5 = arith.addf %2, %4 : vector<32x256xf32>
    %cst_5 = arith.constant 0.000000e+00 : f32
    %6 = vector.broadcast %cst_5 : f32 to vector<32x256xf32>
    %7 = arith.maximumf %5, %6 : vector<32x256xf32>
    %c1 = arith.constant 1 : index
    %c0_6 = arith.constant 0 : index
    %8 = vector.load %arg3[%c1, %c0_6] : memref<3x256xf32, #tpu.memory_space<vmem>>, vector<1x256xf32>
    %9 = vector.broadcast %8 : vector<1x256xf32> to vector<32x256xf32>
    %10 = arith.mulf %7, %9 : vector<32x256xf32>
    %c2 = arith.constant 2 : index
    %c0_7 = arith.constant 0 : index
    %11 = vector.load %arg3[%c2, %c0_7] : memref<3x256xf32, #tpu.memory_space<vmem>>, vector<1x256xf32>
    %12 = vector.broadcast %11 : vector<1x256xf32> to vector<32x256xf32>
    %13 = arith.addf %10, %12 : vector<32x256xf32>
    %c0_8 = arith.constant 0 : index
    %c0_9 = arith.constant 0 : index
    %14 = vector.load %arg4[%c0_8, %c0_9] : memref<32x256xf32, #tpu.memory_space<vmem>>, vector<32x256xf32>
    tpu.vector_store %arg4[%c0_8, %c0_9], %13 {strides = array<i32>} : memref<32x256xf32, #tpu.memory_space<vmem>>, vector<32x256xf32>,
    return
  }
  func.func @transform_0(%arg0: i32) -> (i32, i32) {
    %c0_i32 = arith.constant 0 : i32
    %c0_i32_0 = arith.constant 0 : i32
    return %arg0, %c0_i32 : i32, i32
  }
  func.func @transform_1(%arg0: i32) -> (i32, i32) {
    %c0_i32 = arith.constant 0 : i32
    %c0_i32_0 = arith.constant 0 : i32
    %c0_i32_1 = arith.constant 0 : i32
    return %c0_i32, %c0_i32_0 : i32, i32
  }
  func.func @transform_2(%arg0: i32) -> (i32, i32) {
    %c0_i32 = arith.constant 0 : i32
    %c0_i32_0 = arith.constant 0 : i32
    %c0_i32_1 = arith.constant 0 : i32
    return %c0_i32, %c0_i32_0 : i32, i32
  }
  func.func @transform_3(%arg0: i32) -> (i32, i32) {
    %c0_i32 = arith.constant 0 : i32
    %c0_i32_0 = arith.constant 0 : i32
    return %arg0, %c0_i32 : i32, i32
  }
}

module attributes {stable_mosaic.version = 11 : i64} {
  func.func @_fc_head_kernel(%arg0: i32, %arg1: memref<2x4096xf32, #tpu.memory_space<vmem>>, %arg2: memref<4096x256xf32, #tpu.memory_space<vmem>>, %arg3: memref<3x256xf32, #tpu.memory_space<vmem>>, %arg4: memref<256x128xf32, #tpu.memory_space<vmem>>, %arg5: memref<1x128xf32, #tpu.memory_space<vmem>>, %arg6: memref<128x128xf32, #tpu.memory_space<vmem>>, %arg7: memref<1x128xf32, #tpu.memory_space<vmem>>, %arg8: memref<2x128xf32, #tpu.memory_space<vmem>>) attributes {dimension_semantics = [#tpu.dimension_semantics<parallel>], iteration_bounds = array<i64: 1>, scalar_prefetch = 0 : i64, scratch_operands = 0 : i64, tpu.core_type = #tpu.core_type<tc>, window_params = [{transform_indices = @transform_0, window_bounds = array<i64: 2, 4096>}, {pipeline_mode = #tpu.pipeline_mode<synchronous>, transform_indices = @transform_1, window_bounds = array<i64: 4096, 256>}, {pipeline_mode = #tpu.pipeline_mode<synchronous>, transform_indices = @transform_2, window_bounds = array<i64: 3, 256>}, {pipeline_mode = #tpu.pipeline_mode<synchronous>, transform_indices = @transform_3, window_bounds = array<i64: 256, 128>}, {pipeline_mode = #tpu.pipeline_mode<synchronous>, transform_indices = @transform_4, window_bounds = array<i64: 1, 128>}, {pipeline_mode = #tpu.pipeline_mode<synchronous>, transform_indices = @transform_5, window_bounds = array<i64: 128, 128>}, {pipeline_mode = #tpu.pipeline_mode<synchronous>, transform_indices = @transform_6, window_bounds = array<i64: 1, 128>}, {transform_indices = @transform_7, window_bounds = array<i64: 2, 128>}]} {
    %c0 = arith.constant 0 : index
    %c0_0 = arith.constant 0 : index
    %0 = vector.load %arg1[%c0, %c0_0] : memref<2x4096xf32, #tpu.memory_space<vmem>>, vector<2x4096xf32>
    %c0_1 = arith.constant 0 : index
    %c0_2 = arith.constant 0 : index
    %1 = vector.load %arg2[%c0_1, %c0_2] : memref<4096x256xf32, #tpu.memory_space<vmem>>, vector<4096x256xf32>
    %cst = arith.constant dense<0.000000e+00> : vector<2x256xf32>
    %2 = tpu.matmul %0, %1, %cst {dimension_numbers = #tpu.dot_dimension_numbers<[1], [0], [0], [1], [0, 0, 1, 1], [], []>} : vector<2x4096xf32>, vector<4096x256xf32>, vector<2x256xf32> -> vector<2x256xf32>
    %c0_3 = arith.constant 0 : index
    %c0_4 = arith.constant 0 : index
    %3 = vector.load %arg3[%c0_3, %c0_4] : memref<3x256xf32, #tpu.memory_space<vmem>>, vector<1x256xf32>
    %4 = vector.broadcast %3 : vector<1x256xf32> to vector<2x256xf32>
    %5 = arith.addf %2, %4 : vector<2x256xf32>
    %cst_5 = arith.constant 0.000000e+00 : f32
    %6 = vector.broadcast %cst_5 : f32 to vector<2x256xf32>
    %7 = arith.maximumf %5, %6 : vector<2x256xf32>
    %c1 = arith.constant 1 : index
    %c0_6 = arith.constant 0 : index
    %8 = vector.load %arg3[%c1, %c0_6] : memref<3x256xf32, #tpu.memory_space<vmem>>, vector<1x256xf32>
    %9 = vector.broadcast %8 : vector<1x256xf32> to vector<2x256xf32>
    %10 = arith.mulf %7, %9 : vector<2x256xf32>
    %c2 = arith.constant 2 : index
    %c0_7 = arith.constant 0 : index
    %11 = vector.load %arg3[%c2, %c0_7] : memref<3x256xf32, #tpu.memory_space<vmem>>, vector<1x256xf32>
    %12 = vector.broadcast %11 : vector<1x256xf32> to vector<2x256xf32>
    %13 = arith.addf %10, %12 : vector<2x256xf32>
    %c0_8 = arith.constant 0 : index
    %c0_9 = arith.constant 0 : index
    %14 = vector.load %arg4[%c0_8, %c0_9] : memref<256x128xf32, #tpu.memory_space<vmem>>, vector<256x128xf32>
    %cst_10 = arith.constant dense<0.000000e+00> : vector<2x128xf32>
    %15 = tpu.matmul %13, %14, %cst_10 {dimension_numbers = #tpu.dot_dimension_numbers<[1], [0], [0], [1], [0, 0, 1, 1], [], []>} : vector<2x256xf32>, vector<256x128xf32>, vector<2x128xf32> -> vector<2x128xf32>
    %c0_11 = arith.constant 0 : index
    %c0_12 = arith.constant 0 : index
    %16 = vector.load %arg5[%c0_11, %c0_12] : memref<1x128xf32, #tpu.memory_space<vmem>>, vector<1x128xf32>
    %17 = vector.broadcast %16 : vector<1x128xf32> to vector<2x128xf32>
    %18 = arith.addf %15, %17 : vector<2x128xf32>
    %cst_13 = arith.constant 0.000000e+00 : f32
    %19 = vector.broadcast %cst_13 : f32 to vector<2x128xf32>
    %20 = arith.maximumf %18, %19 : vector<2x128xf32>
    %c0_14 = arith.constant 0 : index
    %c0_15 = arith.constant 0 : index
    %21 = vector.load %arg6[%c0_14, %c0_15] : memref<128x128xf32, #tpu.memory_space<vmem>>, vector<128x128xf32>
    %cst_16 = arith.constant dense<0.000000e+00> : vector<2x128xf32>
    %22 = tpu.matmul %20, %21, %cst_16 {dimension_numbers = #tpu.dot_dimension_numbers<[1], [0], [0], [1], [0, 0, 1, 1], [], []>} : vector<2x128xf32>, vector<128x128xf32>, vector<2x128xf32> -> vector<2x128xf32>
    %c0_17 = arith.constant 0 : index
    %c0_18 = arith.constant 0 : index
    %23 = vector.load %arg7[%c0_17, %c0_18] : memref<1x128xf32, #tpu.memory_space<vmem>>, vector<1x128xf32>
    %24 = vector.broadcast %23 : vector<1x128xf32> to vector<2x128xf32>
    %25 = arith.addf %22, %24 : vector<2x128xf32>
    %cst_19 = arith.constant 0.000000e+00 : f32
    %26 = vector.broadcast %cst_19 : f32 to vector<2x128xf32>
    %27 = arith.subf %26, %25 : vector<2x128xf32>
    %28 = math.exp %27 : vector<2x128xf32>
    %cst_20 = arith.constant 1.000000e+00 : f32
    %29 = vector.broadcast %cst_20 : f32 to vector<2x128xf32>
    %30 = arith.addf %29, %28 : vector<2x128xf32>
    %31 = tpu.reciprocal %30 {approx = true} : vector<2x128xf32> -> vector<2x128xf32>
    %c0_21 = arith.constant 0 : index
    %c0_22 = arith.constant 0 : index
    %32 = vector.load %arg8[%c0_21, %c0_22] : memref<2x128xf32, #tpu.memory_space<vmem>>, vector<2x128xf32>
    tpu.vector_store %arg8[%c0_21, %c0_22], %31 {strides = array<i32>} : memref<2x128xf32, #tpu.memory_space<vmem>>, vector<2x128xf32>,
    return
  }
  func.func @transform_0(%arg0: i32) -> (i32, i32) {
    %c0_i32 = arith.constant 0 : i32
    %c0_i32_0 = arith.constant 0 : i32
    return %arg0, %c0_i32 : i32, i32
  }
  func.func @transform_1(%arg0: i32) -> (i32, i32) {
    %c0_i32 = arith.constant 0 : i32
    %c0_i32_0 = arith.constant 0 : i32
    %c0_i32_1 = arith.constant 0 : i32
    return %c0_i32, %c0_i32_0 : i32, i32
  }
  func.func @transform_2(%arg0: i32) -> (i32, i32) {
    %c0_i32 = arith.constant 0 : i32
    %c0_i32_0 = arith.constant 0 : i32
    %c0_i32_1 = arith.constant 0 : i32
    return %c0_i32, %c0_i32_0 : i32, i32
  }
  func.func @transform_3(%arg0: i32) -> (i32, i32) {
    %c0_i32 = arith.constant 0 : i32
    %c0_i32_0 = arith.constant 0 : i32
    %c0_i32_1 = arith.constant 0 : i32
    return %c0_i32, %c0_i32_0 : i32, i32
  }
  func.func @transform_4(%arg0: i32) -> (i32, i32) {
    %c0_i32 = arith.constant 0 : i32
    %c0_i32_0 = arith.constant 0 : i32
    %c0_i32_1 = arith.constant 0 : i32
    return %c0_i32, %c0_i32_0 : i32, i32
  }
  func.func @transform_5(%arg0: i32) -> (i32, i32) {
    %c0_i32 = arith.constant 0 : i32
    %c0_i32_0 = arith.constant 0 : i32
    %c0_i32_1 = arith.constant 0 : i32
    return %c0_i32, %c0_i32_0 : i32, i32
  }
  func.func @transform_6(%arg0: i32) -> (i32, i32) {
    %c0_i32 = arith.constant 0 : i32
    %c0_i32_0 = arith.constant 0 : i32
    %c0_i32_1 = arith.constant 0 : i32
    return %c0_i32, %c0_i32_0 : i32, i32
  }
  func.func @transform_7(%arg0: i32) -> (i32, i32) {
    %c0_i32 = arith.constant 0 : i32
    %c0_i32_0 = arith.constant 0 : i32
    return %arg0, %c0_i32 : i32, i32
  }
}

</mosaic_0001>

<bundles_post_ra>
// kernel: fake_net2_forward.6
= control target key start
LH: loop header
LB: loop body
LE: loop exit
PB: predicated region body
PF: predicated region fallthrough
CT: control target
= control target key end

     0   :  { %s1583_s12 = smov 0   ;;  %s1585_s13 = smov 0   ;;  %s2187_s0 = inlined_call_operand.vmem [shape: f32[900,54], index: 0, kind: input, shape index: {}]   ;;  %s2188_s1 = inlined_call_operand.vmem [shape: f32[54,128], index: 1, kind: input, shape index: {}]   ;;  %s2189_s2 = inlined_call_operand.vmem [shape: f32[3,128], index: 2, kind: input, shape index: {}]   ;;  %s2190_s3 = inlined_call_operand.vmem [shape: f32[900,128], index: 3, kind: output, shape index: {}]  }
   0x1   :  { %s1587_s14 = smov 0  }
   0x2 LB: > { %s1596_s15 = sadd.s32 4294967295, %s1529_s14   ;;  %s1598_s16 = sadd.s32 1, %s1529_s14   ;;  %s1529_s14 = sphi %s1587_s14, %s2199_s14   ;;  %s1525_s13 = sphi %s1585_s13, %s2198_s13   ;;  %s1521_s12 = sphi %s1583_s12, %s2197_s12  }
   0x3   : > { %s85_s17 = ssub.s32 %s1529_s14, %s1598_s16  ;;  %s88_s18 = sadd.s32 1, %s1525_s13 }
   0x4   : > { %p86_p0 = scmp.eq.s32.totalorder %s85_s17, 0  ;;  %p98_p1 = scmp.ne.s32.totalorder %s1525_s13, %s1521_s12 }
   0x5   : > { %p99_p2 = scmp.eq.s32.totalorder %s1596_s15, 1  ;;  %p1274_p3 = scmp.ge.s32.totalorder %s1529_s14, 1 }
   0x6   : > { %s1606_s19 = scalar_select %p86_p0, %s1525_s13, %s88_s18  }
   0x7   : > { %p1608_p4 = por %p99_p2, %p98_p1  ;;  %p146_p5 = scmp.lt.s32.totalorder %s1529_s14, 3 }
   0x9   : > { %p147_p6 = pnand %p1274_p3, %p146_p5 }
   0xa   : > { %s1619_s25 = sshll.u32 (!%p147_p6), %s1596_s15, 6  ;;  %s170_s22 = sand.u32 (!%p147_p6), 1, %s1521_s12  }
   0xb   : > { %150 = sbr.rel (%p147_p6) target bundleno = 356 (0x164), region = 32  ;;  %p178_p7 = scmp.lt.s32.totalorder (!%p147_p6), %s1619_s25, 112 }
   0xc   : > { %s1275_s26 = sshll.u32 (!%p147_p6), %s170_s22, 9 }
   0xd   : > { %s1795_s12 = scalar_lea.vmem (!%p147_p6), [#allocation2], %s1275_s26  }
  0x10   : > { %v262_v0 = vld [vmem:[%s2188_s1 + $0x30] sm:$0x3f]  ;;  %vm458_vm0 = vcmask 1045504   ;;  %v261_v1 = vld [vmem:[%s2188_s1 + $0x28] sm:$0xff]  ;;  %v260_v2 = vld [vmem:[%s2188_s1 + $0x20] sm:$0xff]  ;;  %s179_s28 = scalar_select %p178_p7, %s1619_s25, 112 }
  0x11   : > { %1364 = vmatpush.msk.msra.mxu2 %vm458_vm0, %v262_v0  ;;  %1365 = vmatpush.msk.msra.mxu3 %vm458_vm0, %v262_v0  ;;  %v259_v3 = vld [vmem:[%s2188_s1 + $0x18] sm:$0xff]  ;;  %v258_v4 = vld [vmem:[%s2188_s1 + $0x10] sm:$0xff]  ;;  %v257_v5 = vld [vmem:[%s2188_s1 + $0x8] sm:$0xff]  ;;  %vm265_vm1 = vcmask 441344   ;;  %s939_s29 = ssub.s32 (%p1608_p4), 113, %s1619_s25  ;;  %s1360_s30 = sshll.u32 (%p1608_p4), %s1596_s15, 9 }
  0x12   : > { %1278 = vmatpush.msk.msra.mxu0 %vm458_vm0, %v262_v0  ;;  %1363 = vmatpush.msk.msra.mxu1 %vm458_vm0, %v262_v0  ;;  %s1277_s4 = sshll.u32 %s179_s28, 3  ;;  %v256_v6 = vld [vmem:[%s2188_s1] sm:$0xff]  ;;  %p940_p8 = scmp.lt.s32.totalorder (%p1608_p4), %s939_s29, 64 }
  0x13   : > { %1367 = vmatpush.msra.mxu2 %v261_v1  ;;  %1368 = vmatpush.msra.mxu3 %v261_v1  ;;  %s1638_s11 = scalar_lea.vmem %s2187_s0, %s1277_s4  ;;  %s2052_s6 = scalar_lea.vmem (%p1608_p4), %s2190_s3, %s1360_s30  }
  0x14   : > { %472 = vmatpush.msra.mxu0 %v261_v1  ;;  %1366 = vmatpush.msra.mxu1 %v261_v1  ;;  %v224_v7 = vld [vmem:[%s1638_s11 + $0x100] sm:$0xff]  ;;  %v225_v11 = vld [vmem:[%s1638_s11 + $0x108] sm:$0xff]  ;;  %v226_v15 = vld [vmem:[%s1638_s11 + $0x110] sm:$0xff] }
  0x15   : > { %1370 = vmatpush.msra.mxu2 %v260_v2  ;;  %1371 = vmatpush.msra.mxu3 %v260_v2  ;;  %v240_v8 = vld [vmem:[%s1638_s11 + $0x180] sm:$0xff]  ;;  %v241_v12 = vld [vmem:[%s1638_s11 + $0x188] sm:$0xff]  ;;  %v242_v16 = vld [vmem:[%s1638_s11 + $0x190] sm:$0xff] }
  0x16   : > { %473 = vmatpush.msra.mxu0 %v260_v2  ;;  %1369 = vmatpush.msra.mxu1 %v260_v2  ;;  %v192_v9 = vld [vmem:[%s1638_s11] sm:$0xff]  ;;  %v193_v13 = vld [vmem:[%s1638_s11 + $0x8] sm:$0xff]  ;;  %v194_v17 = vld [vmem:[%s1638_s11 + $0x10] sm:$0xff] }
  0x17   : > { %1373 = vmatpush.msra.mxu2 %v259_v3  ;;  %1374 = vmatpush.msra.mxu3 %v259_v3  ;;  %v208_v10 = vld [vmem:[%s1638_s11 + $0x80] sm:$0xff]  ;;  %v209_v14 = vld [vmem:[%s1638_s11 + $0x88] sm:$0xff]  ;;  %v210_v18 = vld [vmem:[%s1638_s11 + $0x90] sm:$0xff] }
  0x18   : > { %474 = vmatpush.msra.mxu0 %v259_v3  ;;  %1372 = vmatpush.msra.mxu1 %v259_v3  ;;  %v227_v19 = vld [vmem:[%s1638_s11 + $0x118] sm:$0xff]  ;;  %v228_v23 = vld [vmem:[%s1638_s11 + $0x120] sm:$0xff]  ;;  %v229_v27 = vld [vmem:[%s1638_s11 + $0x128] sm:$0xff] }
  0x19   : > { %1376 = vmatpush.msra.mxu2 %v258_v4  ;;  %1377 = vmatpush.msra.mxu3 %v258_v4  ;;  %v243_v20 = vld [vmem:[%s1638_s11 + $0x198] sm:$0xff]  ;;  %v244_v24 = vld [vmem:[%s1638_s11 + $0x1a0] sm:$0xff]  ;;  %v245_v28 = vld [vmem:[%s1638_s11 + $0x1a8] sm:$0xff] }
  0x1a   : > { %475 = vmatpush.msra.mxu0 %v258_v4  ;;  %1375 = vmatpush.msra.mxu1 %v258_v4  ;;  %v195_v21 = vld [vmem:[%s1638_s11 + $0x18] sm:$0xff]  ;;  %v196_v25 = vld [vmem:[%s1638_s11 + $0x20] sm:$0xff]  ;;  %v197_v29 = vld [vmem:[%s1638_s11 + $0x28] sm:$0xff] }
  0x1b   : > { %1379 = vmatpush.msra.mxu2 %v257_v5  ;;  %1380 = vmatpush.msra.mxu3 %v257_v5  ;;  %v211_v22 = vld [vmem:[%s1638_s11 + $0x98] sm:$0xff]  ;;  %v212_v26 = vld [vmem:[%s1638_s11 + $0xa0] sm:$0xff]  ;;  %v213_v30 = vld [vmem:[%s1638_s11 + $0xa8] sm:$0xff] }
  0x1c   : > { %476 = vmatpush.msra.mxu0 %v257_v5  ;;  %1378 = vmatpush.msra.mxu1 %v257_v5  ;;  %v230_v31 = vld [vmem:[%s1638_s11 + $0x130] sm:$0xff]  ;;  %v231_v35 = vld [vmem:[%s1638_s11 + $0x138] sm:$0xff]  ;;  %v232_v39 = vld [vmem:[%s1638_s11 + $0x140] sm:$0xff] }
  0x1d   : > { %1382 = vmatpush.msra.mxu2 %v256_v6  ;;  %1383 = vmatpush.msra.mxu3 %v256_v6  ;;  %v246_v32 = vld [vmem:[%s1638_s11 + $0x1b0] sm:$0xff]  ;;  %v247_v36 = vld [vmem:[%s1638_s11 + $0x1b8] sm:$0xff]  ;;  %v248_v40 = vld [vmem:[%s1638_s11 + $0x1c0] sm:$0xff] }
  0x1e   : > { %1311 = vmatmul.msk.f32.vlgmr.msra.gmra.mxu2 %vm265_vm1, %v224_v7  ;;  %1327 = vmatmul.msk.f32.vlgmr.msra.gmra.mxu3 %vm265_vm1, %v240_v8  ;;  %v198_v33 = vld [vmem:[%s1638_s11 + $0x30] sm:$0xff]  ;;  %v199_v37 = vld [vmem:[%s1638_s11 + $0x38] sm:$0xff]  ;;  %v200_v41 = vld [vmem:[%s1638_s11 + $0x40] sm:$0xff] }
  0x1f   : > { %477 = vmatpush.msra.mxu0 %v256_v6  ;;  %1381 = vmatpush.msra.mxu1 %v256_v6  ;;  %v214_v34 = vld [vmem:[%s1638_s11 + $0xb0] sm:$0xff]  ;;  %v215_v38 = vld [vmem:[%s1638_s11 + $0xb8] sm:$0xff]  ;;  %v216_v42 = vld [vmem:[%s1638_s11 + $0xc0] sm:$0xff] }
  0x20   : > { %1279 = vmatmul.msk.f32.vlgmr.msra.gmra.mxu0 %vm265_vm1, %v192_v9  ;;  %1295 = vmatmul.msk.f32.vlgmr.msra.gmra.mxu1 %vm265_vm1, %v208_v10  ;;  %v233_v43 = vld [vmem:[%s1638_s11 + $0x148] sm:$0xff]  ;;  %v234_v47 = vld [vmem:[%s1638_s11 + $0x150] sm:$0xff]  ;;  %v235_v51 = vld [vmem:[%s1638_s11 + $0x158] sm:$0xff] }
  0x21   : > { %v249_v44 = vld [vmem:[%s1638_s11 + $0x1c8] sm:$0xff]  ;;  %v250_v48 = vld [vmem:[%s1638_s11 + $0x1d0] sm:$0xff]  ;;  %v251_v52 = vld [vmem:[%s1638_s11 + $0x1d8] sm:$0xff] }
  0x22   : > { %v201_v45 = vld [vmem:[%s1638_s11 + $0x48] sm:$0xff]  ;;  %v202_v49 = vld [vmem:[%s1638_s11 + $0x50] sm:$0xff]  ;;  %v203_v53 = vld [vmem:[%s1638_s11 + $0x58] sm:$0xff] }
  0x23   : > { %v217_v46 = vld [vmem:[%s1638_s11 + $0xc8] sm:$0xff]  ;;  %v218_v50 = vld [vmem:[%s1638_s11 + $0xd0] sm:$0xff]  ;;  %v219_v54 = vld [vmem:[%s1638_s11 + $0xd8] sm:$0xff] }
  0x24   : > { %v236_v55 = vld [vmem:[%s1638_s11 + $0x160] sm:$0xff]  ;;  %v237_v59 = vld [vmem:[%s1638_s11 + $0x168] sm:$0xff]  ;;  %v238_v63 = vld [vmem:[%s1638_s11 + $0x170] sm:$0xff] }
  0x25   : > { %v252_v56 = vld [vmem:[%s1638_s11 + $0x1e0] sm:$0xff]  ;;  %v253_v60 = vld [vmem:[%s1638_s11 + $0x1e8] sm:$0xff]  ;;  %v254_v0 = vld [vmem:[%s1638_s11 + $0x1f0] sm:$0xff] }
  0x26   : > { %1312 = vmatmul.msk.f32.gmra.mxu2 %vm265_vm1, %v225_v11  ;;  %1328 = vmatmul.msk.f32.gmra.mxu3 %vm265_vm1, %v241_v12  ;;  %v204_v57 = vld [vmem:[%s1638_s11 + $0x60] sm:$0xff]  ;;  %v205_v61 = vld [vmem:[%s1638_s11 + $0x68] sm:$0xff]  ;;  %v206_v1 = vld [vmem:[%s1638_s11 + $0x70] sm:$0xff] }
  0x27   : > { %v220_v58 = vld [vmem:[%s1638_s11 + $0xe0] sm:$0xff]  ;;  %v221_v62 = vld [vmem:[%s1638_s11 + $0xe8] sm:$0xff]  ;;  %v222_v2 = vld [vmem:[%s1638_s11 + $0xf0] sm:$0xff] }
  0x28   : > { %1280 = vmatmul.msk.f32.gmra.mxu0 %vm265_vm1, %v193_v13  ;;  %1296 = vmatmul.msk.f32.gmra.mxu1 %vm265_vm1, %v209_v14  ;;  %v239_v3 = vld [vmem:[%s1638_s11 + $0x178] sm:$0xff]  ;;  %v1774_v7 = vld [vmem:[%s2189_s2] ss:$0 sm:$0xff]  ;;  %v1781_v11 = vld [vmem:[%s2189_s2 + $0x1] ss:$0 sm:$0xff] }
  0x29   : > { %v255_v4 = vld [vmem:[%s1638_s11 + $0x1f8] sm:$0xff]  ;;  %v1787_v14 = vld [vmem:[%s2189_s2 + $0x2] ss:$0 sm:$0xff] }
  0x2a   : > { %v207_v5 = vld [vmem:[%s1638_s11 + $0x78] sm:$0xff] }
  0x2b   : > { %v223_v6 = vld [vmem:[%s1638_s11 + $0xf8] sm:$0xff] }
  0x2e   : > { %1313 = vmatmul.msk.f32.gmra.mxu2 %vm265_vm1, %v226_v15  ;;  %1329 = vmatmul.msk.f32.gmra.mxu3 %vm265_vm1, %v242_v16 }
  0x30   : > { %1281 = vmatmul.msk.f32.gmra.mxu0 %vm265_vm1, %v194_v17  ;;  %1297 = vmatmul.msk.f32.gmra.mxu1 %vm265_vm1, %v210_v18 }
  0x36   : > { %1314 = vmatmul.msk.f32.gmra.mxu2 %vm265_vm1, %v227_v19  ;;  %1330 = vmatmul.msk.f32.gmra.mxu3 %vm265_vm1, %v243_v20 }
  0x38   : > { %1282 = vmatmul.msk.f32.gmra.mxu0 %vm265_vm1, %v195_v21  ;;  %1298 = vmatmul.msk.f32.gmra.mxu1 %vm265_vm1, %v211_v22 }
  0x3e   : > { %1315 = vmatmul.msk.f32.gmra.mxu2 %vm265_vm1, %v228_v23  ;;  %1331 = vmatmul.msk.f32.gmra.mxu3 %vm265_vm1, %v244_v24 }
  0x40   : > { %1283 = vmatmul.msk.f32.gmra.mxu0 %vm265_vm1, %v196_v25  ;;  %1299 = vmatmul.msk.f32.gmra.mxu1 %vm265_vm1, %v212_v26 }
  0x46   : > { %1316 = vmatmul.msk.f32.gmra.mxu2 %vm265_vm1, %v229_v27  ;;  %1332 = vmatmul.msk.f32.gmra.mxu3 %vm265_vm1, %v245_v28 }
  0x48   : > { %1284 = vmatmul.msk.f32.gmra.mxu0 %vm265_vm1, %v197_v29  ;;  %1300 = vmatmul.msk.f32.gmra.mxu1 %vm265_vm1, %v213_v30 }
  0x4e   : > { %1317 = vmatmul.msk.f32.gmra.mxu2 %vm265_vm1, %v230_v31  ;;  %1333 = vmatmul.msk.f32.gmra.mxu3 %vm265_vm1, %v246_v32 }
  0x50   : > { %1285 = vmatmul.msk.f32.gmra.mxu0 %vm265_vm1, %v198_v33  ;;  %1301 = vmatmul.msk.f32.gmra.mxu1 %vm265_vm1, %v214_v34 }
  0x56   : > { %1318 = vmatmul.msk.f32.gmra.mxu2 %vm265_vm1, %v231_v35  ;;  %1334 = vmatmul.msk.f32.gmra.mxu3 %vm265_vm1, %v247_v36 }
  0x58   : > { %1286 = vmatmul.msk.f32.gmra.mxu0 %vm265_vm1, %v199_v37  ;;  %1302 = vmatmul.msk.f32.gmra.mxu1 %vm265_vm1, %v215_v38 }
  0x5e   : > { %1319 = vmatmul.msk.f32.gmra.mxu2 %vm265_vm1, %v232_v39  ;;  %1335 = vmatmul.msk.f32.gmra.mxu3 %vm265_vm1, %v248_v40 }
  0x60   : > { %1287 = vmatmul.msk.f32.gmra.mxu0 %vm265_vm1, %v200_v41  ;;  %1303 = vmatmul.msk.f32.gmra.mxu1 %vm265_vm1, %v216_v42 }
  0x66   : > { %1320 = vmatmul.msk.f32.gmra.mxu2 %vm265_vm1, %v233_v43  ;;  %1336 = vmatmul.msk.f32.gmra.mxu3 %vm265_vm1, %v249_v44 }
  0x68   : > { %1288 = vmatmul.msk.f32.gmra.mxu0 %vm265_vm1, %v201_v45  ;;  %1304 = vmatmul.msk.f32.gmra.mxu1 %vm265_vm1, %v217_v46 }
  0x6e   : > { %1321 = vmatmul.msk.f32.gmra.mxu2 %vm265_vm1, %v234_v47  ;;  %1337 = vmatmul.msk.f32.gmra.mxu3 %vm265_vm1, %v250_v48 }
  0x70   : > { %1289 = vmatmul.msk.f32.gmra.mxu0 %vm265_vm1, %v202_v49  ;;  %1305 = vmatmul.msk.f32.gmra.mxu1 %vm265_vm1, %v218_v50 }
  0x76   : > { %1322 = vmatmul.msk.f32.gmra.mxu2 %vm265_vm1, %v235_v51  ;;  %1338 = vmatmul.msk.f32.gmra.mxu3 %vm265_vm1, %v251_v52 }
  0x78   : > { %1290 = vmatmul.msk.f32.gmra.mxu0 %vm265_vm1, %v203_v53  ;;  %1306 = vmatmul.msk.f32.gmra.mxu1 %vm265_vm1, %v219_v54 }
  0x7e   : > { %1323 = vmatmul.msk.f32.gmra.mxu2 %vm265_vm1, %v236_v55  ;;  %1339 = vmatmul.msk.f32.gmra.mxu3 %vm265_vm1, %v252_v56 }
  0x80   : > { %1291 = vmatmul.msk.f32.gmra.mxu0 %vm265_vm1, %v204_v57  ;;  %1307 = vmatmul.msk.f32.gmra.mxu1 %vm265_vm1, %v220_v58 }
  0x86   : > { %1324 = vmatmul.msk.f32.gmra.mxu2 %vm265_vm1, %v237_v59  ;;  %1340 = vmatmul.msk.f32.gmra.mxu3 %vm265_vm1, %v253_v60 }
  0x88   : > { %1292 = vmatmul.msk.f32.gmra.mxu0 %vm265_vm1, %v205_v61  ;;  %1308 = vmatmul.msk.f32.gmra.mxu1 %vm265_vm1, %v221_v62 }
  0x8e   : > { %1325 = vmatmul.msk.f32.gmra.mxu2 %vm265_vm1, %v238_v63  ;;  %1341 = vmatmul.msk.f32.gmra.mxu3 %vm265_vm1, %v254_v0 }
  0x90   : > { %1293 = vmatmul.msk.f32.gmra.mxu0 %vm265_vm1, %v206_v1  ;;  %1309 = vmatmul.msk.f32.gmra.mxu1 %vm265_vm1, %v222_v2 }
  0x96   : > { %1326 = vmatmul.msk.f32.gmra.mxu2 %vm265_vm1, %v239_v3  ;;  %1342 = vmatmul.msk.f32.gmra.mxu3 %vm265_vm1, %v255_v4 }
  0x98   : > { %1294 = vmatmul.msk.f32.gmra.mxu0 %vm265_vm1, %v207_v5  ;;  %1310 = vmatmul.msk.f32.gmra.mxu1 %vm265_vm1, %v223_v6 }
  0x9d   : > { %v479_v8 = vpop.f32.mrf.mxu0  ;;  %v527_v9 = vpop.f32.mrf.mxu1 }
  0x9e   : > { %v480_v10 = vadd.f32 %v1774_v7, %v479_v8  ;;  %v528_v12 = vadd.f32 %v1774_v7, %v527_v9 }
  0xa0   : > { %v671_v13 = vmax.f32 %v480_v10, 0.0  ;;  %v687_v15 = vmax.f32 %v528_v12, 0.0 }
  0xa1   : > { %v575_v16 = vpop.f32.mrf.mxu2  ;;  %v623_v17 = vpop.f32.mrf.mxu3 }
  0xa2   : > { %v737_v18 = vmul.f32 %v1781_v11, %v671_v13  ;;  %v753_v19 = vmul.f32 %v1781_v11, %v687_v15  ;;  %v576_v20 = vadd.f32 %v1774_v7, %v575_v16  ;;  %v624_v21 = vadd.f32 %v1774_v7, %v623_v17 }
  0xa4   : > { %v803_v22 = vadd.f32 %v1787_v14, %v737_v18  ;;  %v819_v23 = vadd.f32 %v1787_v14, %v753_v19  ;;  %v703_v24 = vmax.f32 %v576_v20, 0.0  ;;  %v719_v25 = vmax.f32 %v624_v21, 0.0 }
  0xa5   : > { %v482_v26 = vpop.f32.mrf.mxu0  ;;  %v530_v27 = vpop.f32.mrf.mxu1 }
  0xa6   : > { %867 = vst [vmem:[%s1795_s12] sm:$0xff] %v803_v22  ;;  %v769_v28 = vmul.f32 %v1781_v11, %v703_v24  ;;  %v785_v29 = vmul.f32 %v1781_v11, %v719_v25  ;;  %v483_v30 = vadd.f32 %v1774_v7, %v482_v26  ;;  %v531_v31 = vadd.f32 %v1774_v7, %v530_v27 }
  0xa7   : > { %883 = vst [vmem:[%s1795_s12 + $0x80] sm:$0xff] %v819_v23 }
  0xa8   : > { %v835_v32 = vadd.f32 %v1787_v14, %v769_v28  ;;  %v851_v33 = vadd.f32 %v1787_v14, %v785_v29  ;;  %v672_v34 = vmax.f32 %v483_v30, 0.0  ;;  %v688_v35 = vmax.f32 %v531_v31, 0.0 }
  0xa9   : > { %v578_v36 = vpop.f32.mrf.mxu2  ;;  %v626_v37 = vpop.f32.mrf.mxu3 }
  0xaa   : > { %899 = vst [vmem:[%s1795_s12 + $0x100] sm:$0xff] %v835_v32  ;;  %v738_v38 = vmul.f32 %v1781_v11, %v672_v34  ;;  %v754_v39 = vmul.f32 %v1781_v11, %v688_v35  ;;  %v579_v40 = vadd.f32 %v1774_v7, %v578_v36  ;;  %v627_v41 = vadd.f32 %v1774_v7, %v626_v37 }
  0xab   : > { %915 = vst [vmem:[%s1795_s12 + $0x180] sm:$0xff] %v851_v33 }
  0xac   : > { %v804_v42 = vadd.f32 %v1787_v14, %v738_v38  ;;  %v820_v43 = vadd.f32 %v1787_v14, %v754_v39  ;;  %v704_v44 = vmax.f32 %v579_v40, 0.0  ;;  %v720_v45 = vmax.f32 %v627_v41, 0.0 }
  0xad   : > { %v485_v46 = vpop.f32.mrf.mxu0  ;;  %v533_v47 = vpop.f32.mrf.mxu1 }
  0xae   : > { %868 = vst [vmem:[%s1795_s12 + $0x8] sm:$0xff] %v804_v42  ;;  %v770_v48 = vmul.f32 %v1781_v11, %v704_v44  ;;  %v786_v49 = vmul.f32 %v1781_v11, %v720_v45  ;;  %v486_v50 = vadd.f32 %v1774_v7, %v485_v46  ;;  %v534_v51 = vadd.f32 %v1774_v7, %v533_v47 }
  0xaf   : > { %884 = vst [vmem:[%s1795_s12 + $0x88] sm:$0xff] %v820_v43 }
  0xb0   : > { %v836_v52 = vadd.f32 %v1787_v14, %v770_v48  ;;  %v852_v53 = vadd.f32 %v1787_v14, %v786_v49  ;;  %v673_v54 = vmax.f32 %v486_v50, 0.0  ;;  %v689_v55 = vmax.f32 %v534_v51, 0.0 }
  0xb1   : > { %v581_v56 = vpop.f32.mrf.mxu2  ;;  %v629_v57 = vpop.f32.mrf.mxu3 }
  0xb2   : > { %900 = vst [vmem:[%s1795_s12 + $0x108] sm:$0xff] %v836_v52  ;;  %v739_v58 = vmul.f32 %v1781_v11, %v673_v54  ;;  %v755_v59 = vmul.f32 %v1781_v11, %v689_v55  ;;  %v582_v60 = vadd.f32 %v1774_v7, %v581_v56  ;;  %v630_v61 = vadd.f32 %v1774_v7, %v629_v57 }
  0xb3   : > { %916 = vst [vmem:[%s1795_s12 + $0x188] sm:$0xff] %v852_v53 }
  0xb4   : > { %v805_v62 = vadd.f32 %v1787_v14, %v739_v58  ;;  %v821_v63 = vadd.f32 %v1787_v14, %v755_v59  ;;  %v705_v0 = vmax.f32 %v582_v60, 0.0  ;;  %v721_v1 = vmax.f32 %v630_v61, 0.0 }
  0xb5   : > { %v488_v2 = vpop.f32.mrf.mxu0  ;;  %v536_v3 = vpop.f32.mrf.mxu1 }
  0xb6   : > { %869 = vst [vmem:[%s1795_s12 + $0x10] sm:$0xff] %v805_v62  ;;  %v771_v4 = vmul.f32 %v1781_v11, %v705_v0  ;;  %v787_v5 = vmul.f32 %v1781_v11, %v721_v1  ;;  %v489_v6 = vadd.f32 %v1774_v7, %v488_v2  ;;  %v537_v8 = vadd.f32 %v1774_v7, %v536_v3 }
  0xb7   : > { %885 = vst [vmem:[%s1795_s12 + $0x90] sm:$0xff] %v821_v63 }
  0xb8   : > { %v837_v9 = vadd.f32 %v1787_v14, %v771_v4  ;;  %v853_v10 = vadd.f32 %v1787_v14, %v787_v5  ;;  %v674_v12 = vmax.f32 %v489_v6, 0.0  ;;  %v690_v13 = vmax.f32 %v537_v8, 0.0 }
  0xb9   : > { %v584_v15 = vpop.f32.mrf.mxu2  ;;  %v632_v16 = vpop.f32.mrf.mxu3 }
  0xba   : > { %901 = vst [vmem:[%s1795_s12 + $0x110] sm:$0xff] %v837_v9  ;;  %v740_v17 = vmul.f32 %v1781_v11, %v674_v12  ;;  %v756_v18 = vmul.f32 %v1781_v11, %v690_v13  ;;  %v585_v19 = vadd.f32 %v1774_v7, %v584_v15  ;;  %v633_v20 = vadd.f32 %v1774_v7, %v632_v16 }
  0xbb   : > { %917 = vst [vmem:[%s1795_s12 + $0x190] sm:$0xff] %v853_v10 }
  0xbc   : > { %v806_v21 = vadd.f32 %v1787_v14, %v740_v17  ;;  %v822_v22 = vadd.f32 %v1787_v14, %v756_v18  ;;  %v706_v23 = vmax.f32 %v585_v19, 0.0  ;;  %v722_v24 = vmax.f32 %v633_v20, 0.0 }
  0xbd   : > { %v491_v25 = vpop.f32.mrf.mxu0  ;;  %v539_v26 = vpop.f32.mrf.mxu1 }
  0xbe   : > { %870 = vst [vmem:[%s1795_s12 + $0x18] sm:$0xff] %v806_v21  ;;  %v772_v27 = vmul.f32 %v1781_v11, %v706_v23  ;;  %v788_v28 = vmul.f32 %v1781_v11, %v722_v24  ;;  %v492_v29 = vadd.f32 %v1774_v7, %v491_v25  ;;  %v540_v30 = vadd.f32 %v1774_v7, %v539_v26 }
  0xbf   : > { %886 = vst [vmem:[%s1795_s12 + $0x98] sm:$0xff] %v822_v22 }
  0xc0   : > { %v838_v31 = vadd.f32 %v1787_v14, %v772_v27  ;;  %v854_v32 = vadd.f32 %v1787_v14, %v788_v28  ;;  %v675_v33 = vmax.f32 %v492_v29, 0.0  ;;  %v691_v34 = vmax.f32 %v540_v30, 0.0 }
  0xc1   : > { %v587_v35 = vpop.f32.mrf.mxu2  ;;  %v635_v36 = vpop.f32.mrf.mxu3 }
  0xc2   : > { %902 = vst [vmem:[%s1795_s12 + $0x118] sm:$0xff] %v838_v31  ;;  %v741_v37 = vmul.f32 %v1781_v11, %v675_v33  ;;  %v757_v38 = vmul.f32 %v1781_v11, %v691_v34  ;;  %v588_v39 = vadd.f32 %v1774_v7, %v587_v35  ;;  %v636_v40 = vadd.f32 %v1774_v7, %v635_v36 }
  0xc3   : > { %918 = vst [vmem:[%s1795_s12 + $0x198] sm:$0xff] %v854_v32 }
  0xc4   : > { %v807_v41 = vadd.f32 %v1787_v14, %v741_v37  ;;  %v823_v42 = vadd.f32 %v1787_v14, %v757_v38  ;;  %v707_v43 = vmax.f32 %v588_v39, 0.0  ;;  %v723_v44 = vmax.f32 %v636_v40, 0.0 }
  0xc5   : > { %v494_v45 = vpop.f32.mrf.mxu0  ;;  %v542_v46 = vpop.f32.mrf.mxu1 }
  0xc6   : > { %871 = vst [vmem:[%s1795_s12 + $0x20] sm:$0xff] %v807_v41  ;;  %v773_v47 = vmul.f32 %v1781_v11, %v707_v43  ;;  %v789_v48 = vmul.f32 %v1781_v11, %v723_v44  ;;  %v495_v49 = vadd.f32 %v1774_v7, %v494_v45  ;;  %v543_v50 = vadd.f32 %v1774_v7, %v542_v46 }
  0xc7   : > { %887 = vst [vmem:[%s1795_s12 + $0xa0] sm:$0xff] %v823_v42 }
  0xc8   : > { %v839_v51 = vadd.f32 %v1787_v14, %v773_v47  ;;  %v855_v52 = vadd.f32 %v1787_v14, %v789_v48  ;;  %v676_v53 = vmax.f32 %v495_v49, 0.0  ;;  %v692_v54 = vmax.f32 %v543_v50, 0.0 }
  0xc9   : > { %v590_v55 = vpop.f32.mrf.mxu2  ;;  %v638_v56 = vpop.f32.mrf.mxu3 }
  0xca   : > { %903 = vst [vmem:[%s1795_s12 + $0x120] sm:$0xff] %v839_v51  ;;  %v742_v57 = vmul.f32 %v1781_v11, %v676_v53  ;;  %v758_v58 = vmul.f32 %v1781_v11, %v692_v54  ;;  %v591_v59 = vadd.f32 %v1774_v7, %v590_v55  ;;  %v639_v60 = vadd.f32 %v1774_v7, %v638_v56 }
  0xcb   : > { %919 = vst [vmem:[%s1795_s12 + $0x1a0] sm:$0xff] %v855_v52 }
  0xcc   : > { %v808_v61 = vadd.f32 %v1787_v14, %v742_v57  ;;  %v824_v62 = vadd.f32 %v1787_v14, %v758_v58  ;;  %v708_v63 = vmax.f32 %v591_v59, 0.0  ;;  %v724_v0 = vmax.f32 %v639_v60, 0.0 }
  0xcd   : > { %v497_v1 = vpop.f32.mrf.mxu0  ;;  %v545_v2 = vpop.f32.mrf.mxu1 }
  0xce   : > { %872 = vst [vmem:[%s1795_s12 + $0x28] sm:$0xff] %v808_v61  ;;  %v774_v3 = vmul.f32 %v1781_v11, %v708_v63  ;;  %v790_v4 = vmul.f32 %v1781_v11, %v724_v0  ;;  %v498_v5 = vadd.f32 %v1774_v7, %v497_v1  ;;  %v546_v6 = vadd.f32 %v1774_v7, %v545_v2 }
  0xcf   : > { %888 = vst [vmem:[%s1795_s12 + $0xa8] sm:$0xff] %v824_v62 }
  0xd0   : > { %v840_v8 = vadd.f32 %v1787_v14, %v774_v3  ;;  %v856_v9 = vadd.f32 %v1787_v14, %v790_v4  ;;  %v677_v10 = vmax.f32 %v498_v5, 0.0  ;;  %v693_v12 = vmax.f32 %v546_v6, 0.0 }
  0xd1   : > { %v593_v13 = vpop.f32.mrf.mxu2  ;;  %v641_v15 = vpop.f32.mrf.mxu3 }
  0xd2   : > { %904 = vst [vmem:[%s1795_s12 + $0x128] sm:$0xff] %v840_v8  ;;  %v743_v16 = vmul.f32 %v1781_v11, %v677_v10  ;;  %v759_v17 = vmul.f32 %v1781_v11, %v693_v12  ;;  %v594_v18 = vadd.f32 %v1774_v7, %v593_v13  ;;  %v642_v19 = vadd.f32 %v1774_v7, %v641_v15 }
  0xd3   : > { %920 = vst [vmem:[%s1795_s12 + $0x1a8] sm:$0xff] %v856_v9 }
  0xd4   : > { %v809_v20 = vadd.f32 %v1787_v14, %v743_v16  ;;  %v825_v21 = vadd.f32 %v1787_v14, %v759_v17  ;;  %v709_v22 = vmax.f32 %v594_v18, 0.0  ;;  %v725_v23 = vmax.f32 %v642_v19, 0.0 }
  0xd5   : > { %v500_v24 = vpop.f32.mrf.mxu0  ;;  %v548_v25 = vpop.f32.mrf.mxu1 }
  0xd6   : > { %873 = vst [vmem:[%s1795_s12 + $0x30] sm:$0xff] %v809_v20  ;;  %v775_v26 = vmul.f32 %v1781_v11, %v709_v22  ;;  %v791_v27 = vmul.f32 %v1781_v11, %v725_v23  ;;  %v501_v28 = vadd.f32 %v1774_v7, %v500_v24  ;;  %v549_v29 = vadd.f32 %v1774_v7, %v548_v25 }
  0xd7   : > { %889 = vst [vmem:[%s1795_s12 + $0xb0] sm:$0xff] %v825_v21 }
  0xd8   : > { %v841_v30 = vadd.f32 %v1787_v14, %v775_v26  ;;  %v857_v31 = vadd.f32 %v1787_v14, %v791_v27  ;;  %v678_v32 = vmax.f32 %v501_v28, 0.0  ;;  %v694_v33 = vmax.f32 %v549_v29, 0.0 }
  0xd9   : > { %v596_v34 = vpop.f32.mrf.mxu2  ;;  %v644_v35 = vpop.f32.mrf.mxu3 }
  0xda   : > { %905 = vst [vmem:[%s1795_s12 + $0x130] sm:$0xff] %v841_v30  ;;  %v744_v36 = vmul.f32 %v1781_v11, %v678_v32  ;;  %v760_v37 = vmul.f32 %v1781_v11, %v694_v33  ;;  %v597_v38 = vadd.f32 %v1774_v7, %v596_v34  ;;  %v645_v39 = vadd.f32 %v1774_v7, %v644_v35 }
  0xdb   : > { %921 = vst [vmem:[%s1795_s12 + $0x1b0] sm:$0xff] %v857_v31 }
  0xdc   : > { %v810_v40 = vadd.f32 %v1787_v14, %v744_v36  ;;  %v826_v41 = vadd.f32 %v1787_v14, %v760_v37  ;;  %v710_v42 = vmax.f32 %v597_v38, 0.0  ;;  %v726_v43 = vmax.f32 %v645_v39, 0.0 }
  0xdd   : > { %v503_v44 = vpop.f32.mrf.mxu0  ;;  %v551_v45 = vpop.f32.mrf.mxu1 }
  0xde   : > { %874 = vst [vmem:[%s1795_s12 + $0x38] sm:$0xff] %v810_v40  ;;  %v776_v46 = vmul.f32 %v1781_v11, %v710_v42  ;;  %v792_v47 = vmul.f32 %v1781_v11, %v726_v43  ;;  %v504_v48 = vadd.f32 %v1774_v7, %v503_v44  ;;  %v552_v49 = vadd.f32 %v1774_v7, %v551_v45 }
  0xdf   : > { %890 = vst [vmem:[%s1795_s12 + $0xb8] sm:$0xff] %v826_v41 }
  0xe0   : > { %v842_v50 = vadd.f32 %v1787_v14, %v776_v46  ;;  %v858_v51 = vadd.f32 %v1787_v14, %v792_v47  ;;  %v679_v52 = vmax.f32 %v504_v48, 0.0  ;;  %v695_v53 = vmax.f32 %v552_v49, 0.0 }
  0xe1   : > { %v599_v54 = vpop.f32.mrf.mxu2  ;;  %v647_v55 = vpop.f32.mrf.mxu3 }
  0xe2   : > { %906 = vst [vmem:[%s1795_s12 + $0x138] sm:$0xff] %v842_v50  ;;  %v745_v56 = vmul.f32 %v1781_v11, %v679_v52  ;;  %v761_v57 = vmul.f32 %v1781_v11, %v695_v53  ;;  %v600_v58 = vadd.f32 %v1774_v7, %v599_v54  ;;  %v648_v59 = vadd.f32 %v1774_v7, %v647_v55 }
  0xe3   : > { %922 = vst [vmem:[%s1795_s12 + $0x1b8] sm:$0xff] %v858_v51 }
  0xe4   : > { %v811_v60 = vadd.f32 %v1787_v14, %v745_v56  ;;  %v827_v61 = vadd.f32 %v1787_v14, %v761_v57  ;;  %v711_v62 = vmax.f32 %v600_v58, 0.0  ;;  %v727_v63 = vmax.f32 %v648_v59, 0.0 }
  0xe5   : > { %v506_v0 = vpop.f32.mrf.mxu0  ;;  %v554_v1 = vpop.f32.mrf.mxu1 }
  0xe6   : > { %875 = vst [vmem:[%s1795_s12 + $0x40] sm:$0xff] %v811_v60  ;;  %v777_v2 = vmul.f32 %v1781_v11, %v711_v62  ;;  %v793_v3 = vmul.f32 %v1781_v11, %v727_v63  ;;  %v507_v4 = vadd.f32 %v1774_v7, %v506_v0  ;;  %v555_v5 = vadd.f32 %v1774_v7, %v554_v1 }
  0xe7   : > { %891 = vst [vmem:[%s1795_s12 + $0xc0] sm:$0xff] %v827_v61 }
  0xe8   : > { %v843_v6 = vadd.f32 %v1787_v14, %v777_v2  ;;  %v859_v8 = vadd.f32 %v1787_v14, %v793_v3  ;;  %v680_v9 = vmax.f32 %v507_v4, 0.0  ;;  %v696_v10 = vmax.f32 %v555_v5, 0.0 }
  0xe9   : > { %v602_v12 = vpop.f32.mrf.mxu2  ;;  %v650_v13 = vpop.f32.mrf.mxu3 }
  0xea   : > { %907 = vst [vmem:[%s1795_s12 + $0x140] sm:$0xff] %v843_v6  ;;  %v746_v15 = vmul.f32 %v1781_v11, %v680_v9  ;;  %v762_v16 = vmul.f32 %v1781_v11, %v696_v10  ;;  %v603_v17 = vadd.f32 %v1774_v7, %v602_v12  ;;  %v651_v18 = vadd.f32 %v1774_v7, %v650_v13 }
  0xeb   : > { %923 = vst [vmem:[%s1795_s12 + $0x1c0] sm:$0xff] %v859_v8 }
  0xec   : > { %v812_v19 = vadd.f32 %v1787_v14, %v746_v15  ;;  %v828_v20 = vadd.f32 %v1787_v14, %v762_v16  ;;  %v712_v21 = vmax.f32 %v603_v17, 0.0  ;;  %v728_v22 = vmax.f32 %v651_v18, 0.0 }
  0xed   : > { %v509_v23 = vpop.f32.mrf.mxu0  ;;  %v557_v24 = vpop.f32.mrf.mxu1 }
  0xee   : > { %876 = vst [vmem:[%s1795_s12 + $0x48] sm:$0xff] %v812_v19  ;;  %v778_v25 = vmul.f32 %v1781_v11, %v712_v21  ;;  %v794_v26 = vmul.f32 %v1781_v11, %v728_v22  ;;  %v510_v27 = vadd.f32 %v1774_v7, %v509_v23  ;;  %v558_v28 = vadd.f32 %v1774_v7, %v557_v24 }
  0xef   : > { %892 = vst [vmem:[%s1795_s12 + $0xc8] sm:$0xff] %v828_v20 }
  0xf0   : > { %v844_v29 = vadd.f32 %v1787_v14, %v778_v25  ;;  %v860_v30 = vadd.f32 %v1787_v14, %v794_v26  ;;  %v681_v31 = vmax.f32 %v510_v27, 0.0  ;;  %v697_v32 = vmax.f32 %v558_v28, 0.0 }
  0xf1   : > { %v605_v33 = vpop.f32.mrf.mxu2  ;;  %v653_v34 = vpop.f32.mrf.mxu3 }
  0xf2   : > { %908 = vst [vmem:[%s1795_s12 + $0x148] sm:$0xff] %v844_v29  ;;  %v747_v35 = vmul.f32 %v1781_v11, %v681_v31  ;;  %v763_v36 = vmul.f32 %v1781_v11, %v697_v32  ;;  %v606_v37 = vadd.f32 %v1774_v7, %v605_v33  ;;  %v654_v38 = vadd.f32 %v1774_v7, %v653_v34 }
  0xf3   : > { %924 = vst [vmem:[%s1795_s12 + $0x1c8] sm:$0xff] %v860_v30 }
  0xf4   : > { %v813_v39 = vadd.f32 %v1787_v14, %v747_v35  ;;  %v829_v40 = vadd.f32 %v1787_v14, %v763_v36  ;;  %v713_v41 = vmax.f32 %v606_v37, 0.0  ;;  %v729_v42 = vmax.f32 %v654_v38, 0.0 }
  0xf5   : > { %v512_v43 = vpop.f32.mrf.mxu0  ;;  %v560_v44 = vpop.f32.mrf.mxu1 }
  0xf6   : > { %877 = vst [vmem:[%s1795_s12 + $0x50] sm:$0xff] %v813_v39  ;;  %v779_v45 = vmul.f32 %v1781_v11, %v713_v41  ;;  %v795_v46 = vmul.f32 %v1781_v11, %v729_v42  ;;  %v513_v47 = vadd.f32 %v1774_v7, %v512_v43  ;;  %v561_v48 = vadd.f32 %v1774_v7, %v560_v44 }
  0xf7   : > { %893 = vst [vmem:[%s1795_s12 + $0xd0] sm:$0xff] %v829_v40 }
  0xf8   : > { %v845_v49 = vadd.f32 %v1787_v14, %v779_v45  ;;  %v861_v50 = vadd.f32 %v1787_v14, %v795_v46  ;;  %v682_v51 = vmax.f32 %v513_v47, 0.0  ;;  %v698_v52 = vmax.f32 %v561_v48, 0.0 }
  0xf9   : > { %v608_v53 = vpop.f32.mrf.mxu2  ;;  %v656_v54 = vpop.f32.mrf.mxu3 }
  0xfa   : > { %909 = vst [vmem:[%s1795_s12 + $0x150] sm:$0xff] %v845_v49  ;;  %v748_v55 = vmul.f32 %v1781_v11, %v682_v51  ;;  %v764_v56 = vmul.f32 %v1781_v11, %v698_v52  ;;  %v609_v57 = vadd.f32 %v1774_v7, %v608_v53  ;;  %v657_v58 = vadd.f32 %v1774_v7, %v656_v54 }
  0xfb   : > { %925 = vst [vmem:[%s1795_s12 + $0x1d0] sm:$0xff] %v861_v50 }
  0xfc   : > { %v814_v59 = vadd.f32 %v1787_v14, %v748_v55  ;;  %v830_v60 = vadd.f32 %v1787_v14, %v764_v56  ;;  %v714_v61 = vmax.f32 %v609_v57, 0.0  ;;  %v730_v62 = vmax.f32 %v657_v58, 0.0 }
  0xfd   : > { %v515_v63 = vpop.f32.mrf.mxu0  ;;  %v563_v0 = vpop.f32.mrf.mxu1 }
  0xfe   : > { %878 = vst [vmem:[%s1795_s12 + $0x58] sm:$0xff] %v814_v59  ;;  %v780_v1 = vmul.f32 %v1781_v11, %v714_v61  ;;  %v796_v2 = vmul.f32 %v1781_v11, %v730_v62  ;;  %v516_v3 = vadd.f32 %v1774_v7, %v515_v63  ;;  %v564_v4 = vadd.f32 %v1774_v7, %v563_v0 }
  0xff   : > { %894 = vst [vmem:[%s1795_s12 + $0xd8] sm:$0xff] %v830_v60 }
 0x100   : > { %v846_v5 = vadd.f32 %v1787_v14, %v780_v1  ;;  %v862_v6 = vadd.f32 %v1787_v14, %v796_v2  ;;  %v683_v8 = vmax.f32 %v516_v3, 0.0  ;;  %v699_v9 = vmax.f32 %v564_v4, 0.0 }
 0x101   : > { %v611_v10 = vpop.f32.mrf.mxu2  ;;  %v659_v12 = vpop.f32.mrf.mxu3 }
 0x102   : > { %910 = vst [vmem:[%s1795_s12 + $0x158] sm:$0xff] %v846_v5  ;;  %v749_v13 = vmul.f32 %v1781_v11, %v683_v8  ;;  %v765_v15 = vmul.f32 %v1781_v11, %v699_v9  ;;  %v612_v16 = vadd.f32 %v1774_v7, %v611_v10  ;;  %v660_v17 = vadd.f32 %v1774_v7, %v659_v12 }
 0x103   : > { %926 = vst [vmem:[%s1795_s12 + $0x1d8] sm:$0xff] %v862_v6 }
 0x104   : > { %v815_v18 = vadd.f32 %v1787_v14, %v749_v13  ;;  %v831_v19 = vadd.f32 %v1787_v14, %v765_v15  ;;  %v715_v20 = vmax.f32 %v612_v16, 0.0  ;;  %v731_v21 = vmax.f32 %v660_v17, 0.0 }
 0x105   : > { %v518_v22 = vpop.f32.mrf.mxu0  ;;  %v566_v23 = vpop.f32.mrf.mxu1 }
 0x106   : > { %879 = vst [vmem:[%s1795_s12 + $0x60] sm:$0xff] %v815_v18  ;;  %v781_v24 = vmul.f32 %v1781_v11, %v715_v20  ;;  %v797_v25 = vmul.f32 %v1781_v11, %v731_v21  ;;  %v519_v26 = vadd.f32 %v1774_v7, %v518_v22  ;;  %v567_v27 = vadd.f32 %v1774_v7, %v566_v23 }
 0x107   : > { %895 = vst [vmem:[%s1795_s12 + $0xe0] sm:$0xff] %v831_v19 }
 0x108   : > { %v847_v28 = vadd.f32 %v1787_v14, %v781_v24  ;;  %v863_v29 = vadd.f32 %v1787_v14, %v797_v25  ;;  %v684_v30 = vmax.f32 %v519_v26, 0.0  ;;  %v700_v31 = vmax.f32 %v567_v27, 0.0 }
 0x109   : > { %v614_v32 = vpop.f32.mrf.mxu2  ;;  %v662_v33 = vpop.f32.mrf.mxu3 }
 0x10a   : > { %911 = vst [vmem:[%s1795_s12 + $0x160] sm:$0xff] %v847_v28  ;;  %v750_v34 = vmul.f32 %v1781_v11, %v684_v30  ;;  %v766_v35 = vmul.f32 %v1781_v11, %v700_v31  ;;  %v615_v36 = vadd.f32 %v1774_v7, %v614_v32  ;;  %v663_v37 = vadd.f32 %v1774_v7, %v662_v33 }
 0x10b   : > { %927 = vst [vmem:[%s1795_s12 + $0x1e0] sm:$0xff] %v863_v29 }
 0x10c   : > { %v816_v38 = vadd.f32 %v1787_v14, %v750_v34  ;;  %v832_v39 = vadd.f32 %v1787_v14, %v766_v35  ;;  %v716_v40 = vmax.f32 %v615_v36, 0.0  ;;  %v732_v41 = vmax.f32 %v663_v37, 0.0 }
 0x10d   : > { %v521_v42 = vpop.f32.mrf.mxu0  ;;  %v569_v43 = vpop.f32.mrf.mxu1 }
 0x10e   : > { %880 = vst [vmem:[%s1795_s12 + $0x68] sm:$0xff] %v816_v38  ;;  %v782_v44 = vmul.f32 %v1781_v11, %v716_v40  ;;  %v798_v45 = vmul.f32 %v1781_v11, %v732_v41  ;;  %v522_v46 = vadd.f32 %v1774_v7, %v521_v42  ;;  %v570_v47 = vadd.f32 %v1774_v7, %v569_v43 }
 0x10f   : > { %896 = vst [vmem:[%s1795_s12 + $0xe8] sm:$0xff] %v832_v39 }
 0x110   : > { %v848_v48 = vadd.f32 %v1787_v14, %v782_v44  ;;  %v864_v49 = vadd.f32 %v1787_v14, %v798_v45  ;;  %v685_v50 = vmax.f32 %v522_v46, 0.0  ;;  %v701_v51 = vmax.f32 %v570_v47, 0.0 }
 0x111   : > { %v617_v52 = vpop.f32.mrf.mxu2  ;;  %v665_v53 = vpop.f32.mrf.mxu3 }
 0x112   : > { %912 = vst [vmem:[%s1795_s12 + $0x168] sm:$0xff] %v848_v48  ;;  %v751_v54 = vmul.f32 %v1781_v11, %v685_v50  ;;  %v767_v55 = vmul.f32 %v1781_v11, %v701_v51  ;;  %v618_v56 = vadd.f32 %v1774_v7, %v617_v52  ;;  %v666_v57 = vadd.f32 %v1774_v7, %v665_v53 }
 0x113   : > { %928 = vst [vmem:[%s1795_s12 + $0x1e8] sm:$0xff] %v864_v49 }
 0x114   : > { %v817_v58 = vadd.f32 %v1787_v14, %v751_v54  ;;  %v833_v59 = vadd.f32 %v1787_v14, %v767_v55  ;;  %v717_v60 = vmax.f32 %v618_v56, 0.0  ;;  %v733_v61 = vmax.f32 %v666_v57, 0.0 }
 0x115   : > { %v524_v62 = vpop.f32.mrf.mxu0  ;;  %v572_v63 = vpop.f32.mrf.mxu1 }
 0x116   : > { %881 = vst [vmem:[%s1795_s12 + $0x70] sm:$0xff] %v817_v58  ;;  %v783_v0 = vmul.f32 %v1781_v11, %v717_v60  ;;  %v799_v1 = vmul.f32 %v1781_v11, %v733_v61  ;;  %v525_v2 = vadd.f32 %v1774_v7, %v524_v62  ;;  %v573_v3 = vadd.f32 %v1774_v7, %v572_v63 }
 0x117   : > { %897 = vst [vmem:[%s1795_s12 + $0xf0] sm:$0xff] %v833_v59 }
 0x118   : > { %v849_v4 = vadd.f32 %v1787_v14, %v783_v0  ;;  %v865_v5 = vadd.f32 %v1787_v14, %v799_v1  ;;  %v686_v6 = vmax.f32 %v525_v2, 0.0  ;;  %v702_v8 = vmax.f32 %v573_v3, 0.0 }
 0x119   : > { %v620_v9 = vpop.f32.mrf.mxu2  ;;  %v668_v10 = vpop.f32.mrf.mxu3 }
 0x11a   : > { %913 = vst [vmem:[%s1795_s12 + $0x170] sm:$0xff] %v849_v4  ;;  %v752_v12 = vmul.f32 %v1781_v11, %v686_v6  ;;  %v768_v13 = vmul.f32 %v1781_v11, %v702_v8  ;;  %v621_v15 = vadd.f32 %v1774_v7, %v620_v9  ;;  %v669_v16 = vadd.f32 %v1774_v7, %v668_v10 }
 0x11b   : > { %929 = vst [vmem:[%s1795_s12 + $0x1f0] sm:$0xff] %v865_v5 }
 0x11c   : > { %v818_v17 = vadd.f32 %v1787_v14, %v752_v12  ;;  %v834_v18 = vadd.f32 %v1787_v14, %v768_v13  ;;  %v718_v19 = vmax.f32 %v621_v15, 0.0  ;;  %v734_v20 = vmax.f32 %v669_v16, 0.0 }
 0x11e   : > { %882 = vst [vmem:[%s1795_s12 + $0x78] sm:$0xff] %v818_v17  ;;  %v784_v21 = vmul.f32 %v1781_v11, %v718_v19  ;;  %v800_v22 = vmul.f32 %v1781_v11, %v734_v20 }
 0x11f   : > { %898 = vst [vmem:[%s1795_s12 + $0xf8] sm:$0xff] %v834_v18  ;;  %937 = sbr.rel (!%p1608_p4) target bundleno = 356 (0x164), region = 36 }
 0x120   : > { %v850_v23 = vadd.f32 %v1787_v14, %v784_v21  ;;  %v866_v24 = vadd.f32 %v1787_v14, %v800_v22 }
 0x122   : > { %914 = vst [vmem:[%s1795_s12 + $0x178] sm:$0xff] %v850_v23 }
 0x123   : > { %930 = vst [vmem:[%s1795_s12 + $0x1f8] sm:$0xff] %v866_v24 }
 0x124   : > { %s2201_s29 = smov (!%p940_p8, %s939_s29), 64 }
 0x125   : > { %s1345_s7 = sshll.u32 %s2201_s29, 3 }
 0x126   : > { %p1348_p9 = scmp.eq.s32.totalorder %s1345_s7, 0 }
 0x127   : > { %s2058_s8 = sshrl.u32 (!%p1348_p9), %s2201_s29, 5 }
 0x128   : > { %948 = sbr.rel (%p1348_p9) target bundleno = 356 (0x164), region = 40  ;;  %p1349_p10 = scmp.le.s32.totalorder (!%p1348_p9), %s2058_s8, 0 }
 0x12d   : > { %1227 = sbr.rel (%p1349_p10) target bundleno = 339 (0x153), region = 116  ;;  %s2192_s15 = smov (!%p1349_p10), %s2052_s6 }
 0x12e   : > { %s2193_s20 = smov (!%p1349_p10), %s1795_s12  ;;  %s2067_s25 = smov (!%p1349_p10), 0  }
 0x12f   : > { %s2069_s9 = smov (!%p1349_p10), 0  }
 0x132 LB: >> { %v1073_v7 = vld [vmem:[%s1537_s20] sm:$0xff]  ;;  %v1075_v11 = vld [vmem:[%s1537_s20 + $0x8] sm:$0xff]  ;;  %v1077_v14 = vld [vmem:[%s1537_s20 + $0x10] sm:$0xff]  ;;  %s1137_s10 = sadd.s32 1, %s1541_s25  ;;  %s1067_s9 = sadd.s32 1, %s1545_s9   ;;  %s1545_s9 = sphi %s2069_s9, %s1067_s9   ;;  %s1541_s25 = sphi %s2067_s25, %s2196_s25   ;;  %s1537_s20 = sphi %s2193_s20, %s2195_s20   ;;  %s1533_s15 = sphi %s2192_s15, %s2194_s15  }
 0x133   : >> { %1074 = vst [vmem:[%s1533_s15] sm:$0xff] %v1073_v7  ;;  %v1079_v25 = vld [vmem:[%s1537_s20 + $0x18] sm:$0xff]  ;;  %p1138_p11 = scmp.ge.s32.totalorder %s1137_s10, %s2058_s8  ;;  %v1081_v26 = vld [vmem:[%s1537_s20 + $0x20] sm:$0xff]  ;;  %v1083_v27 = vld [vmem:[%s1537_s20 + $0x28] sm:$0xff]  ;;  %p1066_p12 = scmp.ge.s32.totalorder %s1067_s9, %s2058_s8 }
 0x134   : >> { %1076 = vst [vmem:[%s1533_s15 + $0x8] sm:$0xff] %v1075_v11  ;;  %v1085_v28 = vld [vmem:[%s1537_s20 + $0x30] sm:$0xff]  ;;  %v1087_v29 = vld [vmem:[%s1537_s20 + $0x38] sm:$0xff]  ;;  %v1089_v30 = vld [vmem:[%s1537_s20 + $0x40] sm:$0xff] }
 0x135   : >> { %1078 = vst [vmem:[%s1533_s15 + $0x10] sm:$0xff] %v1077_v14  ;;  %s2203_s10 = smov (%p1138_p11, %s1137_s10), 0  ;;  %v1091_v31 = vld [vmem:[%s1537_s20 + $0x48] sm:$0xff]  ;;  %v1093_v32 = vld [vmem:[%s1537_s20 + $0x50] sm:$0xff]  ;;  %v1095_v33 = vld [vmem:[%s1537_s20 + $0x58] sm:$0xff] }
 0x136   : >> { %1080 = vst [vmem:[%s1533_s15 + $0x18] sm:$0xff] %v1079_v25  ;;  %s1350_s11 = sshll.u32 %s2203_s10, 8  ;;  %v1097_v34 = vld [vmem:[%s1537_s20 + $0x60] sm:$0xff]  ;;  %v1099_v35 = vld [vmem:[%s1537_s20 + $0x68] sm:$0xff]  ;;  %v1101_v36 = vld [vmem:[%s1537_s20 + $0x70] sm:$0xff]  ;;  %s2196_s25 = smov %s2203_s10 }
 0x137   : >> { %1082 = vst [vmem:[%s1533_s15 + $0x20] sm:$0xff] %v1081_v26  ;;  %s2101_s14 = scalar_lea.vmem %s1795_s12, %s1350_s11 [#allocation2]   ;;  %s2104_s17 = scalar_lea.vmem %s2052_s6, %s1350_s11   ;;  %v1103_v37 = vld [vmem:[%s1537_s20 + $0x78] sm:$0xff]  ;;  %v1105_v38 = vld [vmem:[%s1537_s20 + $0x80] sm:$0xff]  ;;  %v1107_v39 = vld [vmem:[%s1537_s20 + $0x88] sm:$0xff] }
 0x138   : >> { %1084 = vst [vmem:[%s1533_s15 + $0x28] sm:$0xff] %v1083_v27  ;;  %v1109_v40 = vld [vmem:[%s1537_s20 + $0x90] sm:$0xff]  ;;  %v1111_v41 = vld [vmem:[%s1537_s20 + $0x98] sm:$0xff]  ;;  %v1113_v42 = vld [vmem:[%s1537_s20 + $0xa0] sm:$0xff] }
 0x139   : >> { %1086 = vst [vmem:[%s1533_s15 + $0x30] sm:$0xff] %v1085_v28  ;;  %v1115_v43 = vld [vmem:[%s1537_s20 + $0xa8] sm:$0xff]  ;;  %v1117_v44 = vld [vmem:[%s1537_s20 + $0xb0] sm:$0xff]  ;;  %v1119_v45 = vld [vmem:[%s1537_s20 + $0xb8] sm:$0xff] }
 0x13a   : >> { %1088 = vst [vmem:[%s1533_s15 + $0x38] sm:$0xff] %v1087_v29  ;;  %v1121_v46 = vld [vmem:[%s1537_s20 + $0xc0] sm:$0xff]  ;;  %v1123_v47 = vld [vmem:[%s1537_s20 + $0xc8] sm:$0xff]  ;;  %v1125_v48 = vld [vmem:[%s1537_s20 + $0xd0] sm:$0xff] }
 0x13b   : >> { %1090 = vst [vmem:[%s1533_s15 + $0x40] sm:$0xff] %v1089_v30  ;;  %v1127_v49 = vld [vmem:[%s1537_s20 + $0xd8] sm:$0xff]  ;;  %v1129_v50 = vld [vmem:[%s1537_s20 + $0xe0] sm:$0xff]  ;;  %v1131_v51 = vld [vmem:[%s1537_s20 + $0xe8] sm:$0xff] }
 0x13c   : >> { %1092 = vst [vmem:[%s1533_s15 + $0x48] sm:$0xff] %v1091_v31  ;;  %v1133_v52 = vld [vmem:[%s1537_s20 + $0xf0] sm:$0xff]  ;;  %v1135_v53 = vld [vmem:[%s1537_s20 + $0xf8] sm:$0xff]  ;;  %s2195_s20 = smov %s2101_s14 }
 0x13d   : >> { %1094 = vst [vmem:[%s1533_s15 + $0x50] sm:$0xff] %v1093_v32 }
 0x13e   : >> { %1096 = vst [vmem:[%s1533_s15 + $0x58] sm:$0xff] %v1095_v33 }
 0x13f   : >> { %1098 = vst [vmem:[%s1533_s15 + $0x60] sm:$0xff] %v1097_v34 }
 0x140   : >> { %1100 = vst [vmem:[%s1533_s15 + $0x68] sm:$0xff] %v1099_v35 }
 0x141   : >> { %1102 = vst [vmem:[%s1533_s15 + $0x70] sm:$0xff] %v1101_v36 }
 0x142   : >> { %1104 = vst [vmem:[%s1533_s15 + $0x78] sm:$0xff] %v1103_v37 }
 0x143   : >> { %1106 = vst [vmem:[%s1533_s15 + $0x80] sm:$0xff] %v1105_v38 }
 0x144   : >> { %1108 = vst [vmem:[%s1533_s15 + $0x88] sm:$0xff] %v1107_v39 }
 0x145   : >> { %1110 = vst [vmem:[%s1533_s15 + $0x90] sm:$0xff] %v1109_v40 }
 0x146   : >> { %1112 = vst [vmem:[%s1533_s15 + $0x98] sm:$0xff] %v1111_v41 }
 0x147   : >> { %1114 = vst [vmem:[%s1533_s15 + $0xa0] sm:$0xff] %v1113_v42 }
 0x148   : >> { %1116 = vst [vmem:[%s1533_s15 + $0xa8] sm:$0xff] %v1115_v43 }
 0x149   : >> { %1118 = vst [vmem:[%s1533_s15 + $0xb0] sm:$0xff] %v1117_v44 }
 0x14a   : >> { %1120 = vst [vmem:[%s1533_s15 + $0xb8] sm:$0xff] %v1119_v45 }
 0x14b   : >> { %1122 = vst [vmem:[%s1533_s15 + $0xc0] sm:$0xff] %v1121_v46 }
 0x14c   : >> { %1124 = vst [vmem:[%s1533_s15 + $0xc8] sm:$0xff] %v1123_v47 }
 0x14d   : >> { %1126 = vst [vmem:[%s1533_s15 + $0xd0] sm:$0xff] %v1125_v48 }
 0x14e   : >> { %1128 = vst [vmem:[%s1533_s15 + $0xd8] sm:$0xff] %v1127_v49  ;;  %1069 = sbr.rel (!%p1066_p12) target bundleno = 306 (0x132), region = 122 }
 0x14f   : >> { %1130 = vst [vmem:[%s1533_s15 + $0xe0] sm:$0xff] %v1129_v50 }
 0x150   : >> { %1132 = vst [vmem:[%s1533_s15 + $0xe8] sm:$0xff] %v1131_v51 }
 0x151   : >> { %1134 = vst [vmem:[%s1533_s15 + $0xf0] sm:$0xff] %v1133_v52 }
 0x152   : >> { %1136 = vst [vmem:[%s1533_s15 + $0xf8] sm:$0xff] %v1135_v53  ;;  %s2194_s15 = smov %s2104_s17 }
 0x153 PF: > { %s2169_s18 = sand.u32 31, %s2201_s29   ;;  %s1361_s21 = sshll.u32 %s2058_s8, 8 }
 0x154   : > { %s1148_s22 = scalar_lea.vmem %s1795_s12, %s1361_s21 [#allocation2]   ;;  %s1150_s23 = scalar_lea.vmem %s2052_s6, %s1361_s21  }
 0x155   : > { %p1355_p13 = scmp.le.s32.totalorder %s2169_s18, 0 }
 0x156   : > { %s1547_s24 = smov (!%p1355_p13), %s1150_s23   ;;  %s1551_s26 = smov (!%p1355_p13), %s1148_s22  }
 0x157   : > { %1241 = sbr.rel (%p1355_p13) target bundleno = 356 (0x164), region = 127  ;;  %s1555_s27 = smov (!%p1355_p13), 0  }
 0x158   : > { %s1559_s28 = smov (!%p1355_p13), 0  }
 0x15c LB: >> { %v1160_v54 = vld [vmem:[%s1553_s26] sm:$0xff]  ;;  %s1162_s29 = sadd.s32 1, %s1557_s27  ;;  %s1154_s28 = sadd.s32 1, %s1561_s28   ;;  %s1561_s28 = sphi %s1559_s28, %s1154_s28   ;;  %s1557_s27 = sphi %s1555_s27, %s1556_s27   ;;  %s1553_s26 = sphi %s1551_s26, %s1167_s26   ;;  %s1549_s24 = sphi %s1547_s24, %s1168_s24  }
 0x15d   : >> { %1161 = vst [vmem:[%s1549_s24] sm:$0xff] %v1160_v54  ;;  %p1163_p0 = scmp.ge.s32.totalorder %s1162_s29, %s2169_s18  ;;  %p1153_p1 = scmp.ge.s32.totalorder %s1154_s28, %s2169_s18 }
 0x15f   : >> { %s2205_s29 = smov (%p1163_p0, %s1162_s29), 0  ;;  %1156 = sbr.rel (!%p1153_p1) target bundleno = 348 (0x15c), region = 133 }
 0x160   : >> { %s1356_s12 = sshll.u32 %s2205_s29, 3  ;;  %s1556_s27 = smov %s2205_s29  }
 0x161   : >> { %s1167_s26 = scalar_lea.vmem %s1148_s22, %s1356_s12 [#allocation2]   ;;  %s1168_s24 = scalar_lea.vmem %s1150_s23, %s1356_s12  }
 0x164 PF: > { %p10_p2 = scmp.ge.s32.totalorder %s1598_s16, 4   ;;  %s2197_s12 = smov %s1525_s13 }
 0x165   : > { %s2198_s13 = smov %s1606_s19  ;;  %s2199_s14 = smov %s1598_s16 }
 0x166   :  { %12 = sbr.rel (!%p10_p2) target bundleno = 2 (0x2), region = 144 }

// kernel: fake_net2_forward.7
= control target key start
LH: loop header
LB: loop body
LE: loop exit
PB: predicated region body
PF: predicated region fallthrough
CT: control target
= control target key end

     0   :  { %s612_s6 = smov 0   ;;  %s907_s0 = inlined_call_operand.vmem [shape: f32[2,30,15,128], index: 0, kind: input, shape index: {}]   ;;  %s908_s1 = inlined_call_operand.vmem [shape: f32[2,15,15,64], index: 1, kind: output, shape index: {}]  }
   0x1 LB: > { %s487_s7 = sadd.s32 4294967295, %s599_s6   ;;  %p491_p0 = scmp.ge.s32.totalorder %s599_s6, 1  ;;  %s599_s6 = sphi %s612_s6, %s11_s6  }
   0x2   : > { %p87_p1 = scmp.lt.s32.totalorder %s599_s6, 3 }
   0x4   : > { %p88_p2 = pnand %p491_p0, %p87_p1 }
   0x5   : > { %p107_p3 = scmp.lt.s32.totalorder (!%p88_p2), %s487_s7, 1  ;;  %s601_s12 = smov (!%p88_p2), 64  }
   0x6   : > { %91 = sbr.rel (%p88_p2) target bundleno = 209 (0xd1), region = 24 }
   0xb   : > { %s910_s7 = smov (!%p107_p3, %s487_s7), 1  ;;  %vm134_vm0 = vcmask 523264   ;;  %vm136_vm1 = vcmask 522240  }
   0xc   : > { %s582_s8 = smul.u32 480, %s910_s7 }
   0xd   : > { %s583_s13 = smul.u32 240, %s910_s7 }
   0xe   : > { %s626_s11 = scalar_lea.vmem %s907_s0, %s582_s8 }
   0xf   : > { %v496_v0 = vld [vmem:[%s626_s11 + $0x20] sm:$0xff]  ;;  %v498_v1 = vld [vmem:[%s626_s11 + $0x30] sm:$0xff]  ;;  %v497_v6 = vld [vmem:[%s626_s11 + $0x28] sm:$0x7f]  ;;  %s812_s16 = scalar_lea.vmem %s908_s1, %s583_s13 }
  0x10   : > { %v117_v2 = vld [vmem:[%s626_s11] sm:$0xff]  ;;  %v631_v3 = vmax.f32 %v496_v0, %v498_v1  ;;  %v494_v4 = vld [vmem:[%s626_s11 + $0x10] sm:$0xff]  ;;  %v499_v7 = vld [vmem:[%s626_s11 + $0x38] sm:$0x7f] }
  0x11   : > { %v634_v5 = vmax.f32 %v117_v2, %v494_v4  ;;  %v502_v8 = vld [vmem:[%s626_s11 + $0x40] sm:$0xff]  ;;  %v504_v9 = vld [vmem:[%s626_s11 + $0x50] sm:$0xff]  ;;  %v118_v10 = vld [vmem:[%s626_s11 + $0x8] sm:$0x7f]  ;;  %v648_v13 = vmax.f32 %v497_v6, %v499_v7 }
  0x12   : > { %148 = vrot.lane.b32.xlu1 %v631_v3, %s601_s12  ;;  %v495_v11 = vld [vmem:[%s626_s11 + $0x18] sm:$0x7f]  ;;  %v646_v12 = vmax.f32 %v502_v8, %v504_v9  ;;  %v503_v15 = vld [vmem:[%s626_s11 + $0x48] sm:$0x7f]  ;;  %v508_v20 = vld [vmem:[%s626_s11 + $0x60] sm:$0xff] }
  0x13   : > { %126 = vrot.lane.b32.xlu0 %v634_v5, %s601_s12  ;;  %v652_v14 = vmax.f32 %v118_v10, %v495_v11  ;;  %v505_v16 = vld [vmem:[%s626_s11 + $0x58] sm:$0x7f]  ;;  %v509_v18 = vld [vmem:[%s626_s11 + $0x68] sm:$0x7f]  ;;  %v510_v21 = vld [vmem:[%s626_s11 + $0x70] sm:$0xff] }
  0x14   : > { %169 = vrot.lane.b32.xlu2 %v646_v12, %s601_s12  ;;  %v658_v17 = vmax.f32 %v503_v15, %v505_v16  ;;  %v511_v19 = vld [vmem:[%s626_s11 + $0x78] sm:$0x7f]  ;;  %v670_v23 = vmax.f32 %v508_v20, %v510_v21  ;;  %v514_v24 = vld [vmem:[%s626_s11 + $0x80] sm:$0xff]  ;;  %v516_v25 = vld [vmem:[%s626_s11 + $0x90] sm:$0xff] }
  0x15   : > { %v666_v22 = vmax.f32 %v509_v18, %v511_v19  ;;  %v676_v26 = vmax.f32 %v514_v24, %v516_v25  ;;  %v520_v27 = vld [vmem:[%s626_s11 + $0xa0] sm:$0xff]  ;;  %v522_v28 = vld [vmem:[%s626_s11 + $0xb0] sm:$0xff]  ;;  %v515_v29 = vld [vmem:[%s626_s11 + $0x88] sm:$0x7f] }
  0x16   : > { %v517_v30 = vld [vmem:[%s626_s11 + $0x98] sm:$0x7f]  ;;  %v684_v31 = vmax.f32 %v520_v27, %v522_v28  ;;  %v521_v33 = vld [vmem:[%s626_s11 + $0xa8] sm:$0x7f]  ;;  %v526_v38 = vld [vmem:[%s626_s11 + $0xc0] sm:$0xff] }
  0x17   : > { %v688_v32 = vmax.f32 %v515_v29, %v517_v30  ;;  %v523_v34 = vld [vmem:[%s626_s11 + $0xb8] sm:$0x7f]  ;;  %v527_v36 = vld [vmem:[%s626_s11 + $0xc8] sm:$0x7f]  ;;  %v528_v39 = vld [vmem:[%s626_s11 + $0xd0] sm:$0xff] }
  0x18   : > { %v694_v35 = vmax.f32 %v521_v33, %v523_v34  ;;  %v529_v37 = vld [vmem:[%s626_s11 + $0xd8] sm:$0x7f]  ;;  %v706_v41 = vmax.f32 %v526_v38, %v528_v39  ;;  %v532_v42 = vld [vmem:[%s626_s11 + $0xe0] sm:$0xff]  ;;  %v534_v43 = vld [vmem:[%s626_s11 + $0xf0] sm:$0xff] }
  0x19   : > { %v702_v40 = vmax.f32 %v527_v36, %v529_v37  ;;  %v712_v44 = vmax.f32 %v532_v42, %v534_v43  ;;  %v538_v45 = vld [vmem:[%s626_s11 + $0x100] sm:$0xff]  ;;  %v540_v46 = vld [vmem:[%s626_s11 + $0x110] sm:$0xff]  ;;  %v533_v47 = vld [vmem:[%s626_s11 + $0xe8] sm:$0x7f] }
  0x1a   : > { %150 = vrot.lane.b32.xlu1 %v648_v13, %s601_s12  ;;  %v535_v48 = vld [vmem:[%s626_s11 + $0xf8] sm:$0x7f]  ;;  %v720_v49 = vmax.f32 %v538_v45, %v540_v46  ;;  %v539_v51 = vld [vmem:[%s626_s11 + $0x108] sm:$0x7f]  ;;  %v544_v56 = vld [vmem:[%s626_s11 + $0x120] sm:$0xff] }
  0x1b   : > { %128 = vrot.lane.b32.xlu0 %v652_v14, %s601_s12  ;;  %v724_v50 = vmax.f32 %v533_v47, %v535_v48  ;;  %v541_v52 = vld [vmem:[%s626_s11 + $0x118] sm:$0x7f]  ;;  %v545_v54 = vld [vmem:[%s626_s11 + $0x128] sm:$0x7f]  ;;  %v546_v57 = vld [vmem:[%s626_s11 + $0x130] sm:$0xff] }
  0x1c   : > { %171 = vrot.lane.b32.xlu2 %v658_v17, %s601_s12  ;;  %v730_v53 = vmax.f32 %v539_v51, %v541_v52  ;;  %v547_v55 = vld [vmem:[%s626_s11 + $0x138] sm:$0x7f]  ;;  %v742_v59 = vmax.f32 %v544_v56, %v546_v57  ;;  %v550_v60 = vld [vmem:[%s626_s11 + $0x140] sm:$0xff]  ;;  %v552_v61 = vld [vmem:[%s626_s11 + $0x150] sm:$0xff] }
  0x1d   : > { %v738_v58 = vmax.f32 %v545_v54, %v547_v55  ;;  %v748_v62 = vmax.f32 %v550_v60, %v552_v61  ;;  %v556_v63 = vld [vmem:[%s626_s11 + $0x160] sm:$0xff]  ;;  %v558_v0 = vld [vmem:[%s626_s11 + $0x170] sm:$0xff]  ;;  %v551_v1 = vld [vmem:[%s626_s11 + $0x148] sm:$0x7f] }
  0x1e   : > { %v553_v2 = vld [vmem:[%s626_s11 + $0x158] sm:$0x7f]  ;;  %v756_v4 = vmax.f32 %v556_v63, %v558_v0  ;;  %v557_v7 = vld [vmem:[%s626_s11 + $0x168] sm:$0x7f]  ;;  %v562_v15 = vld [vmem:[%s626_s11 + $0x180] sm:$0xff] }
  0x1f   : > { %v760_v6 = vmax.f32 %v551_v1, %v553_v2  ;;  %v559_v8 = vld [vmem:[%s626_s11 + $0x178] sm:$0x7f]  ;;  %v563_v10 = vld [vmem:[%s626_s11 + $0x188] sm:$0x7f]  ;;  %v564_v16 = vld [vmem:[%s626_s11 + $0x190] sm:$0xff] }
  0x20   : > { %v766_v9 = vmax.f32 %v557_v7, %v559_v8  ;;  %v565_v11 = vld [vmem:[%s626_s11 + $0x198] sm:$0x7f]  ;;  %v778_v19 = vmax.f32 %v562_v15, %v564_v16  ;;  %v568_v20 = vld [vmem:[%s626_s11 + $0x1a0] sm:$0xff]  ;;  %v570_v21 = vld [vmem:[%s626_s11 + $0x1b0] sm:$0xff] }
  0x21   : > { %v774_v18 = vmax.f32 %v563_v10, %v565_v11  ;;  %v784_v24 = vmax.f32 %v568_v20, %v570_v21  ;;  %v574_v25 = vld [vmem:[%s626_s11 + $0x1c0] sm:$0xff]  ;;  %v576_v27 = vld [vmem:[%s626_s11 + $0x1d0] sm:$0xff]  ;;  %v569_v28 = vld [vmem:[%s626_s11 + $0x1a8] sm:$0x7f] }
  0x22   : > { %192 = vrot.lane.b32.xlu1 %v666_v22, %s601_s12  ;;  %v571_v29 = vld [vmem:[%s626_s11 + $0x1b8] sm:$0x7f]  ;;  %v792_v30 = vmax.f32 %v574_v25, %v576_v27  ;;  %v575_v34 = vld [vmem:[%s626_s11 + $0x1c8] sm:$0x7f] }
  0x23   : > { %190 = vrot.lane.b32.xlu0 %v670_v23, %s601_s12  ;;  %v796_v33 = vmax.f32 %v569_v28, %v571_v29  ;;  %v577_v36 = vld [vmem:[%s626_s11 + $0x1d8] sm:$0x7f] }
  0x24   : > { %211 = vrot.lane.b32.xlu2 %v676_v26, %s601_s12  ;;  %v802_v37 = vmax.f32 %v575_v34, %v577_v36 }
  0x2a   : > { %232 = vrot.lane.b32.xlu1 %v684_v31, %s601_s12 }
  0x2b   : > { %213 = vrot.lane.b32.xlu0 %v688_v32, %s601_s12 }
  0x2c   : > { %234 = vrot.lane.b32.xlu2 %v694_v35, %s601_s12 }
  0x32   : > { %255 = vrot.lane.b32.xlu1 %v702_v40, %s601_s12 }
  0x33   : > { %253 = vrot.lane.b32.xlu0 %v706_v41, %s601_s12 }
  0x34   : > { %274 = vrot.lane.b32.xlu2 %v712_v44, %s601_s12 }
  0x3a   : > { %295 = vrot.lane.b32.xlu1 %v720_v49, %s601_s12 }
  0x3b   : > { %276 = vrot.lane.b32.xlu0 %v724_v50, %s601_s12 }
  0x3c   : > { %297 = vrot.lane.b32.xlu2 %v730_v53, %s601_s12 }
  0x42   : > { %318 = vrot.lane.b32.xlu1 %v738_v58, %s601_s12 }
  0x43   : > { %316 = vrot.lane.b32.xlu0 %v742_v59, %s601_s12 }
  0x44   : > { %337 = vrot.lane.b32.xlu2 %v748_v62, %s601_s12 }
  0x4a   : > { %358 = vrot.lane.b32.xlu1 %v756_v4, %s601_s12 }
  0x4b   : > { %339 = vrot.lane.b32.xlu0 %v760_v6, %s601_s12 }
  0x4c   : > { %360 = vrot.lane.b32.xlu2 %v766_v9, %s601_s12 }
  0x52   : > { %381 = vrot.lane.b32.xlu1 %v774_v18, %s601_s12 }
  0x53   : > { %379 = vrot.lane.b32.xlu0 %v778_v19, %s601_s12 }
  0x54   : > { %400 = vrot.lane.b32.xlu2 %v784_v24, %s601_s12 }
  0x5a   : > { %421 = vrot.lane.b32.xlu1 %v792_v30, %s601_s12 }
  0x5b   : > { %402 = vrot.lane.b32.xlu0 %v796_v33, %s601_s12 }
  0x5c   : > { %423 = vrot.lane.b32.xlu2 %v802_v37, %s601_s12 }
  0x6e   : > { %v170_v38 = vpop.permute.xlu2 %169 }
  0x6f   : > { %v175_v39 = vmax.f32 %v646_v12, %v170_v38 }
  0x71   : > { %506 = vst.msk [vmem:[%s812_s16 + $0x20] sm:$0xff] %vm134_vm0, %v175_v39 }
  0x76   : > { %v172_v42 = vpop.permute.xlu2 %171 }
  0x77   : > { %v176_v43 = vmax.f32 %v658_v17, %v172_v42 }
  0x79   : > { %507 = vst.msk [vmem:[%s812_s16 + $0x28] sm:$0x7f] %vm136_vm1, %v176_v43 }
  0x7e   : > { %v212_v45 = vpop.permute.xlu2 %211 }
  0x7f   : > { %v217_v46 = vmax.f32 %v676_v26, %v212_v45 }
  0x81   : > { %518 = vst.msk [vmem:[%s812_s16 + $0x40] sm:$0xff] %vm134_vm0, %v217_v46 }
  0x84   : > { %v149_v47 = vpop.permute.xlu1 %148 }
  0x85   : > { %v154_v48 = vmax.f32 %v631_v3, %v149_v47  ;;  %v127_v12 = vpop.permute.xlu0 %126 }
  0x86   : > { %v132_v51 = vmax.f32 %v634_v5, %v127_v12  ;;  %v235_v17 = vpop.permute.xlu2 %234 }
  0x87   : > { %500 = vst.msk [vmem:[%s812_s16 + $0x10] sm:$0xff] %vm134_vm0, %v154_v48  ;;  %v239_v52 = vmax.f32 %v694_v35, %v235_v17 }
  0x88   : > { %135 = vst.msk [vmem:[%s812_s16] sm:$0xff] %vm134_vm0, %v132_v51 }
  0x89   : > { %525 = vst.msk [vmem:[%s812_s16 + $0x58] sm:$0x7f] %vm136_vm1, %v239_v52 }
  0x8c   : > { %v151_v26 = vpop.permute.xlu1 %150 }
  0x8d   : > { %v155_v54 = vmax.f32 %v648_v13, %v151_v26  ;;  %v129_v3 = vpop.permute.xlu0 %128 }
  0x8e   : > { %v133_v55 = vmax.f32 %v652_v14, %v129_v3  ;;  %v275_v5 = vpop.permute.xlu2 %274 }
  0x8f   : > { %501 = vst.msk [vmem:[%s812_s16 + $0x18] sm:$0x7f] %vm136_vm1, %v155_v54  ;;  %v280_v56 = vmax.f32 %v712_v44, %v275_v5 }
  0x90   : > { %137 = vst.msk [vmem:[%s812_s16 + $0x8] sm:$0x7f] %vm136_vm1, %v133_v55 }
  0x91   : > { %536 = vst.msk [vmem:[%s812_s16 + $0x70] sm:$0xff] %vm134_vm0, %v280_v56 }
  0x94   : > { %v193_v35 = vpop.permute.xlu1 %192 }
  0x95   : > { %v197_v57 = vmax.f32 %v666_v22, %v193_v35  ;;  %v191_v13 = vpop.permute.xlu0 %190 }
  0x96   : > { %v196_v60 = vmax.f32 %v670_v23, %v191_v13  ;;  %v298_v14 = vpop.permute.xlu2 %297 }
  0x97   : > { %513 = vst.msk [vmem:[%s812_s16 + $0x38] sm:$0x7f] %vm136_vm1, %v197_v57  ;;  %v302_v61 = vmax.f32 %v730_v53, %v298_v14 }
  0x98   : > { %512 = vst.msk [vmem:[%s812_s16 + $0x30] sm:$0xff] %vm134_vm0, %v196_v60 }
  0x99   : > { %543 = vst.msk [vmem:[%s812_s16 + $0x88] sm:$0x7f] %vm136_vm1, %v302_v61 }
  0x9c   : > { %v233_v44 = vpop.permute.xlu1 %232 }
  0x9d   : > { %v238_v63 = vmax.f32 %v684_v31, %v233_v44  ;;  %v214_v22 = vpop.permute.xlu0 %213 }
  0x9e   : > { %v218_v0 = vmax.f32 %v688_v32, %v214_v22  ;;  %v338_v23 = vpop.permute.xlu2 %337 }
  0x9f   : > { %524 = vst.msk [vmem:[%s812_s16 + $0x50] sm:$0xff] %vm134_vm0, %v238_v63  ;;  %v343_v1 = vmax.f32 %v748_v62, %v338_v23 }
  0xa0   : > { %519 = vst.msk [vmem:[%s812_s16 + $0x48] sm:$0x7f] %vm136_vm1, %v218_v0 }
  0xa1   : > { %554 = vst.msk [vmem:[%s812_s16 + $0xa0] sm:$0xff] %vm134_vm0, %v343_v1 }
  0xa4   : > { %v256_v53 = vpop.permute.xlu1 %255 }
  0xa5   : > { %v260_v2 = vmax.f32 %v702_v40, %v256_v53  ;;  %v254_v31 = vpop.permute.xlu0 %253 }
  0xa6   : > { %v259_v7 = vmax.f32 %v706_v41, %v254_v31  ;;  %v361_v32 = vpop.permute.xlu2 %360 }
  0xa7   : > { %531 = vst.msk [vmem:[%s812_s16 + $0x68] sm:$0x7f] %vm136_vm1, %v260_v2  ;;  %v365_v8 = vmax.f32 %v766_v9, %v361_v32 }
  0xa8   : > { %530 = vst.msk [vmem:[%s812_s16 + $0x60] sm:$0xff] %vm134_vm0, %v259_v7 }
  0xa9   : > { %561 = vst.msk [vmem:[%s812_s16 + $0xb8] sm:$0x7f] %vm136_vm1, %v365_v8 }
  0xac   : > { %v296_v62 = vpop.permute.xlu1 %295 }
  0xad   : > { %v301_v10 = vmax.f32 %v720_v49, %v296_v62  ;;  %v277_v40 = vpop.permute.xlu0 %276 }
  0xae   : > { %v281_v11 = vmax.f32 %v724_v50, %v277_v40  ;;  %v401_v41 = vpop.permute.xlu2 %400 }
  0xaf   : > { %542 = vst.msk [vmem:[%s812_s16 + $0x80] sm:$0xff] %vm134_vm0, %v301_v10  ;;  %v406_v15 = vmax.f32 %v784_v24, %v401_v41 }
  0xb0   : > { %537 = vst.msk [vmem:[%s812_s16 + $0x78] sm:$0x7f] %vm136_vm1, %v281_v11 }
  0xb1   : > { %572 = vst.msk [vmem:[%s812_s16 + $0xd0] sm:$0xff] %vm134_vm0, %v406_v15 }
  0xb4   : > { %v319_v9 = vpop.permute.xlu1 %318 }
  0xb5   : > { %v323_v16 = vmax.f32 %v738_v58, %v319_v9  ;;  %v317_v20 = vpop.permute.xlu0 %316 }
  0xb6   : > { %v322_v49 = vmax.f32 %v742_v59, %v317_v20  ;;  %v424_v50 = vpop.permute.xlu2 %423 }
  0xb7   : > { %549 = vst.msk [vmem:[%s812_s16 + $0x98] sm:$0x7f] %vm136_vm1, %v323_v16  ;;  %v428_v21 = vmax.f32 %v802_v37, %v424_v50 }
  0xb8   : > { %548 = vst.msk [vmem:[%s812_s16 + $0x90] sm:$0xff] %vm134_vm0, %v322_v49 }
  0xb9   : > { %579 = vst.msk [vmem:[%s812_s16 + $0xe8] sm:$0x7f] %vm136_vm1, %v428_v21 }
  0xbc   : > { %v359_v24 = vpop.permute.xlu1 %358 }
  0xbd   : > { %v364_v25 = vmax.f32 %v756_v4, %v359_v24  ;;  %v340_v58 = vpop.permute.xlu0 %339 }
  0xbe   : > { %v344_v27 = vmax.f32 %v760_v6, %v340_v58 }
  0xbf   : > { %560 = vst.msk [vmem:[%s812_s16 + $0xb0] sm:$0xff] %vm134_vm0, %v364_v25 }
  0xc0   : > { %555 = vst.msk [vmem:[%s812_s16 + $0xa8] sm:$0x7f] %vm136_vm1, %v344_v27 }
  0xc4   : > { %v382_v59 = vpop.permute.xlu1 %381 }
  0xc5   : > { %v386_v28 = vmax.f32 %v774_v18, %v382_v59  ;;  %v380_v29 = vpop.permute.xlu0 %379 }
  0xc6   : > { %v385_v34 = vmax.f32 %v778_v19, %v380_v29 }
  0xc7   : > { %567 = vst.msk [vmem:[%s812_s16 + $0xc8] sm:$0x7f] %vm136_vm1, %v386_v28 }
  0xc8   : > { %566 = vst.msk [vmem:[%s812_s16 + $0xc0] sm:$0xff] %vm134_vm0, %v385_v34 }
  0xcc   : > { %v422_v36 = vpop.permute.xlu1 %421 }
  0xcd   : > { %v427_v4 = vmax.f32 %v792_v30, %v422_v36  ;;  %v403_v37 = vpop.permute.xlu0 %402 }
  0xce   : > { %v407_v6 = vmax.f32 %v796_v33, %v403_v37 }
  0xcf   : > { %578 = vst.msk [vmem:[%s812_s16 + $0xe0] sm:$0xff] %vm134_vm0, %v427_v4 }
  0xd0   : > { %573 = vst.msk [vmem:[%s812_s16 + $0xd8] sm:$0x7f] %vm136_vm1, %v407_v6 }
  0xd1 PF: > { %s11_s6 = sadd.s32 1, %s599_s6  }
  0xd2   : > { %p8_p4 = scmp.ge.s32.totalorder %s11_s6, 4  }
  0xd4   :  { %10 = sbr.rel (!%p8_p4) target bundleno = 1 (0x1), region = 97 }

// kernel: fake_net2_forward.8
= control target key start
LH: loop header
LB: loop body
LE: loop exit
PB: predicated region body
PF: predicated region fallthrough
CT: control target
= control target key end

     0   :  { %vm303_vm0 = vcmask 523264   ;;  %s2781_s1 = inlined_call_operand.vmem [shape: f32[576,128], index: 1, kind: input, shape index: {}]   ;;  %s2782_s2 = inlined_call_operand.vmem [shape: f32[3,128], index: 2, kind: input, shape index: {}]   ;;  %s2783_s0 = inlined_call_operand.vmem [shape: f32[338,576], index: 0, kind: input, shape index: {}]   ;;  %s2784_s3 = inlined_call_operand.vmem [shape: f32[338,128], index: 3, kind: output, shape index: {}]  }
   0x1   :  { %v244_v0 = vld [vmem:[%s2781_s1 + $0x78] sm:$0xff]  ;;  %v243_v1 = vld [vmem:[%s2781_s1 + $0x70] sm:$0xff]  ;;  %v242_v2 = vld [vmem:[%s2781_s1 + $0x68] sm:$0xff] }
   0x2   :  { %1386 = vmatpush.msra.mxu1 %v244_v0  ;;  %1387 = vmatpush.msra.mxu2 %v244_v0  ;;  %v241_v3 = vld [vmem:[%s2781_s1 + $0x60] sm:$0xff]  ;;  %v240_v4 = vld [vmem:[%s2781_s1 + $0x58] sm:$0xff]  ;;  %v239_v5 = vld [vmem:[%s2781_s1 + $0x50] sm:$0xff] }
   0x3   :  { %433 = vmatpush.msra.mxu0 %v244_v0  ;;  %1388 = vmatpush.msra.mxu3 %v244_v0  ;;  %v238_v6 = vld [vmem:[%s2781_s1 + $0x48] sm:$0xff]  ;;  %v237_v7 = vld [vmem:[%s2781_s1 + $0x40] sm:$0xff]  ;;  %v236_v8 = vld [vmem:[%s2781_s1 + $0x38] sm:$0xff] }
   0x4   :  { %1389 = vmatpush.msra.mxu1 %v243_v1  ;;  %1390 = vmatpush.msra.mxu2 %v243_v1  ;;  %v235_v9 = vld [vmem:[%s2781_s1 + $0x30] sm:$0xff]  ;;  %v234_v10 = vld [vmem:[%s2781_s1 + $0x28] sm:$0xff]  ;;  %v233_v11 = vld [vmem:[%s2781_s1 + $0x20] sm:$0xff] }
   0x5   :  { %434 = vmatpush.msra.mxu0 %v243_v1  ;;  %1391 = vmatpush.msra.mxu3 %v243_v1  ;;  %v232_v12 = vld [vmem:[%s2781_s1 + $0x18] sm:$0xff]  ;;  %v231_v13 = vld [vmem:[%s2781_s1 + $0x10] sm:$0xff]  ;;  %v230_v14 = vld [vmem:[%s2781_s1 + $0x8] sm:$0xff] }
   0x6   :  { %1392 = vmatpush.msra.mxu1 %v242_v2  ;;  %1393 = vmatpush.msra.mxu2 %v242_v2  ;;  %v229_v15 = vld [vmem:[%s2781_s1] sm:$0xff]  ;;  %v69_v16 = vld [vmem:[%s2783_s0 + $0x1b8] sm:$0xff]  ;;  %v124_v17 = vld [vmem:[%s2783_s0 + $0x370] sm:$0xff] }
   0x7   :  { %435 = vmatpush.msra.mxu0 %v242_v2  ;;  %1394 = vmatpush.msra.mxu3 %v242_v2  ;;  %v276_v18 = vld [vmem:[%s2781_s1 + $0x178] sm:$0xff]  ;;  %v275_v20 = vld [vmem:[%s2781_s1 + $0x170] sm:$0xff]  ;;  %v14_v21 = vld [vmem:[%s2783_s0] sm:$0xff] }
   0x8   :  { %1395 = vmatpush.msra.mxu1 %v241_v3  ;;  %1396 = vmatpush.msra.mxu2 %v241_v3  ;;  %v260_v19 = vld [vmem:[%s2781_s1 + $0xf8] sm:$0xff]  ;;  %v179_v22 = vld [vmem:[%s2783_s0 + $0x528] sm:$0xff]  ;;  %v259_v23 = vld [vmem:[%s2781_s1 + $0xf0] sm:$0xff] }
   0x9   :  { %436 = vmatpush.msra.mxu0 %v241_v3  ;;  %1397 = vmatpush.msra.mxu3 %v241_v3  ;;  %v292_v24 = vld [vmem:[%s2781_s1 + $0x1f8] sm:$0xff]  ;;  %v274_v26 = vld [vmem:[%s2781_s1 + $0x168] sm:$0xff]  ;;  %v291_v28 = vld [vmem:[%s2781_s1 + $0x1f0] sm:$0xff] }
   0xa   :  { %1398 = vmatpush.msra.mxu1 %v240_v4  ;;  %1399 = vmatpush.msra.mxu2 %v240_v4  ;;  %v300_v25 = vld [vmem:[%s2781_s1 + $0x238] sm:$0xff]  ;;  %v258_v27 = vld [vmem:[%s2781_s1 + $0xe8] sm:$0xff]  ;;  %v299_v29 = vld [vmem:[%s2781_s1 + $0x230] sm:$0xff] }
   0xb   :  { %437 = vmatpush.msra.mxu0 %v240_v4  ;;  %1400 = vmatpush.msra.mxu3 %v240_v4  ;;  %v74_v30 = vld [vmem:[%s2783_s0 + $0x1e0] sm:$0xff]  ;;  %v129_v31 = vld [vmem:[%s2783_s0 + $0x398] sm:$0xff]  ;;  %v290_v33 = vld [vmem:[%s2781_s1 + $0x1e8] sm:$0xff] }
   0xc   :  { %1401 = vmatpush.msra.mxu1 %v239_v5  ;;  %1402 = vmatpush.msra.mxu2 %v239_v5  ;;  %v273_v32 = vld [vmem:[%s2781_s1 + $0x160] sm:$0xff]  ;;  %v298_v35 = vld [vmem:[%s2781_s1 + $0x228] sm:$0xff]  ;;  %v272_v37 = vld [vmem:[%s2781_s1 + $0x158] sm:$0xff] }
   0xd   :  { %438 = vmatpush.msra.mxu0 %v239_v5  ;;  %1403 = vmatpush.msra.mxu3 %v239_v5  ;;  %v257_v34 = vld [vmem:[%s2781_s1 + $0xe0] sm:$0xff]  ;;  %v19_v36 = vld [vmem:[%s2783_s0 + $0x28] sm:$0xff]  ;;  %v184_v38 = vld [vmem:[%s2783_s0 + $0x550] sm:$0xff] }
   0xe   :  { %1404 = vmatpush.msra.mxu1 %v238_v6  ;;  %1405 = vmatpush.msra.mxu2 %v238_v6  ;;  %v256_v39 = vld [vmem:[%s2781_s1 + $0xd8] sm:$0xff]  ;;  %v289_v40 = vld [vmem:[%s2781_s1 + $0x1e0] sm:$0xff]  ;;  %v271_v41 = vld [vmem:[%s2781_s1 + $0x150] sm:$0xff] }
   0xf   :  { %439 = vmatpush.msra.mxu0 %v238_v6  ;;  %1406 = vmatpush.msra.mxu3 %v238_v6  ;;  %v255_v42 = vld [vmem:[%s2781_s1 + $0xd0] sm:$0xff]  ;;  %v297_v43 = vld [vmem:[%s2781_s1 + $0x220] sm:$0xff]  ;;  %v288_v44 = vld [vmem:[%s2781_s1 + $0x1d8] sm:$0xff] }
  0x10   :  { %1407 = vmatpush.msra.mxu1 %v237_v7  ;;  %1408 = vmatpush.msra.mxu2 %v237_v7  ;;  %v270_v45 = vld [vmem:[%s2781_s1 + $0x148] sm:$0xff]  ;;  %v134_v47 = vld [vmem:[%s2783_s0 + $0x3c0] sm:$0xff]  ;;  %v287_v48 = vld [vmem:[%s2781_s1 + $0x1d0] sm:$0xff] }
  0x11   :  { %440 = vmatpush.msra.mxu0 %v237_v7  ;;  %1409 = vmatpush.msra.mxu3 %v237_v7  ;;  %v79_v46 = vld [vmem:[%s2783_s0 + $0x208] sm:$0xff]  ;;  %v269_v50 = vld [vmem:[%s2781_s1 + $0x140] sm:$0xff]  ;;  %v24_v51 = vld [vmem:[%s2783_s0 + $0x50] sm:$0xff] }
  0x12   :  { %1410 = vmatpush.msra.mxu1 %v236_v8  ;;  %1411 = vmatpush.msra.mxu2 %v236_v8  ;;  %v254_v49 = vld [vmem:[%s2781_s1 + $0xc8] sm:$0xff]  ;;  %v189_v53 = vld [vmem:[%s2783_s0 + $0x578] sm:$0xff]  ;;  %v253_v54 = vld [vmem:[%s2781_s1 + $0xc0] sm:$0xff] }
  0x13   :  { %441 = vmatpush.msra.mxu0 %v236_v8  ;;  %1412 = vmatpush.msra.mxu3 %v236_v8  ;;  %v286_v52 = vld [vmem:[%s2781_s1 + $0x1c8] sm:$0xff]  ;;  %v268_v55 = vld [vmem:[%s2781_s1 + $0x138] sm:$0xff]  ;;  %v285_v56 = vld [vmem:[%s2781_s1 + $0x1c0] sm:$0xff] }
  0x14   :  { %1413 = vmatpush.msra.mxu1 %v235_v9  ;;  %1414 = vmatpush.msra.mxu2 %v235_v9  ;;  %v252_v57 = vld [vmem:[%s2781_s1 + $0xb8] sm:$0xff]  ;;  %v267_v59 = vld [vmem:[%s2781_s1 + $0x130] sm:$0xff]  ;;  %v139_v62 = vld [vmem:[%s2783_s0 + $0x3e8] sm:$0xff] }
  0x15   :  { %442 = vmatpush.msra.mxu0 %v235_v9  ;;  %1415 = vmatpush.msra.mxu3 %v235_v9  ;;  %v296_v58 = vld [vmem:[%s2781_s1 + $0x218] sm:$0xff]  ;;  %v84_v61 = vld [vmem:[%s2783_s0 + $0x230] sm:$0xff]  ;;  %v266_v0 = vld [vmem:[%s2781_s1 + $0x128] sm:$0xff] }
  0x16   :  { %1416 = vmatpush.msra.mxu1 %v234_v10  ;;  %1417 = vmatpush.msra.mxu2 %v234_v10  ;;  %v284_v60 = vld [vmem:[%s2781_s1 + $0x1b8] sm:$0xff]  ;;  %v251_v63 = vld [vmem:[%s2781_s1 + $0xb0] sm:$0xff]  ;;  %v250_v3 = vld [vmem:[%s2781_s1 + $0xa8] sm:$0xff] }
  0x17   :  { %443 = vmatpush.msra.mxu0 %v234_v10  ;;  %1418 = vmatpush.msra.mxu3 %v234_v10  ;;  %v283_v1 = vld [vmem:[%s2781_s1 + $0x1b0] sm:$0xff]  ;;  %v29_v2 = vld [vmem:[%s2783_s0 + $0x78] sm:$0xff]  ;;  %v194_v4 = vld [vmem:[%s2783_s0 + $0x5a0] sm:$0xff] }
  0x18   :  { %1419 = vmatpush.msra.mxu1 %v233_v11  ;;  %1420 = vmatpush.msra.mxu2 %v233_v11  ;;  %v265_v5 = vld [vmem:[%s2781_s1 + $0x120] sm:$0xff]  ;;  %v282_v6 = vld [vmem:[%s2781_s1 + $0x1a8] sm:$0xff]  ;;  %v89_v7 = vld [vmem:[%s2783_s0 + $0x258] sm:$0xff] }
  0x19   :  { %444 = vmatpush.msra.mxu0 %v233_v11  ;;  %1421 = vmatpush.msra.mxu3 %v233_v11  ;;  %v144_v8 = vld [vmem:[%s2783_s0 + $0x410] sm:$0xff]  ;;  %v34_v9 = vld [vmem:[%s2783_s0 + $0xa0] sm:$0xff] }
  0x1a   :  { %1422 = vmatpush.msra.mxu1 %v232_v12  ;;  %1423 = vmatpush.msra.mxu2 %v232_v12  ;;  %v249_v10 = vld [vmem:[%s2781_s1 + $0xa0] sm:$0xff] }
  0x1b   :  { %445 = vmatpush.msra.mxu0 %v232_v12  ;;  %1424 = vmatpush.msra.mxu3 %v232_v12  ;;  %v281_v11 = vld [vmem:[%s2781_s1 + $0x1a0] sm:$0xff]  ;;  %v295_v12 = vld [vmem:[%s2781_s1 + $0x210] sm:$0xff] }
  0x1c   :  { %1425 = vmatpush.msra.mxu1 %v231_v13  ;;  %1426 = vmatpush.msra.mxu2 %v231_v13 }
  0x1d   :  { %446 = vmatpush.msra.mxu0 %v231_v13  ;;  %1427 = vmatpush.msra.mxu3 %v231_v13  ;;  %v199_v13 = vld [vmem:[%s2783_s0 + $0x5c8] sm:$0xff] }
  0x1e   :  { %1428 = vmatpush.msra.mxu1 %v230_v14  ;;  %1429 = vmatpush.msra.mxu2 %v230_v14 }
  0x1f   :  { %447 = vmatpush.msra.mxu0 %v230_v14  ;;  %1430 = vmatpush.msra.mxu3 %v230_v14  ;;  %v264_v14 = vld [vmem:[%s2781_s1 + $0x118] sm:$0xff] }
  0x20   :  { %1431 = vmatpush.msra.mxu1 %v229_v15  ;;  %1432 = vmatpush.msra.mxu2 %v229_v15 }
  0x21   :  { %482 = vmatmul.f32.vlgmr.msra.gmra.mxu1 %v69_v16  ;;  %515 = vmatmul.f32.vlgmr.msra.gmra.mxu2 %v124_v17  ;;  %v280_v16 = vld [vmem:[%s2781_s1 + $0x198] sm:$0xff]  ;;  %v94_v17 = vld [vmem:[%s2783_s0 + $0x280] sm:$0xff] }
  0x22   :  { %725 = vmatpush.msrb.mxu2 %v276_v18  ;;  %579 = vmatpush.msrb.mxu1 %v260_v19  ;;  %v149_v18 = vld [vmem:[%s2783_s0 + $0x438] sm:$0xff]  ;;  %v39_v19 = vld [vmem:[%s2783_s0 + $0xc8] sm:$0xff] }
  0x23   :  { %448 = vmatpush.msra.mxu0 %v229_v15  ;;  %1433 = vmatpush.msra.mxu3 %v229_v15  ;;  %v248_v15 = vld [vmem:[%s2781_s1 + $0x98] sm:$0xff] }
  0x24   :  { %726 = vmatpush.msrb.mxu2 %v275_v20  ;;  %449 = vmatmul.f32.vlgmr.msra.gmra.mxu0 %v14_v21  ;;  %v204_v20 = vld [vmem:[%s2783_s0 + $0x5f0] sm:$0xff] }
  0x25   :  { %548 = vmatmul.f32.vlgmr.msra.gmra.mxu3 %v179_v22  ;;  %580 = vmatpush.msrb.mxu1 %v259_v23  ;;  %v263_v21 = vld [vmem:[%s2781_s1 + $0x110] sm:$0xff] }
  0x26   :  { %871 = vmatpush.msrb.mxu3 %v292_v24  ;;  %1025 = vmatpush.msrb.mxu0 %v300_v25  ;;  %v279_v22 = vld [vmem:[%s2781_s1 + $0x190] sm:$0xff]  ;;  %v294_v24 = vld [vmem:[%s2781_s1 + $0x208] sm:$0xff] }
  0x27   :  { %727 = vmatpush.msrb.mxu2 %v274_v26  ;;  %581 = vmatpush.msrb.mxu1 %v258_v27  ;;  %v247_v23 = vld [vmem:[%s2781_s1 + $0x90] sm:$0xff]  ;;  %v262_v25 = vld [vmem:[%s2781_s1 + $0x108] sm:$0xff]  ;;  %v154_v27 = vld [vmem:[%s2783_s0 + $0x460] sm:$0xff] }
  0x28   :  { %872 = vmatpush.msrb.mxu3 %v291_v28  ;;  %1026 = vmatpush.msrb.mxu0 %v299_v29  ;;  %v99_v26 = vld [vmem:[%s2783_s0 + $0x2a8] sm:$0xff]  ;;  %v44_v28 = vld [vmem:[%s2783_s0 + $0xf0] sm:$0xff] }
  0x29   :  { %485 = vmatmul.f32.gmra.mxu1 %v74_v30  ;;  %518 = vmatmul.f32.gmra.mxu2 %v129_v31  ;;  %v278_v29 = vld [vmem:[%s2781_s1 + $0x188] sm:$0xff]  ;;  %v209_v31 = vld [vmem:[%s2783_s0 + $0x618] sm:$0xff] }
  0x2a   :  { %728 = vmatpush.msrb.mxu2 %v273_v32  ;;  %873 = vmatpush.msrb.mxu3 %v290_v33  ;;  %v246_v30 = vld [vmem:[%s2781_s1 + $0x88] sm:$0xff]  ;;  %v261_v32 = vld [vmem:[%s2781_s1 + $0x100] sm:$0xff] }
  0x2b   :  { %582 = vmatpush.msrb.mxu1 %v257_v34  ;;  %1027 = vmatpush.msrb.mxu0 %v298_v35  ;;  %v277_v33 = vld [vmem:[%s2781_s1 + $0x180] sm:$0xff] }
  0x2c   :  { %452 = vmatmul.f32.gmra.mxu0 %v19_v36  ;;  %729 = vmatpush.msrb.mxu2 %v272_v37  ;;  %v245_v34 = vld [vmem:[%s2781_s1 + $0x80] sm:$0xff]  ;;  %v104_v36 = vld [vmem:[%s2783_s0 + $0x2d0] sm:$0xff]  ;;  %v159_v37 = vld [vmem:[%s2783_s0 + $0x488] sm:$0xff] }
  0x2d   :  { %551 = vmatmul.f32.gmra.mxu3 %v184_v38  ;;  %583 = vmatpush.msrb.mxu1 %v256_v39  ;;  %v293_v35 = vld [vmem:[%s2781_s1 + $0x200] sm:$0xff]  ;;  %v49_v38 = vld [vmem:[%s2783_s0 + $0x118] sm:$0xff] }
  0x2e   :  { %874 = vmatpush.msrb.mxu3 %v289_v40  ;;  %730 = vmatpush.msrb.mxu2 %v271_v41  ;;  %v214_v39 = vld [vmem:[%s2783_s0 + $0x640] sm:$0xff]  ;;  %v109_v40 = vld [vmem:[%s2783_s0 + $0x2f8] sm:$0xff]  ;;  %v164_v41 = vld [vmem:[%s2783_s0 + $0x4b0] sm:$0xff] }
  0x2f   :  { %584 = vmatpush.msrb.mxu1 %v255_v42  ;;  %1028 = vmatpush.msrb.mxu0 %v297_v43  ;;  %v54_v42 = vld [vmem:[%s2783_s0 + $0x140] sm:$0xff]  ;;  %v219_v43 = vld [vmem:[%s2783_s0 + $0x668] sm:$0xff] }
  0x30   :  { %875 = vmatpush.msrb.mxu3 %v288_v44  ;;  %731 = vmatpush.msrb.mxu2 %v270_v45  ;;  %v114_v44 = vld [vmem:[%s2783_s0 + $0x320] sm:$0xff]  ;;  %v169_v45 = vld [vmem:[%s2783_s0 + $0x4d8] sm:$0xff] }
  0x31   :  { %488 = vmatmul.f32.gmra.mxu1 %v79_v46  ;;  %521 = vmatmul.f32.gmra.mxu2 %v134_v47  ;;  %v59_v46 = vld [vmem:[%s2783_s0 + $0x168] sm:$0xff]  ;;  %v224_v47 = vld [vmem:[%s2783_s0 + $0x690] sm:$0x3] }
  0x32   :  { %876 = vmatpush.msrb.mxu3 %v287_v48  ;;  %585 = vmatpush.msrb.mxu1 %v254_v49  ;;  %v119_v48 = vld [vmem:[%s2783_s0 + $0x348] sm:$0xff]  ;;  %v174_v49 = vld [vmem:[%s2783_s0 + $0x500] sm:$0xff] }
  0x33   :  { %732 = vmatpush.msrb.mxu2 %v269_v50  ;;  %1029 = vmatpush.msrb.mxu0 %v296_v58  ;;  %v64_v50 = vld [vmem:[%s2783_s0 + $0x190] sm:$0xff]  ;;  %v23_v58 = vld [vmem:[%s2783_s0 + $0x48] sm:$0xff] }
  0x34   :  { %455 = vmatmul.f32.gmra.mxu0 %v24_v51  ;;  %877 = vmatpush.msrb.mxu3 %v286_v52  ;;  %v17_v51 = vld [vmem:[%s2783_s0 + $0x18] sm:$0xff]  ;;  %v15_v52 = vld [vmem:[%s2783_s0 + $0x8] sm:$0xff] }
  0x35   :  { %554 = vmatmul.f32.gmra.mxu3 %v189_v53  ;;  %586 = vmatpush.msrb.mxu1 %v253_v54  ;;  %v16_v53 = vld [vmem:[%s2783_s0 + $0x10] sm:$0xff]  ;;  %v18_v54 = vld [vmem:[%s2783_s0 + $0x20] sm:$0xff] }
  0x36   :  { %733 = vmatpush.msrb.mxu2 %v268_v55  ;;  %878 = vmatpush.msrb.mxu3 %v285_v56  ;;  %v22_v55 = vld [vmem:[%s2783_s0 + $0x40] sm:$0xff]  ;;  %v20_v56 = vld [vmem:[%s2783_s0 + $0x30] sm:$0xff] }
  0x37   :  { %587 = vmatpush.msrb.mxu1 %v252_v57  ;;  %1030 = vmatpush.msrb.mxu0 %v295_v12  ;;  %v21_v57 = vld [vmem:[%s2783_s0 + $0x38] sm:$0xff]  ;;  %v43_v12 = vld [vmem:[%s2783_s0 + $0xe8] sm:$0xff] }
  0x38   :  { %734 = vmatpush.msrb.mxu2 %v267_v59  ;;  %879 = vmatpush.msrb.mxu3 %v284_v60  ;;  %v27_v59 = vld [vmem:[%s2783_s0 + $0x68] sm:$0xff]  ;;  %v25_v60 = vld [vmem:[%s2783_s0 + $0x58] sm:$0xff] }
  0x39   :  { %491 = vmatmul.f32.gmra.mxu1 %v84_v61  ;;  %524 = vmatmul.f32.gmra.mxu2 %v139_v62  ;;  %v26_v61 = vld [vmem:[%s2783_s0 + $0x60] sm:$0xff]  ;;  %v28_v62 = vld [vmem:[%s2783_s0 + $0x70] sm:$0xff] }
  0x3a   :  { %588 = vmatpush.msrb.mxu1 %v251_v63  ;;  %735 = vmatpush.msrb.mxu2 %v266_v0  ;;  %v32_v63 = vld [vmem:[%s2783_s0 + $0x90] sm:$0xff]  ;;  %v30_v0 = vld [vmem:[%s2783_s0 + $0x80] sm:$0xff] }
  0x3b   :  { %880 = vmatpush.msrb.mxu3 %v283_v1  ;;  %1031 = vmatpush.msrb.mxu0 %v294_v24  ;;  %v31_v1 = vld [vmem:[%s2783_s0 + $0x88] sm:$0xff]  ;;  %v50_v24 = vld [vmem:[%s2783_s0 + $0x120] sm:$0xff] }
  0x3c   :  { %458 = vmatmul.f32.gmra.mxu0 %v29_v2  ;;  %589 = vmatpush.msrb.mxu1 %v250_v3  ;;  %v33_v2 = vld [vmem:[%s2783_s0 + $0x98] sm:$0xff] }
  0x3d   :  { %557 = vmatmul.f32.gmra.mxu3 %v194_v4  ;;  %736 = vmatpush.msrb.mxu2 %v265_v5  ;;  %v37_v3 = vld [vmem:[%s2783_s0 + $0xb8] sm:$0xff]  ;;  %v35_v4 = vld [vmem:[%s2783_s0 + $0xa8] sm:$0xff]  ;;  %v36_v5 = vld [vmem:[%s2783_s0 + $0xb0] sm:$0xff] }
  0x3e   :  { %881 = vmatpush.msrb.mxu3 %v282_v6  ;;  %590 = vmatpush.msrb.mxu1 %v249_v10  ;;  %v38_v6 = vld [vmem:[%s2783_s0 + $0xc0] sm:$0xff]  ;;  %v41_v10 = vld [vmem:[%s2783_s0 + $0xd8] sm:$0xff] }
  0x3f   :  { %737 = vmatpush.msrb.mxu2 %v264_v14  ;;  %1032 = vmatpush.msrb.mxu0 %v293_v35 }
  0x40   :  { %882 = vmatpush.msrb.mxu3 %v281_v11  ;;  %591 = vmatpush.msrb.mxu1 %v248_v15 }
  0x41   :  { %494 = vmatmul.f32.gmra.mxu1 %v89_v7  ;;  %527 = vmatmul.f32.gmra.mxu2 %v144_v8  ;;  %v42_v7 = vld [vmem:[%s2783_s0 + $0xe0] sm:$0xff] }
  0x42   :  { %883 = vmatpush.msrb.mxu3 %v280_v16  ;;  %738 = vmatpush.msrb.mxu2 %v263_v21  ;;  %v45_v16 = vld [vmem:[%s2783_s0 + $0xf8] sm:$0xff]  ;;  %v52_v21 = vld [vmem:[%s2783_s0 + $0x130] sm:$0xff] }
  0x43   :  { %592 = vmatpush.msrb.mxu1 %v247_v23 }
  0x44   :  { %461 = vmatmul.f32.gmra.mxu0 %v34_v9  ;;  %884 = vmatpush.msrb.mxu3 %v279_v22  ;;  %v40_v9 = vld [vmem:[%s2783_s0 + $0xd0] sm:$0xff] }
  0x45   :  { %560 = vmatmul.f32.gmra.mxu3 %v199_v13  ;;  %739 = vmatpush.msrb.mxu2 %v262_v25  ;;  %v47_v13 = vld [vmem:[%s2783_s0 + $0x108] sm:$0xff] }
  0x46   :  { %885 = vmatpush.msrb.mxu3 %v278_v29  ;;  %593 = vmatpush.msrb.mxu1 %v246_v30  ;;  %v51_v25 = vld [vmem:[%s2783_s0 + $0x128] sm:$0xff]  ;;  %v57_v29 = vld [vmem:[%s2783_s0 + $0x158] sm:$0xff] }
  0x47   :  { %740 = vmatpush.msrb.mxu2 %v261_v32  ;;  %v55_v32 = vld [vmem:[%s2783_s0 + $0x148] sm:$0xff] }
  0x48   :  { %886 = vmatpush.msrb.mxu3 %v277_v33  ;;  %594 = vmatpush.msrb.mxu1 %v245_v34  ;;  %v56_v33 = vld [vmem:[%s2783_s0 + $0x150] sm:$0xff] }
  0x49   :  { %497 = vmatmul.f32.gmra.mxu1 %v94_v17  ;;  %530 = vmatmul.f32.gmra.mxu2 %v149_v18  ;;  %v46_v17 = vld [vmem:[%s2783_s0 + $0x100] sm:$0xff] }
  0x4c   :  { %464 = vmatmul.f32.gmra.mxu0 %v39_v19 }
  0x4d   :  { %563 = vmatmul.f32.gmra.mxu3 %v204_v20  ;;  %v48_v20 = vld [vmem:[%s2783_s0 + $0x110] sm:$0xff] }
  0x51   :  { %500 = vmatmul.f32.gmra.mxu1 %v99_v26  ;;  %533 = vmatmul.f32.gmra.mxu2 %v154_v27 }
  0x54   :  { %467 = vmatmul.f32.gmra.mxu0 %v44_v28  ;;  %v53_v28 = vld [vmem:[%s2783_s0 + $0x138] sm:$0xff] }
  0x55   :  { %566 = vmatmul.f32.gmra.mxu3 %v209_v31 }
  0x59   :  { %503 = vmatmul.f32.gmra.mxu1 %v104_v36  ;;  %536 = vmatmul.f32.gmra.mxu2 %v159_v37  ;;  %v58_v36 = vld [vmem:[%s2783_s0 + $0x160] sm:$0xff] }
  0x5a   :  { %v62_v37 = vld [vmem:[%s2783_s0 + $0x180] sm:$0xff] }
  0x5c   :  { %470 = vmatmul.f32.gmra.mxu0 %v49_v38 }
  0x5d   :  { %569 = vmatmul.f32.gmra.mxu3 %v214_v39 }
  0x61   :  { %506 = vmatmul.f32.gmra.mxu1 %v109_v40  ;;  %539 = vmatmul.f32.gmra.mxu2 %v164_v41  ;;  %v60_v40 = vld [vmem:[%s2783_s0 + $0x170] sm:$0xff]  ;;  %v61_v41 = vld [vmem:[%s2783_s0 + $0x178] sm:$0xff] }
  0x64   :  { %473 = vmatmul.f32.gmra.mxu0 %v54_v42 }
  0x65   :  { %572 = vmatmul.f32.gmra.mxu3 %v219_v43 }
  0x69   :  { %509 = vmatmul.f32.gmra.mxu1 %v114_v44  ;;  %542 = vmatmul.f32.gmra.mxu2 %v169_v45  ;;  %v63_v44 = vld [vmem:[%s2783_s0 + $0x188] sm:$0xff] }
  0x6a   :  { %v67_v45 = vld [vmem:[%s2783_s0 + $0x1a8] sm:$0xff] }
  0x6c   :  { %476 = vmatmul.f32.gmra.mxu0 %v59_v46 }
  0x6d   :  { %575 = vmatmul.f32.gmra.mxu3 %v224_v47 }
  0x71   :  { %512 = vmatmul.f32.gmra.mxu1 %v119_v48  ;;  %545 = vmatmul.f32.gmra.mxu2 %v174_v49  ;;  %v65_v48 = vld [vmem:[%s2783_s0 + $0x198] sm:$0xff]  ;;  %v66_v49 = vld [vmem:[%s2783_s0 + $0x1a0] sm:$0xff] }
  0x74   :  { %479 = vmatmul.f32.gmra.mxu0 %v64_v50 }
  0x75   :  { %887 = vmatmul.f32.vlgmr.msrb.gmra.mxu3 %v17_v51 }
  0x79   :  { %595 = vmatmul.f32.vlgmr.msrb.gmra.mxu1 %v15_v52  ;;  %741 = vmatmul.f32.vlgmr.msrb.gmra.mxu2 %v16_v53  ;;  %v68_v52 = vld [vmem:[%s2783_s0 + $0x1b0] sm:$0xff] }
  0x7a   :  { %v72_v53 = vld [vmem:[%s2783_s0 + $0x1d0] sm:$0xff] }
  0x7c   :  { %1343 = vmatmul.msk.f32.vlgmr.msrb.gmra.mxu0 %vm303_vm0, %v18_v54 }
  0x7d   :  { %890 = vmatmul.f32.gmra.mxu3 %v22_v55 }
  0x81   :  { %598 = vmatmul.f32.gmra.mxu1 %v20_v56  ;;  %744 = vmatmul.f32.gmra.mxu2 %v21_v57  ;;  %v70_v56 = vld [vmem:[%s2783_s0 + $0x1c0] sm:$0xff]  ;;  %v71_v57 = vld [vmem:[%s2783_s0 + $0x1c8] sm:$0xff] }
  0x84   :  { %1344 = vmatmul.msk.f32.gmra.mxu0 %vm303_vm0, %v23_v58 }
  0x85   :  { %893 = vmatmul.f32.gmra.mxu3 %v27_v59 }
  0x89   :  { %601 = vmatmul.f32.gmra.mxu1 %v25_v60  ;;  %747 = vmatmul.f32.gmra.mxu2 %v26_v61  ;;  %v73_v60 = vld [vmem:[%s2783_s0 + $0x1d8] sm:$0xff] }
  0x8a   :  { %v77_v61 = vld [vmem:[%s2783_s0 + $0x1f8] sm:$0xff] }
  0x8c   :  { %1345 = vmatmul.msk.f32.gmra.mxu0 %vm303_vm0, %v28_v62 }
  0x8d   :  { %896 = vmatmul.f32.gmra.mxu3 %v32_v63 }
  0x91   :  { %604 = vmatmul.f32.gmra.mxu1 %v30_v0  ;;  %750 = vmatmul.f32.gmra.mxu2 %v31_v1  ;;  %v75_v0 = vld [vmem:[%s2783_s0 + $0x1e8] sm:$0xff]  ;;  %v76_v1 = vld [vmem:[%s2783_s0 + $0x1f0] sm:$0xff] }
  0x94   :  { %1346 = vmatmul.msk.f32.gmra.mxu0 %vm303_vm0, %v33_v2 }
  0x95   :  { %899 = vmatmul.f32.gmra.mxu3 %v37_v3 }
  0x99   :  { %607 = vmatmul.f32.gmra.mxu1 %v35_v4  ;;  %753 = vmatmul.f32.gmra.mxu2 %v36_v5  ;;  %v78_v4 = vld [vmem:[%s2783_s0 + $0x200] sm:$0xff] }
  0x9a   :  { %v82_v5 = vld [vmem:[%s2783_s0 + $0x220] sm:$0xff] }
  0x9c   :  { %1347 = vmatmul.msk.f32.gmra.mxu0 %vm303_vm0, %v38_v6 }
  0x9d   :  { %902 = vmatmul.f32.gmra.mxu3 %v42_v7 }
  0x9e   :  { %v1873_v8 = vpop.f32.mrf.mxu1 }
  0xa1   :  { %610 = vmatmul.f32.gmra.mxu1 %v40_v9  ;;  %756 = vmatmul.f32.gmra.mxu2 %v41_v10  ;;  %v1881_v11 = vpop.f32.mrf.mxu0  ;;  %v80_v9 = vld [vmem:[%s2783_s0 + $0x210] sm:$0xff]  ;;  %v81_v10 = vld [vmem:[%s2783_s0 + $0x218] sm:$0xff] }
  0xa4   :  { %v1889_v14 = vpop.f32.mrf.mxu2  ;;  %1348 = vmatmul.msk.f32.gmra.mxu0 %vm303_vm0, %v43_v12 }
  0xa5   :  { %905 = vmatmul.f32.gmra.mxu3 %v47_v13 }
  0xa6   :  { %v1892_v15 = vpop.f32.mrf.mxu1 }
  0xa8   :  { %v1900_v18 = vpop.f32.mrf.mxu3 }
  0xa9   :  { %613 = vmatmul.f32.gmra.mxu1 %v45_v16  ;;  %759 = vmatmul.f32.gmra.mxu2 %v46_v17  ;;  %v1902_v19 = vpop.f32.mrf.mxu0  ;;  %v83_v16 = vld [vmem:[%s2783_s0 + $0x228] sm:$0xff] }
  0xaa   :  { %v87_v17 = vld [vmem:[%s2783_s0 + $0x248] sm:$0xff] }
  0xac   :  { %v1910_v22 = vpop.f32.mrf.mxu2  ;;  %1349 = vmatmul.msk.f32.gmra.mxu0 %vm303_vm0, %v48_v20 }
  0xad   :  { %908 = vmatmul.f32.gmra.mxu3 %v52_v21 }
  0xae   :  { %v1913_v23 = vpop.f32.mrf.mxu1 }
  0xb0   :  { %v1921_v26 = vpop.f32.mrf.mxu3 }
  0xb1   :  { %616 = vmatmul.f32.gmra.mxu1 %v50_v24  ;;  %762 = vmatmul.f32.gmra.mxu2 %v51_v25  ;;  %v1923_v27 = vpop.f32.mrf.mxu0  ;;  %v85_v24 = vld [vmem:[%s2783_s0 + $0x238] sm:$0xff]  ;;  %v86_v25 = vld [vmem:[%s2783_s0 + $0x240] sm:$0xff] }
  0xb4   :  { %v1931_v30 = vpop.f32.mrf.mxu2  ;;  %1350 = vmatmul.msk.f32.gmra.mxu0 %vm303_vm0, %v53_v28 }
  0xb5   :  { %911 = vmatmul.f32.gmra.mxu3 %v57_v29 }
  0xb6   :  { %v1934_v31 = vpop.f32.mrf.mxu1 }
  0xb8   :  { %v1942_v34 = vpop.f32.mrf.mxu3 }
  0xb9   :  { %619 = vmatmul.f32.gmra.mxu1 %v55_v32  ;;  %765 = vmatmul.f32.gmra.mxu2 %v56_v33  ;;  %v1944_v35 = vpop.f32.mrf.mxu0  ;;  %v88_v32 = vld [vmem:[%s2783_s0 + $0x250] sm:$0xff] }
  0xba   :  { %v92_v33 = vld [vmem:[%s2783_s0 + $0x270] sm:$0xff] }
  0xbc   :  { %v1952_v38 = vpop.f32.mrf.mxu2  ;;  %1351 = vmatmul.msk.f32.gmra.mxu0 %vm303_vm0, %v58_v36 }
  0xbd   :  { %914 = vmatmul.f32.gmra.mxu3 %v62_v37 }
  0xbe   :  { %v1955_v39 = vpop.f32.mrf.mxu1 }
  0xc0   :  { %v1963_v42 = vpop.f32.mrf.mxu3 }
  0xc1   :  { %622 = vmatmul.f32.gmra.mxu1 %v60_v40  ;;  %768 = vmatmul.f32.gmra.mxu2 %v61_v41  ;;  %v1965_v43 = vpop.f32.mrf.mxu0  ;;  %v90_v40 = vld [vmem:[%s2783_s0 + $0x260] sm:$0xff]  ;;  %v91_v41 = vld [vmem:[%s2783_s0 + $0x268] sm:$0xff] }
  0xc4   :  { %v1973_v46 = vpop.f32.mrf.mxu2  ;;  %1352 = vmatmul.msk.f32.gmra.mxu0 %vm303_vm0, %v63_v44 }
  0xc5   :  { %917 = vmatmul.f32.gmra.mxu3 %v67_v45 }
  0xc6   :  { %v1976_v47 = vpop.f32.mrf.mxu1 }
  0xc8   :  { %v1984_v50 = vpop.f32.mrf.mxu3 }
  0xc9   :  { %625 = vmatmul.f32.gmra.mxu1 %v65_v48  ;;  %771 = vmatmul.f32.gmra.mxu2 %v66_v49  ;;  %v1986_v51 = vpop.f32.mrf.mxu0  ;;  %v93_v48 = vld [vmem:[%s2783_s0 + $0x278] sm:$0xff] }
  0xca   :  { %v97_v49 = vld [vmem:[%s2783_s0 + $0x298] sm:$0xff] }
  0xcc   :  { %v1994_v54 = vpop.f32.mrf.mxu2  ;;  %1353 = vmatmul.msk.f32.gmra.mxu0 %vm303_vm0, %v68_v52 }
  0xcd   :  { %920 = vmatmul.f32.gmra.mxu3 %v72_v53 }
  0xce   :  { %v1997_v55 = vpop.f32.mrf.mxu1 }
  0xd0   :  { %v2005_v58 = vpop.f32.mrf.mxu3 }
  0xd1   :  { %628 = vmatmul.f32.gmra.mxu1 %v70_v56  ;;  %774 = vmatmul.f32.gmra.mxu2 %v71_v57  ;;  %v2007_v59 = vpop.f32.mrf.mxu0  ;;  %v95_v56 = vld [vmem:[%s2783_s0 + $0x288] sm:$0xff]  ;;  %v96_v57 = vld [vmem:[%s2783_s0 + $0x290] sm:$0xff] }
  0xd4   :  { %v2015_v62 = vpop.f32.mrf.mxu2  ;;  %1354 = vmatmul.msk.f32.gmra.mxu0 %vm303_vm0, %v73_v60  ;;  %v2111_v60 = vld [vmem:[%s2782_s2] ss:$0 sm:$0xff] }
  0xd5   :  { %923 = vmatmul.f32.gmra.mxu3 %v77_v61 }
  0xd6   :  { %v2018_v63 = vpop.f32.mrf.mxu1 }
  0xd8   :  { %v2026_v2 = vpop.f32.mrf.mxu3 }
  0xd9   :  { %631 = vmatmul.f32.gmra.mxu1 %v75_v0  ;;  %777 = vmatmul.f32.gmra.mxu2 %v76_v1  ;;  %v2028_v3 = vpop.f32.mrf.mxu0  ;;  %v451_v0 = vadd.f32 %v2111_v60, %v1881_v11  ;;  %v100_v11 = vld [vmem:[%s2783_s0 + $0x2b0] sm:$0xff] }
  0xdc   :  { %v2036_v6 = vpop.f32.mrf.mxu2  ;;  %1355 = vmatmul.msk.f32.gmra.mxu0 %vm303_vm0, %v78_v4  ;;  %v98_v4 = vld [vmem:[%s2783_s0 + $0x2a0] sm:$0xff] }
  0xdd   :  { %926 = vmatmul.f32.gmra.mxu3 %v82_v5  ;;  %v102_v5 = vld [vmem:[%s2783_s0 + $0x2c0] sm:$0xff] }
  0xde   :  { %v2039_v7 = vpop.f32.mrf.mxu1 }
  0xe0   :  { %v2047_v12 = vpop.f32.mrf.mxu3 }
  0xe1   :  { %634 = vmatmul.f32.gmra.mxu1 %v80_v9  ;;  %780 = vmatmul.f32.gmra.mxu2 %v81_v10  ;;  %v2049_v13 = vpop.f32.mrf.mxu0 }
  0xe4   :  { %v2057_v20 = vpop.f32.mrf.mxu2  ;;  %1356 = vmatmul.msk.f32.gmra.mxu0 %vm303_vm0, %v83_v16 }
  0xe5   :  { %929 = vmatmul.f32.gmra.mxu3 %v87_v17 }
  0xe6   :  { %v2060_v21 = vpop.f32.mrf.mxu1 }
  0xe8   :  { %v2068_v28 = vpop.f32.mrf.mxu3 }
  0xe9   :  { %637 = vmatmul.f32.gmra.mxu1 %v85_v24  ;;  %783 = vmatmul.f32.gmra.mxu2 %v86_v25  ;;  %v2070_v29 = vpop.f32.mrf.mxu0  ;;  %v101_v24 = vld [vmem:[%s2783_s0 + $0x2b8] sm:$0xff] }
  0xec   :  { %v2078_v36 = vpop.f32.mrf.mxu2  ;;  %1357 = vmatmul.msk.f32.gmra.mxu0 %vm303_vm0, %v88_v32 }
  0xed   :  { %932 = vmatmul.f32.gmra.mxu3 %v92_v33  ;;  %v454_v33 = vadd.f32 %v2111_v60, %v1902_v19  ;;  %v2144_v19 = vld [vmem:[%s2782_s2 + $0x2] ss:$0 sm:$0xff] }
  0xee   :  { %v2081_v37 = vpop.f32.mrf.mxu1 }
  0xf0   :  { %v2089_v44 = vpop.f32.mrf.mxu3 }
  0xf1   :  { %640 = vmatmul.f32.gmra.mxu1 %v90_v40  ;;  %786 = vmatmul.f32.gmra.mxu2 %v91_v41  ;;  %v2091_v45 = vpop.f32.mrf.mxu0  ;;  %v2133_v41 = vld [vmem:[%s2782_s2 + $0x1] ss:$0 sm:$0xff] }
  0xf4   :  { %v2099_v52 = vpop.f32.mrf.mxu2  ;;  %1358 = vmatmul.msk.f32.gmra.mxu0 %vm303_vm0, %v93_v48 }
  0xf5   :  { %935 = vmatmul.f32.gmra.mxu3 %v97_v49  ;;  %v103_v49 = vld [vmem:[%s2783_s0 + $0x2c8] sm:$0xff] }
  0xf6   :  { %v596_v53 = vpop.f32.mrf.mxu1 }
  0xf7   :  { %v597_v9 = vadd.f32 %v596_v53, %v451_v0  ;;  %v107_v53 = vld [vmem:[%s2783_s0 + $0x2e8] sm:$0xff] }
  0xf8   :  { %v888_v61 = vpop.f32.mrf.mxu3 }
  0xf9   :  { %643 = vmatmul.f32.gmra.mxu1 %v95_v56  ;;  %789 = vmatmul.f32.gmra.mxu2 %v96_v57  ;;  %v1034_v1 = vpop.f32.mrf.mxu0 }
  0xfc   :  { %v742_v10 = vpop.f32.mrf.mxu2  ;;  %1359 = vmatmul.msk.f32.gmra.mxu0 %vm303_vm0, %v98_v4 }
  0xfd   :  { %v743_v16 = vadd.f32 %v742_v10, %v597_v9  ;;  %938 = vmatmul.f32.gmra.mxu3 %v102_v5  ;;  %v105_v5 = vld [vmem:[%s2783_s0 + $0x2d8] sm:$0xff]  ;;  %v106_v9 = vld [vmem:[%s2783_s0 + $0x2e0] sm:$0xff] }
  0xfe   :  { %v599_v17 = vpop.f32.mrf.mxu1 }
  0xff   :  { %v889_v25 = vadd.f32 %v888_v61, %v743_v16  ;;  %v600_v56 = vadd.f32 %v599_v17, %v454_v33  ;;  %v108_v33 = vld [vmem:[%s2783_s0 + $0x2f0] sm:$0xff] }
 0x100   :  { %v891_v32 = vpop.f32.mrf.mxu3 }
 0x101   :  { %v1035_v40 = vadd.f32 %v1034_v1, %v889_v25  ;;  %646 = vmatmul.f32.gmra.mxu1 %v100_v11  ;;  %792 = vmatmul.f32.gmra.mxu2 %v101_v24  ;;  %v1037_v48 = vpop.f32.mrf.mxu0  ;;  %v457_v11 = vadd.f32 %v2111_v60, %v1923_v27 }
 0x103   :  { %v1163_v57 = vmax.f32 %v1035_v40, 0.0 }
 0x104   :  { %v745_v61 = vpop.f32.mrf.mxu2  ;;  %1360 = vmatmul.msk.f32.gmra.mxu0 %vm303_vm0, %v103_v49 }
 0x105   :  { %v1208_v0 = vmul.f32 %v2133_v41, %v1163_v57  ;;  %v746_v1 = vadd.f32 %v745_v61, %v600_v56  ;;  %941 = vmatmul.f32.gmra.mxu3 %v107_v53  ;;  %v110_v57 = vld [vmem:[%s2783_s0 + $0x300] sm:$0xff]  ;;  %v111_v61 = vld [vmem:[%s2783_s0 + $0x308] sm:$0xff] }
 0x106   :  { %v602_v4 = vpop.f32.mrf.mxu1 }
 0x107   :  { %v1253_v10 = vadd.f32 %v2144_v19, %v1208_v0  ;;  %v892_v16 = vadd.f32 %v891_v32, %v746_v1  ;;  %v112_v32 = vld [vmem:[%s2783_s0 + $0x310] sm:$0xff]  ;;  %v603_v40 = vadd.f32 %v602_v4, %v457_v11 }
 0x108   :  { %v894_v17 = vpop.f32.mrf.mxu3 }
 0x109   :  { %1296 = vst [vmem:[%s2784_s3] sm:$0xff] %v1253_v10  ;;  %v1038_v24 = vadd.f32 %v1037_v48, %v892_v16  ;;  %649 = vmatmul.f32.gmra.mxu1 %v105_v5  ;;  %795 = vmatmul.f32.gmra.mxu2 %v106_v9  ;;  %v1040_v25 = vpop.f32.mrf.mxu0  ;;  %v460_v5 = vadd.f32 %v2111_v60, %v1944_v35  ;;  %v113_v16 = vld [vmem:[%s2783_s0 + $0x318] sm:$0xff] }
 0x10b   :  { %v1164_v49 = vmax.f32 %v1038_v24, 0.0 }
 0x10c   :  { %v748_v53 = vpop.f32.mrf.mxu2  ;;  %1361 = vmatmul.msk.f32.gmra.mxu0 %vm303_vm0, %v108_v33 }
 0x10d   :  { %v1209_v27 = vmul.f32 %v2133_v41, %v1164_v49  ;;  %v749_v56 = vadd.f32 %v748_v53, %v603_v40  ;;  %944 = vmatmul.f32.gmra.mxu3 %v112_v32  ;;  %v115_v40 = vld [vmem:[%s2783_s0 + $0x328] sm:$0xff]  ;;  %v116_v49 = vld [vmem:[%s2783_s0 + $0x330] sm:$0xff] }
 0x10e   :  { %v605_v48 = vpop.f32.mrf.mxu1 }
 0x10f   :  { %v1254_v0 = vadd.f32 %v2144_v19, %v1209_v27  ;;  %v895_v1 = vadd.f32 %v894_v17, %v749_v56  ;;  %v117_v17 = vld [vmem:[%s2783_s0 + $0x338] sm:$0xff]  ;;  %v606_v11 = vadd.f32 %v605_v48, %v460_v5  ;;  %v463_v48 = vadd.f32 %v2111_v60, %v1965_v43 }
 0x110   :  { %v897_v4 = vpop.f32.mrf.mxu3 }
 0x111   :  { %1297 = vst [vmem:[%s2784_s3 + $0x8] sm:$0xff] %v1254_v0  ;;  %v1041_v9 = vadd.f32 %v1040_v25, %v895_v1  ;;  %652 = vmatmul.f32.gmra.mxu1 %v110_v57  ;;  %798 = vmatmul.f32.gmra.mxu2 %v111_v61  ;;  %v1043_v10 = vpop.f32.mrf.mxu0  ;;  %v118_v0 = vld [vmem:[%s2783_s0 + $0x340] sm:$0xff] }
 0x112   :  { %v122_v1 = vld [vmem:[%s2783_s0 + $0x360] sm:$0xff] }
 0x113   :  { %v1165_v24 = vmax.f32 %v1041_v9, 0.0 }
 0x114   :  { %v751_v33 = vpop.f32.mrf.mxu2  ;;  %1362 = vmatmul.msk.f32.gmra.mxu0 %vm303_vm0, %v113_v16 }
 0x115   :  { %v1210_v35 = vmul.f32 %v2133_v41, %v1165_v24  ;;  %v752_v32 = vadd.f32 %v751_v33, %v606_v11  ;;  %947 = vmatmul.f32.gmra.mxu3 %v117_v17  ;;  %v120_v17 = vld [vmem:[%s2783_s0 + $0x350] sm:$0xff]  ;;  %v121_v11 = vld [vmem:[%s2783_s0 + $0x358] sm:$0xff] }
 0x116   :  { %v608_v25 = vpop.f32.mrf.mxu1 }
 0x117   :  { %v1255_v53 = vadd.f32 %v2144_v19, %v1210_v35  ;;  %v898_v27 = vadd.f32 %v897_v4, %v752_v32  ;;  %v609_v4 = vadd.f32 %v608_v25, %v463_v48  ;;  %v466_v32 = vadd.f32 %v2111_v60, %v1986_v51 }
 0x118   :  { %v900_v56 = vpop.f32.mrf.mxu3 }
 0x119   :  { %1298 = vst [vmem:[%s2784_s3 + $0x10] sm:$0xff] %v1255_v53  ;;  %v1044_v57 = vadd.f32 %v1043_v10, %v898_v27  ;;  %655 = vmatmul.f32.gmra.mxu1 %v115_v40  ;;  %801 = vmatmul.f32.gmra.mxu2 %v116_v49  ;;  %v1046_v61 = vpop.f32.mrf.mxu0  ;;  %v123_v49 = vld [vmem:[%s2783_s0 + $0x368] sm:$0xff] }
 0x11a   :  { %v127_v53 = vld [vmem:[%s2783_s0 + $0x388] sm:$0xff] }
 0x11b   :  { %v1166_v5 = vmax.f32 %v1044_v57, 0.0 }
 0x11c   :  { %v754_v9 = vpop.f32.mrf.mxu2  ;;  %1363 = vmatmul.msk.f32.gmra.mxu0 %vm303_vm0, %v118_v0  ;;  %v125_v0 = vld [vmem:[%s2783_s0 + $0x378] sm:$0xff] }
 0x11d   :  { %v1211_v43 = vmul.f32 %v2133_v41, %v1166_v5  ;;  %v755_v16 = vadd.f32 %v754_v9, %v609_v4  ;;  %950 = vmatmul.f32.gmra.mxu3 %v122_v1  ;;  %v126_v1 = vld [vmem:[%s2783_s0 + $0x380] sm:$0xff] }
 0x11e   :  { %v611_v10 = vpop.f32.mrf.mxu1 }
 0x11f   :  { %v1256_v24 = vadd.f32 %v2144_v19, %v1211_v43  ;;  %v901_v33 = vadd.f32 %v900_v56, %v755_v16  ;;  %v612_v27 = vadd.f32 %v611_v10, %v466_v32  ;;  %v469_v43 = vadd.f32 %v2111_v60, %v2007_v59 }
 0x120   :  { %v903_v35 = vpop.f32.mrf.mxu3 }
 0x121   :  { %1299 = vst [vmem:[%s2784_s3 + $0x18] sm:$0xff] %v1256_v24  ;;  %v1047_v25 = vadd.f32 %v1046_v61, %v901_v33  ;;  %658 = vmatmul.f32.gmra.mxu1 %v120_v17  ;;  %804 = vmatmul.f32.gmra.mxu2 %v121_v11  ;;  %v1049_v40 = vpop.f32.mrf.mxu0  ;;  %v128_v17 = vld [vmem:[%s2783_s0 + $0x390] sm:$0xff] }
 0x122   :  { %v132_v11 = vld [vmem:[%s2783_s0 + $0x3b0] sm:$0xff] }
 0x123   :  { %v1167_v56 = vmax.f32 %v1047_v25, 0.0 }
 0x124   :  { %v757_v48 = vpop.f32.mrf.mxu2  ;;  %1364 = vmatmul.msk.f32.gmra.mxu0 %vm303_vm0, %v123_v49  ;;  %v131_v49 = vld [vmem:[%s2783_s0 + $0x3a8] sm:$0xff] }
 0x125   :  { %v1212_v51 = vmul.f32 %v2133_v41, %v1167_v56  ;;  %v758_v57 = vadd.f32 %v757_v48, %v612_v27  ;;  %953 = vmatmul.f32.gmra.mxu3 %v127_v53  ;;  %v472_v48 = vadd.f32 %v2111_v60, %v2028_v3 }
 0x126   :  { %v614_v61 = vpop.f32.mrf.mxu1 }
 0x127   :  { %v1257_v4 = vadd.f32 %v2144_v19, %v1212_v51  ;;  %v904_v5 = vadd.f32 %v903_v35, %v758_v57  ;;  %v615_v24 = vadd.f32 %v614_v61, %v469_v43  ;;  %v133_v61 = vld [vmem:[%s2783_s0 + $0x3b8] sm:$0xff] }
 0x128   :  { %v906_v9 = vpop.f32.mrf.mxu3 }
 0x129   :  { %1300 = vst [vmem:[%s2784_s3 + $0x20] sm:$0xff] %v1257_v4  ;;  %v1050_v16 = vadd.f32 %v1049_v40, %v904_v5  ;;  %661 = vmatmul.f32.gmra.mxu1 %v125_v0  ;;  %807 = vmatmul.f32.gmra.mxu2 %v126_v1  ;;  %v1052_v10 = vpop.f32.mrf.mxu0  ;;  %v130_v40 = vld [vmem:[%s2783_s0 + $0x3a0] sm:$0xff]  ;;  %v137_v0 = vld [vmem:[%s2783_s0 + $0x3d8] sm:$0xff] }
 0x12b   :  { %v1168_v33 = vmax.f32 %v1050_v16, 0.0  ;;  %v135_v16 = vld [vmem:[%s2783_s0 + $0x3c8] sm:$0xff] }
 0x12c   :  { %v760_v35 = vpop.f32.mrf.mxu2  ;;  %1365 = vmatmul.msk.f32.gmra.mxu0 %vm303_vm0, %v128_v17 }
 0x12d   :  { %v1213_v59 = vmul.f32 %v2133_v41, %v1168_v33  ;;  %v761_v32 = vadd.f32 %v760_v35, %v615_v24  ;;  %956 = vmatmul.f32.gmra.mxu3 %v132_v11  ;;  %v475_v33 = vadd.f32 %v2111_v60, %v2049_v13 }
 0x12e   :  { %v617_v25 = vpop.f32.mrf.mxu1 }
 0x12f   :  { %v1258_v53 = vadd.f32 %v2144_v19, %v1213_v59  ;;  %v907_v27 = vadd.f32 %v906_v9, %v761_v32  ;;  %v618_v1 = vadd.f32 %v617_v25, %v472_v48  ;;  %v138_v32 = vld [vmem:[%s2783_s0 + $0x3e0] sm:$0xff]  ;;  %v140_v48 = vld [vmem:[%s2783_s0 + $0x3f0] sm:$0xff] }
 0x130   :  { %v909_v56 = vpop.f32.mrf.mxu3  ;;  %v142_v25 = vld [vmem:[%s2783_s0 + $0x400] sm:$0xff] }
 0x131   :  { %1301 = vst [vmem:[%s2784_s3 + $0x28] sm:$0xff] %v1258_v53  ;;  %v1053_v51 = vadd.f32 %v1052_v10, %v907_v27  ;;  %664 = vmatmul.f32.gmra.mxu1 %v130_v40  ;;  %810 = vmatmul.f32.gmra.mxu2 %v131_v49  ;;  %v1055_v57 = vpop.f32.mrf.mxu0  ;;  %v136_v10 = vld [vmem:[%s2783_s0 + $0x3d0] sm:$0xff] }
 0x133   :  { %v1169_v4 = vmax.f32 %v1053_v51, 0.0  ;;  %v141_v51 = vld [vmem:[%s2783_s0 + $0x3f8] sm:$0xff] }
 0x134   :  { %v763_v5 = vpop.f32.mrf.mxu2  ;;  %1366 = vmatmul.msk.f32.gmra.mxu0 %vm303_vm0, %v133_v61 }
 0x135   :  { %v1214_v3 = vmul.f32 %v2133_v41, %v1169_v4  ;;  %v764_v9 = vadd.f32 %v763_v5, %v618_v1  ;;  %959 = vmatmul.f32.gmra.mxu3 %v137_v0  ;;  %v478_v1 = vadd.f32 %v2111_v60, %v2070_v29 }
 0x136   :  { %v620_v43 = vpop.f32.mrf.mxu1 }
 0x137   :  { %v1259_v17 = vadd.f32 %v2144_v19, %v1214_v3  ;;  %v910_v11 = vadd.f32 %v909_v56, %v764_v9  ;;  %v621_v40 = vadd.f32 %v620_v43, %v475_v33  ;;  %v143_v3 = vld [vmem:[%s2783_s0 + $0x408] sm:$0xff]  ;;  %v146_v33 = vld [vmem:[%s2783_s0 + $0x420] sm:$0xff] }
 0x138   :  { %v912_v24 = vpop.f32.mrf.mxu3  ;;  %v147_v9 = vld [vmem:[%s2783_s0 + $0x428] sm:$0xff] }
 0x139   :  { %1302 = vst [vmem:[%s2784_s3 + $0x30] sm:$0xff] %v1259_v17  ;;  %v1056_v35 = vadd.f32 %v1055_v57, %v910_v11  ;;  %667 = vmatmul.f32.gmra.mxu1 %v135_v16  ;;  %813 = vmatmul.f32.gmra.mxu2 %v136_v10  ;;  %v1058_v59 = vpop.f32.mrf.mxu0 }
 0x13b   :  { %v1170_v49 = vmax.f32 %v1056_v35, 0.0 }
 0x13c   :  { %v766_v53 = vpop.f32.mrf.mxu2  ;;  %1367 = vmatmul.msk.f32.gmra.mxu0 %vm303_vm0, %v138_v32 }
 0x13d   :  { %v1215_v13 = vmul.f32 %v2133_v41, %v1170_v49  ;;  %v767_v27 = vadd.f32 %v766_v53, %v621_v40  ;;  %962 = vmatmul.f32.gmra.mxu3 %v142_v25  ;;  %v481_v25 = vadd.f32 %v2111_v60, %v2091_v45  ;;  %v148_v53 = vld [vmem:[%s2783_s0 + $0x430] sm:$0xff] }
 0x13e   :  { %v623_v56 = vpop.f32.mrf.mxu1 }
 0x13f   :  { %v1260_v57 = vadd.f32 %v2144_v19, %v1215_v13  ;;  %v913_v61 = vadd.f32 %v912_v24, %v767_v27  ;;  %v624_v43 = vadd.f32 %v623_v56, %v478_v1  ;;  %v145_v24 = vld [vmem:[%s2783_s0 + $0x418] sm:$0xff]  ;;  %v152_v13 = vld [vmem:[%s2783_s0 + $0x450] sm:$0xff] }
 0x140   :  { %v915_v0 = vpop.f32.mrf.mxu3 }
 0x141   :  { %1303 = vst [vmem:[%s2784_s3 + $0x38] sm:$0xff] %v1260_v57  ;;  %v1059_v4 = vadd.f32 %v1058_v59, %v913_v61  ;;  %670 = vmatmul.f32.gmra.mxu1 %v140_v48  ;;  %816 = vmatmul.f32.gmra.mxu2 %v141_v51  ;;  %v1061_v5 = vpop.f32.mrf.mxu0  ;;  %v150_v61 = vld [vmem:[%s2783_s0 + $0x440] sm:$0xff] }
 0x143   :  { %v1171_v16 = vmax.f32 %v1059_v4, 0.0 }
 0x144   :  { %v769_v10 = vpop.f32.mrf.mxu2  ;;  %1368 = vmatmul.msk.f32.gmra.mxu0 %vm303_vm0, %v143_v3  ;;  %v484_v3 = vadd.f32 %v2111_v60, %v1873_v8 }
 0x145   :  { %v1216_v29 = vmul.f32 %v2133_v41, %v1171_v16  ;;  %v770_v17 = vadd.f32 %v769_v10, %v624_v43  ;;  %965 = vmatmul.f32.gmra.mxu3 %v147_v9  ;;  %v153_v16 = vld [vmem:[%s2783_s0 + $0x458] sm:$0xff] }
 0x146   :  { %v626_v11 = vpop.f32.mrf.mxu1  ;;  %v157_v10 = vld [vmem:[%s2783_s0 + $0x478] sm:$0xff] }
 0x147   :  { %v1261_v35 = vadd.f32 %v2144_v19, %v1216_v29  ;;  %v916_v59 = vadd.f32 %v915_v0, %v770_v17  ;;  %v627_v27 = vadd.f32 %v626_v11, %v481_v25  ;;  %v151_v0 = vld [vmem:[%s2783_s0 + $0x448] sm:$0xff] }
 0x148   :  { %v918_v32 = vpop.f32.mrf.mxu3 }
 0x149   :  { %1304 = vst [vmem:[%s2784_s3 + $0x40] sm:$0xff] %v1261_v35  ;;  %v1062_v40 = vadd.f32 %v1061_v5, %v916_v59  ;;  %673 = vmatmul.f32.gmra.mxu1 %v145_v24  ;;  %819 = vmatmul.f32.gmra.mxu2 %v146_v33  ;;  %v1064_v49 = vpop.f32.mrf.mxu0  ;;  %v155_v35 = vld [vmem:[%s2783_s0 + $0x468] sm:$0xff]  ;;  %v156_v59 = vld [vmem:[%s2783_s0 + $0x470] sm:$0xff] }
 0x14b   :  { %v1172_v56 = vmax.f32 %v1062_v40, 0.0 }
 0x14c   :  { %v772_v48 = vpop.f32.mrf.mxu2  ;;  %1369 = vmatmul.msk.f32.gmra.mxu0 %vm303_vm0, %v148_v53 }
 0x14d   :  { %v1217_v45 = vmul.f32 %v2133_v41, %v1172_v56  ;;  %v773_v51 = vadd.f32 %v772_v48, %v627_v27  ;;  %968 = vmatmul.f32.gmra.mxu3 %v152_v13  ;;  %v158_v27 = vld [vmem:[%s2783_s0 + $0x480] sm:$0xff] }
 0x14e   :  { %v629_v57 = vpop.f32.mrf.mxu1  ;;  %v162_v56 = vld [vmem:[%s2783_s0 + $0x4a0] sm:$0xff] }
 0x14f   :  { %v1262_v1 = vadd.f32 %v2144_v19, %v1217_v45  ;;  %v919_v4 = vadd.f32 %v918_v32, %v773_v51  ;;  %v630_v29 = vadd.f32 %v629_v57, %v484_v3 }
 0x150   :  { %v921_v5 = vpop.f32.mrf.mxu3 }
 0x151   :  { %1305 = vst [vmem:[%s2784_s3 + $0x48] sm:$0xff] %v1262_v1  ;;  %v1065_v9 = vadd.f32 %v1064_v49, %v919_v4  ;;  %676 = vmatmul.f32.gmra.mxu1 %v150_v61  ;;  %822 = vmatmul.f32.gmra.mxu2 %v151_v0  ;;  %v1067_v43 = vpop.f32.mrf.mxu0  ;;  %v487_v49 = vadd.f32 %v2111_v60, %v1892_v15  ;;  %v160_v0 = vld [vmem:[%s2783_s0 + $0x490] sm:$0xff]  ;;  %v161_v1 = vld [vmem:[%s2783_s0 + $0x498] sm:$0xff] }
 0x153   :  { %v1173_v17 = vmax.f32 %v1065_v9, 0.0  ;;  %v490_v9 = vadd.f32 %v2111_v60, %v1913_v23 }
 0x154   :  { %v775_v11 = vpop.f32.mrf.mxu2  ;;  %1370 = vmatmul.msk.f32.gmra.mxu0 %vm303_vm0, %v153_v16 }
 0x155   :  { %v1218_v8 = vmul.f32 %v2133_v41, %v1173_v17  ;;  %v776_v24 = vadd.f32 %v775_v11, %v630_v29  ;;  %971 = vmatmul.f32.gmra.mxu3 %v157_v10  ;;  %v163_v10 = vld [vmem:[%s2783_s0 + $0x4a8] sm:$0xff] }
 0x156   :  { %v632_v33 = vpop.f32.mrf.mxu1  ;;  %v167_v29 = vld [vmem:[%s2783_s0 + $0x4c8] sm:$0xff] }
 0x157   :  { %v1263_v32 = vadd.f32 %v2144_v19, %v1218_v8  ;;  %v922_v25 = vadd.f32 %v921_v5, %v776_v24  ;;  %v633_v48 = vadd.f32 %v632_v33, %v487_v49  ;;  %v493_v49 = vadd.f32 %v2111_v60, %v1934_v31 }
 0x158   :  { %v924_v40 = vpop.f32.mrf.mxu3 }
 0x159   :  { %1306 = vst [vmem:[%s2784_s3 + $0x50] sm:$0xff] %v1263_v32  ;;  %v1068_v53 = vadd.f32 %v1067_v43, %v922_v25  ;;  %679 = vmatmul.f32.gmra.mxu1 %v155_v35  ;;  %825 = vmatmul.f32.gmra.mxu2 %v156_v59  ;;  %v1070_v13 = vpop.f32.mrf.mxu0  ;;  %v165_v35 = vld [vmem:[%s2783_s0 + $0x4b8] sm:$0xff]  ;;  %v166_v59 = vld [vmem:[%s2783_s0 + $0x4c0] sm:$0xff] }
 0x15b   :  { %v1174_v45 = vmax.f32 %v1068_v53, 0.0 }
 0x15c   :  { %v778_v51 = vpop.f32.mrf.mxu2  ;;  %1371 = vmatmul.msk.f32.gmra.mxu0 %vm303_vm0, %v158_v27  ;;  %v168_v27 = vld [vmem:[%s2783_s0 + $0x4d0] sm:$0xff] }
 0x15d   :  { %v1219_v15 = vmul.f32 %v2133_v41, %v1174_v45  ;;  %v779_v57 = vadd.f32 %v778_v51, %v633_v48  ;;  %974 = vmatmul.f32.gmra.mxu3 %v162_v56  ;;  %v172_v56 = vld [vmem:[%s2783_s0 + $0x4f0] sm:$0xff] }
 0x15e   :  { %v635_v61 = vpop.f32.mrf.mxu1 }
 0x15f   :  { %v1264_v4 = vadd.f32 %v2144_v19, %v1219_v15  ;;  %v925_v5 = vadd.f32 %v924_v40, %v779_v57  ;;  %v636_v17 = vadd.f32 %v635_v61, %v490_v9  ;;  %v170_v61 = vld [vmem:[%s2783_s0 + $0x4e0] sm:$0xff] }
 0x160   :  { %v927_v3 = vpop.f32.mrf.mxu3 }
 0x161   :  { %1307 = vst [vmem:[%s2784_s3 + $0x58] sm:$0xff] %v1264_v4  ;;  %v1071_v43 = vadd.f32 %v1070_v13, %v925_v5  ;;  %682 = vmatmul.f32.gmra.mxu1 %v160_v0  ;;  %828 = vmatmul.f32.gmra.mxu2 %v161_v1  ;;  %v1073_v16 = vpop.f32.mrf.mxu0  ;;  %v171_v0 = vld [vmem:[%s2783_s0 + $0x4e8] sm:$0xff] }
 0x163   :  { %v1175_v11 = vmax.f32 %v1071_v43, 0.0 }
 0x164   :  { %v781_v8 = vpop.f32.mrf.mxu2  ;;  %1372 = vmatmul.msk.f32.gmra.mxu0 %vm303_vm0, %v163_v10  ;;  %v177_v10 = vld [vmem:[%s2783_s0 + $0x518] sm:$0xff] }
 0x165   :  { %v1220_v23 = vmul.f32 %v2133_v41, %v1175_v11  ;;  %v782_v24 = vadd.f32 %v781_v8, %v636_v17  ;;  %977 = vmatmul.f32.gmra.mxu3 %v167_v29 }
 0x166   :  { %v638_v33 = vpop.f32.mrf.mxu1 }
 0x167   :  { %v1265_v32 = vadd.f32 %v2144_v19, %v1220_v23  ;;  %v928_v25 = vadd.f32 %v927_v3, %v782_v24  ;;  %v639_v48 = vadd.f32 %v638_v33, %v493_v49  ;;  %v496_v3 = vadd.f32 %v2111_v60, %v1955_v39  ;;  %v175_v24 = vld [vmem:[%s2783_s0 + $0x508] sm:$0xff]  ;;  %v176_v33 = vld [vmem:[%s2783_s0 + $0x510] sm:$0xff] }
 0x168   :  { %v930_v40 = vpop.f32.mrf.mxu3 }
 0x169   :  { %1308 = vst [vmem:[%s2784_s3 + $0x60] sm:$0xff] %v1265_v32  ;;  %v1074_v53 = vadd.f32 %v1073_v16, %v928_v25  ;;  %685 = vmatmul.f32.gmra.mxu1 %v165_v35  ;;  %831 = vmatmul.f32.gmra.mxu2 %v166_v59  ;;  %v1076_v13 = vpop.f32.mrf.mxu0  ;;  %v173_v16 = vld [vmem:[%s2783_s0 + $0x4f8] sm:$0xff]  ;;  %v499_v25 = vadd.f32 %v2111_v60, %v1976_v47 }
 0x16b   :  { %v1176_v45 = vmax.f32 %v1074_v53, 0.0  ;;  %v178_v53 = vld [vmem:[%s2783_s0 + $0x520] sm:$0xff] }
 0x16c   :  { %v784_v51 = vpop.f32.mrf.mxu2  ;;  %1373 = vmatmul.msk.f32.gmra.mxu0 %vm303_vm0, %v168_v27 }
 0x16d   :  { %v1221_v31 = vmul.f32 %v2133_v41, %v1176_v45  ;;  %v785_v15 = vadd.f32 %v784_v51, %v639_v48  ;;  %980 = vmatmul.f32.gmra.mxu3 %v172_v56 }
 0x16e   :  { %v641_v57 = vpop.f32.mrf.mxu1 }
 0x16f   :  { %v1266_v1 = vadd.f32 %v2144_v19, %v1221_v31  ;;  %v931_v4 = vadd.f32 %v930_v40, %v785_v15  ;;  %v642_v29 = vadd.f32 %v641_v57, %v496_v3  ;;  %v180_v31 = vld [vmem:[%s2783_s0 + $0x530] sm:$0xff]  ;;  %v181_v15 = vld [vmem:[%s2783_s0 + $0x538] sm:$0xff]  ;;  %v183_v3 = vld [vmem:[%s2783_s0 + $0x548] sm:$0xff] }
 0x170   :  { %v933_v5 = vpop.f32.mrf.mxu3 }
 0x171   :  { %1309 = vst [vmem:[%s2784_s3 + $0x68] sm:$0xff] %v1266_v1  ;;  %v1077_v9 = vadd.f32 %v1076_v13, %v931_v4  ;;  %688 = vmatmul.f32.gmra.mxu1 %v170_v61  ;;  %834 = vmatmul.f32.gmra.mxu2 %v171_v0  ;;  %v1079_v43 = vpop.f32.mrf.mxu0  ;;  %v182_v13 = vld [vmem:[%s2783_s0 + $0x540] sm:$0xff]  ;;  %v502_v1 = vadd.f32 %v2111_v60, %v1997_v55 }
 0x173   :  { %v1177_v17 = vmax.f32 %v1077_v9, 0.0  ;;  %v187_v9 = vld [vmem:[%s2783_s0 + $0x568] sm:$0xff] }
 0x174   :  { %v787_v11 = vpop.f32.mrf.mxu2  ;;  %1374 = vmatmul.msk.f32.gmra.mxu0 %vm303_vm0, %v173_v16 }
 0x175   :  { %v1222_v39 = vmul.f32 %v2133_v41, %v1177_v17  ;;  %v788_v8 = vadd.f32 %v787_v11, %v642_v29  ;;  %983 = vmatmul.f32.gmra.mxu3 %v177_v10  ;;  %v185_v11 = vld [vmem:[%s2783_s0 + $0x558] sm:$0xff] }
 0x176   :  { %v644_v23 = vpop.f32.mrf.mxu1 }
 0x177   :  { %v1267_v35 = vadd.f32 %v2144_v19, %v1222_v39  ;;  %v934_v59 = vadd.f32 %v933_v5, %v788_v8  ;;  %v645_v27 = vadd.f32 %v644_v23, %v499_v25  ;;  %v186_v39 = vld [vmem:[%s2783_s0 + $0x560] sm:$0xff]  ;;  %v192_v25 = vld [vmem:[%s2783_s0 + $0x590] sm:$0xff] }
 0x178   :  { %v936_v32 = vpop.f32.mrf.mxu3 }
 0x179   :  { %1310 = vst [vmem:[%s2784_s3 + $0x70] sm:$0xff] %v1267_v35  ;;  %v1080_v40 = vadd.f32 %v1079_v43, %v934_v59  ;;  %691 = vmatmul.f32.gmra.mxu1 %v175_v24  ;;  %837 = vmatmul.f32.gmra.mxu2 %v176_v33  ;;  %v1082_v49 = vpop.f32.mrf.mxu0  ;;  %v505_v33 = vadd.f32 %v2111_v60, %v2018_v63 }
 0x17b   :  { %v1178_v56 = vmax.f32 %v1080_v40, 0.0 }
 0x17c   :  { %v790_v48 = vpop.f32.mrf.mxu2  ;;  %1375 = vmatmul.msk.f32.gmra.mxu0 %vm303_vm0, %v178_v53 }
 0x17d   :  { %v1223_v47 = vmul.f32 %v2133_v41, %v1178_v56  ;;  %v791_v45 = vadd.f32 %v790_v48, %v645_v27  ;;  %986 = vmatmul.f32.gmra.mxu3 %v182_v13  ;;  %v190_v56 = vld [vmem:[%s2783_s0 + $0x580] sm:$0xff]  ;;  %v191_v48 = vld [vmem:[%s2783_s0 + $0x588] sm:$0xff] }
 0x17e   :  { %v647_v51 = vpop.f32.mrf.mxu1 }
 0x17f   :  { %v1268_v57 = vadd.f32 %v2144_v19, %v1223_v47  ;;  %v937_v61 = vadd.f32 %v936_v32, %v791_v45  ;;  %v648_v43 = vadd.f32 %v647_v51, %v502_v1  ;;  %v188_v32 = vld [vmem:[%s2783_s0 + $0x570] sm:$0xff] }
 0x180   :  { %v939_v0 = vpop.f32.mrf.mxu3 }
 0x181   :  { %1311 = vst [vmem:[%s2784_s3 + $0x78] sm:$0xff] %v1268_v57  ;;  %v1083_v4 = vadd.f32 %v1082_v49, %v937_v61  ;;  %694 = vmatmul.f32.gmra.mxu1 %v180_v31  ;;  %840 = vmatmul.f32.gmra.mxu2 %v181_v15  ;;  %v1085_v5 = vpop.f32.mrf.mxu0  ;;  %v508_v31 = vadd.f32 %v2111_v60, %v2039_v7  ;;  %v193_v61 = vld [vmem:[%s2783_s0 + $0x598] sm:$0xff] }
 0x183   :  { %v1179_v16 = vmax.f32 %v1083_v4, 0.0 }
 0x184   :  { %v793_v10 = vpop.f32.mrf.mxu2  ;;  %1376 = vmatmul.msk.f32.gmra.mxu0 %vm303_vm0, %v183_v3 }
 0x185   :  { %v1224_v55 = vmul.f32 %v2133_v41, %v1179_v16  ;;  %v794_v29 = vadd.f32 %v793_v10, %v648_v43  ;;  %989 = vmatmul.f32.gmra.mxu3 %v187_v9  ;;  %v195_v43 = vld [vmem:[%s2783_s0 + $0x5a8] sm:$0xff]  ;;  %v196_v16 = vld [vmem:[%s2783_s0 + $0x5b0] sm:$0xff] }
 0x186   :  { %v650_v17 = vpop.f32.mrf.mxu1 }
 0x187   :  { %v1269_v8 = vadd.f32 %v2144_v19, %v1224_v55  ;;  %v940_v23 = vadd.f32 %v939_v0, %v794_v29  ;;  %v651_v40 = vadd.f32 %v650_v17, %v505_v33  ;;  %v197_v0 = vld [vmem:[%s2783_s0 + $0x5b8] sm:$0xff]  ;;  %v511_v17 = vadd.f32 %v2111_v60, %v2060_v21 }
 0x188   :  { %v942_v24 = vpop.f32.mrf.mxu3 }
 0x189   :  { %1312 = vst [vmem:[%s2784_s3 + $0x80] sm:$0xff] %v1269_v8  ;;  %v1086_v35 = vadd.f32 %v1085_v5, %v940_v23  ;;  %697 = vmatmul.f32.gmra.mxu1 %v185_v11  ;;  %843 = vmatmul.f32.gmra.mxu2 %v186_v39  ;;  %v1088_v59 = vpop.f32.mrf.mxu0  ;;  %v198_v8 = vld [vmem:[%s2783_s0 + $0x5c0] sm:$0xff] }
 0x18a   :  { %v202_v23 = vld [vmem:[%s2783_s0 + $0x5e0] sm:$0xff] }
 0x18b   :  { %v1180_v49 = vmax.f32 %v1086_v35, 0.0 }
 0x18c   :  { %v796_v53 = vpop.f32.mrf.mxu2  ;;  %1377 = vmatmul.msk.f32.gmra.mxu0 %vm303_vm0, %v188_v32 }
 0x18d   :  { %v1225_v63 = vmul.f32 %v2133_v41, %v1180_v49  ;;  %v797_v13 = vadd.f32 %v796_v53, %v651_v40  ;;  %992 = vmatmul.f32.gmra.mxu3 %v192_v25  ;;  %v200_v25 = vld [vmem:[%s2783_s0 + $0x5d0] sm:$0xff]  ;;  %v201_v40 = vld [vmem:[%s2783_s0 + $0x5d8] sm:$0xff] }
 0x18e   :  { %v653_v27 = vpop.f32.mrf.mxu1 }
 0x18f   :  { %v1270_v47 = vadd.f32 %v2144_v19, %v1225_v63  ;;  %v943_v45 = vadd.f32 %v942_v24, %v797_v13  ;;  %v654_v1 = vadd.f32 %v653_v27, %v508_v31  ;;  %v514_v13 = vadd.f32 %v2111_v60, %v2081_v37 }
 0x190   :  { %v945_v51 = vpop.f32.mrf.mxu3 }
 0x191   :  { %1313 = vst [vmem:[%s2784_s3 + $0x88] sm:$0xff] %v1270_v47  ;;  %v1089_v15 = vadd.f32 %v1088_v59, %v943_v45  ;;  %700 = vmatmul.f32.gmra.mxu1 %v190_v56  ;;  %846 = vmatmul.f32.gmra.mxu2 %v191_v48  ;;  %v1091_v57 = vpop.f32.mrf.mxu0  ;;  %v203_v48 = vld [vmem:[%s2783_s0 + $0x5e8] sm:$0xff] }
 0x192   :  { %v207_v47 = vld [vmem:[%s2783_s0 + $0x608] sm:$0xff] }
 0x193   :  { %v1181_v4 = vmax.f32 %v1089_v15, 0.0 }
 0x194   :  { %v799_v5 = vpop.f32.mrf.mxu2  ;;  %1378 = vmatmul.msk.f32.gmra.mxu0 %vm303_vm0, %v193_v61  ;;  %v205_v61 = vld [vmem:[%s2783_s0 + $0x5f8] sm:$0xff] }
 0x195   :  { %v1226_v7 = vmul.f32 %v2133_v41, %v1181_v4  ;;  %v800_v3 = vadd.f32 %v799_v5, %v654_v1  ;;  %995 = vmatmul.f32.gmra.mxu3 %v197_v0  ;;  %v206_v0 = vld [vmem:[%s2783_s0 + $0x600] sm:$0xff] }
 0x196   :  { %v656_v9 = vpop.f32.mrf.mxu1 }
 0x197   :  { %v1271_v10 = vadd.f32 %v2144_v19, %v1226_v7  ;;  %v946_v55 = vadd.f32 %v945_v51, %v800_v3  ;;  %v657_v24 = vadd.f32 %v656_v9, %v511_v17  ;;  %v517_v7 = vadd.f32 %v2111_v60, %v1889_v14 }
 0x198   :  { %v948_v29 = vpop.f32.mrf.mxu3 }
 0x199   :  { %1314 = vst [vmem:[%s2784_s3 + $0x90] sm:$0xff] %v1271_v10  ;;  %v1092_v11 = vadd.f32 %v1091_v57, %v946_v55  ;;  %703 = vmatmul.f32.gmra.mxu1 %v195_v43  ;;  %849 = vmatmul.f32.gmra.mxu2 %v196_v16  ;;  %v1094_v39 = vpop.f32.mrf.mxu0  ;;  %v208_v43 = vld [vmem:[%s2783_s0 + $0x610] sm:$0xff] }
 0x19a   :  { %v212_v16 = vld [vmem:[%s2783_s0 + $0x630] sm:$0xff] }
 0x19b   :  { %v1182_v33 = vmax.f32 %v1092_v11, 0.0 }
 0x19c   :  { %v802_v35 = vpop.f32.mrf.mxu2  ;;  %1379 = vmatmul.msk.f32.gmra.mxu0 %vm303_vm0, %v198_v8  ;;  %v211_v8 = vld [vmem:[%s2783_s0 + $0x628] sm:$0xff] }
 0x19d   :  { %v1227_v21 = vmul.f32 %v2133_v41, %v1182_v33  ;;  %v803_v59 = vadd.f32 %v802_v35, %v657_v24  ;;  %998 = vmatmul.f32.gmra.mxu3 %v202_v23  ;;  %v520_v35 = vadd.f32 %v2111_v60, %v1910_v22 }
 0x19e   :  { %v659_v32 = vpop.f32.mrf.mxu1 }
 0x19f   :  { %v1272_v49 = vadd.f32 %v2144_v19, %v1227_v21  ;;  %v949_v53 = vadd.f32 %v948_v29, %v803_v59  ;;  %v660_v45 = vadd.f32 %v659_v32, %v514_v13  ;;  %v213_v32 = vld [vmem:[%s2783_s0 + $0x638] sm:$0xff] }
 0x1a0   :  { %v951_v63 = vpop.f32.mrf.mxu3 }
 0x1a1   :  { %1315 = vst [vmem:[%s2784_s3 + $0x98] sm:$0xff] %v1272_v49  ;;  %v1095_v27 = vadd.f32 %v1094_v39, %v949_v53  ;;  %706 = vmatmul.f32.gmra.mxu1 %v200_v25  ;;  %852 = vmatmul.f32.gmra.mxu2 %v201_v40  ;;  %v1097_v56 = vpop.f32.mrf.mxu0  ;;  %v210_v39 = vld [vmem:[%s2783_s0 + $0x620] sm:$0xff]  ;;  %v217_v25 = vld [vmem:[%s2783_s0 + $0x658] sm:$0xff] }
 0x1a3   :  { %v1183_v51 = vmax.f32 %v1095_v27, 0.0  ;;  %v215_v27 = vld [vmem:[%s2783_s0 + $0x648] sm:$0xff] }
 0x1a4   :  { %v805_v31 = vpop.f32.mrf.mxu2  ;;  %1380 = vmatmul.msk.f32.gmra.mxu0 %vm303_vm0, %v203_v48 }
 0x1a5   :  { %v1228_v37 = vmul.f32 %v2133_v41, %v1183_v51  ;;  %v806_v15 = vadd.f32 %v805_v31, %v660_v45  ;;  %1001 = vmatmul.f32.gmra.mxu3 %v207_v47  ;;  %v523_v51 = vadd.f32 %v2111_v60, %v1931_v30 }
 0x1a6   :  { %v662_v57 = vpop.f32.mrf.mxu1 }
 0x1a7   :  { %v1273_v1 = vadd.f32 %v2144_v19, %v1228_v37  ;;  %v952_v4 = vadd.f32 %v951_v63, %v806_v15  ;;  %v663_v10 = vadd.f32 %v662_v57, %v517_v7  ;;  %v218_v15 = vld [vmem:[%s2783_s0 + $0x660] sm:$0xff]  ;;  %v221_v7 = vld [vmem:[%s2783_s0 + $0x678] sm:$0xff] }
 0x1a8   :  { %v954_v5 = vpop.f32.mrf.mxu3  ;;  %v222_v57 = vld [vmem:[%s2783_s0 + $0x680] sm:$0xff] }
 0x1a9   :  { %1316 = vst [vmem:[%s2784_s3 + $0xa0] sm:$0xff] %v1273_v1  ;;  %v1098_v3 = vadd.f32 %v1097_v56, %v952_v4  ;;  %709 = vmatmul.f32.gmra.mxu1 %v205_v61  ;;  %855 = vmatmul.f32.gmra.mxu2 %v206_v0  ;;  %v1100_v9 = vpop.f32.mrf.mxu0  ;;  %v216_v56 = vld [vmem:[%s2783_s0 + $0x650] sm:$0xff] }
 0x1ab   :  { %v1184_v55 = vmax.f32 %v1098_v3, 0.0 }
 0x1ac   :  { %v808_v29 = vpop.f32.mrf.mxu2  ;;  %1381 = vmatmul.msk.f32.gmra.mxu0 %vm303_vm0, %v208_v43 }
 0x1ad   :  { %v1229_v14 = vmul.f32 %v2133_v41, %v1184_v55  ;;  %v809_v17 = vadd.f32 %v808_v29, %v663_v10  ;;  %1004 = vmatmul.f32.gmra.mxu3 %v212_v16  ;;  %v2618_v16 = vld [vmem:[%s2782_s2] ss:$0 sm:$0xff]  ;;  %v227_v29 = vld [vmem:[%s2783_s0 + $0x6a8] sm:$0x3] }
 0x1ae   :  { %v665_v11 = vpop.f32.mrf.mxu1 }
 0x1af   :  { %v1274_v23 = vadd.f32 %v2144_v19, %v1229_v14  ;;  %v955_v24 = vadd.f32 %v954_v5, %v809_v17  ;;  %v666_v40 = vadd.f32 %v665_v11, %v520_v35  ;;  %v220_v5 = vld [vmem:[%s2783_s0 + $0x670] sm:$0xff]  ;;  %v2647_v35 = vld [vmem:[%s2782_s2 + $0x2] ss:$0 sm:$0xff] }
 0x1b0   :  { %v957_v33 = vpop.f32.mrf.mxu3 }
 0x1b1   :  { %1317 = vst [vmem:[%s2784_s3 + $0xa8] sm:$0xff] %v1274_v23  ;;  %v1101_v21 = vadd.f32 %v1100_v9, %v955_v24  ;;  %712 = vmatmul.f32.gmra.mxu1 %v210_v39  ;;  %858 = vmatmul.f32.gmra.mxu2 %v211_v8  ;;  %v1103_v59 = vpop.f32.mrf.mxu0  ;;  %v225_v24 = vld [vmem:[%s2783_s0 + $0x698] sm:$0x3] }
 0x1b3   :  { %v1185_v49 = vmax.f32 %v1101_v21, 0.0 }
 0x1b4   :  { %v811_v53 = vpop.f32.mrf.mxu2  ;;  %1382 = vmatmul.msk.f32.gmra.mxu0 %vm303_vm0, %v213_v32 }
 0x1b5   :  { %v1230_v22 = vmul.f32 %v2133_v41, %v1185_v49  ;;  %v812_v63 = vadd.f32 %v811_v53, %v666_v40  ;;  %1007 = vmatmul.f32.gmra.mxu3 %v217_v25  ;;  %v529_v25 = vadd.f32 %v2618_v16, %v1973_v46  ;;  %v228_v53 = vld [vmem:[%s2783_s0 + $0x6b0] sm:$0x3] }
 0x1b6   :  { %v668_v13 = vpop.f32.mrf.mxu1 }
 0x1b7   :  { %v1275_v48 = vadd.f32 %v2144_v19, %v1230_v22  ;;  %v958_v47 = vadd.f32 %v957_v33, %v812_v63  ;;  %v669_v61 = vadd.f32 %v668_v13, %v523_v51  ;;  %v226_v33 = vld [vmem:[%s2783_s0 + $0x6a0] sm:$0x3]  ;;  %v532_v51 = vadd.f32 %v2618_v16, %v1994_v54 }
 0x1b8   :  { %v960_v45 = vpop.f32.mrf.mxu3  ;;  %v535_v54 = vadd.f32 %v2618_v16, %v2015_v62  ;;  %v538_v62 = vadd.f32 %v2618_v16, %v2036_v6  ;;  %v541_v6 = vadd.f32 %v2618_v16, %v2057_v20  ;;  %v544_v20 = vadd.f32 %v2618_v16, %v2078_v36 }
 0x1b9   :  { %1318 = vst [vmem:[%s2784_s3 + $0xb0] sm:$0xff] %v1275_v48  ;;  %v1104_v31 = vadd.f32 %v1103_v59, %v958_v47  ;;  %715 = vmatmul.f32.gmra.mxu1 %v215_v27  ;;  %861 = vmatmul.f32.gmra.mxu2 %v216_v56  ;;  %v1106_v37 = vpop.f32.mrf.mxu0  ;;  %v547_v36 = vadd.f32 %v2618_v16, %v2099_v52 }
 0x1ba   :  { %v550_v52 = vadd.f32 %v2618_v16, %v1900_v18  ;;  %v553_v18 = vadd.f32 %v2618_v16, %v1921_v26  ;;  %v556_v26 = vadd.f32 %v2618_v16, %v1942_v34  ;;  %v559_v34 = vadd.f32 %v2618_v16, %v1963_v42 }
 0x1bb   :  { %v1186_v0 = vmax.f32 %v1104_v31, 0.0  ;;  %v562_v42 = vadd.f32 %v2618_v16, %v1984_v50  ;;  %v565_v50 = vadd.f32 %v2618_v16, %v2005_v58  ;;  %v568_v58 = vadd.f32 %v2618_v16, %v2026_v2 }
 0x1bc   :  { %v814_v1 = vpop.f32.mrf.mxu2  ;;  %1383 = vmatmul.msk.f32.gmra.mxu0 %vm303_vm0, %v218_v15  ;;  %v571_v2 = vadd.f32 %v2618_v16, %v2047_v12 }
 0x1bd   :  { %v1231_v30 = vmul.f32 %v2133_v41, %v1186_v0  ;;  %v815_v60 = vadd.f32 %v814_v1, %v669_v61  ;;  %1010 = vmatmul.f32.gmra.mxu3 %v222_v57  ;;  %v526_v41 = vadd.f32 %v2618_v16, %v1952_v38  ;;  %v2635_v38 = vld [vmem:[%s2782_s2 + $0x1] ss:$0 sm:$0xff] }
 0x1be   :  { %v671_v4 = vpop.f32.mrf.mxu1 }
 0x1bf   :  { %v1276_v3 = vadd.f32 %v2144_v19, %v1231_v30  ;;  %v961_v9 = vadd.f32 %v960_v45, %v815_v60  ;;  %v223_v19 = vld [vmem:[%s2783_s0 + $0x688] sm:$0xff]  ;;  %v672_v14 = vadd.f32 %v671_v4, %v526_v41 }
 0x1c0   :  { %v963_v43 = vpop.f32.mrf.mxu3 }
 0x1c1   :  { %1319 = vst [vmem:[%s2784_s3 + $0xb8] sm:$0xff] %v1276_v3  ;;  %v1107_v10 = vadd.f32 %v1106_v37, %v961_v9  ;;  %718 = vmatmul.f32.gmra.mxu1 %v220_v5  ;;  %864 = vmatmul.f32.gmra.mxu2 %v221_v7  ;;  %v1109_v55 = vpop.f32.mrf.mxu0 }
 0x1c3   :  { %v1187_v17 = vmax.f32 %v1107_v10, 0.0 }
 0x1c4   :  { %v817_v11 = vpop.f32.mrf.mxu2  ;;  %1384 = vmatmul.msk.f32.gmra.mxu0 %vm303_vm0, %v223_v19 }
 0x1c5   :  { %v1232_v39 = vmul.f32 %v2635_v38, %v1187_v17  ;;  %v818_v8 = vadd.f32 %v817_v11, %v672_v14  ;;  %1013 = vmatmul.f32.gmra.mxu3 %v227_v29 }
 0x1c6   :  { %v674_v23 = vpop.f32.mrf.mxu1 }
 0x1c7   :  { %v1277_v21 = vadd.f32 %v2647_v35, %v1232_v39  ;;  %v964_v59 = vadd.f32 %v963_v43, %v818_v8  ;;  %v675_v22 = vadd.f32 %v674_v23, %v529_v25 }
 0x1c8   :  { %v966_v32 = vpop.f32.mrf.mxu3 }
 0x1c9   :  { %1320 = vst [vmem:[%s2784_s3 + $0xc0] sm:$0xff] %v1277_v21  ;;  %v1110_v40 = vadd.f32 %v1109_v55, %v964_v59  ;;  %721 = vmatmul.f32.gmra.mxu1 %v225_v24  ;;  %867 = vmatmul.f32.gmra.mxu2 %v226_v33  ;;  %v1112_v49 = vpop.f32.mrf.mxu0 }
 0x1cb   :  { %v1188_v63 = vmax.f32 %v1110_v40, 0.0 }
 0x1cc   :  { %v820_v13 = vpop.f32.mrf.mxu2  ;;  %1385 = vmatmul.msk.f32.gmra.mxu0 %vm303_vm0, %v228_v53 }
 0x1cd   :  { %v1233_v27 = vmul.f32 %v2635_v38, %v1188_v63  ;;  %v821_v46 = vadd.f32 %v820_v13, %v675_v22 }
 0x1ce   :  { %v677_v56 = vpop.f32.mrf.mxu1 }
 0x1cf   :  { %v1278_v48 = vadd.f32 %v2647_v35, %v1233_v27  ;;  %v967_v47 = vadd.f32 %v966_v32, %v821_v46  ;;  %v678_v15 = vadd.f32 %v677_v56, %v532_v51 }
 0x1d0   :  { %v969_v45 = vpop.f32.mrf.mxu3 }
 0x1d1   :  { %1321 = vst [vmem:[%s2784_s3 + $0xc8] sm:$0xff] %v1278_v48  ;;  %v1113_v31 = vadd.f32 %v1112_v49, %v967_v47  ;;  %v1115_v37 = vpop.f32.mrf.mxu0 }
 0x1d3   :  { %v1189_v57 = vmax.f32 %v1113_v31, 0.0 }
 0x1d4   :  { %v823_v61 = vpop.f32.mrf.mxu2 }
 0x1d5   :  { %v1234_v0 = vmul.f32 %v2635_v38, %v1189_v57  ;;  %v824_v1 = vadd.f32 %v823_v61, %v678_v15 }
 0x1d6   :  { %v680_v30 = vpop.f32.mrf.mxu1 }
 0x1d7   :  { %v1279_v60 = vadd.f32 %v2647_v35, %v1234_v0  ;;  %v970_v4 = vadd.f32 %v969_v45, %v824_v1  ;;  %v681_v9 = vadd.f32 %v680_v30, %v535_v54 }
 0x1d8   :  { %v972_v5 = vpop.f32.mrf.mxu3 }
 0x1d9   :  { %1322 = vst [vmem:[%s2784_s3 + $0xd0] sm:$0xff] %v1279_v60  ;;  %v1116_v7 = vadd.f32 %v1115_v37, %v970_v4  ;;  %v1118_v3 = vpop.f32.mrf.mxu0 }
 0x1db   :  { %v1190_v43 = vmax.f32 %v1116_v7, 0.0 }
 0x1dc   :  { %v826_v41 = vpop.f32.mrf.mxu2 }
 0x1dd   :  { %v1235_v10 = vmul.f32 %v2635_v38, %v1190_v43  ;;  %v827_v55 = vadd.f32 %v826_v41, %v681_v9 }
 0x1de   :  { %v683_v19 = vpop.f32.mrf.mxu1 }
 0x1df   :  { %v1280_v29 = vadd.f32 %v2647_v35, %v1235_v10  ;;  %v973_v14 = vadd.f32 %v972_v5, %v827_v55  ;;  %v684_v8 = vadd.f32 %v683_v19, %v538_v62 }
 0x1e0   :  { %v975_v17 = vpop.f32.mrf.mxu3 }
 0x1e1   :  { %1323 = vst [vmem:[%s2784_s3 + $0xd8] sm:$0xff] %v1280_v29  ;;  %v1119_v11 = vadd.f32 %v1118_v3, %v973_v14  ;;  %v1121_v39 = vpop.f32.mrf.mxu0 }
 0x1e3   :  { %v1191_v23 = vmax.f32 %v1119_v11, 0.0 }
 0x1e4   :  { %v829_v24 = vpop.f32.mrf.mxu2 }
 0x1e5   :  { %v1236_v33 = vmul.f32 %v2635_v38, %v1191_v23  ;;  %v830_v21 = vadd.f32 %v829_v24, %v684_v8 }
 0x1e6   :  { %v686_v59 = vpop.f32.mrf.mxu1 }
 0x1e7   :  { %v1281_v32 = vadd.f32 %v2647_v35, %v1236_v33  ;;  %v976_v25 = vadd.f32 %v975_v17, %v830_v21  ;;  %v687_v22 = vadd.f32 %v686_v59, %v541_v6 }
 0x1e8   :  { %v978_v40 = vpop.f32.mrf.mxu3 }
 0x1e9   :  { %1324 = vst [vmem:[%s2784_s3 + $0xe0] sm:$0xff] %v1281_v32  ;;  %v1122_v49 = vadd.f32 %v1121_v39, %v976_v25  ;;  %v1124_v53 = vpop.f32.mrf.mxu0 }
 0x1eb   :  { %v1192_v63 = vmax.f32 %v1122_v49, 0.0 }
 0x1ec   :  { %v832_v13 = vpop.f32.mrf.mxu2 }
 0x1ed   :  { %v1237_v27 = vmul.f32 %v2635_v38, %v1192_v63  ;;  %v833_v46 = vadd.f32 %v832_v13, %v687_v22 }
 0x1ee   :  { %v689_v56 = vpop.f32.mrf.mxu1 }
 0x1ef   :  { %v1282_v48 = vadd.f32 %v2647_v35, %v1237_v27  ;;  %v979_v47 = vadd.f32 %v978_v40, %v833_v46  ;;  %v690_v37 = vadd.f32 %v689_v56, %v544_v20 }
 0x1f0   :  { %v981_v45 = vpop.f32.mrf.mxu3 }
 0x1f1   :  { %1325 = vst [vmem:[%s2784_s3 + $0xe8] sm:$0xff] %v1282_v48  ;;  %v1125_v51 = vadd.f32 %v1124_v53, %v979_v47  ;;  %v1127_v31 = vpop.f32.mrf.mxu0 }
 0x1f3   :  { %v1193_v15 = vmax.f32 %v1125_v51, 0.0 }
 0x1f4   :  { %v835_v57 = vpop.f32.mrf.mxu2 }
 0x1f5   :  { %v1238_v61 = vmul.f32 %v2635_v38, %v1193_v15  ;;  %v836_v0 = vadd.f32 %v835_v57, %v690_v37 }
 0x1f6   :  { %v692_v1 = vpop.f32.mrf.mxu1 }
 0x1f7   :  { %v1283_v30 = vadd.f32 %v2647_v35, %v1238_v61  ;;  %v982_v60 = vadd.f32 %v981_v45, %v836_v0  ;;  %v693_v7 = vadd.f32 %v692_v1, %v547_v36 }
 0x1f8   :  { %v984_v4 = vpop.f32.mrf.mxu3 }
 0x1f9   :  { %1326 = vst [vmem:[%s2784_s3 + $0xf0] sm:$0xff] %v1283_v30  ;;  %v1128_v5 = vadd.f32 %v1127_v31, %v982_v60  ;;  %v1130_v54 = vpop.f32.mrf.mxu0 }
 0x1fb   :  { %v1194_v3 = vmax.f32 %v1128_v5, 0.0 }
 0x1fc   :  { %v838_v9 = vpop.f32.mrf.mxu2 }
 0x1fd   :  { %v1239_v43 = vmul.f32 %v2635_v38, %v1194_v3  ;;  %v839_v41 = vadd.f32 %v838_v9, %v693_v7 }
 0x1fe   :  { %v695_v10 = vpop.f32.mrf.mxu1 }
 0x1ff   :  { %v1284_v55 = vadd.f32 %v2647_v35, %v1239_v43  ;;  %v985_v19 = vadd.f32 %v984_v4, %v839_v41  ;;  %v696_v62 = vadd.f32 %v695_v10, %v550_v52 }
 0x200   :  { %v987_v29 = vpop.f32.mrf.mxu3 }
 0x201   :  { %1327 = vst [vmem:[%s2784_s3 + $0xf8] sm:$0xff] %v1284_v55  ;;  %v1131_v14 = vadd.f32 %v1130_v54, %v985_v19  ;;  %v1133_v17 = vpop.f32.mrf.mxu0 }
 0x203   :  { %v1195_v11 = vmax.f32 %v1131_v14, 0.0 }
 0x204   :  { %v841_v39 = vpop.f32.mrf.mxu2 }
 0x205   :  { %v1240_v8 = vmul.f32 %v2635_v38, %v1195_v11  ;;  %v842_v23 = vadd.f32 %v841_v39, %v696_v62 }
 0x206   :  { %v698_v24 = vpop.f32.mrf.mxu1 }
 0x207   :  { %v1285_v33 = vadd.f32 %v2647_v35, %v1240_v8  ;;  %v988_v21 = vadd.f32 %v987_v29, %v842_v23  ;;  %v699_v40 = vadd.f32 %v698_v24, %v553_v18 }
 0x208   :  { %v990_v59 = vpop.f32.mrf.mxu3 }
 0x209   :  { %1328 = vst [vmem:[%s2784_s3 + $0x100] sm:$0xff] %v1285_v33  ;;  %v1134_v32 = vadd.f32 %v1133_v17, %v988_v21  ;;  %v1136_v25 = vpop.f32.mrf.mxu0 }
 0x20b   :  { %v1196_v6 = vmax.f32 %v1134_v32, 0.0 }
 0x20c   :  { %v844_v49 = vpop.f32.mrf.mxu2 }
 0x20d   :  { %v1241_v53 = vmul.f32 %v2635_v38, %v1196_v6  ;;  %v845_v22 = vadd.f32 %v844_v49, %v699_v40 }
 0x20e   :  { %v701_v63 = vpop.f32.mrf.mxu1 }
 0x20f   :  { %v1286_v13 = vadd.f32 %v2647_v35, %v1241_v53  ;;  %v991_v27 = vadd.f32 %v990_v59, %v845_v22  ;;  %v702_v47 = vadd.f32 %v701_v63, %v556_v26 }
 0x210   :  { %v993_v46 = vpop.f32.mrf.mxu3 }
 0x211   :  { %1329 = vst [vmem:[%s2784_s3 + $0x108] sm:$0xff] %v1286_v13  ;;  %v1137_v56 = vadd.f32 %v1136_v25, %v991_v27  ;;  %v1139_v48 = vpop.f32.mrf.mxu0 }
 0x213   :  { %v1197_v45 = vmax.f32 %v1137_v56, 0.0 }
 0x214   :  { %v847_v20 = vpop.f32.mrf.mxu2 }
 0x215   :  { %v1242_v51 = vmul.f32 %v2635_v38, %v1197_v45  ;;  %v848_v31 = vadd.f32 %v847_v20, %v702_v47 }
 0x216   :  { %v704_v37 = vpop.f32.mrf.mxu1 }
 0x217   :  { %v1287_v15 = vadd.f32 %v2647_v35, %v1242_v51  ;;  %v994_v57 = vadd.f32 %v993_v46, %v848_v31  ;;  %v705_v30 = vadd.f32 %v704_v37, %v559_v34 }
 0x218   :  { %v996_v61 = vpop.f32.mrf.mxu3 }
 0x219   :  { %1330 = vst [vmem:[%s2784_s3 + $0x110] sm:$0xff] %v1287_v15  ;;  %v1140_v0 = vadd.f32 %v1139_v48, %v994_v57  ;;  %v1142_v1 = vpop.f32.mrf.mxu0 }
 0x21b   :  { %v1198_v60 = vmax.f32 %v1140_v0, 0.0  ;;  %v574_v0 = vadd.f32 %v2618_v16, %v2068_v28  ;;  %v577_v28 = vadd.f32 %v2618_v16, %v2089_v44 }
 0x21c   :  { %v850_v4 = vpop.f32.mrf.mxu2 }
 0x21d   :  { %v1243_v36 = vmul.f32 %v2635_v38, %v1198_v60  ;;  %v851_v5 = vadd.f32 %v850_v4, %v705_v30 }
 0x21e   :  { %v707_v54 = vpop.f32.mrf.mxu1 }
 0x21f   :  { %v1288_v7 = vadd.f32 %v2647_v35, %v1243_v36  ;;  %v997_v3 = vadd.f32 %v996_v61, %v851_v5  ;;  %v708_v10 = vadd.f32 %v707_v54, %v562_v42 }
 0x220   :  { %v999_v9 = vpop.f32.mrf.mxu3 }
 0x221   :  { %1331 = vst [vmem:[%s2784_s3 + $0x118] sm:$0xff] %v1288_v7  ;;  %v1143_v43 = vadd.f32 %v1142_v1, %v997_v3  ;;  %v1145_v41 = vpop.f32.mrf.mxu0 }
 0x223   :  { %v1199_v55 = vmax.f32 %v1143_v43, 0.0 }
 0x224   :  { %v853_v19 = vpop.f32.mrf.mxu2 }
 0x225   :  { %v1244_v29 = vmul.f32 %v2635_v38, %v1199_v55  ;;  %v854_v52 = vadd.f32 %v853_v19, %v708_v10 }
 0x226   :  { %v710_v14 = vpop.f32.mrf.mxu1 }
 0x227   :  { %v1289_v17 = vadd.f32 %v2647_v35, %v1244_v29  ;;  %v1000_v62 = vadd.f32 %v999_v9, %v854_v52  ;;  %v711_v23 = vadd.f32 %v710_v14, %v565_v50 }
 0x228   :  { %v1002_v11 = vpop.f32.mrf.mxu3 }
 0x229   :  { %1332 = vst [vmem:[%s2784_s3 + $0x120] sm:$0xff] %v1289_v17  ;;  %v1146_v39 = vadd.f32 %v1145_v41, %v1000_v62  ;;  %v1148_v8 = vpop.f32.mrf.mxu0 }
 0x22b   :  { %v1200_v24 = vmax.f32 %v1146_v39, 0.0 }
 0x22c   :  { %v856_v33 = vpop.f32.mrf.mxu2 }
 0x22d   :  { %v1245_v21 = vmul.f32 %v2635_v38, %v1200_v24  ;;  %v857_v59 = vadd.f32 %v856_v33, %v711_v23 }
 0x22e   :  { %v713_v18 = vpop.f32.mrf.mxu1 }
 0x22f   :  { %v1290_v32 = vadd.f32 %v2647_v35, %v1245_v21  ;;  %v1003_v25 = vadd.f32 %v1002_v11, %v857_v59  ;;  %v714_v53 = vadd.f32 %v713_v18, %v568_v58 }
 0x230   :  { %v1005_v40 = vpop.f32.mrf.mxu3 }
 0x231   :  { %1333 = vst [vmem:[%s2784_s3 + $0x128] sm:$0xff] %v1290_v32  ;;  %v1149_v6 = vadd.f32 %v1148_v8, %v1003_v25  ;;  %v1151_v49 = vpop.f32.mrf.mxu0 }
 0x233   :  { %v1201_v22 = vmax.f32 %v1149_v6, 0.0 }
 0x234   :  { %v859_v63 = vpop.f32.mrf.mxu2 }
 0x235   :  { %v1246_v13 = vmul.f32 %v2635_v38, %v1201_v22  ;;  %v860_v27 = vadd.f32 %v859_v63, %v714_v53 }
 0x236   :  { %v716_v46 = vpop.f32.mrf.mxu1 }
 0x237   :  { %v1291_v26 = vadd.f32 %v2647_v35, %v1246_v13  ;;  %v1006_v56 = vadd.f32 %v1005_v40, %v860_v27  ;;  %v717_v20 = vadd.f32 %v716_v46, %v571_v2 }
 0x238   :  { %v1008_v48 = vpop.f32.mrf.mxu3 }
 0x239   :  { %1334 = vst [vmem:[%s2784_s3 + $0x130] sm:$0xff] %v1291_v26  ;;  %v1152_v47 = vadd.f32 %v1151_v49, %v1006_v56  ;;  %v1154_v45 = vpop.f32.mrf.mxu0 }
 0x23b   :  { %v1202_v51 = vmax.f32 %v1152_v47, 0.0 }
 0x23c   :  { %v862_v31 = vpop.f32.mrf.mxu2 }
 0x23d   :  { %v1247_v37 = vmul.f32 %v2635_v38, %v1202_v51  ;;  %v863_v15 = vadd.f32 %v862_v31, %v717_v20 }
 0x23e   :  { %v719_v57 = vpop.f32.mrf.mxu1 }
 0x23f   :  { %v1292_v61 = vadd.f32 %v2647_v35, %v1247_v37  ;;  %v1009_v34 = vadd.f32 %v1008_v48, %v863_v15  ;;  %v720_v30 = vadd.f32 %v719_v57, %v574_v0 }
 0x240   :  { %v1011_v1 = vpop.f32.mrf.mxu3 }
 0x241   :  { %1335 = vst [vmem:[%s2784_s3 + $0x138] sm:$0xff] %v1292_v61  ;;  %v1155_v12 = vadd.f32 %v1154_v45, %v1009_v34  ;;  %v1157_v36 = vpop.f32.mrf.mxu0 }
 0x243   :  { %v1203_v60 = vmax.f32 %v1155_v12, 0.0 }
 0x244   :  { %v865_v4 = vpop.f32.mrf.mxu2 }
 0x245   :  { %v1248_v5 = vmul.f32 %v2635_v38, %v1203_v60  ;;  %v866_v54 = vadd.f32 %v865_v4, %v720_v30 }
 0x246   :  { %v722_v9 = vpop.f32.mrf.mxu1 }
 0x247   :  { %v1293_v7 = vadd.f32 %v2647_v35, %v1248_v5  ;;  %v1012_v3 = vadd.f32 %v1011_v1, %v866_v54  ;;  %v723_v43 = vadd.f32 %v722_v9, %v577_v28 }
 0x248   :  { %v1014_v55 = vpop.f32.mrf.mxu3 }
 0x249   :  { %1336 = vst [vmem:[%s2784_s3 + $0x140] sm:$0xff] %v1293_v7  ;;  %v1158_v42 = vadd.f32 %v1157_v36, %v1012_v3  ;;  %v1160_v52 = vpop.f32.mrf.mxu0 }
 0x24b   :  { %v1204_v41 = vmax.f32 %v1158_v42, 0.0 }
 0x24c   :  { %v868_v10 = vpop.f32.mrf.mxu2 }
 0x24d   :  { %v1249_v19 = vmul.f32 %v2635_v38, %v1204_v41  ;;  %v869_v29 = vadd.f32 %v868_v10, %v723_v43 }
 0x24f   :  { %v1294_v14 = vadd.f32 %v2647_v35, %v1249_v19  ;;  %v1015_v17 = vadd.f32 %v1014_v55, %v869_v29 }
 0x251   :  { %1337 = vst [vmem:[%s2784_s3 + $0x148] sm:$0xff] %v1294_v14  ;;  %v1161_v44 = vadd.f32 %v1160_v52, %v1015_v17 }
 0x253   :  { %v1205_v16 = vmax.f32 %v1161_v44, 0.0 }
 0x255   :  { %v1250_v62 = vmul.f32 %v2635_v38, %v1205_v16 }
 0x257   :  { %v1295_v11 = vadd.f32 %v2647_v35, %v1250_v62 }
 0x259   :  { %1338 = vst [vmem:[%s2784_s3 + $0x150] sm:$0x3] %v1295_v11 }

// kernel: fake_net2_forward.9
= control target key start
LH: loop header
LB: loop body
LE: loop exit
PB: predicated region body
PF: predicated region fallthrough
CT: control target
= control target key end

     0   :  { %s449_s6 = smov 0   ;;  %s534_s0 = inlined_call_operand.vmem [shape: f32[2,13,13,128], index: 0, kind: input, shape index: {}]   ;;  %s535_s1 = inlined_call_operand.vmem [shape: f32[2,6,6,128], index: 1, kind: output, shape index: {}]  }
   0x1 LB: > { %s385_s7 = sadd.s32 4294967295, %s437_s6   ;;  %p389_p0 = scmp.ge.s32.totalorder %s437_s6, 1  ;;  %s437_s6 = sphi %s449_s6, %s11_s6  }
   0x2   : > { %p87_p1 = scmp.lt.s32.totalorder %s437_s6, 3 }
   0x4   : > { %p88_p2 = pnand %p389_p0, %p87_p1 }
   0x5   : > { %p107_p3 = scmp.lt.s32.totalorder (!%p88_p2), %s385_s7, 1 }
   0x6   : > { %91 = sbr.rel (%p88_p2) target bundleno = 47 (0x2f), region = 24 }
   0xb   : > { %s537_s7 = smov (!%p107_p3, %s385_s7), 1  ;;  %vm144_vm0 = vcmask 1040384   ;;  %vm146_vm1 = vcmask 1041408   ;;  %vm148_vm2 = vcmask 1042432   ;;  %vm150_vm3 = vcmask 1043456  }
   0xc   : > { %s421_s8 = smul.u32 208, %s537_s7  ;;  %vm152_vm4 = vcmask 1044480  }
   0xd   : > { %s422_s12 = smul.u32 48, %s537_s7 }
   0xe   : > { %s463_s11 = scalar_lea.vmem %s534_s0, %s421_s8 }
   0xf   : > { %v117_v0 = vld [vmem:[%s463_s11] sm:$0xff]  ;;  %v118_v1 = vld [vmem:[%s463_s11 + $0x8] sm:$0x1f]  ;;  %v392_v2 = vld [vmem:[%s463_s11 + $0x10] sm:$0xff]  ;;  %s487_s15 = scalar_lea.vmem %s535_s1, %s422_s12 }
  0x10   : > { %v393_v3 = vld [vmem:[%s463_s11 + $0x18] sm:$0x1f]  ;;  %v122_v4 = vmax.f32 %v117_v0, %v392_v2  ;;  %v394_v5 = vld [vmem:[%s463_s11 + $0x20] sm:$0xff]  ;;  %v395_v6 = vld [vmem:[%s463_s11 + $0x28] sm:$0x1f] }
  0x11   : > { %v123_v7 = vmax.f32 %v118_v1, %v393_v3  ;;  %v396_v8 = vld [vmem:[%s463_s11 + $0x30] sm:$0xff]  ;;  %v397_v9 = vld [vmem:[%s463_s11 + $0x38] sm:$0x1f]  ;;  %v399_v10 = vld [vmem:[%s463_s11 + $0x40] sm:$0xff] }
  0x12   : > { %v125_v11 = vrot.slane %v122_v4, 1  ;;  %v161_v12 = vmax.f32 %v394_v5, %v396_v8  ;;  %v162_v13 = vmax.f32 %v395_v6, %v397_v9  ;;  %v400_v14 = vld [vmem:[%s463_s11 + $0x48] sm:$0x1f]  ;;  %v401_v15 = vld [vmem:[%s463_s11 + $0x50] sm:$0xff]  ;;  %v402_v16 = vld [vmem:[%s463_s11 + $0x58] sm:$0x1f] }
  0x13   : > { %v129_v17 = vrot.slane %v123_v7, 1  ;;  %v196_v18 = vmax.f32 %v399_v10, %v401_v15  ;;  %v197_v19 = vmax.f32 %v400_v14, %v402_v16  ;;  %v404_v20 = vld [vmem:[%s463_s11 + $0x60] sm:$0xff]  ;;  %v405_v21 = vld [vmem:[%s463_s11 + $0x68] sm:$0x1f]  ;;  %v406_v22 = vld [vmem:[%s463_s11 + $0x70] sm:$0xff] }
  0x14   : > { %v127_v23 = vmax.f32 %v122_v4, %v125_v11  ;;  %v164_v24 = vrot.slane %v161_v12, 1  ;;  %v168_v25 = vrot.slane %v162_v13, 1  ;;  %v407_v26 = vld [vmem:[%s463_s11 + $0x78] sm:$0x1f]  ;;  %v231_v27 = vmax.f32 %v404_v20, %v406_v22  ;;  %v409_v52 = vld [vmem:[%s463_s11 + $0x80] sm:$0xff]  ;;  %v411_v53 = vld [vmem:[%s463_s11 + $0x90] sm:$0xff] }
  0x15   : > { %v131_v28 = vmax.f32 %v123_v7, %v129_v17  ;;  %v199_v29 = vrot.slane %v196_v18, 1  ;;  %v203_v30 = vrot.slane %v197_v19, 1  ;;  %v232_v31 = vmax.f32 %v405_v21, %v407_v26  ;;  %v410_v58 = vld [vmem:[%s463_s11 + $0x88] sm:$0x1f]  ;;  %v412_v59 = vld [vmem:[%s463_s11 + $0x98] sm:$0x1f] }
  0x16   : > { %v133_v32 = vrot.slane %v127_v23, 1  ;;  %v135_v33 = vrot.slane %v127_v23, 2  ;;  %v137_v34 = vrot.slane %v127_v23, 3  ;;  %v166_v35 = vmax.f32 %v161_v12, %v164_v24  ;;  %v414_v0 = vld [vmem:[%s463_s11 + $0xa0] sm:$0xff]  ;;  %v415_v1 = vld [vmem:[%s463_s11 + $0xa8] sm:$0x1f] }
  0x17   : > { %v140_v36 = vrot.slane %v131_v28, 4  ;;  %v142_v37 = vrot.slane %v131_v28, 5  ;;  %v170_v38 = vmax.f32 %v162_v13, %v168_v25  ;;  %v201_v39 = vmax.f32 %v196_v18, %v199_v29  ;;  %v416_v2 = vld [vmem:[%s463_s11 + $0xb0] sm:$0xff]  ;;  %v417_v7 = vld [vmem:[%s463_s11 + $0xb8] sm:$0x1f] }
  0x18   : > { %v145_v40 = vsel %vm144_vm0, %v127_v23, %v133_v32  ;;  %v172_v41 = vrot.slane %v166_v35, 1  ;;  %v174_v42 = vrot.slane %v166_v35, 2  ;;  %v176_v43 = vrot.slane %v166_v35, 3 }
  0x19   : > { %v147_v44 = vsel %vm146_vm1, %v145_v40, %v135_v33  ;;  %v179_v45 = vrot.slane %v170_v38, 4  ;;  %v181_v46 = vrot.slane %v170_v38, 5  ;;  %v205_v47 = vmax.f32 %v197_v19, %v203_v30 }
  0x1a   : > { %v149_v48 = vsel %vm148_vm2, %v147_v44, %v137_v34  ;;  %v183_v49 = vsel %vm144_vm0, %v166_v35, %v172_v41  ;;  %v207_v50 = vrot.slane %v201_v39, 1  ;;  %v209_v51 = vrot.slane %v201_v39, 2 }
  0x1b   : > { %v151_v54 = vsel %vm150_vm3, %v149_v48, %v140_v36  ;;  %v184_v55 = vsel %vm146_vm1, %v183_v49, %v174_v42  ;;  %v211_v56 = vrot.slane %v201_v39, 3  ;;  %v214_v57 = vrot.slane %v205_v47, 4 }
  0x1c   : > { %v153_v60 = vsel %vm152_vm4, %v151_v54, %v142_v37  ;;  %v185_v61 = vsel %vm148_vm2, %v184_v55, %v176_v43  ;;  %v216_v62 = vrot.slane %v205_v47, 5  ;;  %v218_v63 = vsel %vm144_vm0, %v201_v39, %v207_v50 }
  0x1d   : > { %154 = vst [vmem:[%s487_s15] sm:$0x3f] %v153_v60  ;;  %v186_v3 = vsel %vm150_vm3, %v185_v61, %v179_v45  ;;  %v219_v4 = vsel %vm146_vm1, %v218_v63, %v209_v51  ;;  %v234_v5 = vrot.slane %v231_v27, 1  ;;  %v238_v6 = vrot.slane %v232_v31, 1 }
  0x1e   : > { %v187_v8 = vsel %vm152_vm4, %v186_v3, %v181_v46  ;;  %v220_v9 = vsel %vm148_vm2, %v219_v4, %v211_v56  ;;  %v266_v10 = vmax.f32 %v409_v52, %v411_v53  ;;  %v267_v11 = vmax.f32 %v410_v58, %v412_v59 }
  0x1f   : > { %398 = vst [vmem:[%s487_s15 + $0x8] sm:$0x3f] %v187_v8  ;;  %v221_v12 = vsel %vm150_vm3, %v220_v9, %v214_v57  ;;  %v236_v13 = vmax.f32 %v231_v27, %v234_v5  ;;  %v240_v14 = vmax.f32 %v232_v31, %v238_v6  ;;  %v301_v15 = vmax.f32 %v414_v0, %v416_v2 }
  0x20   : > { %v222_v16 = vsel %vm152_vm4, %v221_v12, %v216_v62  ;;  %v269_v17 = vrot.slane %v266_v10, 1  ;;  %v273_v18 = vrot.slane %v267_v11, 1  ;;  %v302_v19 = vmax.f32 %v415_v1, %v417_v7 }
  0x21   : > { %403 = vst [vmem:[%s487_s15 + $0x10] sm:$0x3f] %v222_v16  ;;  %v242_v20 = vrot.slane %v236_v13, 1  ;;  %v244_v21 = vrot.slane %v236_v13, 2  ;;  %v246_v22 = vrot.slane %v236_v13, 3  ;;  %v249_v23 = vrot.slane %v240_v14, 4 }
  0x22   : > { %v271_v24 = vmax.f32 %v266_v10, %v269_v17  ;;  %v275_v25 = vmax.f32 %v267_v11, %v273_v18  ;;  %v304_v26 = vrot.slane %v301_v15, 1  ;;  %v251_v28 = vrot.slane %v240_v14, 5 }
  0x23   : > { %v253_v29 = vsel %vm144_vm0, %v236_v13, %v242_v20  ;;  %v308_v30 = vrot.slane %v302_v19, 1 }
  0x24   : > { %v254_v27 = vsel %vm146_vm1, %v253_v29, %v244_v21  ;;  %v277_v31 = vrot.slane %v271_v24, 1  ;;  %v279_v32 = vrot.slane %v271_v24, 2  ;;  %v281_v33 = vrot.slane %v271_v24, 3 }
  0x25   : > { %v255_v34 = vsel %vm148_vm2, %v254_v27, %v246_v22  ;;  %v284_v35 = vrot.slane %v275_v25, 4  ;;  %v306_v36 = vmax.f32 %v301_v15, %v304_v26  ;;  %v286_v38 = vrot.slane %v275_v25, 5 }
  0x26   : > { %v256_v37 = vsel %vm150_vm3, %v255_v34, %v249_v23  ;;  %v288_v39 = vsel %vm144_vm0, %v271_v24, %v277_v31  ;;  %v310_v40 = vmax.f32 %v302_v19, %v308_v30 }
  0x27   : > { %v257_v41 = vsel %vm152_vm4, %v256_v37, %v251_v28  ;;  %v289_v42 = vsel %vm146_vm1, %v288_v39, %v279_v32  ;;  %v312_v43 = vrot.slane %v306_v36, 1  ;;  %v314_v44 = vrot.slane %v306_v36, 2 }
  0x28   : > { %408 = vst [vmem:[%s487_s15 + $0x18] sm:$0x3f] %v257_v41  ;;  %v290_v45 = vsel %vm148_vm2, %v289_v42, %v281_v33  ;;  %v316_v46 = vrot.slane %v306_v36, 3  ;;  %v319_v47 = vrot.slane %v310_v40, 4  ;;  %v321_v49 = vrot.slane %v310_v40, 5 }
  0x29   : > { %v291_v48 = vsel %vm150_vm3, %v290_v45, %v284_v35  ;;  %v323_v50 = vsel %vm144_vm0, %v306_v36, %v312_v43 }
  0x2a   : > { %v292_v51 = vsel %vm152_vm4, %v291_v48, %v286_v38  ;;  %v324_v52 = vsel %vm146_vm1, %v323_v50, %v314_v44 }
  0x2b   : > { %413 = vst [vmem:[%s487_s15 + $0x20] sm:$0x3f] %v292_v51  ;;  %v325_v53 = vsel %vm148_vm2, %v324_v52, %v316_v46 }
  0x2c   : > { %v326_v54 = vsel %vm150_vm3, %v325_v53, %v319_v47 }
  0x2d   : > { %v327_v55 = vsel %vm152_vm4, %v326_v54, %v321_v49 }
  0x2e   : > { %418 = vst [vmem:[%s487_s15 + $0x28] sm:$0x3f] %v327_v55 }
  0x2f PF: > { %s11_s6 = sadd.s32 1, %s437_s6  }
  0x30   : > { %p8_p4 = scmp.ge.s32.totalorder %s11_s6, 4  }
  0x32   :  { %10 = sbr.rel (!%p8_p4) target bundleno = 1 (0x1), region = 70 }

// kernel: fake_net2_forward.10
= control target key start
LH: loop header
LB: loop body
LE: loop exit
PB: predicated region body
PF: predicated region fallthrough
CT: control target
= control target key end

     0   :  { %s2179_s1 = inlined_call_operand.vmem [shape: f32[1152,256], index: 1, kind: input, shape index: {}]   ;;  %s2180_s0 = inlined_call_operand.vmem [shape: f32[32,1152], index: 0, kind: input, shape index: {}]   ;;  %s2181_s2 = inlined_call_operand.vmem [shape: f32[3,256], index: 2, kind: input, shape index: {}]   ;;  %s2182_s3 = inlined_call_operand.vmem [shape: f32[32,256], index: 3, kind: output, shape index: {}]  }
   0x1   :  { %v80_v0 = vld [vmem:[%s2179_s1 + $0xf0] sm:$0xff]  ;;  %v78_v2 = vld [vmem:[%s2179_s1 + $0xe0] sm:$0xff] }
   0x2   :  { %v144_v1 = vld [vmem:[%s2179_s1 + $0x2f0] sm:$0xff]  ;;  %344 = vmatpush.msra.mxu0 %v80_v0  ;;  %v142_v4 = vld [vmem:[%s2179_s1 + $0x2e0] sm:$0xff] }
   0x3   :  { %402 = vmatpush.msra.mxu2 %v144_v1  ;;  %v112_v3 = vld [vmem:[%s2179_s1 + $0x1f0] sm:$0xff]  ;;  %v110_v7 = vld [vmem:[%s2179_s1 + $0x1e0] sm:$0xff] }
   0x4   :  { %v176_v5 = vld [vmem:[%s2179_s1 + $0x3f0] sm:$0xff]  ;;  %373 = vmatpush.msra.mxu1 %v112_v3  ;;  %345 = vmatpush.msra.mxu0 %v78_v2  ;;  %v174_v9 = vld [vmem:[%s2179_s1 + $0x3e0] sm:$0xff] }
   0x5   :  { %431 = vmatpush.msra.mxu3 %v176_v5  ;;  %v76_v6 = vld [vmem:[%s2179_s1 + $0xd0] sm:$0xff]  ;;  %403 = vmatpush.msra.mxu2 %v142_v4  ;;  %v74_v11 = vld [vmem:[%s2179_s1 + $0xc0] sm:$0xff]  ;;  %v1183_v4 = vld [vmem:[%s2180_s0 + $0x8] sm:$0xff] }
   0x6   :  { %v140_v8 = vld [vmem:[%s2179_s1 + $0x2d0] sm:$0xff]  ;;  %374 = vmatpush.msra.mxu1 %v110_v7  ;;  %v138_v12 = vld [vmem:[%s2179_s1 + $0x2c0] sm:$0xff]  ;;  %346 = vmatpush.msra.mxu0 %v76_v6  ;;  %v1188_v5 = vld [vmem:[%s2180_s0 + $0x18] sm:$0xff] }
   0x7   :  { %v108_v10 = vld [vmem:[%s2179_s1 + $0x1d0] sm:$0xff]  ;;  %432 = vmatpush.msra.mxu3 %v174_v9  ;;  %404 = vmatpush.msra.mxu2 %v140_v8  ;;  %v106_v14 = vld [vmem:[%s2179_s1 + $0x1c0] sm:$0xff] }
   0x8   :  { %v172_v13 = vld [vmem:[%s2179_s1 + $0x3d0] sm:$0xff]  ;;  %v170_v15 = vld [vmem:[%s2179_s1 + $0x3c0] sm:$0xff]  ;;  %375 = vmatpush.msra.mxu1 %v108_v10  ;;  %347 = vmatpush.msra.mxu0 %v74_v11 }
   0x9   :  { %433 = vmatpush.msra.mxu3 %v172_v13  ;;  %v72_v16 = vld [vmem:[%s2179_s1 + $0xb0] sm:$0xff]  ;;  %405 = vmatpush.msra.mxu2 %v138_v12  ;;  %v70_v20 = vld [vmem:[%s2179_s1 + $0xa0] sm:$0xff] }
   0xa   :  { %v136_v17 = vld [vmem:[%s2179_s1 + $0x2b0] sm:$0xff]  ;;  %376 = vmatpush.msra.mxu1 %v106_v14  ;;  %v134_v21 = vld [vmem:[%s2179_s1 + $0x2a0] sm:$0xff]  ;;  %348 = vmatpush.msra.mxu0 %v72_v16 }
   0xb   :  { %v104_v18 = vld [vmem:[%s2179_s1 + $0x1b0] sm:$0xff]  ;;  %434 = vmatpush.msra.mxu3 %v170_v15  ;;  %406 = vmatpush.msra.mxu2 %v136_v17  ;;  %v102_v22 = vld [vmem:[%s2179_s1 + $0x1a0] sm:$0xff] }
   0xc   :  { %v168_v19 = vld [vmem:[%s2179_s1 + $0x3b0] sm:$0xff]  ;;  %v166_v23 = vld [vmem:[%s2179_s1 + $0x3a0] sm:$0xff]  ;;  %377 = vmatpush.msra.mxu1 %v104_v18  ;;  %349 = vmatpush.msra.mxu0 %v70_v20  ;;  %v1231_v18 = vld [vmem:[%s2180_s0 + $0x48] sm:$0xff] }
   0xd   :  { %435 = vmatpush.msra.mxu3 %v168_v19  ;;  %v68_v24 = vld [vmem:[%s2179_s1 + $0x90] sm:$0xff]  ;;  %407 = vmatpush.msra.mxu2 %v134_v21  ;;  %v66_v28 = vld [vmem:[%s2179_s1 + $0x80] sm:$0xff]  ;;  %v1236_v19 = vld [vmem:[%s2180_s0 + $0x58] sm:$0xff] }
   0xe   :  { %v132_v25 = vld [vmem:[%s2179_s1 + $0x290] sm:$0xff]  ;;  %378 = vmatpush.msra.mxu1 %v102_v22  ;;  %v130_v29 = vld [vmem:[%s2179_s1 + $0x280] sm:$0xff]  ;;  %350 = vmatpush.msra.mxu0 %v68_v24 }
   0xf   :  { %v100_v26 = vld [vmem:[%s2179_s1 + $0x190] sm:$0xff]  ;;  %436 = vmatpush.msra.mxu3 %v166_v23  ;;  %408 = vmatpush.msra.mxu2 %v132_v25  ;;  %v98_v30 = vld [vmem:[%s2179_s1 + $0x180] sm:$0xff] }
  0x10   :  { %v164_v27 = vld [vmem:[%s2179_s1 + $0x390] sm:$0xff]  ;;  %v162_v31 = vld [vmem:[%s2179_s1 + $0x380] sm:$0xff]  ;;  %379 = vmatpush.msra.mxu1 %v100_v26  ;;  %351 = vmatpush.msra.mxu0 %v66_v28 }
  0x11   :  { %437 = vmatpush.msra.mxu3 %v164_v27  ;;  %v64_v32 = vld [vmem:[%s2179_s1 + $0x70] sm:$0xff]  ;;  %409 = vmatpush.msra.mxu2 %v130_v29  ;;  %v62_v36 = vld [vmem:[%s2179_s1 + $0x60] sm:$0xff] }
  0x12   :  { %v128_v33 = vld [vmem:[%s2179_s1 + $0x270] sm:$0xff]  ;;  %380 = vmatpush.msra.mxu1 %v98_v30  ;;  %v126_v37 = vld [vmem:[%s2179_s1 + $0x260] sm:$0xff]  ;;  %352 = vmatpush.msra.mxu0 %v64_v32 }
  0x13   :  { %v96_v34 = vld [vmem:[%s2179_s1 + $0x170] sm:$0xff]  ;;  %438 = vmatpush.msra.mxu3 %v162_v31  ;;  %410 = vmatpush.msra.mxu2 %v128_v33  ;;  %v94_v38 = vld [vmem:[%s2179_s1 + $0x160] sm:$0xff] }
  0x14   :  { %v160_v35 = vld [vmem:[%s2179_s1 + $0x370] sm:$0xff]  ;;  %v158_v39 = vld [vmem:[%s2179_s1 + $0x360] sm:$0xff]  ;;  %381 = vmatpush.msra.mxu1 %v96_v34  ;;  %353 = vmatpush.msra.mxu0 %v62_v36 }
  0x15   :  { %439 = vmatpush.msra.mxu3 %v160_v35  ;;  %v60_v40 = vld [vmem:[%s2179_s1 + $0x50] sm:$0xff]  ;;  %411 = vmatpush.msra.mxu2 %v126_v37  ;;  %v58_v44 = vld [vmem:[%s2179_s1 + $0x40] sm:$0xff] }
  0x16   :  { %v124_v41 = vld [vmem:[%s2179_s1 + $0x250] sm:$0xff]  ;;  %382 = vmatpush.msra.mxu1 %v94_v38  ;;  %v122_v45 = vld [vmem:[%s2179_s1 + $0x240] sm:$0xff]  ;;  %354 = vmatpush.msra.mxu0 %v60_v40 }
  0x17   :  { %v92_v42 = vld [vmem:[%s2179_s1 + $0x150] sm:$0xff]  ;;  %440 = vmatpush.msra.mxu3 %v158_v39  ;;  %412 = vmatpush.msra.mxu2 %v124_v41  ;;  %v90_v46 = vld [vmem:[%s2179_s1 + $0x140] sm:$0xff] }
  0x18   :  { %v156_v43 = vld [vmem:[%s2179_s1 + $0x350] sm:$0xff]  ;;  %v154_v47 = vld [vmem:[%s2179_s1 + $0x340] sm:$0xff]  ;;  %383 = vmatpush.msra.mxu1 %v92_v42  ;;  %355 = vmatpush.msra.mxu0 %v58_v44  ;;  %v1327_v44 = vld [vmem:[%s2180_s0 + $0x98] sm:$0xff] }
  0x19   :  { %441 = vmatpush.msra.mxu3 %v156_v43  ;;  %v56_v48 = vld [vmem:[%s2179_s1 + $0x30] sm:$0xff]  ;;  %413 = vmatpush.msra.mxu2 %v122_v45  ;;  %v54_v52 = vld [vmem:[%s2179_s1 + $0x20] sm:$0xff]  ;;  %v1332_v45 = vld [vmem:[%s2180_s0 + $0xa8] sm:$0xff] }
  0x1a   :  { %v120_v49 = vld [vmem:[%s2179_s1 + $0x230] sm:$0xff]  ;;  %384 = vmatpush.msra.mxu1 %v90_v46  ;;  %v118_v53 = vld [vmem:[%s2179_s1 + $0x220] sm:$0xff]  ;;  %356 = vmatpush.msra.mxu0 %v56_v48 }
  0x1b   :  { %v88_v50 = vld [vmem:[%s2179_s1 + $0x130] sm:$0xff]  ;;  %442 = vmatpush.msra.mxu3 %v154_v47  ;;  %414 = vmatpush.msra.mxu2 %v120_v49  ;;  %v86_v54 = vld [vmem:[%s2179_s1 + $0x120] sm:$0xff] }
  0x1c   :  { %v152_v51 = vld [vmem:[%s2179_s1 + $0x330] sm:$0xff]  ;;  %v150_v55 = vld [vmem:[%s2179_s1 + $0x320] sm:$0xff]  ;;  %385 = vmatpush.msra.mxu1 %v88_v50  ;;  %357 = vmatpush.msra.mxu0 %v54_v52 }
  0x1d   :  { %443 = vmatpush.msra.mxu3 %v152_v51  ;;  %v52_v56 = vld [vmem:[%s2179_s1 + $0x10] sm:$0xff]  ;;  %415 = vmatpush.msra.mxu2 %v118_v53  ;;  %v50_v60 = vld [vmem:[%s2179_s1] sm:$0xff] }
  0x1e   :  { %v116_v57 = vld [vmem:[%s2179_s1 + $0x210] sm:$0xff]  ;;  %386 = vmatpush.msra.mxu1 %v86_v54  ;;  %v114_v61 = vld [vmem:[%s2179_s1 + $0x200] sm:$0xff]  ;;  %358 = vmatpush.msra.mxu0 %v52_v56 }
  0x1f   :  { %v84_v58 = vld [vmem:[%s2179_s1 + $0x110] sm:$0xff]  ;;  %444 = vmatpush.msra.mxu3 %v150_v55  ;;  %416 = vmatpush.msra.mxu2 %v116_v57  ;;  %v1159_v62 = vld [vmem:[%s2180_s0] sm:$0xff] }
  0x20   :  { %v148_v59 = vld [vmem:[%s2179_s1 + $0x310] sm:$0xff]  ;;  %387 = vmatpush.msra.mxu1 %v84_v58  ;;  %v82_v1 = vld [vmem:[%s2179_s1 + $0x100] sm:$0xff]  ;;  %359 = vmatpush.msra.mxu0 %v50_v60  ;;  %v1375_v58 = vld [vmem:[%s2180_s0 + $0xd8] sm:$0xff] }
  0x21   :  { %v1164_v63 = vld [vmem:[%s2180_s0 + $0x10] sm:$0xff]  ;;  %445 = vmatpush.msra.mxu3 %v148_v59  ;;  %417 = vmatpush.msra.mxu2 %v114_v61  ;;  %v146_v2 = vld [vmem:[%s2179_s1 + $0x300] sm:$0xff]  ;;  %v1380_v59 = vld [vmem:[%s2180_s0 + $0xe8] sm:$0xff] }
  0x22   :  { %v272_v0 = vld [vmem:[%s2179_s1 + $0x6f0] sm:$0xff]  ;;  %360 = vmatmul.f32.vlgmr.msra.gmra.mxu0 %v1159_v62  ;;  %418 = vmatmul.f32.vlgmr.msra.gmra.mxu2 %v1164_v63  ;;  %v270_v6 = vld [vmem:[%s2179_s1 + $0x6e0] sm:$0xff] }
  0x23   :  { %v208_v3 = vld [vmem:[%s2179_s1 + $0x4f0] sm:$0xff]  ;;  %518 = vmatpush.msrb.mxu2 %v272_v0  ;;  %388 = vmatpush.msra.mxu1 %v82_v1  ;;  %v206_v8 = vld [vmem:[%s2179_s1 + $0x4e0] sm:$0xff] }
  0x24   :  { %v304_v7 = vld [vmem:[%s2179_s1 + $0x7f0] sm:$0xff]  ;;  %446 = vmatpush.msra.mxu3 %v146_v2  ;;  %460 = vmatpush.msrb.mxu0 %v208_v3  ;;  %v302_v11 = vld [vmem:[%s2179_s1 + $0x7e0] sm:$0xff] }
  0x25   :  { %v240_v9 = vld [vmem:[%s2179_s1 + $0x5f0] sm:$0xff]  ;;  %389 = vmatmul.f32.vlgmr.msra.gmra.mxu1 %v1183_v4  ;;  %447 = vmatmul.f32.vlgmr.msra.gmra.mxu3 %v1188_v5  ;;  %v238_v13 = vld [vmem:[%s2179_s1 + $0x5e0] sm:$0xff] }
  0x26   :  { %v268_v10 = vld [vmem:[%s2179_s1 + $0x6d0] sm:$0xff]  ;;  %519 = vmatpush.msrb.mxu2 %v270_v6  ;;  %547 = vmatpush.msrb.mxu3 %v304_v7  ;;  %v266_v14 = vld [vmem:[%s2179_s1 + $0x6c0] sm:$0xff] }
  0x27   :  { %v204_v12 = vld [vmem:[%s2179_s1 + $0x4d0] sm:$0xff]  ;;  %461 = vmatpush.msrb.mxu0 %v206_v8  ;;  %489 = vmatpush.msrb.mxu1 %v240_v9  ;;  %v202_v16 = vld [vmem:[%s2179_s1 + $0x4c0] sm:$0xff] }
  0x28   :  { %v300_v15 = vld [vmem:[%s2179_s1 + $0x7d0] sm:$0xff]  ;;  %520 = vmatpush.msrb.mxu2 %v268_v10  ;;  %548 = vmatpush.msrb.mxu3 %v302_v11  ;;  %v298_v21 = vld [vmem:[%s2179_s1 + $0x7c0] sm:$0xff] }
  0x29   :  { %v236_v17 = vld [vmem:[%s2179_s1 + $0x5d0] sm:$0xff]  ;;  %462 = vmatpush.msrb.mxu0 %v204_v12  ;;  %490 = vmatpush.msrb.mxu1 %v238_v13  ;;  %v234_v23 = vld [vmem:[%s2179_s1 + $0x5c0] sm:$0xff] }
  0x2a   :  { %521 = vmatpush.msrb.mxu2 %v266_v14  ;;  %549 = vmatpush.msrb.mxu3 %v300_v15  ;;  %v264_v20 = vld [vmem:[%s2179_s1 + $0x6b0] sm:$0xff]  ;;  %v1260_v25 = vld [vmem:[%s2180_s0 + $0x60] sm:$0xff] }
  0x2b   :  { %463 = vmatpush.msrb.mxu0 %v202_v16  ;;  %491 = vmatpush.msrb.mxu1 %v236_v17  ;;  %v200_v22 = vld [vmem:[%s2179_s1 + $0x4b0] sm:$0xff]  ;;  %v262_v26 = vld [vmem:[%s2179_s1 + $0x6a0] sm:$0xff] }
  0x2c   :  { %363 = vmatmul.f32.gmra.mxu0 %v1231_v18  ;;  %421 = vmatmul.f32.gmra.mxu2 %v1236_v19  ;;  %v1255_v24 = vld [vmem:[%s2180_s0 + $0x50] sm:$0xff]  ;;  %v198_v28 = vld [vmem:[%s2179_s1 + $0x4a0] sm:$0xff] }
  0x2d   :  { %522 = vmatpush.msrb.mxu2 %v264_v20  ;;  %550 = vmatpush.msrb.mxu3 %v298_v21  ;;  %v296_v27 = vld [vmem:[%s2179_s1 + $0x7b0] sm:$0xff]  ;;  %v294_v31 = vld [vmem:[%s2179_s1 + $0x7a0] sm:$0xff] }
  0x2e   :  { %464 = vmatpush.msrb.mxu0 %v200_v22  ;;  %492 = vmatpush.msrb.mxu1 %v234_v23  ;;  %v232_v29 = vld [vmem:[%s2179_s1 + $0x5b0] sm:$0xff]  ;;  %v230_v33 = vld [vmem:[%s2179_s1 + $0x5a0] sm:$0xff]  ;;  %v113_v23 = vld [vmem:[%s2179_s1 + $0x1f8] sm:$0xff] }
  0x2f   :  { %392 = vmatmul.f32.gmra.mxu1 %v1255_v24  ;;  %450 = vmatmul.f32.gmra.mxu3 %v1260_v25  ;;  %v260_v30 = vld [vmem:[%s2179_s1 + $0x690] sm:$0xff]  ;;  %v258_v34 = vld [vmem:[%s2179_s1 + $0x680] sm:$0xff] }
  0x30   :  { %523 = vmatpush.msrb.mxu2 %v262_v26  ;;  %551 = vmatpush.msrb.mxu3 %v296_v27  ;;  %v196_v32 = vld [vmem:[%s2179_s1 + $0x490] sm:$0xff]  ;;  %v194_v36 = vld [vmem:[%s2179_s1 + $0x480] sm:$0xff] }
  0x31   :  { %465 = vmatpush.msrb.mxu0 %v198_v28  ;;  %493 = vmatpush.msrb.mxu1 %v232_v29  ;;  %v292_v35 = vld [vmem:[%s2179_s1 + $0x790] sm:$0xff]  ;;  %v1308_v39 = vld [vmem:[%s2180_s0 + $0xa0] sm:$0xff]  ;;  %v1471_v28 = vld [vmem:[%s2180_s0 + $0x28] sm:$0xff] }
  0x32   :  { %524 = vmatpush.msrb.mxu2 %v260_v30  ;;  %552 = vmatpush.msrb.mxu3 %v294_v31  ;;  %v228_v37 = vld [vmem:[%s2179_s1 + $0x590] sm:$0xff]  ;;  %v290_v41 = vld [vmem:[%s2179_s1 + $0x780] sm:$0xff]  ;;  %v1476_v29 = vld [vmem:[%s2180_s0 + $0x38] sm:$0xff] }
  0x33   :  { %466 = vmatpush.msrb.mxu0 %v196_v32  ;;  %494 = vmatpush.msrb.mxu1 %v230_v33  ;;  %v1303_v38 = vld [vmem:[%s2180_s0 + $0x90] sm:$0xff]  ;;  %v226_v43 = vld [vmem:[%s2179_s1 + $0x580] sm:$0xff]  ;;  %v111_v30 = vld [vmem:[%s2179_s1 + $0x1e8] sm:$0xff] }
  0x34   :  { %525 = vmatpush.msrb.mxu2 %v258_v34  ;;  %553 = vmatpush.msrb.mxu3 %v292_v35  ;;  %v256_v40 = vld [vmem:[%s2179_s1 + $0x670] sm:$0xff]  ;;  %v254_v46 = vld [vmem:[%s2179_s1 + $0x660] sm:$0xff]  ;;  %v145_v31 = vld [vmem:[%s2179_s1 + $0x2f8] sm:$0xff] }
  0x35   :  { %467 = vmatpush.msrb.mxu0 %v194_v36  ;;  %495 = vmatpush.msrb.mxu1 %v228_v37  ;;  %v192_v42 = vld [vmem:[%s2179_s1 + $0x470] sm:$0xff]  ;;  %v190_v48 = vld [vmem:[%s2179_s1 + $0x460] sm:$0xff]  ;;  %v81_v33 = vld [vmem:[%s2179_s1 + $0xf8] sm:$0xff] }
  0x36   :  { %366 = vmatmul.f32.gmra.mxu0 %v1303_v38  ;;  %424 = vmatmul.f32.gmra.mxu2 %v1308_v39  ;;  %v288_v47 = vld [vmem:[%s2179_s1 + $0x770] sm:$0xff]  ;;  %v286_v51 = vld [vmem:[%s2179_s1 + $0x760] sm:$0xff]  ;;  %v109_v34 = vld [vmem:[%s2179_s1 + $0x1d8] sm:$0xff] }
  0x37   :  { %526 = vmatpush.msrb.mxu2 %v256_v40  ;;  %554 = vmatpush.msrb.mxu3 %v290_v41  ;;  %v224_v49 = vld [vmem:[%s2179_s1 + $0x570] sm:$0xff]  ;;  %v222_v53 = vld [vmem:[%s2179_s1 + $0x560] sm:$0xff]  ;;  %v143_v35 = vld [vmem:[%s2179_s1 + $0x2e8] sm:$0xff] }
  0x38   :  { %468 = vmatpush.msrb.mxu0 %v192_v42  ;;  %496 = vmatpush.msrb.mxu1 %v226_v43  ;;  %v252_v50 = vld [vmem:[%s2179_s1 + $0x650] sm:$0xff]  ;;  %v250_v54 = vld [vmem:[%s2179_s1 + $0x640] sm:$0xff]  ;;  %v79_v37 = vld [vmem:[%s2179_s1 + $0xe8] sm:$0xff] }
  0x39   :  { %395 = vmatmul.f32.gmra.mxu1 %v1327_v44  ;;  %453 = vmatmul.f32.gmra.mxu3 %v1332_v45  ;;  %v188_v52 = vld [vmem:[%s2179_s1 + $0x450] sm:$0xff]  ;;  %v186_v56 = vld [vmem:[%s2179_s1 + $0x440] sm:$0xff]  ;;  %v107_v40 = vld [vmem:[%s2179_s1 + $0x1c8] sm:$0xff] }
  0x3a   :  { %527 = vmatpush.msrb.mxu2 %v254_v46  ;;  %555 = vmatpush.msrb.mxu3 %v288_v47  ;;  %v284_v55 = vld [vmem:[%s2179_s1 + $0x750] sm:$0xff]  ;;  %v282_v61 = vld [vmem:[%s2179_s1 + $0x740] sm:$0xff]  ;;  %v141_v41 = vld [vmem:[%s2179_s1 + $0x2d8] sm:$0xff] }
  0x3b   :  { %469 = vmatpush.msrb.mxu0 %v190_v48  ;;  %497 = vmatpush.msrb.mxu1 %v224_v49  ;;  %v220_v57 = vld [vmem:[%s2179_s1 + $0x550] sm:$0xff]  ;;  %v218_v1 = vld [vmem:[%s2179_s1 + $0x540] sm:$0xff]  ;;  %v77_v43 = vld [vmem:[%s2179_s1 + $0xd8] sm:$0xff] }
  0x3c   :  { %528 = vmatpush.msrb.mxu2 %v252_v50  ;;  %556 = vmatpush.msrb.mxu3 %v286_v51  ;;  %v248_v60 = vld [vmem:[%s2179_s1 + $0x630] sm:$0xff]  ;;  %v1399_v2 = vld [vmem:[%s2180_s0 + $0xe0] sm:$0xff]  ;;  %v1519_v46 = vld [vmem:[%s2180_s0 + $0x68] sm:$0xff] }
  0x3d   :  { %470 = vmatpush.msrb.mxu0 %v188_v52  ;;  %498 = vmatpush.msrb.mxu1 %v222_v53  ;;  %v184_v0 = vld [vmem:[%s2179_s1 + $0x430] sm:$0xff]  ;;  %v246_v6 = vld [vmem:[%s2179_s1 + $0x620] sm:$0xff]  ;;  %v1524_v47 = vld [vmem:[%s2180_s0 + $0x78] sm:$0xff] }
  0x3e   :  { %529 = vmatpush.msrb.mxu2 %v250_v54  ;;  %557 = vmatpush.msrb.mxu3 %v284_v55  ;;  %v1404_v3 = vld [vmem:[%s2180_s0 + $0xf0] sm:$0xff]  ;;  %v182_v8 = vld [vmem:[%s2179_s1 + $0x420] sm:$0xff]  ;;  %v105_v48 = vld [vmem:[%s2179_s1 + $0x1b8] sm:$0xff] }
  0x3f   :  { %471 = vmatpush.msrb.mxu0 %v186_v56  ;;  %499 = vmatpush.msrb.mxu1 %v220_v57  ;;  %v280_v7 = vld [vmem:[%s2179_s1 + $0x730] sm:$0xff]  ;;  %v278_v11 = vld [vmem:[%s2179_s1 + $0x720] sm:$0xff]  ;;  %v139_v49 = vld [vmem:[%s2179_s1 + $0x2c8] sm:$0xff] }
  0x40   :  { %369 = vmatmul.f32.gmra.mxu0 %v1375_v58  ;;  %427 = vmatmul.f32.gmra.mxu2 %v1380_v59  ;;  %v216_v9 = vld [vmem:[%s2179_s1 + $0x530] sm:$0xff]  ;;  %v214_v13 = vld [vmem:[%s2179_s1 + $0x520] sm:$0xff]  ;;  %v75_v51 = vld [vmem:[%s2179_s1 + $0xc8] sm:$0xff] }
  0x41   :  { %530 = vmatpush.msrb.mxu2 %v248_v60  ;;  %558 = vmatpush.msrb.mxu3 %v282_v61  ;;  %v244_v10 = vld [vmem:[%s2179_s1 + $0x610] sm:$0xff]  ;;  %v242_v14 = vld [vmem:[%s2179_s1 + $0x600] sm:$0xff]  ;;  %v103_v54 = vld [vmem:[%s2179_s1 + $0x1a8] sm:$0xff] }
  0x42   :  { %472 = vmatpush.msrb.mxu0 %v184_v0  ;;  %500 = vmatpush.msrb.mxu1 %v218_v1  ;;  %v180_v12 = vld [vmem:[%s2179_s1 + $0x410] sm:$0xff]  ;;  %v178_v16 = vld [vmem:[%s2179_s1 + $0x400] sm:$0xff]  ;;  %v137_v55 = vld [vmem:[%s2179_s1 + $0x2b8] sm:$0xff] }
  0x43   :  { %398 = vmatmul.f32.gmra.mxu1 %v1399_v2  ;;  %456 = vmatmul.f32.gmra.mxu3 %v1404_v3  ;;  %v276_v15 = vld [vmem:[%s2179_s1 + $0x710] sm:$0xff]  ;;  %v1447_v20 = vld [vmem:[%s2180_s0 + $0x20] sm:$0xff]  ;;  %v73_v57 = vld [vmem:[%s2179_s1 + $0xb8] sm:$0xff] }
  0x44   :  { %531 = vmatpush.msrb.mxu2 %v246_v6  ;;  %559 = vmatpush.msrb.mxu3 %v280_v7  ;;  %v212_v17 = vld [vmem:[%s2179_s1 + $0x510] sm:$0xff]  ;;  %v274_v22 = vld [vmem:[%s2179_s1 + $0x700] sm:$0xff]  ;;  %v101_v60 = vld [vmem:[%s2179_s1 + $0x198] sm:$0xff] }
  0x45   :  { %473 = vmatpush.msrb.mxu0 %v182_v8  ;;  %501 = vmatpush.msrb.mxu1 %v216_v9  ;;  %v1452_v21 = vld [vmem:[%s2180_s0 + $0x30] sm:$0xff]  ;;  %v210_v26 = vld [vmem:[%s2179_s1 + $0x500] sm:$0xff]  ;;  %v135_v61 = vld [vmem:[%s2179_s1 + $0x2a8] sm:$0xff] }
  0x46   :  { %532 = vmatpush.msrb.mxu2 %v244_v10  ;;  %560 = vmatpush.msrb.mxu3 %v278_v11  ;;  %v336_v27 = vld [vmem:[%s2179_s1 + $0x8f0] sm:$0xff]  ;;  %v334_v32 = vld [vmem:[%s2179_s1 + $0x8e0] sm:$0xff]  ;;  %v71_v1 = vld [vmem:[%s2179_s1 + $0xa8] sm:$0xff] }
  0x47   :  { %474 = vmatpush.msrb.mxu0 %v180_v12  ;;  %502 = vmatpush.msrb.mxu1 %v214_v13  ;;  %v332_v36 = vld [vmem:[%s2179_s1 + $0x8d0] sm:$0xff]  ;;  %v330_v42 = vld [vmem:[%s2179_s1 + $0x8c0] sm:$0xff]  ;;  %v99_v6 = vld [vmem:[%s2179_s1 + $0x188] sm:$0xff] }
  0x48   :  { %533 = vmatpush.msrb.mxu2 %v242_v14  ;;  %561 = vmatpush.msrb.mxu3 %v276_v15  ;;  %v328_v50 = vld [vmem:[%s2179_s1 + $0x8b0] sm:$0xff]  ;;  %v1548_v53 = vld [vmem:[%s2180_s0 + $0x80] sm:$0xff]  ;;  %v133_v7 = vld [vmem:[%s2179_s1 + $0x298] sm:$0xff] }
  0x49   :  { %475 = vmatpush.msrb.mxu0 %v178_v16  ;;  %503 = vmatpush.msrb.mxu1 %v212_v17  ;;  %v1543_v52 = vld [vmem:[%s2180_s0 + $0x70] sm:$0xff]  ;;  %v326_v56 = vld [vmem:[%s2179_s1 + $0x8a0] sm:$0xff]  ;;  %v69_v9 = vld [vmem:[%s2179_s1 + $0x98] sm:$0xff] }
  0x4a   :  { %476 = vmatmul.f32.vlgmr.msrb.gmra.mxu0 %v1447_v20  ;;  %534 = vmatmul.f32.vlgmr.msrb.gmra.mxu2 %v1452_v21  ;;  %v324_v0 = vld [vmem:[%s2179_s1 + $0x890] sm:$0xff]  ;;  %v322_v8 = vld [vmem:[%s2179_s1 + $0x880] sm:$0xff]  ;;  %v97_v12 = vld [vmem:[%s2179_s1 + $0x178] sm:$0xff] }
  0x4b   :  { %562 = vmatpush.msrb.mxu3 %v274_v22  ;;  %634 = vmatpush.msra.mxu2 %v113_v23  ;;  %v1591_v10 = vld [vmem:[%s2180_s0 + $0xb0] sm:$0xff]  ;;  %v1596_v11 = vld [vmem:[%s2180_s0 + $0xc0] sm:$0xff]  ;;  %v131_v13 = vld [vmem:[%s2179_s1 + $0x288] sm:$0xff] }
  0x4c   :  { %504 = vmatpush.msrb.mxu1 %v210_v26  ;;  %576 = vmatpush.msra.mxu0 %v336_v27  ;;  %v320_v14 = vld [vmem:[%s2179_s1 + $0x870] sm:$0xff]  ;;  %v67_v15 = vld [vmem:[%s2179_s1 + $0x88] sm:$0xff]  ;;  %v1615_v16 = vld [vmem:[%s2180_s0 + $0xb8] sm:$0xff] }
  0x4d   :  { %505 = vmatmul.f32.vlgmr.msrb.gmra.mxu1 %v1471_v28  ;;  %563 = vmatmul.f32.vlgmr.msrb.gmra.mxu3 %v1476_v29  ;;  %v1620_v17 = vld [vmem:[%s2180_s0 + $0xc8] sm:$0xff]  ;;  %v129_v23 = vld [vmem:[%s2179_s1 + $0x278] sm:$0xff]  ;;  %v318_v26 = vld [vmem:[%s2179_s1 + $0x860] sm:$0xff] }
  0x4e   :  { %635 = vmatpush.msra.mxu2 %v111_v30  ;;  %663 = vmatpush.msra.mxu3 %v145_v31  ;;  %v95_v22 = vld [vmem:[%s2179_s1 + $0x168] sm:$0xff]  ;;  %v65_v27 = vld [vmem:[%s2179_s1 + $0x78] sm:$0xff] }
  0x4f   :  { %577 = vmatpush.msra.mxu0 %v334_v32  ;;  %605 = vmatpush.msra.mxu1 %v81_v33  ;;  %v93_v30 = vld [vmem:[%s2179_s1 + $0x158] sm:$0xff]  ;;  %v127_v31 = vld [vmem:[%s2179_s1 + $0x268] sm:$0xff]  ;;  %v316_v32 = vld [vmem:[%s2179_s1 + $0x850] sm:$0xff] }
  0x50   :  { %636 = vmatpush.msra.mxu2 %v109_v34  ;;  %664 = vmatpush.msra.mxu3 %v143_v35  ;;  %v63_v33 = vld [vmem:[%s2179_s1 + $0x68] sm:$0xff]  ;;  %v125_v35 = vld [vmem:[%s2179_s1 + $0x258] sm:$0xff] }
  0x51   :  { %578 = vmatpush.msra.mxu0 %v332_v36  ;;  %606 = vmatpush.msra.mxu1 %v79_v37  ;;  %v91_v34 = vld [vmem:[%s2179_s1 + $0x148] sm:$0xff]  ;;  %v314_v36 = vld [vmem:[%s2179_s1 + $0x840] sm:$0xff]  ;;  %v61_v37 = vld [vmem:[%s2179_s1 + $0x58] sm:$0xff] }
  0x52   :  { %637 = vmatpush.msra.mxu2 %v107_v40  ;;  %665 = vmatpush.msra.mxu3 %v141_v41  ;;  %v1663_v40 = vld [vmem:[%s2180_s0 + $0xf8] sm:$0xff]  ;;  %v1668_v41 = vld [vmem:[%s2180_s0 + $0x108] sm:$0xff] }
  0x53   :  { %579 = vmatpush.msra.mxu0 %v330_v42  ;;  %607 = vmatpush.msra.mxu1 %v77_v43  ;;  %v89_v42 = vld [vmem:[%s2179_s1 + $0x138] sm:$0xff]  ;;  %v123_v43 = vld [vmem:[%s2179_s1 + $0x248] sm:$0xff] }
  0x54   :  { %479 = vmatmul.f32.gmra.mxu0 %v1519_v46  ;;  %537 = vmatmul.f32.gmra.mxu2 %v1524_v47 }
  0x55   :  { %638 = vmatpush.msra.mxu2 %v105_v48  ;;  %666 = vmatpush.msra.mxu3 %v139_v49  ;;  %v312_v48 = vld [vmem:[%s2179_s1 + $0x830] sm:$0xff]  ;;  %v59_v49 = vld [vmem:[%s2179_s1 + $0x48] sm:$0xff] }
  0x56   :  { %580 = vmatpush.msra.mxu0 %v328_v50  ;;  %608 = vmatpush.msra.mxu1 %v75_v51  ;;  %v1687_v50 = vld [vmem:[%s2180_s0 + $0x100] sm:$0xff]  ;;  %v1692_v51 = vld [vmem:[%s2180_s0 + $0x110] sm:$0xff] }
  0x57   :  { %508 = vmatmul.f32.gmra.mxu1 %v1543_v52  ;;  %566 = vmatmul.f32.gmra.mxu3 %v1548_v53 }
  0x58   :  { %639 = vmatpush.msra.mxu2 %v103_v54  ;;  %667 = vmatpush.msra.mxu3 %v137_v55  ;;  %v87_v54 = vld [vmem:[%s2179_s1 + $0x128] sm:$0xff]  ;;  %v121_v55 = vld [vmem:[%s2179_s1 + $0x238] sm:$0xff] }
  0x59   :  { %581 = vmatpush.msra.mxu0 %v326_v56  ;;  %609 = vmatpush.msra.mxu1 %v73_v57  ;;  %v310_v56 = vld [vmem:[%s2179_s1 + $0x820] sm:$0xff]  ;;  %v57_v57 = vld [vmem:[%s2179_s1 + $0x38] sm:$0xff] }
  0x5a   :  { %640 = vmatpush.msra.mxu2 %v101_v60  ;;  %668 = vmatpush.msra.mxu3 %v135_v61  ;;  %v85_v60 = vld [vmem:[%s2179_s1 + $0x118] sm:$0xff]  ;;  %v119_v61 = vld [vmem:[%s2179_s1 + $0x228] sm:$0xff] }
  0x5b   :  { %582 = vmatpush.msra.mxu0 %v324_v0  ;;  %610 = vmatpush.msra.mxu1 %v71_v1  ;;  %v308_v0 = vld [vmem:[%s2179_s1 + $0x810] sm:$0xff]  ;;  %v55_v1 = vld [vmem:[%s2179_s1 + $0x28] sm:$0xff] }
  0x5c   :  { %641 = vmatpush.msra.mxu2 %v99_v6  ;;  %669 = vmatpush.msra.mxu3 %v133_v7  ;;  %v83_v6 = vld [vmem:[%s2179_s1 + $0x108] sm:$0xff]  ;;  %v117_v7 = vld [vmem:[%s2179_s1 + $0x218] sm:$0xff] }
  0x5d   :  { %583 = vmatpush.msra.mxu0 %v322_v8  ;;  %611 = vmatpush.msra.mxu1 %v69_v9  ;;  %v306_v8 = vld [vmem:[%s2179_s1 + $0x800] sm:$0xff]  ;;  %v53_v9 = vld [vmem:[%s2179_s1 + $0x18] sm:$0xff] }
  0x5e   :  { %482 = vmatmul.f32.gmra.mxu0 %v1591_v10  ;;  %540 = vmatmul.f32.gmra.mxu2 %v1596_v11 }
  0x5f   :  { %642 = vmatpush.msra.mxu2 %v97_v12  ;;  %670 = vmatpush.msra.mxu3 %v131_v13  ;;  %v1735_v12 = vld [vmem:[%s2180_s0 + $0x40] sm:$0xff]  ;;  %v115_v13 = vld [vmem:[%s2179_s1 + $0x208] sm:$0xff] }
  0x60   :  { %584 = vmatpush.msra.mxu0 %v320_v14  ;;  %612 = vmatpush.msra.mxu1 %v67_v15  ;;  %v241_v14 = vld [vmem:[%s2179_s1 + $0x5f8] sm:$0xff]  ;;  %v51_v15 = vld [vmem:[%s2179_s1 + $0x8] sm:$0xff] }
  0x61   :  { %511 = vmatmul.f32.gmra.mxu1 %v1615_v16  ;;  %569 = vmatmul.f32.gmra.mxu3 %v1620_v17 }
  0x62   :  { %643 = vmatpush.msra.mxu2 %v95_v22  ;;  %671 = vmatpush.msra.mxu3 %v129_v23  ;;  %v177_v22 = vld [vmem:[%s2179_s1 + $0x3f8] sm:$0xff]  ;;  %v239_v23 = vld [vmem:[%s2179_s1 + $0x5e8] sm:$0xff] }
  0x63   :  { %585 = vmatpush.msra.mxu0 %v318_v26  ;;  %613 = vmatpush.msra.mxu1 %v65_v27  ;;  %v273_v26 = vld [vmem:[%s2179_s1 + $0x6f8] sm:$0xff]  ;;  %v175_v27 = vld [vmem:[%s2179_s1 + $0x3e8] sm:$0xff] }
  0x64   :  { %644 = vmatpush.msra.mxu2 %v93_v30  ;;  %672 = vmatpush.msra.mxu3 %v127_v31  ;;  %v237_v30 = vld [vmem:[%s2179_s1 + $0x5d8] sm:$0xff]  ;;  %v271_v31 = vld [vmem:[%s2179_s1 + $0x6e8] sm:$0xff] }
  0x65   :  { %586 = vmatpush.msra.mxu0 %v316_v32  ;;  %614 = vmatpush.msra.mxu1 %v63_v33  ;;  %v173_v32 = vld [vmem:[%s2179_s1 + $0x3d8] sm:$0xff] }
  0x66   :  { %645 = vmatpush.msra.mxu2 %v91_v34  ;;  %673 = vmatpush.msra.mxu3 %v125_v35  ;;  %v269_v33 = vld [vmem:[%s2179_s1 + $0x6d8] sm:$0xff]  ;;  %v171_v34 = vld [vmem:[%s2179_s1 + $0x3c8] sm:$0xff] }
  0x67   :  { %587 = vmatpush.msra.mxu0 %v314_v36  ;;  %615 = vmatpush.msra.mxu1 %v61_v37  ;;  %v205_v35 = vld [vmem:[%s2179_s1 + $0x4d8] sm:$0xff]  ;;  %v1792_v36 = vld [vmem:[%s2180_s0 + $0x88] sm:$0xff] }
  0x68   :  { %485 = vmatmul.f32.gmra.mxu0 %v1663_v40  ;;  %543 = vmatmul.f32.gmra.mxu2 %v1668_v41  ;;  %v233_v37 = vld [vmem:[%s2179_s1 + $0x5b8] sm:$0xff] }
  0x69   :  { %646 = vmatpush.msra.mxu2 %v89_v42  ;;  %674 = vmatpush.msra.mxu3 %v123_v43  ;;  %v267_v42 = vld [vmem:[%s2179_s1 + $0x6c8] sm:$0xff]  ;;  %v169_v43 = vld [vmem:[%s2179_s1 + $0x3b8] sm:$0xff] }
  0x6a   :  { %588 = vmatpush.msra.mxu0 %v312_v48  ;;  %616 = vmatpush.msra.mxu1 %v59_v49  ;;  %v203_v48 = vld [vmem:[%s2179_s1 + $0x4c8] sm:$0xff] }
  0x6b   :  { %514 = vmatmul.f32.gmra.mxu1 %v1687_v50  ;;  %572 = vmatmul.f32.gmra.mxu3 %v1692_v51  ;;  %v231_v49 = vld [vmem:[%s2179_s1 + $0x5a8] sm:$0xff] }
  0x6c   :  { %647 = vmatpush.msra.mxu2 %v87_v54  ;;  %675 = vmatpush.msra.mxu3 %v121_v55  ;;  %v265_v54 = vld [vmem:[%s2179_s1 + $0x6b8] sm:$0xff]  ;;  %v167_v55 = vld [vmem:[%s2179_s1 + $0x3a8] sm:$0xff] }
  0x6d   :  { %589 = vmatpush.msra.mxu0 %v310_v56  ;;  %617 = vmatpush.msra.mxu1 %v57_v57  ;;  %v229_v56 = vld [vmem:[%s2179_s1 + $0x598] sm:$0xff]  ;;  %v263_v57 = vld [vmem:[%s2179_s1 + $0x6a8] sm:$0xff] }
  0x6e   :  { %648 = vmatpush.msra.mxu2 %v85_v60  ;;  %676 = vmatpush.msra.mxu3 %v119_v61  ;;  %v165_v60 = vld [vmem:[%s2179_s1 + $0x398] sm:$0xff] }
  0x6f   :  { %590 = vmatpush.msra.mxu0 %v308_v0  ;;  %618 = vmatpush.msra.mxu1 %v55_v1  ;;  %v261_v61 = vld [vmem:[%s2179_s1 + $0x698] sm:$0xff]  ;;  %v163_v0 = vld [vmem:[%s2179_s1 + $0x388] sm:$0xff] }
  0x70   :  { %649 = vmatpush.msra.mxu2 %v83_v6  ;;  %677 = vmatpush.msra.mxu3 %v117_v7  ;;  %v197_v1 = vld [vmem:[%s2179_s1 + $0x498] sm:$0xff]  ;;  %v1849_v6 = vld [vmem:[%s2180_s0 + $0xd0] sm:$0xff] }
  0x71   :  { %591 = vmatpush.msra.mxu0 %v306_v8  ;;  %619 = vmatpush.msra.mxu1 %v53_v9  ;;  %v225_v7 = vld [vmem:[%s2179_s1 + $0x578] sm:$0xff]  ;;  %v259_v8 = vld [vmem:[%s2179_s1 + $0x688] sm:$0xff] }
  0x72   :  { %592 = vmatmul.f32.vlgmr.msra.gmra.mxu0 %v1735_v12  ;;  %650 = vmatmul.f32.vlgmr.msra.gmra.mxu2 %v1183_v4  ;;  %v209_v4 = vld [vmem:[%s2179_s1 + $0x4f8] sm:$0xff] }
  0x73   :  { %678 = vmatpush.msra.mxu3 %v115_v13  ;;  %750 = vmatpush.msrb.mxu2 %v241_v14  ;;  %v161_v9 = vld [vmem:[%s2179_s1 + $0x378] sm:$0xff]  ;;  %v195_v13 = vld [vmem:[%s2179_s1 + $0x488] sm:$0xff] }
  0x74   :  { %620 = vmatpush.msra.mxu1 %v51_v15  ;;  %692 = vmatpush.msrb.mxu0 %v177_v22  ;;  %v223_v14 = vld [vmem:[%s2179_s1 + $0x568] sm:$0xff]  ;;  %v257_v15 = vld [vmem:[%s2179_s1 + $0x678] sm:$0xff] }
  0x75   :  { %621 = vmatmul.f32.vlgmr.msra.gmra.mxu1 %v1159_v62  ;;  %679 = vmatmul.f32.vlgmr.msra.gmra.mxu3 %v1164_v63  ;;  %v207_v62 = vld [vmem:[%s2179_s1 + $0x4e8] sm:$0xff] }
  0x76   :  { %751 = vmatpush.msrb.mxu2 %v239_v23  ;;  %779 = vmatpush.msrb.mxu3 %v273_v26  ;;  %v235_v63 = vld [vmem:[%s2179_s1 + $0x5c8] sm:$0xff]  ;;  %v221_v23 = vld [vmem:[%s2179_s1 + $0x558] sm:$0xff] }
  0x77   :  { %693 = vmatpush.msrb.mxu0 %v175_v27  ;;  %721 = vmatpush.msrb.mxu1 %v209_v4  ;;  %v159_v22 = vld [vmem:[%s2179_s1 + $0x368] sm:$0xff]  ;;  %v157_v27 = vld [vmem:[%s2179_s1 + $0x358] sm:$0xff] }
  0x78   :  { %752 = vmatpush.msrb.mxu2 %v237_v30  ;;  %780 = vmatpush.msrb.mxu3 %v271_v31  ;;  %v255_v26 = vld [vmem:[%s2179_s1 + $0x668] sm:$0xff]  ;;  %v253_v4 = vld [vmem:[%s2179_s1 + $0x658] sm:$0xff] }
  0x79   :  { %694 = vmatpush.msrb.mxu0 %v173_v32  ;;  %722 = vmatpush.msrb.mxu1 %v207_v62  ;;  %v155_v30 = vld [vmem:[%s2179_s1 + $0x348] sm:$0xff]  ;;  %v189_v31 = vld [vmem:[%s2179_s1 + $0x458] sm:$0xff] }
  0x7a   :  { %753 = vmatpush.msrb.mxu2 %v235_v63  ;;  %781 = vmatpush.msrb.mxu3 %v269_v33  ;;  %v1906_v32 = vld [vmem:[%s2180_s0 + $0x118] sm:$0xff]  ;;  %v251_v63 = vld [vmem:[%s2179_s1 + $0x648] sm:$0xff] }
  0x7b   :  { %695 = vmatpush.msrb.mxu0 %v171_v34  ;;  %723 = vmatpush.msrb.mxu1 %v205_v35  ;;  %v217_v62 = vld [vmem:[%s2179_s1 + $0x538] sm:$0xff]  ;;  %v187_v34 = vld [vmem:[%s2179_s1 + $0x448] sm:$0xff] }
  0x7c   :  { %595 = vmatmul.f32.gmra.mxu0 %v1792_v36  ;;  %653 = vmatmul.f32.gmra.mxu2 %v1255_v24  ;;  %v201_v24 = vld [vmem:[%s2179_s1 + $0x4b8] sm:$0xff]  ;;  %v215_v35 = vld [vmem:[%s2179_s1 + $0x528] sm:$0xff] }
  0x7d   :  { %754 = vmatpush.msrb.mxu2 %v233_v37  ;;  %782 = vmatpush.msrb.mxu3 %v267_v42  ;;  %v153_v33 = vld [vmem:[%s2179_s1 + $0x338] sm:$0xff]  ;;  %v151_v42 = vld [vmem:[%s2179_s1 + $0x328] sm:$0xff] }
  0x7e   :  { %696 = vmatpush.msrb.mxu0 %v169_v43  ;;  %724 = vmatpush.msrb.mxu1 %v203_v48  ;;  %v249_v37 = vld [vmem:[%s2179_s1 + $0x638] sm:$0xff]  ;;  %v247_v48 = vld [vmem:[%s2179_s1 + $0x628] sm:$0xff] }
  0x7f   :  { %624 = vmatmul.f32.gmra.mxu1 %v1231_v18  ;;  %682 = vmatmul.f32.gmra.mxu3 %v1236_v19  ;;  %v199_v18 = vld [vmem:[%s2179_s1 + $0x4a8] sm:$0xff]  ;;  %v213_v43 = vld [vmem:[%s2179_s1 + $0x518] sm:$0xff] }
  0x80   :  { %755 = vmatpush.msrb.mxu2 %v231_v49  ;;  %783 = vmatpush.msrb.mxu3 %v265_v54  ;;  %v227_v19 = vld [vmem:[%s2179_s1 + $0x588] sm:$0xff]  ;;  %v149_v49 = vld [vmem:[%s2179_s1 + $0x318] sm:$0xff] }
  0x81   :  { %697 = vmatpush.msrb.mxu0 %v167_v55  ;;  %725 = vmatpush.msrb.mxu1 %v201_v24  ;;  %v245_v54 = vld [vmem:[%s2179_s1 + $0x618] sm:$0xff]  ;;  %v147_v55 = vld [vmem:[%s2179_s1 + $0x308] sm:$0xff] }
  0x82   :  { %756 = vmatpush.msrb.mxu2 %v229_v56  ;;  %784 = vmatpush.msrb.mxu3 %v263_v57  ;;  %v181_v24 = vld [vmem:[%s2179_s1 + $0x418] sm:$0xff]  ;;  %v243_v56 = vld [vmem:[%s2179_s1 + $0x608] sm:$0xff] }
  0x83   :  { %698 = vmatpush.msrb.mxu0 %v165_v60  ;;  %726 = vmatpush.msrb.mxu1 %v199_v18  ;;  %v305_v57 = vld [vmem:[%s2179_s1 + $0x7f8] sm:$0xff]  ;;  %v179_v60 = vld [vmem:[%s2179_s1 + $0x408] sm:$0xff] }
  0x84   :  { %757 = vmatpush.msrb.mxu2 %v227_v19  ;;  %785 = vmatpush.msrb.mxu3 %v261_v61  ;;  %v303_v18 = vld [vmem:[%s2179_s1 + $0x7e8] sm:$0xff]  ;;  %v337_v19 = vld [vmem:[%s2179_s1 + $0x8f8] sm:$0xff] }
  0x85   :  { %699 = vmatpush.msrb.mxu0 %v163_v0  ;;  %727 = vmatpush.msrb.mxu1 %v197_v1  ;;  %v299_v61 = vld [vmem:[%s2179_s1 + $0x7c8] sm:$0xff]  ;;  %v297_v0 = vld [vmem:[%s2179_s1 + $0x7b8] sm:$0xff] }
  0x86   :  { %598 = vmatmul.f32.gmra.mxu0 %v1849_v6  ;;  %656 = vmatmul.f32.gmra.mxu2 %v1327_v44  ;;  %v193_v44 = vld [vmem:[%s2179_s1 + $0x478] sm:$0xff]  ;;  %v331_v1 = vld [vmem:[%s2179_s1 + $0x8c8] sm:$0xff] }
  0x87   :  { %758 = vmatpush.msrb.mxu2 %v225_v7  ;;  %786 = vmatpush.msrb.mxu3 %v259_v8  ;;  %v295_v8 = vld [vmem:[%s2179_s1 + $0x7a8] sm:$0xff] }
  0x88   :  { %700 = vmatpush.msrb.mxu0 %v161_v9  ;;  %728 = vmatpush.msrb.mxu1 %v195_v13  ;;  %v329_v9 = vld [vmem:[%s2179_s1 + $0x8b8] sm:$0xff] }
  0x89   :  { %627 = vmatmul.f32.gmra.mxu1 %v1303_v38  ;;  %685 = vmatmul.f32.gmra.mxu3 %v1308_v39  ;;  %v191_v38 = vld [vmem:[%s2179_s1 + $0x468] sm:$0xff] }
  0x8a   :  { %759 = vmatpush.msrb.mxu2 %v223_v14  ;;  %787 = vmatpush.msrb.mxu3 %v257_v15  ;;  %v219_v39 = vld [vmem:[%s2179_s1 + $0x548] sm:$0xff] }
  0x8b   :  { %701 = vmatpush.msrb.mxu0 %v159_v22  ;;  %729 = vmatpush.msrb.mxu1 %v193_v44  ;;  %v289_v22 = vld [vmem:[%s2179_s1 + $0x778] sm:$0xff]  ;;  %v323_v44 = vld [vmem:[%s2179_s1 + $0x888] sm:$0xff] }
  0x8c   :  { %760 = vmatpush.msrb.mxu2 %v221_v23  ;;  %788 = vmatpush.msrb.mxu3 %v255_v26  ;;  %v287_v26 = vld [vmem:[%s2179_s1 + $0x768] sm:$0xff] }
  0x8d   :  { %702 = vmatpush.msrb.mxu0 %v157_v27  ;;  %730 = vmatpush.msrb.mxu1 %v191_v38  ;;  %v321_v27 = vld [vmem:[%s2179_s1 + $0x878] sm:$0xff] }
  0x8e   :  { %761 = vmatpush.msrb.mxu2 %v219_v39  ;;  %789 = vmatpush.msrb.mxu3 %v253_v4 }
  0x8f   :  { %703 = vmatpush.msrb.mxu0 %v155_v30  ;;  %731 = vmatpush.msrb.mxu1 %v189_v31  ;;  %v281_v30 = vld [vmem:[%s2179_s1 + $0x738] sm:$0xff]  ;;  %v315_v31 = vld [vmem:[%s2179_s1 + $0x848] sm:$0xff] }
  0x90   :  { %601 = vmatmul.f32.gmra.mxu0 %v1906_v32  ;;  %659 = vmatmul.f32.gmra.mxu2 %v1399_v2  ;;  %v185_v2 = vld [vmem:[%s2179_s1 + $0x438] sm:$0xff] }
  0x91   :  { %762 = vmatpush.msrb.mxu2 %v217_v62  ;;  %790 = vmatpush.msrb.mxu3 %v251_v63  ;;  %v279_v63 = vld [vmem:[%s2179_s1 + $0x728] sm:$0xff] }
  0x92   :  { %704 = vmatpush.msrb.mxu0 %v153_v33  ;;  %732 = vmatpush.msrb.mxu1 %v187_v34  ;;  %v313_v33 = vld [vmem:[%s2179_s1 + $0x838] sm:$0xff] }
  0x93   :  { %630 = vmatmul.f32.gmra.mxu1 %v1375_v58  ;;  %688 = vmatmul.f32.gmra.mxu3 %v1380_v59  ;;  %v183_v58 = vld [vmem:[%s2179_s1 + $0x428] sm:$0xff] }
  0x94   :  { %763 = vmatpush.msrb.mxu2 %v215_v35  ;;  %791 = vmatpush.msrb.mxu3 %v249_v37  ;;  %v211_v59 = vld [vmem:[%s2179_s1 + $0x508] sm:$0xff] }
  0x95   :  { %705 = vmatpush.msrb.mxu0 %v151_v42  ;;  %733 = vmatpush.msrb.mxu1 %v185_v2  ;;  %v307_v42 = vld [vmem:[%s2179_s1 + $0x808] sm:$0xff] }
  0x96   :  { %764 = vmatpush.msrb.mxu2 %v213_v43  ;;  %792 = vmatpush.msrb.mxu3 %v247_v48 }
  0x97   :  { %706 = vmatpush.msrb.mxu0 %v149_v49  ;;  %734 = vmatpush.msrb.mxu1 %v183_v58 }
  0x98   :  { %765 = vmatpush.msrb.mxu2 %v211_v59  ;;  %793 = vmatpush.msrb.mxu3 %v245_v54 }
  0x99   :  { %707 = vmatpush.msrb.mxu0 %v147_v55  ;;  %735 = vmatpush.msrb.mxu1 %v181_v24 }
  0x9a   :  { %708 = vmatmul.f32.vlgmr.msrb.gmra.mxu0 %v1188_v5  ;;  %766 = vmatmul.f32.vlgmr.msrb.gmra.mxu2 %v1471_v28  ;;  %v301_v5 = vld [vmem:[%s2179_s1 + $0x7d8] sm:$0xff]  ;;  %v335_v28 = vld [vmem:[%s2179_s1 + $0x8e8] sm:$0xff] }
  0x9b   :  { %794 = vmatpush.msrb.mxu3 %v243_v56  ;;  %918 = vmatpush.msra.mxu2 %v305_v57 }
  0x9c   :  { %736 = vmatpush.msrb.mxu1 %v179_v60  ;;  %808 = vmatpush.msra.mxu0 %v305_v57 }
  0x9d   :  { %737 = vmatmul.f32.vlgmr.msrb.gmra.mxu1 %v1447_v20  ;;  %795 = vmatmul.f32.vlgmr.msrb.gmra.mxu3 %v1452_v21  ;;  %v333_v20 = vld [vmem:[%s2179_s1 + $0x8d8] sm:$0xff] }
  0x9e   :  { %919 = vmatpush.msra.mxu2 %v303_v18  ;;  %934 = vmatpush.msra.mxu3 %v337_v19 }
  0x9f   :  { %809 = vmatpush.msra.mxu0 %v303_v18  ;;  %837 = vmatpush.msra.mxu1 %v337_v19  ;;  %v1991_v21 = vpop.f32.mrf.mxu0 }
  0xa0   :  { %920 = vmatpush.msra.mxu2 %v301_v5  ;;  %935 = vmatpush.msra.mxu3 %v335_v28 }
  0xa1   :  { %810 = vmatpush.msra.mxu0 %v301_v5  ;;  %838 = vmatpush.msra.mxu1 %v335_v28 }
  0xa2   :  { %921 = vmatpush.msra.mxu2 %v299_v61  ;;  %936 = vmatpush.msra.mxu3 %v333_v20  ;;  %v1999_v7 = vpop.f32.mrf.mxu1 }
  0xa3   :  { %811 = vmatpush.msra.mxu0 %v299_v61  ;;  %839 = vmatpush.msra.mxu1 %v333_v20 }
  0xa4   :  { %711 = vmatmul.f32.gmra.mxu0 %v1260_v25  ;;  %769 = vmatmul.f32.gmra.mxu2 %v1543_v52  ;;  %v293_v25 = vld [vmem:[%s2179_s1 + $0x798] sm:$0xff]  ;;  %v327_v52 = vld [vmem:[%s2179_s1 + $0x8a8] sm:$0xff] }
  0xa5   :  { %922 = vmatpush.msra.mxu2 %v297_v0  ;;  %937 = vmatpush.msra.mxu3 %v331_v1  ;;  %v2009_v13 = vpop.f32.mrf.mxu2 }
  0xa6   :  { %812 = vmatpush.msra.mxu0 %v297_v0  ;;  %840 = vmatpush.msra.mxu1 %v331_v1 }
  0xa7   :  { %740 = vmatmul.f32.gmra.mxu1 %v1519_v46  ;;  %798 = vmatmul.f32.gmra.mxu3 %v1524_v47  ;;  %v291_v46 = vld [vmem:[%s2179_s1 + $0x788] sm:$0xff]  ;;  %v325_v47 = vld [vmem:[%s2179_s1 + $0x898] sm:$0xff] }
  0xa8   :  { %923 = vmatpush.msra.mxu2 %v295_v8  ;;  %938 = vmatpush.msra.mxu3 %v329_v9  ;;  %v2019_v14 = vpop.f32.mrf.mxu3 }
  0xa9   :  { %813 = vmatpush.msra.mxu0 %v295_v8  ;;  %841 = vmatpush.msra.mxu1 %v329_v9  ;;  %v2027_v15 = vpop.f32.mrf.mxu0 }
  0xaa   :  { %924 = vmatpush.msra.mxu2 %v293_v25  ;;  %939 = vmatpush.msra.mxu3 %v327_v52 }
  0xab   :  { %814 = vmatpush.msra.mxu0 %v293_v25  ;;  %842 = vmatpush.msra.mxu1 %v327_v52 }
  0xac   :  { %925 = vmatpush.msra.mxu2 %v291_v46  ;;  %940 = vmatpush.msra.mxu3 %v325_v47  ;;  %v2035_v23 = vpop.f32.mrf.mxu1 }
  0xad   :  { %815 = vmatpush.msra.mxu0 %v291_v46  ;;  %843 = vmatpush.msra.mxu1 %v325_v47 }
  0xae   :  { %714 = vmatmul.f32.gmra.mxu0 %v1332_v45  ;;  %772 = vmatmul.f32.gmra.mxu2 %v1615_v16  ;;  %v285_v45 = vld [vmem:[%s2179_s1 + $0x758] sm:$0xff]  ;;  %v319_v16 = vld [vmem:[%s2179_s1 + $0x868] sm:$0xff] }
  0xaf   :  { %926 = vmatpush.msra.mxu2 %v289_v22  ;;  %941 = vmatpush.msra.mxu3 %v323_v44  ;;  %v2045_v38 = vpop.f32.mrf.mxu2 }
  0xb0   :  { %816 = vmatpush.msra.mxu0 %v289_v22  ;;  %844 = vmatpush.msra.mxu1 %v323_v44 }
  0xb1   :  { %743 = vmatmul.f32.gmra.mxu1 %v1591_v10  ;;  %801 = vmatmul.f32.gmra.mxu3 %v1596_v11  ;;  %v283_v10 = vld [vmem:[%s2179_s1 + $0x748] sm:$0xff]  ;;  %v317_v11 = vld [vmem:[%s2179_s1 + $0x858] sm:$0xff] }
  0xb2   :  { %927 = vmatpush.msra.mxu2 %v287_v26  ;;  %942 = vmatpush.msra.mxu3 %v321_v27  ;;  %v2055_v39 = vpop.f32.mrf.mxu3 }
  0xb3   :  { %817 = vmatpush.msra.mxu0 %v287_v26  ;;  %845 = vmatpush.msra.mxu1 %v321_v27  ;;  %v2063_v4 = vpop.f32.mrf.mxu0 }
  0xb4   :  { %928 = vmatpush.msra.mxu2 %v285_v45  ;;  %943 = vmatpush.msra.mxu3 %v319_v16 }
  0xb5   :  { %818 = vmatpush.msra.mxu0 %v285_v45  ;;  %846 = vmatpush.msra.mxu1 %v319_v16 }
  0xb6   :  { %929 = vmatpush.msra.mxu2 %v283_v10  ;;  %944 = vmatpush.msra.mxu3 %v317_v11  ;;  %v2071_v62 = vpop.f32.mrf.mxu1 }
  0xb7   :  { %819 = vmatpush.msra.mxu0 %v283_v10  ;;  %847 = vmatpush.msra.mxu1 %v317_v11 }
  0xb8   :  { %717 = vmatmul.f32.gmra.mxu0 %v1404_v3  ;;  %775 = vmatmul.f32.gmra.mxu2 %v1687_v50  ;;  %v277_v3 = vld [vmem:[%s2179_s1 + $0x718] sm:$0xff]  ;;  %v311_v50 = vld [vmem:[%s2179_s1 + $0x828] sm:$0xff] }
  0xb9   :  { %930 = vmatpush.msra.mxu2 %v281_v30  ;;  %945 = vmatpush.msra.mxu3 %v315_v31  ;;  %v2081_v34 = vpop.f32.mrf.mxu2 }
  0xba   :  { %820 = vmatpush.msra.mxu0 %v281_v30  ;;  %848 = vmatpush.msra.mxu1 %v315_v31 }
  0xbb   :  { %746 = vmatmul.f32.gmra.mxu1 %v1663_v40  ;;  %804 = vmatmul.f32.gmra.mxu3 %v1668_v41  ;;  %v275_v40 = vld [vmem:[%s2179_s1 + $0x708] sm:$0xff]  ;;  %v309_v41 = vld [vmem:[%s2179_s1 + $0x818] sm:$0xff] }
  0xbc   :  { %931 = vmatpush.msra.mxu2 %v279_v63  ;;  %946 = vmatpush.msra.mxu3 %v313_v33  ;;  %v2091_v35 = vpop.f32.mrf.mxu3 }
  0xbd   :  { %821 = vmatpush.msra.mxu0 %v279_v63  ;;  %849 = vmatpush.msra.mxu1 %v313_v33  ;;  %v2099_v37 = vpop.f32.mrf.mxu0 }
  0xbe   :  { %932 = vmatpush.msra.mxu2 %v277_v3  ;;  %947 = vmatpush.msra.mxu3 %v311_v50 }
  0xbf   :  { %822 = vmatpush.msra.mxu0 %v277_v3  ;;  %850 = vmatpush.msra.mxu1 %v311_v50 }
  0xc0   :  { %933 = vmatpush.msra.mxu2 %v275_v40  ;;  %948 = vmatpush.msra.mxu3 %v309_v41  ;;  %v2104_v2 = vpop.f32.mrf.mxu1 }
  0xc1   :  { %823 = vmatpush.msra.mxu0 %v275_v40  ;;  %851 = vmatpush.msra.mxu1 %v309_v41 }
  0xc2   :  { %824 = vmatmul.f32.vlgmr.msra.gmra.mxu0 %v1476_v29  ;;  %830 = vmatmul.f32.vlgmr.msra.gmra.mxu2 %v1620_v17  ;;  %v2121_v17 = vld [vmem:[%s2181_s2] ss:$4 sm:$0x3] }
  0xc3   :  { %949 = vmatpush.msra.mxu3 %v307_v42  ;;  %852 = vmatpush.msra.mxu1 %v307_v42  ;;  %v2108_v43 = vpop.f32.mrf.mxu2  ;;  %v340_v59 = vperm.slane %v2121_v17, 0 }
  0xc4   :  { %853 = vmatmul.f32.vlgmr.msra.gmra.mxu1 %v1735_v12  ;;  %859 = vmatmul.f32.vlgmr.msra.gmra.mxu3 %v1849_v6 }
  0xc5   :  { %v365_v57 = vadd.f32 %v2027_v15, %v340_v59  ;;  %v368_v1 = vadd.f32 %v2063_v4, %v340_v59  ;;  %v2142_v15 = vld [vmem:[%s2181_s2 + $0x2] ss:$4 sm:$0x3]  ;;  %v371_v16 = vadd.f32 %v2099_v37, %v340_v59 }
  0xc6   :  { %v2112_v48 = vpop.f32.mrf.mxu3 }
  0xc7   :  { %v477_v49 = vpop.f32.mrf.mxu0  ;;  %v394_v19 = vadd.f32 %v2035_v23, %v365_v57  ;;  %v397_v25 = vadd.f32 %v2071_v62, %v368_v1  ;;  %v400_v31 = vadd.f32 %v2104_v2, %v371_v16 }
  0xc9   :  { %v423_v20 = vadd.f32 %v2045_v38, %v394_v19  ;;  %v426_v23 = vadd.f32 %v2081_v34, %v397_v25  ;;  %v892_v38 = vperm.slane %v2142_v15, 0  ;;  %v429_v50 = vadd.f32 %v2108_v43, %v400_v31 }
  0xca   :  { %827 = vmatmul.f32.gmra.mxu0 %v1548_v53  ;;  %833 = vmatmul.f32.gmra.mxu2 %v1692_v51  ;;  %v506_v58 = vpop.f32.mrf.mxu1  ;;  %v362_v53 = vadd.f32 %v1991_v21, %v340_v59  ;;  %v341_v25 = vperm.slane %v2121_v17, 1 }
  0xcb   :  { %v452_v9 = vadd.f32 %v2055_v39, %v423_v20  ;;  %v455_v4 = vadd.f32 %v2091_v35, %v426_v23 }
  0xcc   :  { %856 = vmatmul.f32.gmra.mxu1 %v1792_v36  ;;  %862 = vmatmul.f32.gmra.mxu3 %v1906_v32  ;;  %v391_v51 = vadd.f32 %v1999_v7, %v362_v53 }
  0xcd   :  { %v535_v29 = vpop.f32.mrf.mxu2 }
  0xce   :  { %v420_v32 = vadd.f32 %v2009_v13, %v391_v51  ;;  %v2136_v13 = vld [vmem:[%s2181_s2 + $0x1] ss:$4 sm:$0x3] }
  0xcf   :  { %v877_v44 = vperm.slane %v2136_v13, 0 }
  0xd0   :  { %v564_v12 = vpop.f32.mrf.mxu3  ;;  %v449_v18 = vadd.f32 %v2019_v14, %v420_v32 }
  0xd1   :  { %v480_v6 = vpop.f32.mrf.mxu0 }
  0xd2   :  { %v478_v5 = vadd.f32 %v477_v49, %v449_v18  ;;  %v481_v52 = vadd.f32 %v480_v6, %v452_v9 }
  0xd4   :  { %v509_v54 = vpop.f32.mrf.mxu1  ;;  %v507_v21 = vadd.f32 %v506_v58, %v478_v5  ;;  %v458_v58 = vadd.f32 %v2112_v48, %v429_v50 }
  0xd5   :  { %v510_v26 = vadd.f32 %v509_v54, %v481_v52 }
  0xd6   :  { %v536_v7 = vadd.f32 %v535_v29, %v507_v21 }
  0xd7   :  { %v538_v55 = vpop.f32.mrf.mxu2 }
  0xd8   :  { %v565_v14 = vadd.f32 %v564_v12, %v536_v7  ;;  %v539_v39 = vadd.f32 %v538_v55, %v510_v26 }
  0xda   :  { %v567_v24 = vpop.f32.mrf.mxu3 }
  0xdb   :  { %v483_v36 = vpop.f32.mrf.mxu0  ;;  %v568_v63 = vadd.f32 %v567_v24, %v539_v39 }
  0xdc   :  { %v484_v62 = vadd.f32 %v483_v36, %v455_v4 }
  0xde   :  { %v512_v56 = vpop.f32.mrf.mxu1 }
  0xdf   :  { %v513_v40 = vadd.f32 %v512_v56, %v484_v62 }
  0xe1   :  { %v541_v60 = vpop.f32.mrf.mxu2 }
  0xe2   :  { %v542_v42 = vadd.f32 %v541_v60, %v513_v40 }
  0xe4   :  { %v570_v28 = vpop.f32.mrf.mxu3 }
  0xe5   :  { %v486_v61 = vpop.f32.mrf.mxu0  ;;  %v571_v12 = vadd.f32 %v570_v28, %v542_v42 }
  0xe6   :  { %v487_v29 = vadd.f32 %v486_v61, %v458_v58 }
  0xe8   :  { %v515_v0 = vpop.f32.mrf.mxu1 }
  0xe9   :  { %v516_v53 = vadd.f32 %v515_v0, %v487_v29 }
  0xeb   :  { %v544_v8 = vpop.f32.mrf.mxu2 }
  0xec   :  { %v545_v51 = vadd.f32 %v544_v8, %v516_v53  ;;  %v878_v53 = vperm.slane %v2136_v13, 1 }
  0xee   :  { %v573_v46 = vpop.f32.mrf.mxu3 }
  0xef   :  { %v593_v47 = vpop.f32.mrf.mxu0  ;;  %v574_v56 = vadd.f32 %v573_v46, %v545_v51 }
  0xf0   :  { %v594_v22 = vadd.f32 %v593_v47, %v565_v14 }
  0xf2   :  { %v866_v27 = vmax.f32 %v594_v22, 0.0  ;;  %v622_v45 = vpop.f32.mrf.mxu1 }
  0xf3   :  { %v623_v14 = vadd.f32 %v622_v45, %v341_v25 }
  0xf4   :  { %v881_v10 = vmul.f32 %v877_v44, %v866_v27 }
  0xf5   :  { %v651_v11 = vpop.f32.mrf.mxu2 }
  0xf6   :  { %v896_v30 = vadd.f32 %v892_v38, %v881_v10  ;;  %v652_v22 = vadd.f32 %v651_v11, %v623_v14 }
  0xf8   :  { %904 = vst [vmem:[%s2182_s3] sm:$0xff] %v896_v30  ;;  %v680_v33 = vpop.f32.mrf.mxu3 }
  0xf9   :  { %v596_v34 = vpop.f32.mrf.mxu0  ;;  %v681_v27 = vadd.f32 %v680_v33, %v652_v22 }
  0xfa   :  { %v597_v3 = vadd.f32 %v596_v34, %v568_v63 }
  0xfc   :  { %v868_v41 = vmax.f32 %v597_v3, 0.0  ;;  %v625_v37 = vpop.f32.mrf.mxu1 }
  0xfe   :  { %v883_v49 = vmul.f32 %v877_v44, %v868_v41 }
  0xff   :  { %v654_v35 = vpop.f32.mrf.mxu2 }
 0x100   :  { %v898_v2 = vadd.f32 %v892_v38, %v883_v49 }
 0x102   :  { %906 = vst [vmem:[%s2182_s3 + $0x10] sm:$0xff] %v898_v2  ;;  %v683_v6 = vpop.f32.mrf.mxu3 }
 0x103   :  { %v599_v59 = vpop.f32.mrf.mxu0 }
 0x104   :  { %v600_v54 = vadd.f32 %v599_v59, %v571_v12 }
 0x106   :  { %v870_v43 = vmax.f32 %v600_v54, 0.0  ;;  %v628_v55 = vpop.f32.mrf.mxu1 }
 0x107   :  { %v629_v23 = vadd.f32 %v628_v55, %v341_v25  ;;  %v893_v55 = vperm.slane %v2142_v15, 1 }
 0x108   :  { %v885_v24 = vmul.f32 %v877_v44, %v870_v43 }
 0x109   :  { %v657_v36 = vpop.f32.mrf.mxu2 }
 0x10a   :  { %v900_v32 = vadd.f32 %v892_v38, %v885_v24  ;;  %v658_v16 = vadd.f32 %v657_v36, %v629_v23 }
 0x10c   :  { %908 = vst [vmem:[%s2182_s3 + $0x20] sm:$0xff] %v900_v32  ;;  %v686_v48 = vpop.f32.mrf.mxu3 }
 0x10d   :  { %v602_v57 = vpop.f32.mrf.mxu0  ;;  %v687_v31 = vadd.f32 %v686_v48, %v658_v16 }
 0x10e   :  { %v603_v60 = vadd.f32 %v602_v57, %v574_v56 }
 0x110   :  { %v872_v18 = vmax.f32 %v603_v60, 0.0  ;;  %v631_v19 = vpop.f32.mrf.mxu1 }
 0x111   :  { %v632_v62 = vadd.f32 %v631_v19, %v341_v25 }
 0x112   :  { %v887_v5 = vmul.f32 %v877_v44, %v872_v18 }
 0x113   :  { %v660_v28 = vpop.f32.mrf.mxu2 }
 0x114   :  { %v902_v61 = vadd.f32 %v892_v38, %v887_v5  ;;  %v626_v38 = vadd.f32 %v625_v37, %v341_v25  ;;  %v661_v40 = vadd.f32 %v660_v28, %v632_v62 }
 0x116   :  { %910 = vst [vmem:[%s2182_s3 + $0x30] sm:$0xff] %v902_v61  ;;  %v689_v20 = vpop.f32.mrf.mxu3  ;;  %v655_v30 = vadd.f32 %v654_v35, %v626_v38 }
 0x117   :  { %v709_v21 = vpop.f32.mrf.mxu0  ;;  %v690_v37 = vadd.f32 %v689_v20, %v661_v40 }
 0x118   :  { %v710_v39 = vadd.f32 %v709_v21, %v681_v27  ;;  %v684_v17 = vadd.f32 %v683_v6, %v655_v30 }
 0x11a   :  { %v738_v0 = vpop.f32.mrf.mxu1 }
 0x11b   :  { %v739_v63 = vadd.f32 %v738_v0, %v710_v39 }
 0x11d   :  { %v767_v1 = vpop.f32.mrf.mxu2 }
 0x11e   :  { %v768_v3 = vadd.f32 %v767_v1, %v739_v63 }
 0x120   :  { %v796_v7 = vpop.f32.mrf.mxu3 }
 0x121   :  { %v712_v8 = vpop.f32.mrf.mxu0  ;;  %v797_v41 = vadd.f32 %v796_v7, %v768_v3 }
 0x122   :  { %v713_v11 = vadd.f32 %v712_v8, %v684_v17 }
 0x124   :  { %v741_v9 = vpop.f32.mrf.mxu1 }
 0x125   :  { %v742_v58 = vadd.f32 %v741_v9, %v713_v11 }
 0x127   :  { %v770_v52 = vpop.f32.mrf.mxu2 }
 0x128   :  { %v771_v35 = vadd.f32 %v770_v52, %v742_v58 }
 0x12a   :  { %v799_v46 = vpop.f32.mrf.mxu3 }
 0x12b   :  { %v715_v47 = vpop.f32.mrf.mxu0  ;;  %v800_v24 = vadd.f32 %v799_v46, %v771_v35 }
 0x12c   :  { %v716_v45 = vadd.f32 %v715_v47, %v687_v31 }
 0x12e   :  { %v744_v44 = vpop.f32.mrf.mxu1 }
 0x12f   :  { %v745_v42 = vadd.f32 %v744_v44, %v716_v45 }
 0x131   :  { %v773_v26 = vpop.f32.mrf.mxu2 }
 0x132   :  { %v774_v2 = vadd.f32 %v773_v26, %v745_v42 }
 0x134   :  { %v802_v10 = vpop.f32.mrf.mxu3 }
 0x135   :  { %v718_v4 = vpop.f32.mrf.mxu0  ;;  %v803_v6 = vadd.f32 %v802_v10, %v774_v2 }
 0x136   :  { %v719_v59 = vadd.f32 %v718_v4, %v690_v37 }
 0x138   :  { %v747_v34 = vpop.f32.mrf.mxu1 }
 0x139   :  { %v748_v36 = vadd.f32 %v747_v34, %v719_v59 }
 0x13b   :  { %v776_v50 = vpop.f32.mrf.mxu2 }
 0x13c   :  { %v777_v60 = vadd.f32 %v776_v50, %v748_v36 }
 0x13e   :  { %v805_v49 = vpop.f32.mrf.mxu3 }
 0x13f   :  { %v825_v33 = vpop.f32.mrf.mxu0  ;;  %v806_v20 = vadd.f32 %v805_v49, %v777_v60 }
 0x140   :  { %v826_v29 = vadd.f32 %v825_v33, %v797_v41 }
 0x141   :  { %v854_v12 = vpop.f32.mrf.mxu1 }
 0x142   :  { %v855_v54 = vadd.f32 %v854_v12, %v826_v29 }
 0x144   :  { %v867_v43 = vmax.f32 %v855_v54, 0.0 }
 0x145   :  { %v831_v51 = vpop.f32.mrf.mxu2 }
 0x146   :  { %v882_v32 = vmul.f32 %v878_v53, %v867_v43  ;;  %v832_v56 = vadd.f32 %v831_v51, %v803_v6 }
 0x147   :  { %v828_v48 = vpop.f32.mrf.mxu0  ;;  %v860_v57 = vpop.f32.mrf.mxu3 }
 0x148   :  { %v897_v18 = vadd.f32 %v893_v55, %v882_v32  ;;  %v829_v19 = vadd.f32 %v828_v48, %v800_v24  ;;  %v861_v5 = vadd.f32 %v860_v57, %v832_v56 }
 0x149   :  { %v857_v28 = vpop.f32.mrf.mxu1 }
 0x14a   :  { %905 = vst [vmem:[%s2182_s3 + $0x8] sm:$0xff] %v897_v18  ;;  %v871_v13 = vmax.f32 %v861_v5, 0.0  ;;  %v858_v61 = vadd.f32 %v857_v28, %v829_v19 }
 0x14c   :  { %v886_v15 = vmul.f32 %v878_v53, %v871_v13  ;;  %v869_v21 = vmax.f32 %v858_v61, 0.0 }
 0x14d   :  { %v834_v0 = vpop.f32.mrf.mxu2 }
 0x14e   :  { %v901_v1 = vadd.f32 %v893_v55, %v886_v15  ;;  %v884_v7 = vmul.f32 %v878_v53, %v869_v21  ;;  %v835_v8 = vadd.f32 %v834_v0, %v806_v20 }
 0x14f   :  { %v863_v9 = vpop.f32.mrf.mxu3 }
 0x150   :  { %909 = vst [vmem:[%s2182_s3 + $0x28] sm:$0xff] %v901_v1  ;;  %v899_v25 = vadd.f32 %v893_v55, %v884_v7  ;;  %v864_v52 = vadd.f32 %v863_v9, %v835_v8 }
 0x152   :  { %907 = vst [vmem:[%s2182_s3 + $0x18] sm:$0xff] %v899_v25  ;;  %v873_v14 = vmax.f32 %v864_v52, 0.0 }
 0x154   :  { %v888_v46 = vmul.f32 %v878_v53, %v873_v14 }
 0x156   :  { %v903_v47 = vadd.f32 %v893_v55, %v888_v46 }
 0x158   :  { %911 = vst [vmem:[%s2182_s3 + $0x38] sm:$0xff] %v903_v47 }

// kernel: fake_net2_forward.11
= control target key start
LH: loop header
LB: loop body
LE: loop exit
PB: predicated region body
PF: predicated region fallthrough
CT: control target
= control target key end

     0   :  { %s5994_s1 = inlined_call_operand.vmem [shape: f32[4096,256], index: 1, kind: input, shape index: {}]   ;;  %s5995_s0 = inlined_call_operand.vmem [shape: f32[2,4096], index: 0, kind: input, shape index: {}]   ;;  %s5996_s2 = inlined_call_operand.vmem [shape: f32[3,256], index: 2, kind: input, shape index: {}]   ;;  %s5997_s3 = inlined_call_operand.vmem [shape: f32[256,128], index: 3, kind: input, shape index: {}]   ;;  %s5998_s4 = inlined_call_operand.vmem [shape: f32[1,128], index: 4, kind: input, shape index: {}]   ;;  %s5999_s5 = inlined_call_operand.vmem [shape: f32[128,128], index: 5, kind: input, shape index: {}]   ;;  %s6000_s6 = inlined_call_operand.vmem [shape: f32[1,128], index: 6, kind: input, shape index: {}]   ;;  %s6001_s7 = inlined_call_operand.vmem [shape: f32[2,128], index: 7, kind: output, shape index: {}]  }
   0x1   :  { %v64_v0 = vld [vmem:[%s5994_s1 + $0xf0] sm:$0xff]  ;;  %v62_v2 = vld [vmem:[%s5994_s1 + $0xe0] sm:$0xff] }
   0x2   :  { %v128_v1 = vld [vmem:[%s5994_s1 + $0x2f0] sm:$0xff]  ;;  %1145 = vmatpush.msra.mxu0 %v64_v0  ;;  %v126_v4 = vld [vmem:[%s5994_s1 + $0x2e0] sm:$0xff] }
   0x3   :  { %1185 = vmatpush.msra.mxu2 %v128_v1  ;;  %v96_v3 = vld [vmem:[%s5994_s1 + $0x1f0] sm:$0xff]  ;;  %v94_v7 = vld [vmem:[%s5994_s1 + $0x1e0] sm:$0xff] }
   0x4   :  { %v160_v5 = vld [vmem:[%s5994_s1 + $0x3f0] sm:$0xff]  ;;  %1165 = vmatpush.msra.mxu1 %v96_v3  ;;  %1146 = vmatpush.msra.mxu0 %v62_v2  ;;  %v158_v9 = vld [vmem:[%s5994_s1 + $0x3e0] sm:$0xff] }
   0x5   :  { %1205 = vmatpush.msra.mxu3 %v160_v5  ;;  %v60_v6 = vld [vmem:[%s5994_s1 + $0xd0] sm:$0xff]  ;;  %1186 = vmatpush.msra.mxu2 %v126_v4  ;;  %v58_v11 = vld [vmem:[%s5994_s1 + $0xc0] sm:$0xff] }
   0x6   :  { %v124_v8 = vld [vmem:[%s5994_s1 + $0x2d0] sm:$0xff]  ;;  %1166 = vmatpush.msra.mxu1 %v94_v7  ;;  %v122_v12 = vld [vmem:[%s5994_s1 + $0x2c0] sm:$0xff]  ;;  %1147 = vmatpush.msra.mxu0 %v60_v6 }
   0x7   :  { %v92_v10 = vld [vmem:[%s5994_s1 + $0x1d0] sm:$0xff]  ;;  %1206 = vmatpush.msra.mxu3 %v158_v9  ;;  %1187 = vmatpush.msra.mxu2 %v124_v8  ;;  %v90_v14 = vld [vmem:[%s5994_s1 + $0x1c0] sm:$0xff] }
   0x8   :  { %v156_v13 = vld [vmem:[%s5994_s1 + $0x3d0] sm:$0xff]  ;;  %v154_v15 = vld [vmem:[%s5994_s1 + $0x3c0] sm:$0xff]  ;;  %1167 = vmatpush.msra.mxu1 %v92_v10  ;;  %1148 = vmatpush.msra.mxu0 %v58_v11 }
   0x9   :  { %1207 = vmatpush.msra.mxu3 %v156_v13  ;;  %v56_v16 = vld [vmem:[%s5994_s1 + $0xb0] sm:$0xff]  ;;  %1188 = vmatpush.msra.mxu2 %v122_v12  ;;  %v54_v20 = vld [vmem:[%s5994_s1 + $0xa0] sm:$0xff] }
   0xa   :  { %v120_v17 = vld [vmem:[%s5994_s1 + $0x2b0] sm:$0xff]  ;;  %1168 = vmatpush.msra.mxu1 %v90_v14  ;;  %v118_v21 = vld [vmem:[%s5994_s1 + $0x2a0] sm:$0xff]  ;;  %1149 = vmatpush.msra.mxu0 %v56_v16 }
   0xb   :  { %v88_v18 = vld [vmem:[%s5994_s1 + $0x1b0] sm:$0xff]  ;;  %1208 = vmatpush.msra.mxu3 %v154_v15  ;;  %1189 = vmatpush.msra.mxu2 %v120_v17  ;;  %v86_v22 = vld [vmem:[%s5994_s1 + $0x1a0] sm:$0xff] }
   0xc   :  { %v152_v19 = vld [vmem:[%s5994_s1 + $0x3b0] sm:$0xff]  ;;  %v150_v23 = vld [vmem:[%s5994_s1 + $0x3a0] sm:$0xff]  ;;  %1169 = vmatpush.msra.mxu1 %v88_v18  ;;  %1150 = vmatpush.msra.mxu0 %v54_v20 }
   0xd   :  { %1209 = vmatpush.msra.mxu3 %v152_v19  ;;  %v52_v24 = vld [vmem:[%s5994_s1 + $0x90] sm:$0xff]  ;;  %1190 = vmatpush.msra.mxu2 %v118_v21  ;;  %v50_v28 = vld [vmem:[%s5994_s1 + $0x80] sm:$0xff] }
   0xe   :  { %v116_v25 = vld [vmem:[%s5994_s1 + $0x290] sm:$0xff]  ;;  %1170 = vmatpush.msra.mxu1 %v86_v22  ;;  %v114_v29 = vld [vmem:[%s5994_s1 + $0x280] sm:$0xff]  ;;  %1151 = vmatpush.msra.mxu0 %v52_v24 }
   0xf   :  { %v84_v26 = vld [vmem:[%s5994_s1 + $0x190] sm:$0xff]  ;;  %1210 = vmatpush.msra.mxu3 %v150_v23  ;;  %1191 = vmatpush.msra.mxu2 %v116_v25  ;;  %v82_v30 = vld [vmem:[%s5994_s1 + $0x180] sm:$0xff] }
  0x10   :  { %v148_v27 = vld [vmem:[%s5994_s1 + $0x390] sm:$0xff]  ;;  %v146_v31 = vld [vmem:[%s5994_s1 + $0x380] sm:$0xff]  ;;  %1171 = vmatpush.msra.mxu1 %v84_v26  ;;  %1152 = vmatpush.msra.mxu0 %v50_v28 }
  0x11   :  { %1211 = vmatpush.msra.mxu3 %v148_v27  ;;  %v48_v32 = vld [vmem:[%s5994_s1 + $0x70] sm:$0xff]  ;;  %1192 = vmatpush.msra.mxu2 %v114_v29  ;;  %v46_v36 = vld [vmem:[%s5994_s1 + $0x60] sm:$0xff] }
  0x12   :  { %v112_v33 = vld [vmem:[%s5994_s1 + $0x270] sm:$0xff]  ;;  %1172 = vmatpush.msra.mxu1 %v82_v30  ;;  %v110_v37 = vld [vmem:[%s5994_s1 + $0x260] sm:$0xff]  ;;  %1153 = vmatpush.msra.mxu0 %v48_v32 }
  0x13   :  { %v80_v34 = vld [vmem:[%s5994_s1 + $0x170] sm:$0xff]  ;;  %1212 = vmatpush.msra.mxu3 %v146_v31  ;;  %1193 = vmatpush.msra.mxu2 %v112_v33  ;;  %v78_v38 = vld [vmem:[%s5994_s1 + $0x160] sm:$0xff] }
  0x14   :  { %v144_v35 = vld [vmem:[%s5994_s1 + $0x370] sm:$0xff]  ;;  %v142_v39 = vld [vmem:[%s5994_s1 + $0x360] sm:$0xff]  ;;  %1173 = vmatpush.msra.mxu1 %v80_v34  ;;  %1154 = vmatpush.msra.mxu0 %v46_v36 }
  0x15   :  { %1213 = vmatpush.msra.mxu3 %v144_v35  ;;  %v44_v40 = vld [vmem:[%s5994_s1 + $0x50] sm:$0xff]  ;;  %1194 = vmatpush.msra.mxu2 %v110_v37  ;;  %v42_v44 = vld [vmem:[%s5994_s1 + $0x40] sm:$0xff] }
  0x16   :  { %v108_v41 = vld [vmem:[%s5994_s1 + $0x250] sm:$0xff]  ;;  %1174 = vmatpush.msra.mxu1 %v78_v38  ;;  %v106_v45 = vld [vmem:[%s5994_s1 + $0x240] sm:$0xff]  ;;  %1155 = vmatpush.msra.mxu0 %v44_v40 }
  0x17   :  { %v76_v42 = vld [vmem:[%s5994_s1 + $0x150] sm:$0xff]  ;;  %1214 = vmatpush.msra.mxu3 %v142_v39  ;;  %1195 = vmatpush.msra.mxu2 %v108_v41  ;;  %v74_v46 = vld [vmem:[%s5994_s1 + $0x140] sm:$0xff] }
  0x18   :  { %v140_v43 = vld [vmem:[%s5994_s1 + $0x350] sm:$0xff]  ;;  %v138_v47 = vld [vmem:[%s5994_s1 + $0x340] sm:$0xff]  ;;  %1175 = vmatpush.msra.mxu1 %v76_v42  ;;  %1156 = vmatpush.msra.mxu0 %v42_v44 }
  0x19   :  { %1215 = vmatpush.msra.mxu3 %v140_v43  ;;  %v40_v48 = vld [vmem:[%s5994_s1 + $0x30] sm:$0xff]  ;;  %1196 = vmatpush.msra.mxu2 %v106_v45  ;;  %v38_v52 = vld [vmem:[%s5994_s1 + $0x20] sm:$0xff]  ;;  %v27_v43 = vld [vmem:[%s5995_s0 + $0x8] sm:$0xff] }
  0x1a   :  { %v104_v49 = vld [vmem:[%s5994_s1 + $0x230] sm:$0xff]  ;;  %1176 = vmatpush.msra.mxu1 %v74_v46  ;;  %v102_v53 = vld [vmem:[%s5994_s1 + $0x220] sm:$0xff]  ;;  %1157 = vmatpush.msra.mxu0 %v40_v48  ;;  %1074 = vst [vmem:[#allocation1 + $0x20] ss:$4 sm:$0xff] %v27_v43 }
  0x1b   :  { %v72_v50 = vld [vmem:[%s5994_s1 + $0x130] sm:$0xff]  ;;  %1216 = vmatpush.msra.mxu3 %v138_v47  ;;  %1197 = vmatpush.msra.mxu2 %v104_v49  ;;  %v70_v54 = vld [vmem:[%s5994_s1 + $0x120] sm:$0xff] }
  0x1c   :  { %v136_v51 = vld [vmem:[%s5994_s1 + $0x330] sm:$0xff]  ;;  %v134_v55 = vld [vmem:[%s5994_s1 + $0x320] sm:$0xff]  ;;  %1177 = vmatpush.msra.mxu1 %v72_v50  ;;  %1158 = vmatpush.msra.mxu0 %v38_v52 }
  0x1d   :  { %1217 = vmatpush.msra.mxu3 %v136_v51  ;;  %v36_v56 = vld [vmem:[%s5994_s1 + $0x10] sm:$0xff]  ;;  %1198 = vmatpush.msra.mxu2 %v102_v53  ;;  %v34_v60 = vld [vmem:[%s5994_s1] sm:$0xff] }
  0x1e   :  { %v100_v57 = vld [vmem:[%s5994_s1 + $0x210] sm:$0xff]  ;;  %1178 = vmatpush.msra.mxu1 %v70_v54  ;;  %v98_v61 = vld [vmem:[%s5994_s1 + $0x200] sm:$0xff]  ;;  %1159 = vmatpush.msra.mxu0 %v36_v56 }
  0x1f   :  { %v68_v58 = vld [vmem:[%s5994_s1 + $0x110] sm:$0xff]  ;;  %1218 = vmatpush.msra.mxu3 %v134_v55  ;;  %1199 = vmatpush.msra.mxu2 %v100_v57  ;;  %v66_v0 = vld [vmem:[%s5994_s1 + $0x100] sm:$0xff] }
  0x20   :  { %v132_v59 = vld [vmem:[%s5994_s1 + $0x310] sm:$0xff]  ;;  %1179 = vmatpush.msra.mxu1 %v68_v58  ;;  %v130_v1 = vld [vmem:[%s5994_s1 + $0x300] sm:$0xff]  ;;  %1160 = vmatpush.msra.mxu0 %v34_v60 }
  0x21   :  { %v192_v62 = vld [vmem:[%s5994_s1 + $0x4f0] sm:$0xff]  ;;  %1219 = vmatpush.msra.mxu3 %v132_v59  ;;  %1200 = vmatpush.msra.mxu2 %v98_v61  ;;  %v190_v2 = vld [vmem:[%s5994_s1 + $0x4e0] sm:$0xff] }
  0x22   :  { %v256_v63 = vld [vmem:[%s5994_s1 + $0x6f0] sm:$0xff]  ;;  %1225 = vmatpush.msrb.mxu0 %v192_v62  ;;  %v254_v4 = vld [vmem:[%s5994_s1 + $0x6e0] sm:$0xff]  ;;  %1180 = vmatpush.msra.mxu1 %v66_v0 }
  0x23   :  { %v224_v3 = vld [vmem:[%s5994_s1 + $0x5f0] sm:$0xff]  ;;  %1265 = vmatpush.msrb.mxu2 %v256_v63  ;;  %1220 = vmatpush.msra.mxu3 %v130_v1  ;;  %v222_v7 = vld [vmem:[%s5994_s1 + $0x5e0] sm:$0xff]  ;;  %v29_v63 = vld [vmem:[%s5995_s0 + $0x18] sm:$0xff] }
  0x24   :  { %v288_v5 = vld [vmem:[%s5994_s1 + $0x7f0] sm:$0xff]  ;;  %1226 = vmatpush.msrb.mxu0 %v190_v2  ;;  %1245 = vmatpush.msrb.mxu1 %v224_v3  ;;  %v286_v9 = vld [vmem:[%s5994_s1 + $0x7e0] sm:$0xff]  ;;  %v3012_v2 = vld.sshfl [vmem:[#allocation1 + $0x38] sm:$0xff pattern:$0x73625140] }
  0x25   :  { %v188_v6 = vld [vmem:[%s5994_s1 + $0x4d0] sm:$0xff]  ;;  %1266 = vmatpush.msrb.mxu2 %v254_v4  ;;  %1285 = vmatpush.msrb.mxu3 %v288_v5  ;;  %v186_v10 = vld [vmem:[%s5994_s1 + $0x4c0] sm:$0xff]  ;;  %v3014_v3 = vld.sshfl [vmem:[#allocation1 + $0x28] sm:$0xff pattern:$0x73625140] }
  0x26   :  { %v252_v8 = vld [vmem:[%s5994_s1 + $0x6d0] sm:$0xff]  ;;  %1227 = vmatpush.msrb.mxu0 %v188_v6  ;;  %1246 = vmatpush.msrb.mxu1 %v222_v7  ;;  %v250_v12 = vld [vmem:[%s5994_s1 + $0x6c0] sm:$0xff] }
  0x27   :  { %v220_v11 = vld [vmem:[%s5994_s1 + $0x5d0] sm:$0xff]  ;;  %1267 = vmatpush.msrb.mxu2 %v252_v8  ;;  %1286 = vmatpush.msrb.mxu3 %v286_v9  ;;  %v218_v15 = vld [vmem:[%s5994_s1 + $0x5c0] sm:$0xff] }
  0x28   :  { %v284_v13 = vld [vmem:[%s5994_s1 + $0x7d0] sm:$0xff]  ;;  %1228 = vmatpush.msrb.mxu0 %v186_v10  ;;  %1247 = vmatpush.msrb.mxu1 %v220_v11  ;;  %v282_v17 = vld [vmem:[%s5994_s1 + $0x7c0] sm:$0xff] }
  0x29   :  { %v184_v14 = vld [vmem:[%s5994_s1 + $0x4b0] sm:$0xff]  ;;  %1268 = vmatpush.msrb.mxu2 %v250_v12  ;;  %1287 = vmatpush.msrb.mxu3 %v284_v13  ;;  %v182_v18 = vld [vmem:[%s5994_s1 + $0x4a0] sm:$0xff] }
  0x2a   :  { %v248_v16 = vld [vmem:[%s5994_s1 + $0x6b0] sm:$0xff]  ;;  %1229 = vmatpush.msrb.mxu0 %v184_v14  ;;  %1248 = vmatpush.msrb.mxu1 %v218_v15  ;;  %v246_v20 = vld [vmem:[%s5994_s1 + $0x6a0] sm:$0xff] }
  0x2b   :  { %v216_v19 = vld [vmem:[%s5994_s1 + $0x5b0] sm:$0xff]  ;;  %1269 = vmatpush.msrb.mxu2 %v248_v16  ;;  %1288 = vmatpush.msrb.mxu3 %v282_v17  ;;  %v214_v23 = vld [vmem:[%s5994_s1 + $0x5a0] sm:$0xff] }
  0x2c   :  { %v280_v21 = vld [vmem:[%s5994_s1 + $0x7b0] sm:$0xff]  ;;  %1230 = vmatpush.msrb.mxu0 %v182_v18  ;;  %1249 = vmatpush.msrb.mxu1 %v216_v19  ;;  %v278_v25 = vld [vmem:[%s5994_s1 + $0x7a0] sm:$0xff] }
  0x2d   :  { %v180_v22 = vld [vmem:[%s5994_s1 + $0x490] sm:$0xff]  ;;  %v26_v26 = vld [vmem:[%s5995_s0] sm:$0xff]  ;;  %1270 = vmatpush.msrb.mxu2 %v246_v20  ;;  %1289 = vmatpush.msrb.mxu3 %v280_v21 }
  0x2e   :  { %v244_v24 = vld [vmem:[%s5994_s1 + $0x690] sm:$0xff]  ;;  %v178_v27 = vld [vmem:[%s5994_s1 + $0x480] sm:$0xff]  ;;  %1072 = vst [vmem:[#allocation1] ss:$4 sm:$0xff] %v26_v26  ;;  %1231 = vmatpush.msrb.mxu0 %v180_v22  ;;  %1250 = vmatpush.msrb.mxu1 %v214_v23 }
  0x2f   :  { %v212_v28 = vld [vmem:[%s5994_s1 + $0x590] sm:$0xff]  ;;  %v242_v29 = vld [vmem:[%s5994_s1 + $0x680] sm:$0xff]  ;;  %1271 = vmatpush.msrb.mxu2 %v244_v24  ;;  %1290 = vmatpush.msrb.mxu3 %v278_v25 }
  0x30   :  { %v276_v30 = vld [vmem:[%s5994_s1 + $0x790] sm:$0xff]  ;;  %v210_v32 = vld [vmem:[%s5994_s1 + $0x580] sm:$0xff]  ;;  %1232 = vmatpush.msrb.mxu0 %v178_v27  ;;  %1251 = vmatpush.msrb.mxu1 %v212_v28 }
  0x31   :  { %v176_v31 = vld [vmem:[%s5994_s1 + $0x470] sm:$0xff]  ;;  %v274_v34 = vld [vmem:[%s5994_s1 + $0x780] sm:$0xff]  ;;  %1272 = vmatpush.msrb.mxu2 %v242_v29  ;;  %1291 = vmatpush.msrb.mxu3 %v276_v30 }
  0x32   :  { %v240_v33 = vld [vmem:[%s5994_s1 + $0x670] sm:$0xff]  ;;  %v174_v35 = vld [vmem:[%s5994_s1 + $0x460] sm:$0xff]  ;;  %1233 = vmatpush.msrb.mxu0 %v176_v31  ;;  %1252 = vmatpush.msrb.mxu1 %v210_v32 }
  0x33   :  { %v208_v36 = vld [vmem:[%s5994_s1 + $0x570] sm:$0xff]  ;;  %v238_v37 = vld [vmem:[%s5994_s1 + $0x660] sm:$0xff]  ;;  %1273 = vmatpush.msrb.mxu2 %v240_v33  ;;  %1292 = vmatpush.msrb.mxu3 %v274_v34 }
  0x34   :  { %v272_v38 = vld [vmem:[%s5994_s1 + $0x770] sm:$0xff]  ;;  %v206_v40 = vld [vmem:[%s5994_s1 + $0x560] sm:$0xff]  ;;  %1234 = vmatpush.msrb.mxu0 %v174_v35  ;;  %1253 = vmatpush.msrb.mxu1 %v208_v36 }
  0x35   :  { %v172_v39 = vld [vmem:[%s5994_s1 + $0x450] sm:$0xff]  ;;  %v270_v42 = vld [vmem:[%s5994_s1 + $0x760] sm:$0xff]  ;;  %1274 = vmatpush.msrb.mxu2 %v238_v37  ;;  %1293 = vmatpush.msrb.mxu3 %v272_v38  ;;  %v2968_v50 = vld.sshfl [vmem:[#allocation1 + $0x8] sm:$0xff pattern:$0x73625140] }
  0x36   :  { %v236_v41 = vld [vmem:[%s5994_s1 + $0x650] sm:$0xff]  ;;  %v170_v44 = vld [vmem:[%s5994_s1 + $0x440] sm:$0xff]  ;;  %v2970_v51 = vld.sshfl [vmem:[#allocation1 + $0x18] sm:$0xff pattern:$0x73625140]  ;;  %1235 = vmatpush.msrb.mxu0 %v172_v39  ;;  %1254 = vmatpush.msrb.mxu1 %v206_v40 }
  0x37   :  { %v204_v45 = vld [vmem:[%s5994_s1 + $0x550] sm:$0xff]  ;;  %v234_v47 = vld [vmem:[%s5994_s1 + $0x640] sm:$0xff]  ;;  %1275 = vmatpush.msrb.mxu2 %v236_v41  ;;  %1294 = vmatpush.msrb.mxu3 %v270_v42 }
  0x38   :  { %v28_v46 = vld [vmem:[%s5995_s0 + $0x10] sm:$0xff]  ;;  %v2964_v48 = vld.sshfl [vmem:[#allocation1] sm:$0xff pattern:$0x73625140]  ;;  %1236 = vmatpush.msrb.mxu0 %v170_v44  ;;  %1255 = vmatpush.msrb.mxu1 %v204_v45 }
  0x39   :  { %v2966_v49 = vld.sshfl [vmem:[#allocation1 + $0x10] sm:$0xff pattern:$0x73625140]  ;;  %v202_v54 = vld [vmem:[%s5994_s1 + $0x540] sm:$0xff]  ;;  %1276 = vmatpush.msrb.mxu2 %v234_v47  ;;  %1161 = vmatmul.f32.vlgmr.msra.gmra.mxu0 %v2964_v48 }
  0x3a   :  { %v268_v52 = vld [vmem:[%s5994_s1 + $0x750] sm:$0xff]  ;;  %1083 = vst [vmem:[#allocation1] ss:$4 sm:$0xff] %v28_v46  ;;  %v266_v56 = vld [vmem:[%s5994_s1 + $0x740] sm:$0xff]  ;;  %1256 = vmatpush.msrb.mxu1 %v202_v54  ;;  %1201 = vmatmul.f32.vlgmr.msra.gmra.mxu2 %v2966_v49 }
  0x3b   :  { %v168_v53 = vld [vmem:[%s5994_s1 + $0x430] sm:$0xff]  ;;  %v166_v57 = vld [vmem:[%s5994_s1 + $0x420] sm:$0xff]  ;;  %1295 = vmatpush.msrb.mxu3 %v268_v52  ;;  %1181 = vmatmul.f32.vlgmr.msra.gmra.mxu1 %v2968_v50 }
  0x3c   :  { %v232_v55 = vld [vmem:[%s5994_s1 + $0x630] sm:$0xff]  ;;  %v230_v59 = vld [vmem:[%s5994_s1 + $0x620] sm:$0xff]  ;;  %1237 = vmatpush.msrb.mxu0 %v168_v53  ;;  %1221 = vmatmul.f32.vlgmr.msra.gmra.mxu3 %v2970_v51 }
  0x3d   :  { %v200_v58 = vld [vmem:[%s5994_s1 + $0x530] sm:$0xff]  ;;  %v198_v62 = vld [vmem:[%s5994_s1 + $0x520] sm:$0xff]  ;;  %1277 = vmatpush.msrb.mxu2 %v232_v55  ;;  %1296 = vmatpush.msrb.mxu3 %v266_v56 }
  0x3e   :  { %v264_v60 = vld [vmem:[%s5994_s1 + $0x730] sm:$0xff]  ;;  %v3010_v1 = vld.sshfl [vmem:[#allocation1 + $0x20] sm:$0xff pattern:$0x73625140]  ;;  %1238 = vmatpush.msrb.mxu0 %v166_v57  ;;  %1257 = vmatpush.msrb.mxu1 %v200_v58 }
  0x3f   :  { %v164_v61 = vld [vmem:[%s5994_s1 + $0x410] sm:$0xff]  ;;  %v262_v5 = vld [vmem:[%s5994_s1 + $0x720] sm:$0xff]  ;;  %1278 = vmatpush.msrb.mxu2 %v230_v59  ;;  %1297 = vmatpush.msrb.mxu3 %v264_v60 }
  0x40   :  { %v3008_v0 = vld.sshfl [vmem:[#allocation1 + $0x30] sm:$0xff pattern:$0x73625140]  ;;  %v162_v6 = vld [vmem:[%s5994_s1 + $0x400] sm:$0xff]  ;;  %1239 = vmatpush.msrb.mxu0 %v164_v61  ;;  %1258 = vmatpush.msrb.mxu1 %v198_v62 }
  0x41   :  { %v228_v4 = vld [vmem:[%s5994_s1 + $0x610] sm:$0xff]  ;;  %1084 = vst [vmem:[#allocation1 + $0x20] ss:$4 sm:$0xff] %v29_v63  ;;  %v226_v8 = vld [vmem:[%s5994_s1 + $0x600] sm:$0xff]  ;;  %1298 = vmatpush.msrb.mxu3 %v262_v5 }
  0x42   :  { %v196_v7 = vld [vmem:[%s5994_s1 + $0x510] sm:$0xff]  ;;  %1279 = vmatpush.msrb.mxu2 %v228_v4  ;;  %1240 = vmatpush.msrb.mxu0 %v162_v6  ;;  %v194_v12 = vld [vmem:[%s5994_s1 + $0x500] sm:$0xff]  ;;  %v3102_v32 = vld.sshfl [vmem:[#allocation1 + $0x8] sm:$0xff pattern:$0x73625140] }
  0x43   :  { %v260_v9 = vld [vmem:[%s5994_s1 + $0x710] sm:$0xff]  ;;  %1259 = vmatpush.msrb.mxu1 %v196_v7  ;;  %v258_v13 = vld [vmem:[%s5994_s1 + $0x700] sm:$0xff]  ;;  %v3104_v33 = vld.sshfl [vmem:[#allocation1 + $0x18] sm:$0xff pattern:$0x73625140]  ;;  %1241 = vmatmul.f32.vlgmr.msrb.gmra.mxu0 %v3010_v1 }
  0x44   :  { %v320_v10 = vld [vmem:[%s5994_s1 + $0x8f0] sm:$0xff]  ;;  %1280 = vmatpush.msrb.mxu2 %v226_v8  ;;  %1299 = vmatpush.msrb.mxu3 %v260_v9  ;;  %v318_v14 = vld [vmem:[%s5994_s1 + $0x8e0] sm:$0xff] }
  0x45   :  { %v384_v11 = vld [vmem:[%s5994_s1 + $0xaf0] sm:$0xff]  ;;  %1305 = vmatpush.msra.mxu0 %v320_v10  ;;  %1260 = vmatpush.msrb.mxu1 %v194_v12  ;;  %v382_v16 = vld [vmem:[%s5994_s1 + $0xae0] sm:$0xff] }
  0x46   :  { %1345 = vmatpush.msra.mxu2 %v384_v11  ;;  %v352_v15 = vld [vmem:[%s5994_s1 + $0x9f0] sm:$0xff]  ;;  %1300 = vmatpush.msrb.mxu3 %v258_v13  ;;  %v350_v19 = vld [vmem:[%s5994_s1 + $0x9e0] sm:$0xff] }
  0x47   :  { %v416_v17 = vld [vmem:[%s5994_s1 + $0xbf0] sm:$0xff]  ;;  %1306 = vmatpush.msra.mxu0 %v318_v14  ;;  %1325 = vmatpush.msra.mxu1 %v352_v15  ;;  %v414_v21 = vld [vmem:[%s5994_s1 + $0xbe0] sm:$0xff] }
  0x48   :  { %v316_v18 = vld [vmem:[%s5994_s1 + $0x8d0] sm:$0xff]  ;;  %v314_v22 = vld [vmem:[%s5994_s1 + $0x8c0] sm:$0xff]  ;;  %1346 = vmatpush.msra.mxu2 %v382_v16  ;;  %1365 = vmatpush.msra.mxu3 %v416_v17 }
  0x49   :  { %v380_v20 = vld [vmem:[%s5994_s1 + $0xad0] sm:$0xff]  ;;  %v378_v24 = vld [vmem:[%s5994_s1 + $0xac0] sm:$0xff]  ;;  %1307 = vmatpush.msra.mxu0 %v316_v18  ;;  %1326 = vmatpush.msra.mxu1 %v350_v19 }
  0x4a   :  { %v348_v23 = vld [vmem:[%s5994_s1 + $0x9d0] sm:$0xff]  ;;  %v346_v27 = vld [vmem:[%s5994_s1 + $0x9c0] sm:$0xff]  ;;  %1347 = vmatpush.msra.mxu2 %v380_v20  ;;  %1366 = vmatpush.msra.mxu3 %v414_v21 }
  0x4b   :  { %v412_v25 = vld [vmem:[%s5994_s1 + $0xbd0] sm:$0xff]  ;;  %v3092_v28 = vld.sshfl [vmem:[#allocation1] sm:$0xff pattern:$0x73625140]  ;;  %1308 = vmatpush.msra.mxu0 %v314_v22  ;;  %1327 = vmatpush.msra.mxu1 %v348_v23 }
  0x4c   :  { %v312_v26 = vld [vmem:[%s5994_s1 + $0x8b0] sm:$0xff]  ;;  %v30_v31 = vld [vmem:[%s5995_s0 + $0x20] sm:$0xff]  ;;  %1348 = vmatpush.msra.mxu2 %v378_v24  ;;  %1367 = vmatpush.msra.mxu3 %v412_v25 }
  0x4d   :  { %v376_v29 = vld [vmem:[%s5994_s1 + $0xab0] sm:$0xff]  ;;  %v410_v34 = vld [vmem:[%s5994_s1 + $0xbc0] sm:$0xff]  ;;  %1281 = vmatmul.f32.vlgmr.msrb.gmra.mxu2 %v3008_v0  ;;  %1309 = vmatpush.msra.mxu0 %v312_v26 }
  0x4e   :  { %v3097_v30 = vld.sshfl [vmem:[#allocation1 + $0x10] sm:$0xff pattern:$0x73625140]  ;;  %v310_v35 = vld [vmem:[%s5994_s1 + $0x8a0] sm:$0xff]  ;;  %1328 = vmatpush.msra.mxu1 %v346_v27  ;;  %1349 = vmatpush.msra.mxu2 %v376_v29 }
  0x4f   :  { %1093 = vst [vmem:[#allocation1] ss:$4 sm:$0xff] %v30_v31  ;;  %v344_v36 = vld [vmem:[%s5994_s1 + $0x9b0] sm:$0xff]  ;;  %v374_v37 = vld [vmem:[%s5994_s1 + $0xaa0] sm:$0xff]  ;;  %1368 = vmatpush.msra.mxu3 %v410_v34  ;;  %1310 = vmatpush.msra.mxu0 %v310_v35 }
  0x50   :  { %v408_v38 = vld [vmem:[%s5994_s1 + $0xbb0] sm:$0xff]  ;;  %1301 = vmatmul.f32.vlgmr.msrb.gmra.mxu3 %v3012_v2  ;;  %v342_v40 = vld [vmem:[%s5994_s1 + $0x9a0] sm:$0xff]  ;;  %1329 = vmatpush.msra.mxu1 %v344_v36 }
  0x51   :  { %v308_v39 = vld [vmem:[%s5994_s1 + $0x890] sm:$0xff]  ;;  %1350 = vmatpush.msra.mxu2 %v374_v37  ;;  %v406_v42 = vld [vmem:[%s5994_s1 + $0xba0] sm:$0xff]  ;;  %1369 = vmatpush.msra.mxu3 %v408_v38 }
  0x52   :  { %v372_v41 = vld [vmem:[%s5994_s1 + $0xa90] sm:$0xff]  ;;  %1261 = vmatmul.f32.vlgmr.msrb.gmra.mxu1 %v3014_v3  ;;  %v306_v43 = vld [vmem:[%s5994_s1 + $0x880] sm:$0xff]  ;;  %1311 = vmatpush.msra.mxu0 %v308_v39 }
  0x53   :  { %v340_v44 = vld [vmem:[%s5994_s1 + $0x990] sm:$0xff]  ;;  %1330 = vmatpush.msra.mxu1 %v342_v40  ;;  %v370_v45 = vld [vmem:[%s5994_s1 + $0xa80] sm:$0xff]  ;;  %1351 = vmatpush.msra.mxu2 %v372_v41 }
  0x54   :  { %v404_v46 = vld [vmem:[%s5994_s1 + $0xb90] sm:$0xff]  ;;  %1370 = vmatpush.msra.mxu3 %v406_v42  ;;  %v338_v52 = vld [vmem:[%s5994_s1 + $0x980] sm:$0xff]  ;;  %1312 = vmatpush.msra.mxu0 %v306_v43  ;;  %v3292_v42 = vld.sshfl [vmem:[#allocation1 + $0x28] sm:$0xff pattern:$0x73625140] }
  0x55   :  { %v304_v47 = vld [vmem:[%s5994_s1 + $0x870] sm:$0xff]  ;;  %1331 = vmatpush.msra.mxu1 %v340_v44  ;;  %v402_v54 = vld [vmem:[%s5994_s1 + $0xb80] sm:$0xff]  ;;  %1352 = vmatpush.msra.mxu2 %v370_v45  ;;  %v31_v44 = vld [vmem:[%s5995_s0 + $0x28] sm:$0xff] }
  0x56   :  { %v368_v53 = vld [vmem:[%s5994_s1 + $0xa70] sm:$0xff]  ;;  %1371 = vmatpush.msra.mxu3 %v404_v46  ;;  %v302_v55 = vld [vmem:[%s5994_s1 + $0x860] sm:$0xff]  ;;  %1313 = vmatpush.msra.mxu0 %v304_v47  ;;  %v3300_v45 = vld.sshfl [vmem:[#allocation1 + $0x38] sm:$0xff pattern:$0x73625140] }
  0x57   :  { %v336_v56 = vld [vmem:[%s5994_s1 + $0x970] sm:$0xff]  ;;  %1332 = vmatpush.msra.mxu1 %v338_v52  ;;  %v366_v57 = vld [vmem:[%s5994_s1 + $0xa60] sm:$0xff]  ;;  %1353 = vmatpush.msra.mxu2 %v368_v53 }
  0x58   :  { %v400_v58 = vld [vmem:[%s5994_s1 + $0xb70] sm:$0xff]  ;;  %1372 = vmatpush.msra.mxu3 %v402_v54  ;;  %v334_v60 = vld [vmem:[%s5994_s1 + $0x960] sm:$0xff]  ;;  %1314 = vmatpush.msra.mxu0 %v302_v55 }
  0x59   :  { %v300_v59 = vld [vmem:[%s5994_s1 + $0x850] sm:$0xff]  ;;  %1333 = vmatpush.msra.mxu1 %v336_v56  ;;  %v398_v62 = vld [vmem:[%s5994_s1 + $0xb60] sm:$0xff]  ;;  %1354 = vmatpush.msra.mxu2 %v366_v57 }
  0x5a   :  { %v364_v61 = vld [vmem:[%s5994_s1 + $0xa50] sm:$0xff]  ;;  %1373 = vmatpush.msra.mxu3 %v400_v58  ;;  %v298_v63 = vld [vmem:[%s5994_s1 + $0x840] sm:$0xff]  ;;  %1315 = vmatpush.msra.mxu0 %v300_v59 }
  0x5b   :  { %v332_v4 = vld [vmem:[%s5994_s1 + $0x950] sm:$0xff]  ;;  %1334 = vmatpush.msra.mxu1 %v334_v60  ;;  %v362_v5 = vld [vmem:[%s5994_s1 + $0xa40] sm:$0xff]  ;;  %1355 = vmatpush.msra.mxu2 %v364_v61 }
  0x5c   :  { %v396_v6 = vld [vmem:[%s5994_s1 + $0xb50] sm:$0xff]  ;;  %1374 = vmatpush.msra.mxu3 %v398_v62  ;;  %v330_v8 = vld [vmem:[%s5994_s1 + $0x940] sm:$0xff]  ;;  %1316 = vmatpush.msra.mxu0 %v298_v63 }
  0x5d   :  { %v296_v7 = vld [vmem:[%s5994_s1 + $0x830] sm:$0xff]  ;;  %1335 = vmatpush.msra.mxu1 %v332_v4  ;;  %v394_v10 = vld [vmem:[%s5994_s1 + $0xb40] sm:$0xff]  ;;  %1356 = vmatpush.msra.mxu2 %v362_v5 }
  0x5e   :  { %v360_v9 = vld [vmem:[%s5994_s1 + $0xa30] sm:$0xff]  ;;  %1375 = vmatpush.msra.mxu3 %v396_v6  ;;  %v294_v11 = vld [vmem:[%s5994_s1 + $0x820] sm:$0xff]  ;;  %1317 = vmatpush.msra.mxu0 %v296_v7 }
  0x5f   :  { %v328_v12 = vld [vmem:[%s5994_s1 + $0x930] sm:$0xff]  ;;  %1336 = vmatpush.msra.mxu1 %v330_v8  ;;  %v358_v13 = vld [vmem:[%s5994_s1 + $0xa20] sm:$0xff]  ;;  %1357 = vmatpush.msra.mxu2 %v360_v9 }
  0x60   :  { %v392_v14 = vld [vmem:[%s5994_s1 + $0xb30] sm:$0xff]  ;;  %1376 = vmatpush.msra.mxu3 %v394_v10  ;;  %v326_v16 = vld [vmem:[%s5994_s1 + $0x920] sm:$0xff]  ;;  %1318 = vmatpush.msra.mxu0 %v294_v11 }
  0x61   :  { %v292_v15 = vld [vmem:[%s5994_s1 + $0x810] sm:$0xff]  ;;  %1337 = vmatpush.msra.mxu1 %v328_v12  ;;  %v390_v18 = vld [vmem:[%s5994_s1 + $0xb20] sm:$0xff]  ;;  %1358 = vmatpush.msra.mxu2 %v358_v13 }
  0x62   :  { %v356_v17 = vld [vmem:[%s5994_s1 + $0xa10] sm:$0xff]  ;;  %1377 = vmatpush.msra.mxu3 %v392_v14  ;;  %v290_v19 = vld [vmem:[%s5994_s1 + $0x800] sm:$0xff]  ;;  %1319 = vmatpush.msra.mxu0 %v292_v15 }
  0x63   :  { %v324_v20 = vld [vmem:[%s5994_s1 + $0x910] sm:$0xff]  ;;  %1338 = vmatpush.msra.mxu1 %v326_v16  ;;  %v354_v21 = vld [vmem:[%s5994_s1 + $0xa00] sm:$0xff]  ;;  %1359 = vmatpush.msra.mxu2 %v356_v17 }
  0x64   :  { %v388_v22 = vld [vmem:[%s5994_s1 + $0xb10] sm:$0xff]  ;;  %1378 = vmatpush.msra.mxu3 %v390_v18  ;;  %1320 = vmatpush.msra.mxu0 %v290_v19  ;;  %v322_v25 = vld [vmem:[%s5994_s1 + $0x900] sm:$0xff] }
  0x65   :  { %1339 = vmatpush.msra.mxu1 %v324_v20  ;;  %v448_v23 = vld [vmem:[%s5994_s1 + $0xcf0] sm:$0xff]  ;;  %1360 = vmatpush.msra.mxu2 %v354_v21  ;;  %v386_v26 = vld [vmem:[%s5994_s1 + $0xb00] sm:$0xff] }
  0x66   :  { %v512_v24 = vld [vmem:[%s5994_s1 + $0xef0] sm:$0xff]  ;;  %1379 = vmatpush.msra.mxu3 %v388_v22  ;;  %1321 = vmatmul.f32.vlgmr.msra.gmra.mxu0 %v3092_v28  ;;  %v446_v27 = vld [vmem:[%s5994_s1 + $0xce0] sm:$0xff] }
  0x67   :  { %1361 = vmatmul.f32.vlgmr.msra.gmra.mxu2 %v3097_v30  ;;  %1385 = vmatpush.msrb.mxu0 %v448_v23  ;;  %v480_v29 = vld [vmem:[%s5994_s1 + $0xdf0] sm:$0xff]  ;;  %v510_v31 = vld [vmem:[%s5994_s1 + $0xee0] sm:$0xff] }
  0x68   :  { %1425 = vmatpush.msrb.mxu2 %v512_v24  ;;  %v544_v34 = vld [vmem:[%s5994_s1 + $0xff0] sm:$0xff]  ;;  %1340 = vmatpush.msra.mxu1 %v322_v25  ;;  %v478_v36 = vld [vmem:[%s5994_s1 + $0xde0] sm:$0xff] }
  0x69   :  { %1380 = vmatpush.msra.mxu3 %v386_v26  ;;  %v444_v35 = vld [vmem:[%s5994_s1 + $0xcd0] sm:$0xff]  ;;  %1341 = vmatmul.f32.vlgmr.msra.gmra.mxu1 %v3102_v32  ;;  %v542_v38 = vld [vmem:[%s5994_s1 + $0xfe0] sm:$0xff] }
  0x6a   :  { %v508_v37 = vld [vmem:[%s5994_s1 + $0xed0] sm:$0xff]  ;;  %1381 = vmatmul.f32.vlgmr.msra.gmra.mxu3 %v3104_v33  ;;  %v442_v39 = vld [vmem:[%s5994_s1 + $0xcc0] sm:$0xff]  ;;  %1386 = vmatpush.msrb.mxu0 %v446_v27 }
  0x6b   :  { %v3288_v40 = vld.sshfl [vmem:[#allocation1 + $0x20] sm:$0xff pattern:$0x73625140]  ;;  %1405 = vmatpush.msrb.mxu1 %v480_v29  ;;  %v3290_v41 = vld.sshfl [vmem:[#allocation1 + $0x30] sm:$0xff pattern:$0x73625140]  ;;  %1426 = vmatpush.msrb.mxu2 %v510_v31 }
  0x6c   :  { %1445 = vmatpush.msrb.mxu3 %v544_v34  ;;  %v476_v43 = vld [vmem:[%s5994_s1 + $0xdd0] sm:$0xff]  ;;  %1387 = vmatpush.msrb.mxu0 %v444_v35  ;;  %v506_v46 = vld [vmem:[%s5994_s1 + $0xec0] sm:$0xff]  ;;  %1094 = vst [vmem:[#allocation1 + $0x20] ss:$4 sm:$0xff] %v31_v44 }
  0x6d   :  { %1406 = vmatpush.msrb.mxu1 %v478_v36  ;;  %v540_v47 = vld [vmem:[%s5994_s1 + $0xfd0] sm:$0xff]  ;;  %1427 = vmatpush.msrb.mxu2 %v508_v37  ;;  %v474_v53 = vld [vmem:[%s5994_s1 + $0xdc0] sm:$0xff] }
  0x6e   :  { %1446 = vmatpush.msrb.mxu3 %v542_v38  ;;  %v440_v52 = vld [vmem:[%s5994_s1 + $0xcb0] sm:$0xff]  ;;  %1388 = vmatpush.msrb.mxu0 %v442_v39  ;;  %v538_v55 = vld [vmem:[%s5994_s1 + $0xfc0] sm:$0xff] }
  0x6f   :  { %1407 = vmatpush.msrb.mxu1 %v476_v43  ;;  %v504_v54 = vld [vmem:[%s5994_s1 + $0xeb0] sm:$0xff]  ;;  %1428 = vmatpush.msrb.mxu2 %v506_v46  ;;  %v438_v56 = vld [vmem:[%s5994_s1 + $0xca0] sm:$0xff] }
  0x70   :  { %1447 = vmatpush.msrb.mxu3 %v540_v47  ;;  %v472_v57 = vld [vmem:[%s5994_s1 + $0xdb0] sm:$0xff]  ;;  %1389 = vmatpush.msrb.mxu0 %v440_v52  ;;  %v502_v58 = vld [vmem:[%s5994_s1 + $0xea0] sm:$0xff] }
  0x71   :  { %1408 = vmatpush.msrb.mxu1 %v474_v53  ;;  %v536_v59 = vld [vmem:[%s5994_s1 + $0xfb0] sm:$0xff]  ;;  %1429 = vmatpush.msrb.mxu2 %v504_v54  ;;  %v470_v61 = vld [vmem:[%s5994_s1 + $0xda0] sm:$0xff] }
  0x72   :  { %1448 = vmatpush.msrb.mxu3 %v538_v55  ;;  %v436_v60 = vld [vmem:[%s5994_s1 + $0xc90] sm:$0xff]  ;;  %1390 = vmatpush.msrb.mxu0 %v438_v56  ;;  %v534_v63 = vld [vmem:[%s5994_s1 + $0xfa0] sm:$0xff] }
  0x73   :  { %1409 = vmatpush.msrb.mxu1 %v472_v57  ;;  %v500_v62 = vld [vmem:[%s5994_s1 + $0xe90] sm:$0xff]  ;;  %1430 = vmatpush.msrb.mxu2 %v502_v58  ;;  %v434_v4 = vld [vmem:[%s5994_s1 + $0xc80] sm:$0xff] }
  0x74   :  { %1449 = vmatpush.msrb.mxu3 %v536_v59  ;;  %v468_v5 = vld [vmem:[%s5994_s1 + $0xd90] sm:$0xff]  ;;  %1391 = vmatpush.msrb.mxu0 %v436_v60  ;;  %v498_v6 = vld [vmem:[%s5994_s1 + $0xe80] sm:$0xff] }
  0x75   :  { %1410 = vmatpush.msrb.mxu1 %v470_v61  ;;  %v532_v7 = vld [vmem:[%s5994_s1 + $0xf90] sm:$0xff]  ;;  %1431 = vmatpush.msrb.mxu2 %v500_v62  ;;  %v466_v9 = vld [vmem:[%s5994_s1 + $0xd80] sm:$0xff] }
  0x76   :  { %1450 = vmatpush.msrb.mxu3 %v534_v63  ;;  %v432_v8 = vld [vmem:[%s5994_s1 + $0xc70] sm:$0xff]  ;;  %1392 = vmatpush.msrb.mxu0 %v434_v4  ;;  %v530_v11 = vld [vmem:[%s5994_s1 + $0xf80] sm:$0xff] }
  0x77   :  { %1411 = vmatpush.msrb.mxu1 %v468_v5  ;;  %v496_v10 = vld [vmem:[%s5994_s1 + $0xe70] sm:$0xff]  ;;  %1432 = vmatpush.msrb.mxu2 %v498_v6  ;;  %v430_v12 = vld [vmem:[%s5994_s1 + $0xc60] sm:$0xff] }
  0x78   :  { %1451 = vmatpush.msrb.mxu3 %v532_v7  ;;  %v464_v13 = vld [vmem:[%s5994_s1 + $0xd70] sm:$0xff]  ;;  %1393 = vmatpush.msrb.mxu0 %v432_v8  ;;  %v494_v14 = vld [vmem:[%s5994_s1 + $0xe60] sm:$0xff]  ;;  %v3499_v7 = vld.sshfl [vmem:[#allocation1 + $0x8] sm:$0xff pattern:$0x73625140] }
  0x79   :  { %1412 = vmatpush.msrb.mxu1 %v466_v9  ;;  %v528_v15 = vld [vmem:[%s5994_s1 + $0xf70] sm:$0xff]  ;;  %1433 = vmatpush.msrb.mxu2 %v496_v10  ;;  %v462_v17 = vld [vmem:[%s5994_s1 + $0xd60] sm:$0xff]  ;;  %v3501_v8 = vld.sshfl [vmem:[#allocation1 + $0x18] sm:$0xff pattern:$0x73625140] }
  0x7a   :  { %1452 = vmatpush.msrb.mxu3 %v530_v11  ;;  %v428_v16 = vld [vmem:[%s5994_s1 + $0xc50] sm:$0xff]  ;;  %1394 = vmatpush.msrb.mxu0 %v430_v12  ;;  %v526_v19 = vld [vmem:[%s5994_s1 + $0xf60] sm:$0xff] }
  0x7b   :  { %1413 = vmatpush.msrb.mxu1 %v464_v13  ;;  %v492_v18 = vld [vmem:[%s5994_s1 + $0xe50] sm:$0xff]  ;;  %1434 = vmatpush.msrb.mxu2 %v494_v14  ;;  %v426_v20 = vld [vmem:[%s5994_s1 + $0xc40] sm:$0xff] }
  0x7c   :  { %1453 = vmatpush.msrb.mxu3 %v528_v15  ;;  %v460_v21 = vld [vmem:[%s5994_s1 + $0xd50] sm:$0xff]  ;;  %1395 = vmatpush.msrb.mxu0 %v428_v16  ;;  %v490_v22 = vld [vmem:[%s5994_s1 + $0xe40] sm:$0xff] }
  0x7d   :  { %1414 = vmatpush.msrb.mxu1 %v462_v17  ;;  %v524_v23 = vld [vmem:[%s5994_s1 + $0xf50] sm:$0xff]  ;;  %1435 = vmatpush.msrb.mxu2 %v492_v18  ;;  %v458_v25 = vld [vmem:[%s5994_s1 + $0xd40] sm:$0xff] }
  0x7e   :  { %1454 = vmatpush.msrb.mxu3 %v526_v19  ;;  %v424_v24 = vld [vmem:[%s5994_s1 + $0xc30] sm:$0xff]  ;;  %1396 = vmatpush.msrb.mxu0 %v426_v20  ;;  %v522_v27 = vld [vmem:[%s5994_s1 + $0xf40] sm:$0xff] }
  0x7f   :  { %1415 = vmatpush.msrb.mxu1 %v460_v21  ;;  %v488_v26 = vld [vmem:[%s5994_s1 + $0xe30] sm:$0xff]  ;;  %1436 = vmatpush.msrb.mxu2 %v490_v22  ;;  %v422_v29 = vld [vmem:[%s5994_s1 + $0xc20] sm:$0xff] }
  0x80   :  { %1455 = vmatpush.msrb.mxu3 %v524_v23  ;;  %v456_v31 = vld [vmem:[%s5994_s1 + $0xd30] sm:$0xff]  ;;  %1397 = vmatpush.msrb.mxu0 %v424_v24  ;;  %v486_v34 = vld [vmem:[%s5994_s1 + $0xe20] sm:$0xff] }
  0x81   :  { %1416 = vmatpush.msrb.mxu1 %v458_v25  ;;  %v520_v35 = vld [vmem:[%s5994_s1 + $0xf30] sm:$0xff]  ;;  %1437 = vmatpush.msrb.mxu2 %v488_v26  ;;  %v454_v37 = vld [vmem:[%s5994_s1 + $0xd20] sm:$0xff] }
  0x82   :  { %1456 = vmatpush.msrb.mxu3 %v522_v27  ;;  %v420_v36 = vld [vmem:[%s5994_s1 + $0xc10] sm:$0xff]  ;;  %1398 = vmatpush.msrb.mxu0 %v422_v29  ;;  %v518_v39 = vld [vmem:[%s5994_s1 + $0xf20] sm:$0xff] }
  0x83   :  { %1417 = vmatpush.msrb.mxu1 %v456_v31  ;;  %v484_v38 = vld [vmem:[%s5994_s1 + $0xe10] sm:$0xff]  ;;  %1438 = vmatpush.msrb.mxu2 %v486_v34  ;;  %v418_v43 = vld [vmem:[%s5994_s1 + $0xc00] sm:$0xff] }
  0x84   :  { %1457 = vmatpush.msrb.mxu3 %v520_v35  ;;  %v452_v44 = vld [vmem:[%s5994_s1 + $0xd10] sm:$0xff]  ;;  %1399 = vmatpush.msrb.mxu0 %v420_v36  ;;  %v482_v46 = vld [vmem:[%s5994_s1 + $0xe00] sm:$0xff] }
  0x85   :  { %1418 = vmatpush.msrb.mxu1 %v454_v37  ;;  %v516_v47 = vld [vmem:[%s5994_s1 + $0xf10] sm:$0xff]  ;;  %1439 = vmatpush.msrb.mxu2 %v484_v38  ;;  %v450_v54 = vld [vmem:[%s5994_s1 + $0xd00] sm:$0xff] }
  0x86   :  { %1458 = vmatpush.msrb.mxu3 %v518_v39  ;;  %1400 = vmatpush.msrb.mxu0 %v418_v43  ;;  %v576_v52 = vld [vmem:[%s5994_s1 + $0x10f0] sm:$0xff]  ;;  %v514_v55 = vld [vmem:[%s5994_s1 + $0xf00] sm:$0xff] }
  0x87   :  { %1419 = vmatpush.msrb.mxu1 %v452_v44  ;;  %v640_v53 = vld [vmem:[%s5994_s1 + $0x12f0] sm:$0xff]  ;;  %1440 = vmatpush.msrb.mxu2 %v482_v46  ;;  %v574_v57 = vld [vmem:[%s5994_s1 + $0x10e0] sm:$0xff] }
  0x88   :  { %1459 = vmatpush.msrb.mxu3 %v516_v47  ;;  %v32_v56 = vld [vmem:[%s5995_s0 + $0x30] sm:$0xff]  ;;  %1401 = vmatmul.f32.vlgmr.msrb.gmra.mxu0 %v3288_v40  ;;  %v638_v59 = vld [vmem:[%s5994_s1 + $0x12e0] sm:$0xff] }
  0x89   :  { %1441 = vmatmul.f32.vlgmr.msrb.gmra.mxu2 %v3290_v41  ;;  %v608_v58 = vld [vmem:[%s5994_s1 + $0x11f0] sm:$0xff]  ;;  %1465 = vmatpush.msra.mxu0 %v576_v52  ;;  %v606_v62 = vld [vmem:[%s5994_s1 + $0x11e0] sm:$0xff] }
  0x8a   :  { %1505 = vmatpush.msra.mxu2 %v640_v53  ;;  %v672_v60 = vld [vmem:[%s5994_s1 + $0x13f0] sm:$0xff]  ;;  %1420 = vmatpush.msrb.mxu1 %v450_v54  ;;  %v670_v4 = vld [vmem:[%s5994_s1 + $0x13e0] sm:$0xff] }
  0x8b   :  { %v572_v61 = vld [vmem:[%s5994_s1 + $0x10d0] sm:$0xff]  ;;  %1460 = vmatpush.msrb.mxu3 %v514_v55  ;;  %1421 = vmatmul.f32.vlgmr.msrb.gmra.mxu1 %v3292_v42  ;;  %v3495_v5 = vld.sshfl [vmem:[#allocation1] sm:$0xff pattern:$0x73625140] }
  0x8c   :  { %v636_v63 = vld [vmem:[%s5994_s1 + $0x12d0] sm:$0xff]  ;;  %1461 = vmatmul.f32.vlgmr.msrb.gmra.mxu3 %v3300_v45  ;;  %1466 = vmatpush.msra.mxu0 %v574_v57  ;;  %v570_v9 = vld [vmem:[%s5994_s1 + $0x10c0] sm:$0xff] }
  0x8d   :  { %v3497_v6 = vld.sshfl [vmem:[#allocation1 + $0x10] sm:$0xff pattern:$0x73625140]  ;;  %1485 = vmatpush.msra.mxu1 %v608_v58  ;;  %1506 = vmatpush.msra.mxu2 %v638_v59  ;;  %v634_v11 = vld [vmem:[%s5994_s1 + $0x12c0] sm:$0xff] }
  0x8e   :  { %1525 = vmatpush.msra.mxu3 %v672_v60  ;;  %v604_v10 = vld [vmem:[%s5994_s1 + $0x11d0] sm:$0xff]  ;;  %1103 = vst [vmem:[#allocation1] ss:$4 sm:$0xff] %v32_v56  ;;  %1467 = vmatpush.msra.mxu0 %v572_v61  ;;  %v602_v14 = vld [vmem:[%s5994_s1 + $0x11c0] sm:$0xff] }
  0x8f   :  { %1486 = vmatpush.msra.mxu1 %v606_v62  ;;  %v668_v12 = vld [vmem:[%s5994_s1 + $0x13d0] sm:$0xff]  ;;  %1507 = vmatpush.msra.mxu2 %v636_v63  ;;  %v666_v16 = vld [vmem:[%s5994_s1 + $0x13c0] sm:$0xff] }
  0x90   :  { %1526 = vmatpush.msra.mxu3 %v670_v4  ;;  %v568_v13 = vld [vmem:[%s5994_s1 + $0x10b0] sm:$0xff]  ;;  %1468 = vmatpush.msra.mxu0 %v570_v9  ;;  %v566_v17 = vld [vmem:[%s5994_s1 + $0x10a0] sm:$0xff] }
  0x91   :  { %1487 = vmatpush.msra.mxu1 %v604_v10  ;;  %v632_v15 = vld [vmem:[%s5994_s1 + $0x12b0] sm:$0xff]  ;;  %1508 = vmatpush.msra.mxu2 %v634_v11  ;;  %v630_v19 = vld [vmem:[%s5994_s1 + $0x12a0] sm:$0xff] }
  0x92   :  { %1527 = vmatpush.msra.mxu3 %v668_v12  ;;  %v600_v18 = vld [vmem:[%s5994_s1 + $0x11b0] sm:$0xff]  ;;  %1469 = vmatpush.msra.mxu0 %v568_v13  ;;  %v598_v22 = vld [vmem:[%s5994_s1 + $0x11a0] sm:$0xff] }
  0x93   :  { %1488 = vmatpush.msra.mxu1 %v602_v14  ;;  %v664_v20 = vld [vmem:[%s5994_s1 + $0x13b0] sm:$0xff]  ;;  %1509 = vmatpush.msra.mxu2 %v632_v15  ;;  %v662_v24 = vld [vmem:[%s5994_s1 + $0x13a0] sm:$0xff] }
  0x94   :  { %1528 = vmatpush.msra.mxu3 %v666_v16  ;;  %v564_v21 = vld [vmem:[%s5994_s1 + $0x1090] sm:$0xff]  ;;  %1470 = vmatpush.msra.mxu0 %v566_v17  ;;  %v562_v25 = vld [vmem:[%s5994_s1 + $0x1080] sm:$0xff] }
  0x95   :  { %1489 = vmatpush.msra.mxu1 %v600_v18  ;;  %v628_v23 = vld [vmem:[%s5994_s1 + $0x1290] sm:$0xff]  ;;  %1510 = vmatpush.msra.mxu2 %v630_v19  ;;  %v626_v27 = vld [vmem:[%s5994_s1 + $0x1280] sm:$0xff] }
  0x96   :  { %1529 = vmatpush.msra.mxu3 %v664_v20  ;;  %v596_v26 = vld [vmem:[%s5994_s1 + $0x1190] sm:$0xff]  ;;  %1471 = vmatpush.msra.mxu0 %v564_v21  ;;  %v594_v34 = vld [vmem:[%s5994_s1 + $0x1180] sm:$0xff]  ;;  %v33_v21 = vld [vmem:[%s5995_s0 + $0x38] sm:$0xff] }
  0x97   :  { %1490 = vmatpush.msra.mxu1 %v598_v22  ;;  %v660_v29 = vld [vmem:[%s5994_s1 + $0x1390] sm:$0xff]  ;;  %1511 = vmatpush.msra.mxu2 %v628_v23  ;;  %v658_v36 = vld [vmem:[%s5994_s1 + $0x1380] sm:$0xff] }
  0x98   :  { %1530 = vmatpush.msra.mxu3 %v662_v24  ;;  %v560_v31 = vld [vmem:[%s5994_s1 + $0x1070] sm:$0xff]  ;;  %1472 = vmatpush.msra.mxu0 %v562_v25  ;;  %v558_v37 = vld [vmem:[%s5994_s1 + $0x1060] sm:$0xff] }
  0x99   :  { %1491 = vmatpush.msra.mxu1 %v596_v26  ;;  %v624_v35 = vld [vmem:[%s5994_s1 + $0x1270] sm:$0xff]  ;;  %1512 = vmatpush.msra.mxu2 %v626_v27  ;;  %v622_v39 = vld [vmem:[%s5994_s1 + $0x1260] sm:$0xff] }
  0x9a   :  { %1531 = vmatpush.msra.mxu3 %v660_v29  ;;  %v592_v38 = vld [vmem:[%s5994_s1 + $0x1170] sm:$0xff]  ;;  %1473 = vmatpush.msra.mxu0 %v560_v31  ;;  %v590_v46 = vld [vmem:[%s5994_s1 + $0x1160] sm:$0xff] }
  0x9b   :  { %1492 = vmatpush.msra.mxu1 %v594_v34  ;;  %v656_v43 = vld [vmem:[%s5994_s1 + $0x1370] sm:$0xff]  ;;  %1513 = vmatpush.msra.mxu2 %v624_v35  ;;  %v654_v52 = vld [vmem:[%s5994_s1 + $0x1360] sm:$0xff] }
  0x9c   :  { %1532 = vmatpush.msra.mxu3 %v658_v36  ;;  %v556_v44 = vld [vmem:[%s5994_s1 + $0x1050] sm:$0xff]  ;;  %1474 = vmatpush.msra.mxu0 %v558_v37  ;;  %v554_v53 = vld [vmem:[%s5994_s1 + $0x1040] sm:$0xff]  ;;  %v3706_v36 = vld.sshfl [vmem:[#allocation1 + $0x28] sm:$0xff pattern:$0x73625140] }
  0x9d   :  { %1493 = vmatpush.msra.mxu1 %v592_v38  ;;  %v620_v47 = vld [vmem:[%s5994_s1 + $0x1250] sm:$0xff]  ;;  %1514 = vmatpush.msra.mxu2 %v622_v39  ;;  %v618_v55 = vld [vmem:[%s5994_s1 + $0x1240] sm:$0xff]  ;;  %v3708_v37 = vld.sshfl [vmem:[#allocation1 + $0x38] sm:$0xff pattern:$0x73625140] }
  0x9e   :  { %1533 = vmatpush.msra.mxu3 %v656_v43  ;;  %v588_v54 = vld [vmem:[%s5994_s1 + $0x1150] sm:$0xff]  ;;  %1475 = vmatpush.msra.mxu0 %v556_v44  ;;  %v586_v58 = vld [vmem:[%s5994_s1 + $0x1140] sm:$0xff] }
  0x9f   :  { %1494 = vmatpush.msra.mxu1 %v590_v46  ;;  %v652_v56 = vld [vmem:[%s5994_s1 + $0x1350] sm:$0xff]  ;;  %1515 = vmatpush.msra.mxu2 %v620_v47  ;;  %v650_v60 = vld [vmem:[%s5994_s1 + $0x1340] sm:$0xff] }
  0xa0   :  { %1534 = vmatpush.msra.mxu3 %v654_v52  ;;  %v552_v57 = vld [vmem:[%s5994_s1 + $0x1030] sm:$0xff]  ;;  %1476 = vmatpush.msra.mxu0 %v554_v53  ;;  %v550_v61 = vld [vmem:[%s5994_s1 + $0x1020] sm:$0xff] }
  0xa1   :  { %1495 = vmatpush.msra.mxu1 %v588_v54  ;;  %v616_v59 = vld [vmem:[%s5994_s1 + $0x1230] sm:$0xff]  ;;  %1516 = vmatpush.msra.mxu2 %v618_v55  ;;  %v614_v63 = vld [vmem:[%s5994_s1 + $0x1220] sm:$0xff] }
  0xa2   :  { %1535 = vmatpush.msra.mxu3 %v652_v56  ;;  %v584_v62 = vld [vmem:[%s5994_s1 + $0x1130] sm:$0xff]  ;;  %1477 = vmatpush.msra.mxu0 %v552_v57  ;;  %v582_v10 = vld [vmem:[%s5994_s1 + $0x1120] sm:$0xff] }
  0xa3   :  { %1496 = vmatpush.msra.mxu1 %v586_v58  ;;  %v648_v4 = vld [vmem:[%s5994_s1 + $0x1330] sm:$0xff]  ;;  %1517 = vmatpush.msra.mxu2 %v616_v59  ;;  %v646_v12 = vld [vmem:[%s5994_s1 + $0x1320] sm:$0xff] }
  0xa4   :  { %1536 = vmatpush.msra.mxu3 %v650_v60  ;;  %v548_v9 = vld [vmem:[%s5994_s1 + $0x1010] sm:$0xff]  ;;  %1478 = vmatpush.msra.mxu0 %v550_v61  ;;  %v546_v13 = vld [vmem:[%s5994_s1 + $0x1000] sm:$0xff] }
  0xa5   :  { %1497 = vmatpush.msra.mxu1 %v584_v62  ;;  %v612_v11 = vld [vmem:[%s5994_s1 + $0x1210] sm:$0xff]  ;;  %1518 = vmatpush.msra.mxu2 %v614_v63  ;;  %v610_v15 = vld [vmem:[%s5994_s1 + $0x1200] sm:$0xff] }
  0xa6   :  { %1537 = vmatpush.msra.mxu3 %v648_v4  ;;  %v580_v14 = vld [vmem:[%s5994_s1 + $0x1110] sm:$0xff]  ;;  %1479 = vmatpush.msra.mxu0 %v548_v9  ;;  %v578_v19 = vld [vmem:[%s5994_s1 + $0x1100] sm:$0xff] }
  0xa7   :  { %1498 = vmatpush.msra.mxu1 %v582_v10  ;;  %v644_v16 = vld [vmem:[%s5994_s1 + $0x1310] sm:$0xff]  ;;  %1519 = vmatpush.msra.mxu2 %v612_v11  ;;  %v642_v20 = vld [vmem:[%s5994_s1 + $0x1300] sm:$0xff] }
  0xa8   :  { %1538 = vmatpush.msra.mxu3 %v646_v12  ;;  %1480 = vmatpush.msra.mxu0 %v546_v13  ;;  %v704_v17 = vld [vmem:[%s5994_s1 + $0x14f0] sm:$0xff]  ;;  %v702_v22 = vld [vmem:[%s5994_s1 + $0x14e0] sm:$0xff] }
  0xa9   :  { %1499 = vmatpush.msra.mxu1 %v580_v14  ;;  %v768_v18 = vld [vmem:[%s5994_s1 + $0x16f0] sm:$0xff]  ;;  %1520 = vmatpush.msra.mxu2 %v610_v15  ;;  %v766_v24 = vld [vmem:[%s5994_s1 + $0x16e0] sm:$0xff] }
  0xaa   :  { %1539 = vmatpush.msra.mxu3 %v644_v16  ;;  %1481 = vmatmul.f32.vlgmr.msra.gmra.mxu0 %v3495_v5  ;;  %v736_v23 = vld [vmem:[%s5994_s1 + $0x15f0] sm:$0xff]  ;;  %v734_v27 = vld [vmem:[%s5994_s1 + $0x15e0] sm:$0xff] }
  0xab   :  { %1521 = vmatmul.f32.vlgmr.msra.gmra.mxu2 %v3497_v6  ;;  %1545 = vmatpush.msrb.mxu0 %v704_v17  ;;  %v800_v25 = vld [vmem:[%s5994_s1 + $0x17f0] sm:$0xff]  ;;  %v798_v31 = vld [vmem:[%s5994_s1 + $0x17e0] sm:$0xff] }
  0xac   :  { %1585 = vmatpush.msrb.mxu2 %v768_v18  ;;  %v700_v26 = vld [vmem:[%s5994_s1 + $0x14d0] sm:$0xff]  ;;  %1500 = vmatpush.msra.mxu1 %v578_v19  ;;  %v3702_v34 = vld.sshfl [vmem:[#allocation1 + $0x20] sm:$0xff pattern:$0x73625140] }
  0xad   :  { %1540 = vmatpush.msra.mxu3 %v642_v20  ;;  %v764_v29 = vld [vmem:[%s5994_s1 + $0x16d0] sm:$0xff]  ;;  %1501 = vmatmul.f32.vlgmr.msra.gmra.mxu1 %v3499_v7  ;;  %v698_v38 = vld [vmem:[%s5994_s1 + $0x14c0] sm:$0xff] }
  0xae   :  { %1541 = vmatmul.f32.vlgmr.msra.gmra.mxu3 %v3501_v8  ;;  %v3704_v35 = vld.sshfl [vmem:[#allocation1 + $0x30] sm:$0xff pattern:$0x73625140]  ;;  %1546 = vmatpush.msrb.mxu0 %v702_v22  ;;  %v762_v43 = vld [vmem:[%s5994_s1 + $0x16c0] sm:$0xff] }
  0xaf   :  { %1565 = vmatpush.msrb.mxu1 %v736_v23  ;;  %1586 = vmatpush.msrb.mxu2 %v766_v24  ;;  %v732_v39 = vld [vmem:[%s5994_s1 + $0x15d0] sm:$0xff]  ;;  %1104 = vst [vmem:[#allocation1 + $0x20] ss:$4 sm:$0xff] %v33_v21  ;;  %v730_v47 = vld [vmem:[%s5994_s1 + $0x15c0] sm:$0xff] }
  0xb0   :  { %1605 = vmatpush.msrb.mxu3 %v800_v25  ;;  %1547 = vmatpush.msrb.mxu0 %v700_v26  ;;  %v796_v44 = vld [vmem:[%s5994_s1 + $0x17d0] sm:$0xff]  ;;  %v794_v53 = vld [vmem:[%s5994_s1 + $0x17c0] sm:$0xff] }
  0xb1   :  { %1566 = vmatpush.msrb.mxu1 %v734_v27  ;;  %1587 = vmatpush.msrb.mxu2 %v764_v29  ;;  %v696_v46 = vld [vmem:[%s5994_s1 + $0x14b0] sm:$0xff]  ;;  %v694_v54 = vld [vmem:[%s5994_s1 + $0x14a0] sm:$0xff] }
  0xb2   :  { %1606 = vmatpush.msrb.mxu3 %v798_v31  ;;  %1548 = vmatpush.msrb.mxu0 %v698_v38  ;;  %v760_v52 = vld [vmem:[%s5994_s1 + $0x16b0] sm:$0xff]  ;;  %v758_v56 = vld [vmem:[%s5994_s1 + $0x16a0] sm:$0xff] }
  0xb3   :  { %1567 = vmatpush.msrb.mxu1 %v732_v39  ;;  %1588 = vmatpush.msrb.mxu2 %v762_v43  ;;  %v728_v55 = vld [vmem:[%s5994_s1 + $0x15b0] sm:$0xff]  ;;  %v726_v59 = vld [vmem:[%s5994_s1 + $0x15a0] sm:$0xff] }
  0xb4   :  { %1607 = vmatpush.msrb.mxu3 %v796_v44  ;;  %1549 = vmatpush.msrb.mxu0 %v696_v46  ;;  %v792_v57 = vld [vmem:[%s5994_s1 + $0x17b0] sm:$0xff]  ;;  %v790_v61 = vld [vmem:[%s5994_s1 + $0x17a0] sm:$0xff] }
  0xb5   :  { %1568 = vmatpush.msrb.mxu1 %v730_v47  ;;  %1589 = vmatpush.msrb.mxu2 %v760_v52  ;;  %v692_v58 = vld [vmem:[%s5994_s1 + $0x1490] sm:$0xff]  ;;  %v690_v62 = vld [vmem:[%s5994_s1 + $0x1480] sm:$0xff] }
  0xb6   :  { %1608 = vmatpush.msrb.mxu3 %v794_v53  ;;  %1550 = vmatpush.msrb.mxu0 %v694_v54  ;;  %v756_v60 = vld [vmem:[%s5994_s1 + $0x1690] sm:$0xff]  ;;  %v754_v4 = vld [vmem:[%s5994_s1 + $0x1680] sm:$0xff] }
  0xb7   :  { %1569 = vmatpush.msrb.mxu1 %v728_v55  ;;  %1590 = vmatpush.msrb.mxu2 %v758_v56  ;;  %v724_v63 = vld [vmem:[%s5994_s1 + $0x1590] sm:$0xff]  ;;  %v722_v11 = vld [vmem:[%s5994_s1 + $0x1580] sm:$0xff] }
  0xb8   :  { %1609 = vmatpush.msrb.mxu3 %v792_v57  ;;  %1551 = vmatpush.msrb.mxu0 %v692_v58  ;;  %v788_v9 = vld [vmem:[%s5994_s1 + $0x1790] sm:$0xff]  ;;  %v786_v13 = vld [vmem:[%s5994_s1 + $0x1780] sm:$0xff] }
  0xb9   :  { %1570 = vmatpush.msrb.mxu1 %v726_v59  ;;  %1591 = vmatpush.msrb.mxu2 %v756_v60  ;;  %v688_v10 = vld [vmem:[%s5994_s1 + $0x1470] sm:$0xff]  ;;  %v686_v14 = vld [vmem:[%s5994_s1 + $0x1460] sm:$0xff] }
  0xba   :  { %1610 = vmatpush.msrb.mxu3 %v790_v61  ;;  %1552 = vmatpush.msrb.mxu0 %v690_v62  ;;  %v752_v12 = vld [vmem:[%s5994_s1 + $0x1670] sm:$0xff]  ;;  %v750_v16 = vld [vmem:[%s5994_s1 + $0x1660] sm:$0xff] }
  0xbb   :  { %1571 = vmatpush.msrb.mxu1 %v724_v63  ;;  %1592 = vmatpush.msrb.mxu2 %v754_v4  ;;  %v720_v15 = vld [vmem:[%s5994_s1 + $0x1570] sm:$0xff]  ;;  %v718_v19 = vld [vmem:[%s5994_s1 + $0x1560] sm:$0xff] }
  0xbc   :  { %1611 = vmatpush.msrb.mxu3 %v788_v9  ;;  %1553 = vmatpush.msrb.mxu0 %v688_v10  ;;  %v784_v17 = vld [vmem:[%s5994_s1 + $0x1770] sm:$0xff]  ;;  %v782_v21 = vld [vmem:[%s5994_s1 + $0x1760] sm:$0xff] }
  0xbd   :  { %1572 = vmatpush.msrb.mxu1 %v722_v11  ;;  %1593 = vmatpush.msrb.mxu2 %v752_v12  ;;  %v684_v18 = vld [vmem:[%s5994_s1 + $0x1450] sm:$0xff]  ;;  %v682_v22 = vld [vmem:[%s5994_s1 + $0x1440] sm:$0xff] }
  0xbe   :  { %1612 = vmatpush.msrb.mxu3 %v786_v13  ;;  %1554 = vmatpush.msrb.mxu0 %v686_v14  ;;  %v748_v20 = vld [vmem:[%s5994_s1 + $0x1650] sm:$0xff]  ;;  %v746_v24 = vld [vmem:[%s5994_s1 + $0x1640] sm:$0xff] }
  0xbf   :  { %1573 = vmatpush.msrb.mxu1 %v720_v15  ;;  %1594 = vmatpush.msrb.mxu2 %v750_v16  ;;  %v716_v23 = vld [vmem:[%s5994_s1 + $0x1550] sm:$0xff]  ;;  %v714_v27 = vld [vmem:[%s5994_s1 + $0x1540] sm:$0xff] }
  0xc0   :  { %1613 = vmatpush.msrb.mxu3 %v784_v17  ;;  %1555 = vmatpush.msrb.mxu0 %v684_v18  ;;  %v780_v25 = vld [vmem:[%s5994_s1 + $0x1750] sm:$0xff]  ;;  %v778_v31 = vld [vmem:[%s5994_s1 + $0x1740] sm:$0xff] }
  0xc1   :  { %1574 = vmatpush.msrb.mxu1 %v718_v19  ;;  %1595 = vmatpush.msrb.mxu2 %v748_v20  ;;  %v680_v26 = vld [vmem:[%s5994_s1 + $0x1430] sm:$0xff]  ;;  %v678_v38 = vld [vmem:[%s5994_s1 + $0x1420] sm:$0xff] }
  0xc2   :  { %1614 = vmatpush.msrb.mxu3 %v782_v21  ;;  %1556 = vmatpush.msrb.mxu0 %v682_v22  ;;  %v744_v29 = vld [vmem:[%s5994_s1 + $0x1630] sm:$0xff]  ;;  %v742_v43 = vld [vmem:[%s5994_s1 + $0x1620] sm:$0xff] }
  0xc3   :  { %1575 = vmatpush.msrb.mxu1 %v716_v23  ;;  %1596 = vmatpush.msrb.mxu2 %v746_v24  ;;  %v712_v39 = vld [vmem:[%s5994_s1 + $0x1530] sm:$0xff]  ;;  %v710_v47 = vld [vmem:[%s5994_s1 + $0x1520] sm:$0xff] }
  0xc4   :  { %1615 = vmatpush.msrb.mxu3 %v780_v25  ;;  %1557 = vmatpush.msrb.mxu0 %v680_v26  ;;  %v776_v44 = vld [vmem:[%s5994_s1 + $0x1730] sm:$0xff]  ;;  %v774_v53 = vld [vmem:[%s5994_s1 + $0x1720] sm:$0xff] }
  0xc5   :  { %1576 = vmatpush.msrb.mxu1 %v714_v27  ;;  %1597 = vmatpush.msrb.mxu2 %v744_v29  ;;  %v676_v46 = vld [vmem:[%s5994_s1 + $0x1410] sm:$0xff]  ;;  %v674_v54 = vld [vmem:[%s5994_s1 + $0x1400] sm:$0xff] }
  0xc6   :  { %1616 = vmatpush.msrb.mxu3 %v778_v31  ;;  %1558 = vmatpush.msrb.mxu0 %v678_v38  ;;  %v740_v52 = vld [vmem:[%s5994_s1 + $0x1610] sm:$0xff]  ;;  %v738_v56 = vld [vmem:[%s5994_s1 + $0x1600] sm:$0xff] }
  0xc7   :  { %1577 = vmatpush.msrb.mxu1 %v712_v39  ;;  %1598 = vmatpush.msrb.mxu2 %v742_v43  ;;  %v708_v55 = vld [vmem:[%s5994_s1 + $0x1510] sm:$0xff]  ;;  %v706_v60 = vld [vmem:[%s5994_s1 + $0x1500] sm:$0xff] }
  0xc8   :  { %1617 = vmatpush.msrb.mxu3 %v776_v44  ;;  %1559 = vmatpush.msrb.mxu0 %v676_v46  ;;  %v772_v57 = vld [vmem:[%s5994_s1 + $0x1710] sm:$0xff]  ;;  %v770_v61 = vld [vmem:[%s5994_s1 + $0x1700] sm:$0xff] }
  0xc9   :  { %1578 = vmatpush.msrb.mxu1 %v710_v47  ;;  %1599 = vmatpush.msrb.mxu2 %v740_v52  ;;  %v832_v58 = vld [vmem:[%s5994_s1 + $0x18f0] sm:$0xff]  ;;  %v830_v62 = vld [vmem:[%s5994_s1 + $0x18e0] sm:$0xff] }
  0xca   :  { %1618 = vmatpush.msrb.mxu3 %v774_v53  ;;  %1560 = vmatpush.msrb.mxu0 %v674_v54  ;;  %v896_v59 = vld [vmem:[%s5994_s1 + $0x1af0] sm:$0xff]  ;;  %v894_v4 = vld [vmem:[%s5994_s1 + $0x1ae0] sm:$0xff] }
  0xcb   :  { %1579 = vmatpush.msrb.mxu1 %v708_v55  ;;  %1600 = vmatpush.msrb.mxu2 %v738_v56  ;;  %v864_v63 = vld [vmem:[%s5994_s1 + $0x19f0] sm:$0xff]  ;;  %v862_v11 = vld [vmem:[%s5994_s1 + $0x19e0] sm:$0xff] }
  0xcc   :  { %1619 = vmatpush.msrb.mxu3 %v772_v57  ;;  %1561 = vmatmul.f32.vlgmr.msrb.gmra.mxu0 %v3702_v34  ;;  %v928_v9 = vld [vmem:[%s5994_s1 + $0x1bf0] sm:$0xff]  ;;  %v926_v13 = vld [vmem:[%s5994_s1 + $0x1be0] sm:$0xff] }
  0xcd   :  { %1601 = vmatmul.f32.vlgmr.msrb.gmra.mxu2 %v3704_v35  ;;  %1625 = vmatpush.msra.mxu0 %v832_v58  ;;  %v828_v10 = vld [vmem:[%s5994_s1 + $0x18d0] sm:$0xff]  ;;  %v826_v14 = vld [vmem:[%s5994_s1 + $0x18c0] sm:$0xff] }
  0xce   :  { %1665 = vmatpush.msra.mxu2 %v896_v59  ;;  %1580 = vmatpush.msrb.mxu1 %v706_v60  ;;  %v892_v12 = vld [vmem:[%s5994_s1 + $0x1ad0] sm:$0xff]  ;;  %v890_v16 = vld [vmem:[%s5994_s1 + $0x1ac0] sm:$0xff] }
  0xcf   :  { %1620 = vmatpush.msrb.mxu3 %v770_v61  ;;  %1581 = vmatmul.f32.vlgmr.msrb.gmra.mxu1 %v3706_v36  ;;  %v860_v15 = vld [vmem:[%s5994_s1 + $0x19d0] sm:$0xff]  ;;  %v858_v19 = vld [vmem:[%s5994_s1 + $0x19c0] sm:$0xff] }
  0xd0   :  { %1621 = vmatmul.f32.vlgmr.msrb.gmra.mxu3 %v3708_v37  ;;  %1626 = vmatpush.msra.mxu0 %v830_v62  ;;  %v924_v17 = vld [vmem:[%s5994_s1 + $0x1bd0] sm:$0xff]  ;;  %v922_v21 = vld [vmem:[%s5994_s1 + $0x1bc0] sm:$0xff] }
  0xd1   :  { %1645 = vmatpush.msra.mxu1 %v864_v63  ;;  %1666 = vmatpush.msra.mxu2 %v894_v4  ;;  %v824_v18 = vld [vmem:[%s5994_s1 + $0x18b0] sm:$0xff]  ;;  %v822_v22 = vld [vmem:[%s5994_s1 + $0x18a0] sm:$0xff] }
  0xd2   :  { %1685 = vmatpush.msra.mxu3 %v928_v9  ;;  %1627 = vmatpush.msra.mxu0 %v828_v10  ;;  %v888_v20 = vld [vmem:[%s5994_s1 + $0x1ab0] sm:$0xff]  ;;  %v886_v24 = vld [vmem:[%s5994_s1 + $0x1aa0] sm:$0xff] }
  0xd3   :  { %1646 = vmatpush.msra.mxu1 %v862_v11  ;;  %1667 = vmatpush.msra.mxu2 %v892_v12  ;;  %v856_v23 = vld [vmem:[%s5994_s1 + $0x19b0] sm:$0xff]  ;;  %v854_v27 = vld [vmem:[%s5994_s1 + $0x19a0] sm:$0xff] }
  0xd4   :  { %1686 = vmatpush.msra.mxu3 %v926_v13  ;;  %1628 = vmatpush.msra.mxu0 %v826_v14  ;;  %v920_v25 = vld [vmem:[%s5994_s1 + $0x1bb0] sm:$0xff]  ;;  %v918_v31 = vld [vmem:[%s5994_s1 + $0x1ba0] sm:$0xff] }
  0xd5   :  { %1647 = vmatpush.msra.mxu1 %v860_v15  ;;  %1668 = vmatpush.msra.mxu2 %v890_v16  ;;  %v820_v26 = vld [vmem:[%s5994_s1 + $0x1890] sm:$0xff]  ;;  %v818_v38 = vld [vmem:[%s5994_s1 + $0x1880] sm:$0xff] }
  0xd6   :  { %1687 = vmatpush.msra.mxu3 %v924_v17  ;;  %1629 = vmatpush.msra.mxu0 %v824_v18  ;;  %v884_v29 = vld [vmem:[%s5994_s1 + $0x1a90] sm:$0xff]  ;;  %v882_v43 = vld [vmem:[%s5994_s1 + $0x1a80] sm:$0xff] }
  0xd7   :  { %1648 = vmatpush.msra.mxu1 %v858_v19  ;;  %1669 = vmatpush.msra.mxu2 %v888_v20  ;;  %v852_v39 = vld [vmem:[%s5994_s1 + $0x1990] sm:$0xff]  ;;  %v850_v47 = vld [vmem:[%s5994_s1 + $0x1980] sm:$0xff] }
  0xd8   :  { %1688 = vmatpush.msra.mxu3 %v922_v21  ;;  %1630 = vmatpush.msra.mxu0 %v822_v22  ;;  %v916_v44 = vld [vmem:[%s5994_s1 + $0x1b90] sm:$0xff]  ;;  %v914_v53 = vld [vmem:[%s5994_s1 + $0x1b80] sm:$0xff] }
  0xd9   :  { %1649 = vmatpush.msra.mxu1 %v856_v23  ;;  %1670 = vmatpush.msra.mxu2 %v886_v24  ;;  %v816_v46 = vld [vmem:[%s5994_s1 + $0x1870] sm:$0xff]  ;;  %v814_v54 = vld [vmem:[%s5994_s1 + $0x1860] sm:$0xff] }
  0xda   :  { %1689 = vmatpush.msra.mxu3 %v920_v25  ;;  %1631 = vmatpush.msra.mxu0 %v820_v26  ;;  %v880_v52 = vld [vmem:[%s5994_s1 + $0x1a70] sm:$0xff]  ;;  %v878_v56 = vld [vmem:[%s5994_s1 + $0x1a60] sm:$0xff] }
  0xdb   :  { %1650 = vmatpush.msra.mxu1 %v854_v27  ;;  %1671 = vmatpush.msra.mxu2 %v884_v29  ;;  %v848_v55 = vld [vmem:[%s5994_s1 + $0x1970] sm:$0xff]  ;;  %v846_v59 = vld [vmem:[%s5994_s1 + $0x1960] sm:$0xff] }
  0xdc   :  { %1690 = vmatpush.msra.mxu3 %v918_v31  ;;  %1632 = vmatpush.msra.mxu0 %v818_v38  ;;  %v912_v57 = vld [vmem:[%s5994_s1 + $0x1b70] sm:$0xff]  ;;  %v910_v61 = vld [vmem:[%s5994_s1 + $0x1b60] sm:$0xff] }
  0xdd   :  { %1651 = vmatpush.msra.mxu1 %v852_v39  ;;  %1672 = vmatpush.msra.mxu2 %v882_v43  ;;  %v812_v58 = vld [vmem:[%s5994_s1 + $0x1850] sm:$0xff]  ;;  %v810_v62 = vld [vmem:[%s5994_s1 + $0x1840] sm:$0xff]  ;;  %v1106_v43 = vld.sshfl [vmem:[#allocation1 + $0x8] sm:$0xff pattern:$0x73625140] }
  0xde   :  { %1691 = vmatpush.msra.mxu3 %v916_v44  ;;  %1633 = vmatpush.msra.mxu0 %v816_v46  ;;  %v876_v60 = vld [vmem:[%s5994_s1 + $0x1a50] sm:$0xff]  ;;  %v874_v4 = vld [vmem:[%s5994_s1 + $0x1a40] sm:$0xff]  ;;  %v1108_v44 = vld.sshfl [vmem:[#allocation1 + $0x18] sm:$0xff pattern:$0x73625140] }
  0xdf   :  { %1652 = vmatpush.msra.mxu1 %v850_v47  ;;  %1673 = vmatpush.msra.mxu2 %v880_v52  ;;  %v844_v63 = vld [vmem:[%s5994_s1 + $0x1950] sm:$0xff]  ;;  %v842_v11 = vld [vmem:[%s5994_s1 + $0x1940] sm:$0xff] }
  0xe0   :  { %1692 = vmatpush.msra.mxu3 %v914_v53  ;;  %1634 = vmatpush.msra.mxu0 %v814_v54  ;;  %v908_v9 = vld [vmem:[%s5994_s1 + $0x1b50] sm:$0xff]  ;;  %v906_v13 = vld [vmem:[%s5994_s1 + $0x1b40] sm:$0xff] }
  0xe1   :  { %1653 = vmatpush.msra.mxu1 %v848_v55  ;;  %1674 = vmatpush.msra.mxu2 %v878_v56  ;;  %v808_v10 = vld [vmem:[%s5994_s1 + $0x1830] sm:$0xff]  ;;  %v806_v14 = vld [vmem:[%s5994_s1 + $0x1820] sm:$0xff] }
  0xe2   :  { %1693 = vmatpush.msra.mxu3 %v912_v57  ;;  %1635 = vmatpush.msra.mxu0 %v812_v58  ;;  %v872_v12 = vld [vmem:[%s5994_s1 + $0x1a30] sm:$0xff]  ;;  %v870_v16 = vld [vmem:[%s5994_s1 + $0x1a20] sm:$0xff] }
  0xe3   :  { %1654 = vmatpush.msra.mxu1 %v846_v59  ;;  %1675 = vmatpush.msra.mxu2 %v876_v60  ;;  %v840_v15 = vld [vmem:[%s5994_s1 + $0x1930] sm:$0xff]  ;;  %v838_v19 = vld [vmem:[%s5994_s1 + $0x1920] sm:$0xff] }
  0xe4   :  { %1694 = vmatpush.msra.mxu3 %v910_v61  ;;  %1636 = vmatpush.msra.mxu0 %v810_v62  ;;  %v904_v17 = vld [vmem:[%s5994_s1 + $0x1b30] sm:$0xff]  ;;  %v902_v21 = vld [vmem:[%s5994_s1 + $0x1b20] sm:$0xff] }
  0xe5   :  { %1655 = vmatpush.msra.mxu1 %v844_v63  ;;  %1676 = vmatpush.msra.mxu2 %v874_v4  ;;  %v804_v18 = vld [vmem:[%s5994_s1 + $0x1810] sm:$0xff]  ;;  %v802_v22 = vld [vmem:[%s5994_s1 + $0x1800] sm:$0xff] }
  0xe6   :  { %1695 = vmatpush.msra.mxu3 %v908_v9  ;;  %1637 = vmatpush.msra.mxu0 %v808_v10  ;;  %v868_v20 = vld [vmem:[%s5994_s1 + $0x1a10] sm:$0xff]  ;;  %v866_v24 = vld [vmem:[%s5994_s1 + $0x1a00] sm:$0xff] }
  0xe7   :  { %1656 = vmatpush.msra.mxu1 %v842_v11  ;;  %1677 = vmatpush.msra.mxu2 %v872_v12  ;;  %v836_v23 = vld [vmem:[%s5994_s1 + $0x1910] sm:$0xff]  ;;  %v1105_v26 = vld.sshfl [vmem:[#allocation1] sm:$0xff pattern:$0x73625140] }
  0xe8   :  { %1696 = vmatpush.msra.mxu3 %v906_v13  ;;  %1638 = vmatpush.msra.mxu0 %v806_v14  ;;  %v900_v25 = vld [vmem:[%s5994_s1 + $0x1b10] sm:$0xff]  ;;  %v834_v38 = vld [vmem:[%s5994_s1 + $0x1900] sm:$0xff] }
  0xe9   :  { %1657 = vmatpush.msra.mxu1 %v840_v15  ;;  %1678 = vmatpush.msra.mxu2 %v870_v16  ;;  %v1107_v27 = vld.sshfl [vmem:[#allocation1 + $0x10] sm:$0xff pattern:$0x73625140]  ;;  %v898_v39 = vld [vmem:[%s5994_s1 + $0x1b00] sm:$0xff] }
  0xea   :  { %1697 = vmatpush.msra.mxu3 %v904_v17  ;;  %1639 = vmatpush.msra.mxu0 %v804_v18  ;;  %v960_v29 = vld [vmem:[%s5994_s1 + $0x1cf0] sm:$0xff]  ;;  %v958_v46 = vld [vmem:[%s5994_s1 + $0x1ce0] sm:$0xff] }
  0xeb   :  { %1658 = vmatpush.msra.mxu1 %v838_v19  ;;  %1679 = vmatpush.msra.mxu2 %v868_v20  ;;  %v1024_v31 = vld [vmem:[%s5994_s1 + $0x1ef0] sm:$0xff]  ;;  %v1022_v52 = vld [vmem:[%s5994_s1 + $0x1ee0] sm:$0xff] }
  0xec   :  { %1698 = vmatpush.msra.mxu3 %v902_v21  ;;  %1640 = vmatpush.msra.mxu0 %v802_v22  ;;  %v992_v47 = vld [vmem:[%s5994_s1 + $0x1df0] sm:$0xff]  ;;  %v990_v55 = vld [vmem:[%s5994_s1 + $0x1de0] sm:$0xff] }
  0xed   :  { %1659 = vmatpush.msra.mxu1 %v836_v23  ;;  %1680 = vmatpush.msra.mxu2 %v866_v24  ;;  %v1056_v53 = vld [vmem:[%s5994_s1 + $0x1ff0] sm:$0xff]  ;;  %v1054_v57 = vld [vmem:[%s5994_s1 + $0x1fe0] sm:$0xff] }
  0xee   :  { %1699 = vmatpush.msra.mxu3 %v900_v25  ;;  %1641 = vmatmul.f32.vlgmr.msra.gmra.mxu0 %v1105_v26  ;;  %v956_v54 = vld [vmem:[%s5994_s1 + $0x1cd0] sm:$0xff]  ;;  %v954_v58 = vld [vmem:[%s5994_s1 + $0x1cc0] sm:$0xff] }
  0xef   :  { %1681 = vmatmul.f32.vlgmr.msra.gmra.mxu2 %v1107_v27  ;;  %1705 = vmatpush.msrb.mxu0 %v960_v29  ;;  %v1020_v56 = vld [vmem:[%s5994_s1 + $0x1ed0] sm:$0xff]  ;;  %v1018_v60 = vld [vmem:[%s5994_s1 + $0x1ec0] sm:$0xff] }
  0xf0   :  { %1745 = vmatpush.msrb.mxu2 %v1024_v31  ;;  %1660 = vmatpush.msra.mxu1 %v834_v38  ;;  %v988_v59 = vld [vmem:[%s5994_s1 + $0x1dd0] sm:$0xff]  ;;  %v986_v63 = vld [vmem:[%s5994_s1 + $0x1dc0] sm:$0xff] }
  0xf1   :  { %1700 = vmatpush.msra.mxu3 %v898_v39  ;;  %1661 = vmatmul.f32.vlgmr.msra.gmra.mxu1 %v1106_v43  ;;  %v1052_v61 = vld [vmem:[%s5994_s1 + $0x1fd0] sm:$0xff]  ;;  %v1050_v9 = vld [vmem:[%s5994_s1 + $0x1fc0] sm:$0xff] }
  0xf2   :  { %1701 = vmatmul.f32.vlgmr.msra.gmra.mxu3 %v1108_v44  ;;  %1706 = vmatpush.msrb.mxu0 %v958_v46  ;;  %v952_v62 = vld [vmem:[%s5994_s1 + $0x1cb0] sm:$0xff]  ;;  %v950_v10 = vld [vmem:[%s5994_s1 + $0x1ca0] sm:$0xff] }
  0xf3   :  { %1725 = vmatpush.msrb.mxu1 %v992_v47  ;;  %1746 = vmatpush.msrb.mxu2 %v1022_v52  ;;  %v1016_v4 = vld [vmem:[%s5994_s1 + $0x1eb0] sm:$0xff]  ;;  %v1014_v12 = vld [vmem:[%s5994_s1 + $0x1ea0] sm:$0xff] }
  0xf4   :  { %1765 = vmatpush.msrb.mxu3 %v1056_v53  ;;  %1707 = vmatpush.msrb.mxu0 %v956_v54  ;;  %v984_v11 = vld [vmem:[%s5994_s1 + $0x1db0] sm:$0xff]  ;;  %v982_v15 = vld [vmem:[%s5994_s1 + $0x1da0] sm:$0xff] }
  0xf5   :  { %1726 = vmatpush.msrb.mxu1 %v990_v55  ;;  %1747 = vmatpush.msrb.mxu2 %v1020_v56  ;;  %v1048_v13 = vld [vmem:[%s5994_s1 + $0x1fb0] sm:$0xff]  ;;  %v1046_v17 = vld [vmem:[%s5994_s1 + $0x1fa0] sm:$0xff] }
  0xf6   :  { %1766 = vmatpush.msrb.mxu3 %v1054_v57  ;;  %1708 = vmatpush.msrb.mxu0 %v954_v58  ;;  %v948_v14 = vld [vmem:[%s5994_s1 + $0x1c90] sm:$0xff]  ;;  %v946_v18 = vld [vmem:[%s5994_s1 + $0x1c80] sm:$0xff] }
  0xf7   :  { %1727 = vmatpush.msrb.mxu1 %v988_v59  ;;  %1748 = vmatpush.msrb.mxu2 %v1018_v60  ;;  %v1012_v16 = vld [vmem:[%s5994_s1 + $0x1e90] sm:$0xff]  ;;  %v1010_v20 = vld [vmem:[%s5994_s1 + $0x1e80] sm:$0xff] }
  0xf8   :  { %1767 = vmatpush.msrb.mxu3 %v1052_v61  ;;  %1709 = vmatpush.msrb.mxu0 %v952_v62  ;;  %v980_v19 = vld [vmem:[%s5994_s1 + $0x1d90] sm:$0xff]  ;;  %v978_v23 = vld [vmem:[%s5994_s1 + $0x1d80] sm:$0xff] }
  0xf9   :  { %1728 = vmatpush.msrb.mxu1 %v986_v63  ;;  %1749 = vmatpush.msrb.mxu2 %v1016_v4  ;;  %v1044_v21 = vld [vmem:[%s5994_s1 + $0x1f90] sm:$0xff]  ;;  %v1042_v25 = vld [vmem:[%s5994_s1 + $0x1f80] sm:$0xff] }
  0xfa   :  { %1768 = vmatpush.msrb.mxu3 %v1050_v9  ;;  %1710 = vmatpush.msrb.mxu0 %v950_v10  ;;  %v944_v22 = vld [vmem:[%s5994_s1 + $0x1c70] sm:$0xff]  ;;  %v942_v26 = vld [vmem:[%s5994_s1 + $0x1c60] sm:$0xff] }
  0xfb   :  { %1729 = vmatpush.msrb.mxu1 %v984_v11  ;;  %1750 = vmatpush.msrb.mxu2 %v1014_v12  ;;  %v1008_v24 = vld [vmem:[%s5994_s1 + $0x1e70] sm:$0xff]  ;;  %v1006_v29 = vld [vmem:[%s5994_s1 + $0x1e60] sm:$0xff] }
  0xfc   :  { %1769 = vmatpush.msrb.mxu3 %v1048_v13  ;;  %1711 = vmatpush.msrb.mxu0 %v948_v14  ;;  %v976_v27 = vld [vmem:[%s5994_s1 + $0x1d70] sm:$0xff]  ;;  %v974_v39 = vld [vmem:[%s5994_s1 + $0x1d60] sm:$0xff] }
  0xfd   :  { %1730 = vmatpush.msrb.mxu1 %v982_v15  ;;  %1751 = vmatpush.msrb.mxu2 %v1012_v16  ;;  %v1040_v31 = vld [vmem:[%s5994_s1 + $0x1f70] sm:$0xff]  ;;  %v1038_v44 = vld [vmem:[%s5994_s1 + $0x1f60] sm:$0xff]  ;;  %v65_v16 = vld [vmem:[%s5994_s1 + $0xf8] sm:$0xff] }
  0xfe   :  { %1770 = vmatpush.msrb.mxu3 %v1046_v17  ;;  %1712 = vmatpush.msrb.mxu0 %v946_v18  ;;  %v940_v38 = vld [vmem:[%s5994_s1 + $0x1c50] sm:$0xff]  ;;  %v938_v46 = vld [vmem:[%s5994_s1 + $0x1c40] sm:$0xff]  ;;  %v129_v17 = vld [vmem:[%s5994_s1 + $0x2f8] sm:$0xff] }
  0xff   :  { %1731 = vmatpush.msrb.mxu1 %v980_v19  ;;  %1752 = vmatpush.msrb.mxu2 %v1010_v20  ;;  %v1004_v43 = vld [vmem:[%s5994_s1 + $0x1e50] sm:$0xff]  ;;  %v1002_v52 = vld [vmem:[%s5994_s1 + $0x1e40] sm:$0xff]  ;;  %v1110_v20 = vld.sshfl [vmem:[#allocation1 + $0x28] sm:$0xff pattern:$0x73625140] }
 0x100   :  { %1771 = vmatpush.msrb.mxu3 %v1044_v21  ;;  %1713 = vmatpush.msrb.mxu0 %v944_v22  ;;  %v972_v47 = vld [vmem:[%s5994_s1 + $0x1d50] sm:$0xff]  ;;  %v970_v55 = vld [vmem:[%s5994_s1 + $0x1d40] sm:$0xff]  ;;  %v1112_v21 = vld.sshfl [vmem:[#allocation1 + $0x38] sm:$0xff pattern:$0x73625140] }
 0x101   :  { %1732 = vmatpush.msrb.mxu1 %v978_v23  ;;  %1753 = vmatpush.msrb.mxu2 %v1008_v24  ;;  %v1036_v53 = vld [vmem:[%s5994_s1 + $0x1f50] sm:$0xff]  ;;  %v1034_v57 = vld [vmem:[%s5994_s1 + $0x1f40] sm:$0xff]  ;;  %v63_v22 = vld [vmem:[%s5994_s1 + $0xe8] sm:$0xff] }
 0x102   :  { %1772 = vmatpush.msrb.mxu3 %v1042_v25  ;;  %1714 = vmatpush.msrb.mxu0 %v942_v26  ;;  %v936_v54 = vld [vmem:[%s5994_s1 + $0x1c30] sm:$0xff]  ;;  %v934_v58 = vld [vmem:[%s5994_s1 + $0x1c20] sm:$0xff]  ;;  %v97_v23 = vld [vmem:[%s5994_s1 + $0x1f8] sm:$0xff] }
 0x103   :  { %1733 = vmatpush.msrb.mxu1 %v976_v27  ;;  %1754 = vmatpush.msrb.mxu2 %v1006_v29  ;;  %v1000_v56 = vld [vmem:[%s5994_s1 + $0x1e30] sm:$0xff]  ;;  %v998_v60 = vld [vmem:[%s5994_s1 + $0x1e20] sm:$0xff]  ;;  %v127_v24 = vld [vmem:[%s5994_s1 + $0x2e8] sm:$0xff] }
 0x104   :  { %1773 = vmatpush.msrb.mxu3 %v1040_v31  ;;  %1715 = vmatpush.msrb.mxu0 %v940_v38  ;;  %v968_v59 = vld [vmem:[%s5994_s1 + $0x1d30] sm:$0xff]  ;;  %v966_v63 = vld [vmem:[%s5994_s1 + $0x1d20] sm:$0xff]  ;;  %v161_v25 = vld [vmem:[%s5994_s1 + $0x3f8] sm:$0xff] }
 0x105   :  { %1734 = vmatpush.msrb.mxu1 %v974_v39  ;;  %1755 = vmatpush.msrb.mxu2 %v1004_v43  ;;  %v1032_v61 = vld [vmem:[%s5994_s1 + $0x1f30] sm:$0xff]  ;;  %v1030_v9 = vld [vmem:[%s5994_s1 + $0x1f20] sm:$0xff]  ;;  %v61_v26 = vld [vmem:[%s5994_s1 + $0xd8] sm:$0xff] }
 0x106   :  { %1774 = vmatpush.msrb.mxu3 %v1038_v44  ;;  %1716 = vmatpush.msrb.mxu0 %v938_v46  ;;  %v932_v62 = vld [vmem:[%s5994_s1 + $0x1c10] sm:$0xff]  ;;  %v930_v10 = vld [vmem:[%s5994_s1 + $0x1c00] sm:$0xff]  ;;  %v95_v27 = vld [vmem:[%s5994_s1 + $0x1e8] sm:$0xff] }
 0x107   :  { %1735 = vmatpush.msrb.mxu1 %v972_v47  ;;  %1756 = vmatpush.msrb.mxu2 %v1002_v52  ;;  %v996_v4 = vld [vmem:[%s5994_s1 + $0x1e10] sm:$0xff]  ;;  %v994_v12 = vld [vmem:[%s5994_s1 + $0x1e00] sm:$0xff]  ;;  %v125_v29 = vld [vmem:[%s5994_s1 + $0x2d8] sm:$0xff] }
 0x108   :  { %1775 = vmatpush.msrb.mxu3 %v1036_v53  ;;  %1717 = vmatpush.msrb.mxu0 %v936_v54  ;;  %v964_v11 = vld [vmem:[%s5994_s1 + $0x1d10] sm:$0xff]  ;;  %v1109_v14 = vld.sshfl [vmem:[#allocation1 + $0x20] sm:$0xff pattern:$0x73625140]  ;;  %v159_v31 = vld [vmem:[%s5994_s1 + $0x3e8] sm:$0xff] }
 0x109   :  { %1736 = vmatpush.msrb.mxu1 %v970_v55  ;;  %1757 = vmatpush.msrb.mxu2 %v1000_v56  ;;  %v1028_v13 = vld [vmem:[%s5994_s1 + $0x1f10] sm:$0xff]  ;;  %v962_v18 = vld [vmem:[%s5994_s1 + $0x1d00] sm:$0xff]  ;;  %v59_v38 = vld [vmem:[%s5994_s1 + $0xc8] sm:$0xff] }
 0x10a   :  { %1776 = vmatpush.msrb.mxu3 %v1034_v57  ;;  %1718 = vmatpush.msrb.mxu0 %v934_v58  ;;  %v1111_v15 = vld.sshfl [vmem:[#allocation1 + $0x30] sm:$0xff pattern:$0x73625140]  ;;  %v1026_v19 = vld [vmem:[%s5994_s1 + $0x1f00] sm:$0xff]  ;;  %v93_v39 = vld [vmem:[%s5994_s1 + $0x1d8] sm:$0xff] }
 0x10b   :  { %1737 = vmatpush.msrb.mxu1 %v968_v59  ;;  %1758 = vmatpush.msrb.mxu2 %v998_v60  ;;  %v123_v43 = vld [vmem:[%s5994_s1 + $0x2c8] sm:$0xff]  ;;  %v157_v44 = vld [vmem:[%s5994_s1 + $0x3d8] sm:$0xff] }
 0x10c   :  { %1777 = vmatpush.msrb.mxu3 %v1032_v61  ;;  %1719 = vmatpush.msrb.mxu0 %v932_v62  ;;  %v57_v46 = vld [vmem:[%s5994_s1 + $0xb8] sm:$0xff]  ;;  %v91_v47 = vld [vmem:[%s5994_s1 + $0x1c8] sm:$0xff] }
 0x10d   :  { %1738 = vmatpush.msrb.mxu1 %v966_v63  ;;  %1759 = vmatpush.msrb.mxu2 %v996_v4  ;;  %v121_v52 = vld [vmem:[%s5994_s1 + $0x2b8] sm:$0xff]  ;;  %v155_v53 = vld [vmem:[%s5994_s1 + $0x3c8] sm:$0xff] }
 0x10e   :  { %1778 = vmatpush.msrb.mxu3 %v1030_v9  ;;  %1720 = vmatpush.msrb.mxu0 %v930_v10  ;;  %v55_v54 = vld [vmem:[%s5994_s1 + $0xa8] sm:$0xff]  ;;  %v89_v55 = vld [vmem:[%s5994_s1 + $0x1b8] sm:$0xff] }
 0x10f   :  { %1739 = vmatpush.msrb.mxu1 %v964_v11  ;;  %1760 = vmatpush.msrb.mxu2 %v994_v12  ;;  %v119_v56 = vld [vmem:[%s5994_s1 + $0x2a8] sm:$0xff]  ;;  %v153_v57 = vld [vmem:[%s5994_s1 + $0x3b8] sm:$0xff] }
 0x110   :  { %1779 = vmatpush.msrb.mxu3 %v1028_v13  ;;  %1721 = vmatmul.f32.vlgmr.msrb.gmra.mxu0 %v1109_v14  ;;  %v53_v58 = vld [vmem:[%s5994_s1 + $0x98] sm:$0xff]  ;;  %v87_v59 = vld [vmem:[%s5994_s1 + $0x1a8] sm:$0xff] }
 0x111   :  { %1761 = vmatmul.f32.vlgmr.msrb.gmra.mxu2 %v1111_v15  ;;  %1785 = vmatpush.msra.mxu0 %v65_v16  ;;  %v117_v60 = vld [vmem:[%s5994_s1 + $0x298] sm:$0xff]  ;;  %v151_v61 = vld [vmem:[%s5994_s1 + $0x3a8] sm:$0xff] }
 0x112   :  { %1825 = vmatpush.msra.mxu2 %v129_v17  ;;  %1740 = vmatpush.msrb.mxu1 %v962_v18  ;;  %v51_v62 = vld [vmem:[%s5994_s1 + $0x88] sm:$0xff]  ;;  %v85_v63 = vld [vmem:[%s5994_s1 + $0x198] sm:$0xff] }
 0x113   :  { %1780 = vmatpush.msrb.mxu3 %v1026_v19  ;;  %1741 = vmatmul.f32.vlgmr.msrb.gmra.mxu1 %v1110_v20  ;;  %v115_v4 = vld [vmem:[%s5994_s1 + $0x288] sm:$0xff]  ;;  %v149_v9 = vld [vmem:[%s5994_s1 + $0x398] sm:$0xff] }
 0x114   :  { %1781 = vmatmul.f32.vlgmr.msrb.gmra.mxu3 %v1112_v21  ;;  %1786 = vmatpush.msra.mxu0 %v63_v22  ;;  %v49_v10 = vld [vmem:[%s5994_s1 + $0x78] sm:$0xff]  ;;  %v83_v11 = vld [vmem:[%s5994_s1 + $0x188] sm:$0xff] }
 0x115   :  { %1805 = vmatpush.msra.mxu1 %v97_v23  ;;  %1826 = vmatpush.msra.mxu2 %v127_v24  ;;  %v113_v12 = vld [vmem:[%s5994_s1 + $0x278] sm:$0xff]  ;;  %v147_v13 = vld [vmem:[%s5994_s1 + $0x388] sm:$0xff] }
 0x116   :  { %1845 = vmatpush.msra.mxu3 %v161_v25  ;;  %1787 = vmatpush.msra.mxu0 %v61_v26  ;;  %v47_v14 = vld [vmem:[%s5994_s1 + $0x68] sm:$0xff]  ;;  %v81_v15 = vld [vmem:[%s5994_s1 + $0x178] sm:$0xff] }
 0x117   :  { %1806 = vmatpush.msra.mxu1 %v95_v27  ;;  %1827 = vmatpush.msra.mxu2 %v125_v29  ;;  %v111_v16 = vld [vmem:[%s5994_s1 + $0x268] sm:$0xff]  ;;  %v145_v17 = vld [vmem:[%s5994_s1 + $0x378] sm:$0xff] }
 0x118   :  { %1846 = vmatpush.msra.mxu3 %v159_v31  ;;  %1788 = vmatpush.msra.mxu0 %v59_v38  ;;  %v45_v18 = vld [vmem:[%s5994_s1 + $0x58] sm:$0xff]  ;;  %v79_v19 = vld [vmem:[%s5994_s1 + $0x168] sm:$0xff] }
 0x119   :  { %1807 = vmatpush.msra.mxu1 %v93_v39  ;;  %1828 = vmatpush.msra.mxu2 %v123_v43  ;;  %v109_v20 = vld [vmem:[%s5994_s1 + $0x258] sm:$0xff]  ;;  %v143_v21 = vld [vmem:[%s5994_s1 + $0x368] sm:$0xff] }
 0x11a   :  { %1847 = vmatpush.msra.mxu3 %v157_v44  ;;  %1789 = vmatpush.msra.mxu0 %v57_v46  ;;  %v43_v22 = vld [vmem:[%s5994_s1 + $0x48] sm:$0xff]  ;;  %v77_v23 = vld [vmem:[%s5994_s1 + $0x158] sm:$0xff] }
 0x11b   :  { %1808 = vmatpush.msra.mxu1 %v91_v47  ;;  %1829 = vmatpush.msra.mxu2 %v121_v52  ;;  %v107_v24 = vld [vmem:[%s5994_s1 + $0x248] sm:$0xff]  ;;  %v141_v25 = vld [vmem:[%s5994_s1 + $0x358] sm:$0xff] }
 0x11c   :  { %1848 = vmatpush.msra.mxu3 %v155_v53  ;;  %1790 = vmatpush.msra.mxu0 %v55_v54  ;;  %v41_v26 = vld [vmem:[%s5994_s1 + $0x38] sm:$0xff]  ;;  %v75_v27 = vld [vmem:[%s5994_s1 + $0x148] sm:$0xff] }
 0x11d   :  { %1809 = vmatpush.msra.mxu1 %v89_v55  ;;  %1830 = vmatpush.msra.mxu2 %v119_v56  ;;  %v105_v29 = vld [vmem:[%s5994_s1 + $0x238] sm:$0xff]  ;;  %v139_v31 = vld [vmem:[%s5994_s1 + $0x348] sm:$0xff] }
 0x11e   :  { %1849 = vmatpush.msra.mxu3 %v153_v57  ;;  %1791 = vmatpush.msra.mxu0 %v53_v58  ;;  %v39_v38 = vld [vmem:[%s5994_s1 + $0x28] sm:$0xff]  ;;  %v73_v39 = vld [vmem:[%s5994_s1 + $0x138] sm:$0xff] }
 0x11f   :  { %1810 = vmatpush.msra.mxu1 %v87_v59  ;;  %1831 = vmatpush.msra.mxu2 %v117_v60  ;;  %v103_v43 = vld [vmem:[%s5994_s1 + $0x228] sm:$0xff]  ;;  %v137_v44 = vld [vmem:[%s5994_s1 + $0x338] sm:$0xff] }
 0x120   :  { %1850 = vmatpush.msra.mxu3 %v151_v61  ;;  %1792 = vmatpush.msra.mxu0 %v51_v62  ;;  %v37_v46 = vld [vmem:[%s5994_s1 + $0x18] sm:$0xff]  ;;  %v71_v47 = vld [vmem:[%s5994_s1 + $0x128] sm:$0xff] }
 0x121   :  { %1811 = vmatpush.msra.mxu1 %v85_v63  ;;  %1832 = vmatpush.msra.mxu2 %v115_v4  ;;  %v101_v52 = vld [vmem:[%s5994_s1 + $0x218] sm:$0xff]  ;;  %v135_v53 = vld [vmem:[%s5994_s1 + $0x328] sm:$0xff] }
 0x122   :  { %1851 = vmatpush.msra.mxu3 %v149_v9  ;;  %1793 = vmatpush.msra.mxu0 %v49_v10  ;;  %v35_v54 = vld [vmem:[%s5994_s1 + $0x8] sm:$0xff]  ;;  %v69_v55 = vld [vmem:[%s5994_s1 + $0x118] sm:$0xff] }
 0x123   :  { %1812 = vmatpush.msra.mxu1 %v83_v11  ;;  %1833 = vmatpush.msra.mxu2 %v113_v12  ;;  %v99_v56 = vld [vmem:[%s5994_s1 + $0x208] sm:$0xff]  ;;  %v133_v57 = vld [vmem:[%s5994_s1 + $0x318] sm:$0xff] }
 0x124   :  { %1852 = vmatpush.msra.mxu3 %v147_v13  ;;  %1794 = vmatpush.msra.mxu0 %v47_v14  ;;  %v193_v58 = vld [vmem:[%s5994_s1 + $0x4f8] sm:$0xff]  ;;  %v67_v60 = vld [vmem:[%s5994_s1 + $0x108] sm:$0xff] }
 0x125   :  { %1813 = vmatpush.msra.mxu1 %v81_v15  ;;  %1834 = vmatpush.msra.mxu2 %v111_v16  ;;  %v257_v59 = vld [vmem:[%s5994_s1 + $0x6f8] sm:$0xff]  ;;  %v131_v61 = vld [vmem:[%s5994_s1 + $0x308] sm:$0xff] }
 0x126   :  { %1853 = vmatpush.msra.mxu3 %v145_v17  ;;  %1795 = vmatpush.msra.mxu0 %v45_v18  ;;  %v191_v62 = vld [vmem:[%s5994_s1 + $0x4e8] sm:$0xff]  ;;  %v225_v63 = vld [vmem:[%s5994_s1 + $0x5f8] sm:$0xff] }
 0x127   :  { %1814 = vmatpush.msra.mxu1 %v79_v19  ;;  %1835 = vmatpush.msra.mxu2 %v109_v20  ;;  %v255_v4 = vld [vmem:[%s5994_s1 + $0x6e8] sm:$0xff]  ;;  %v289_v9 = vld [vmem:[%s5994_s1 + $0x7f8] sm:$0xff] }
 0x128   :  { %1854 = vmatpush.msra.mxu3 %v143_v21  ;;  %1796 = vmatpush.msra.mxu0 %v43_v22  ;;  %v189_v10 = vld [vmem:[%s5994_s1 + $0x4d8] sm:$0xff]  ;;  %v223_v11 = vld [vmem:[%s5994_s1 + $0x5e8] sm:$0xff] }
 0x129   :  { %1815 = vmatpush.msra.mxu1 %v77_v23  ;;  %1836 = vmatpush.msra.mxu2 %v107_v24  ;;  %v253_v12 = vld [vmem:[%s5994_s1 + $0x6d8] sm:$0xff]  ;;  %v287_v13 = vld [vmem:[%s5994_s1 + $0x7e8] sm:$0xff] }
 0x12a   :  { %1855 = vmatpush.msra.mxu3 %v141_v25  ;;  %1797 = vmatpush.msra.mxu0 %v41_v26  ;;  %v187_v14 = vld [vmem:[%s5994_s1 + $0x4c8] sm:$0xff]  ;;  %v221_v15 = vld [vmem:[%s5994_s1 + $0x5d8] sm:$0xff] }
 0x12b   :  { %1816 = vmatpush.msra.mxu1 %v75_v27  ;;  %1837 = vmatpush.msra.mxu2 %v105_v29  ;;  %v251_v16 = vld [vmem:[%s5994_s1 + $0x6c8] sm:$0xff]  ;;  %v285_v17 = vld [vmem:[%s5994_s1 + $0x7d8] sm:$0xff] }
 0x12c   :  { %1856 = vmatpush.msra.mxu3 %v139_v31  ;;  %1798 = vmatpush.msra.mxu0 %v39_v38  ;;  %v185_v18 = vld [vmem:[%s5994_s1 + $0x4b8] sm:$0xff]  ;;  %v219_v19 = vld [vmem:[%s5994_s1 + $0x5c8] sm:$0xff] }
 0x12d   :  { %1817 = vmatpush.msra.mxu1 %v73_v39  ;;  %1838 = vmatpush.msra.mxu2 %v103_v43  ;;  %v249_v20 = vld [vmem:[%s5994_s1 + $0x6b8] sm:$0xff]  ;;  %v283_v21 = vld [vmem:[%s5994_s1 + $0x7c8] sm:$0xff] }
 0x12e   :  { %1857 = vmatpush.msra.mxu3 %v137_v44  ;;  %1799 = vmatpush.msra.mxu0 %v37_v46  ;;  %v183_v22 = vld [vmem:[%s5994_s1 + $0x4a8] sm:$0xff]  ;;  %v217_v23 = vld [vmem:[%s5994_s1 + $0x5b8] sm:$0xff] }
 0x12f   :  { %1818 = vmatpush.msra.mxu1 %v71_v47  ;;  %1839 = vmatpush.msra.mxu2 %v101_v52  ;;  %v247_v24 = vld [vmem:[%s5994_s1 + $0x6a8] sm:$0xff]  ;;  %v281_v25 = vld [vmem:[%s5994_s1 + $0x7b8] sm:$0xff] }
 0x130   :  { %1858 = vmatpush.msra.mxu3 %v135_v53  ;;  %1800 = vmatpush.msra.mxu0 %v35_v54  ;;  %v181_v26 = vld [vmem:[%s5994_s1 + $0x498] sm:$0xff]  ;;  %v215_v27 = vld [vmem:[%s5994_s1 + $0x5a8] sm:$0xff] }
 0x131   :  { %1819 = vmatpush.msra.mxu1 %v69_v55  ;;  %1840 = vmatpush.msra.mxu2 %v99_v56  ;;  %v245_v29 = vld [vmem:[%s5994_s1 + $0x698] sm:$0xff]  ;;  %v279_v31 = vld [vmem:[%s5994_s1 + $0x7a8] sm:$0xff] }
 0x132   :  { %1859 = vmatpush.msra.mxu3 %v133_v57  ;;  %1865 = vmatpush.msrb.mxu0 %v193_v58  ;;  %v179_v38 = vld [vmem:[%s5994_s1 + $0x488] sm:$0xff]  ;;  %v213_v39 = vld [vmem:[%s5994_s1 + $0x598] sm:$0xff] }
 0x133   :  { %1905 = vmatpush.msrb.mxu2 %v257_v59  ;;  %1820 = vmatpush.msra.mxu1 %v67_v60  ;;  %v243_v43 = vld [vmem:[%s5994_s1 + $0x688] sm:$0xff]  ;;  %v277_v44 = vld [vmem:[%s5994_s1 + $0x798] sm:$0xff] }
 0x134   :  { %1860 = vmatpush.msra.mxu3 %v131_v61  ;;  %1866 = vmatpush.msrb.mxu0 %v191_v62  ;;  %v177_v46 = vld [vmem:[%s5994_s1 + $0x478] sm:$0xff]  ;;  %v211_v47 = vld [vmem:[%s5994_s1 + $0x588] sm:$0xff] }
 0x135   :  { %1885 = vmatpush.msrb.mxu1 %v225_v63  ;;  %1906 = vmatpush.msrb.mxu2 %v255_v4  ;;  %v241_v52 = vld [vmem:[%s5994_s1 + $0x678] sm:$0xff]  ;;  %v275_v53 = vld [vmem:[%s5994_s1 + $0x788] sm:$0xff] }
 0x136   :  { %1925 = vmatpush.msrb.mxu3 %v289_v9  ;;  %1867 = vmatpush.msrb.mxu0 %v189_v10  ;;  %v175_v54 = vld [vmem:[%s5994_s1 + $0x468] sm:$0xff]  ;;  %v209_v55 = vld [vmem:[%s5994_s1 + $0x578] sm:$0xff] }
 0x137   :  { %1886 = vmatpush.msrb.mxu1 %v223_v11  ;;  %1907 = vmatpush.msrb.mxu2 %v253_v12  ;;  %v239_v56 = vld [vmem:[%s5994_s1 + $0x668] sm:$0xff]  ;;  %v273_v57 = vld [vmem:[%s5994_s1 + $0x778] sm:$0xff] }
 0x138   :  { %1926 = vmatpush.msrb.mxu3 %v287_v13  ;;  %1868 = vmatpush.msrb.mxu0 %v187_v14  ;;  %v173_v58 = vld [vmem:[%s5994_s1 + $0x458] sm:$0xff]  ;;  %v207_v59 = vld [vmem:[%s5994_s1 + $0x568] sm:$0xff] }
 0x139   :  { %1887 = vmatpush.msrb.mxu1 %v221_v15  ;;  %1908 = vmatpush.msrb.mxu2 %v251_v16  ;;  %v237_v60 = vld [vmem:[%s5994_s1 + $0x658] sm:$0xff]  ;;  %v271_v61 = vld [vmem:[%s5994_s1 + $0x768] sm:$0xff] }
 0x13a   :  { %1927 = vmatpush.msrb.mxu3 %v285_v17  ;;  %1869 = vmatpush.msrb.mxu0 %v185_v18  ;;  %v171_v62 = vld [vmem:[%s5994_s1 + $0x448] sm:$0xff]  ;;  %v205_v63 = vld [vmem:[%s5994_s1 + $0x558] sm:$0xff] }
 0x13b   :  { %1888 = vmatpush.msrb.mxu1 %v219_v19  ;;  %1909 = vmatpush.msrb.mxu2 %v249_v20  ;;  %v235_v4 = vld [vmem:[%s5994_s1 + $0x648] sm:$0xff]  ;;  %v269_v9 = vld [vmem:[%s5994_s1 + $0x758] sm:$0xff] }
 0x13c   :  { %1928 = vmatpush.msrb.mxu3 %v283_v21  ;;  %1870 = vmatpush.msrb.mxu0 %v183_v22  ;;  %v169_v10 = vld [vmem:[%s5994_s1 + $0x438] sm:$0xff]  ;;  %v203_v11 = vld [vmem:[%s5994_s1 + $0x548] sm:$0xff] }
 0x13d   :  { %1889 = vmatpush.msrb.mxu1 %v217_v23  ;;  %1910 = vmatpush.msrb.mxu2 %v247_v24  ;;  %v233_v12 = vld [vmem:[%s5994_s1 + $0x638] sm:$0xff]  ;;  %v267_v13 = vld [vmem:[%s5994_s1 + $0x748] sm:$0xff] }
 0x13e   :  { %1929 = vmatpush.msrb.mxu3 %v281_v25  ;;  %1871 = vmatpush.msrb.mxu0 %v181_v26  ;;  %v167_v14 = vld [vmem:[%s5994_s1 + $0x428] sm:$0xff]  ;;  %v201_v15 = vld [vmem:[%s5994_s1 + $0x538] sm:$0xff] }
 0x13f   :  { %1890 = vmatpush.msrb.mxu1 %v215_v27  ;;  %1911 = vmatpush.msrb.mxu2 %v245_v29  ;;  %v231_v16 = vld [vmem:[%s5994_s1 + $0x628] sm:$0xff]  ;;  %v265_v17 = vld [vmem:[%s5994_s1 + $0x738] sm:$0xff] }
 0x140   :  { %1930 = vmatpush.msrb.mxu3 %v279_v31  ;;  %1872 = vmatpush.msrb.mxu0 %v179_v38  ;;  %v165_v18 = vld [vmem:[%s5994_s1 + $0x418] sm:$0xff]  ;;  %v199_v19 = vld [vmem:[%s5994_s1 + $0x528] sm:$0xff] }
 0x141   :  { %1891 = vmatpush.msrb.mxu1 %v213_v39  ;;  %1912 = vmatpush.msrb.mxu2 %v243_v43  ;;  %v229_v20 = vld [vmem:[%s5994_s1 + $0x618] sm:$0xff]  ;;  %v263_v21 = vld [vmem:[%s5994_s1 + $0x728] sm:$0xff] }
 0x142   :  { %1931 = vmatpush.msrb.mxu3 %v277_v44  ;;  %1873 = vmatpush.msrb.mxu0 %v177_v46  ;;  %v163_v22 = vld [vmem:[%s5994_s1 + $0x408] sm:$0xff]  ;;  %v197_v23 = vld [vmem:[%s5994_s1 + $0x518] sm:$0xff] }
 0x143   :  { %1892 = vmatpush.msrb.mxu1 %v211_v47  ;;  %1913 = vmatpush.msrb.mxu2 %v241_v52  ;;  %v227_v24 = vld [vmem:[%s5994_s1 + $0x608] sm:$0xff]  ;;  %v261_v25 = vld [vmem:[%s5994_s1 + $0x718] sm:$0xff] }
 0x144   :  { %1932 = vmatpush.msrb.mxu3 %v275_v53  ;;  %1874 = vmatpush.msrb.mxu0 %v175_v54  ;;  %v321_v26 = vld [vmem:[%s5994_s1 + $0x8f8] sm:$0xff]  ;;  %v195_v29 = vld [vmem:[%s5994_s1 + $0x508] sm:$0xff] }
 0x145   :  { %1893 = vmatpush.msrb.mxu1 %v209_v55  ;;  %1914 = vmatpush.msrb.mxu2 %v239_v56  ;;  %v385_v27 = vld [vmem:[%s5994_s1 + $0xaf8] sm:$0xff]  ;;  %v259_v31 = vld [vmem:[%s5994_s1 + $0x708] sm:$0xff] }
 0x146   :  { %1933 = vmatpush.msrb.mxu3 %v273_v57  ;;  %1875 = vmatpush.msrb.mxu0 %v173_v58  ;;  %v319_v38 = vld [vmem:[%s5994_s1 + $0x8e8] sm:$0xff]  ;;  %v353_v39 = vld [vmem:[%s5994_s1 + $0x9f8] sm:$0xff] }
 0x147   :  { %1894 = vmatpush.msrb.mxu1 %v207_v59  ;;  %1915 = vmatpush.msrb.mxu2 %v237_v60  ;;  %v383_v43 = vld [vmem:[%s5994_s1 + $0xae8] sm:$0xff]  ;;  %v381_v46 = vld [vmem:[%s5994_s1 + $0xad8] sm:$0xff] }
 0x148   :  { %1934 = vmatpush.msrb.mxu3 %v271_v61  ;;  %1876 = vmatpush.msrb.mxu0 %v171_v62  ;;  %v351_v44 = vld [vmem:[%s5994_s1 + $0x9e8] sm:$0xff]  ;;  %v349_v47 = vld [vmem:[%s5994_s1 + $0x9d8] sm:$0xff] }
 0x149   :  { %1895 = vmatpush.msrb.mxu1 %v205_v63  ;;  %1916 = vmatpush.msrb.mxu2 %v235_v4  ;;  %v379_v52 = vld [vmem:[%s5994_s1 + $0xac8] sm:$0xff]  ;;  %v413_v53 = vld [vmem:[%s5994_s1 + $0xbd8] sm:$0xff] }
 0x14a   :  { %1935 = vmatpush.msrb.mxu3 %v269_v9  ;;  %1877 = vmatpush.msrb.mxu0 %v169_v10  ;;  %v313_v54 = vld [vmem:[%s5994_s1 + $0x8b8] sm:$0xff]  ;;  %v347_v55 = vld [vmem:[%s5994_s1 + $0x9c8] sm:$0xff] }
 0x14b   :  { %1896 = vmatpush.msrb.mxu1 %v203_v11  ;;  %1917 = vmatpush.msrb.mxu2 %v233_v12  ;;  %v377_v56 = vld [vmem:[%s5994_s1 + $0xab8] sm:$0xff]  ;;  %v411_v57 = vld [vmem:[%s5994_s1 + $0xbc8] sm:$0xff] }
 0x14c   :  { %1936 = vmatpush.msrb.mxu3 %v267_v13  ;;  %1878 = vmatpush.msrb.mxu0 %v167_v14  ;;  %v311_v58 = vld [vmem:[%s5994_s1 + $0x8a8] sm:$0xff]  ;;  %v345_v59 = vld [vmem:[%s5994_s1 + $0x9b8] sm:$0xff] }
 0x14d   :  { %1897 = vmatpush.msrb.mxu1 %v201_v15  ;;  %1918 = vmatpush.msrb.mxu2 %v231_v16  ;;  %v375_v60 = vld [vmem:[%s5994_s1 + $0xaa8] sm:$0xff]  ;;  %v309_v61 = vld [vmem:[%s5994_s1 + $0x898] sm:$0xff] }
 0x14e   :  { %1937 = vmatpush.msrb.mxu3 %v265_v17  ;;  %1879 = vmatpush.msrb.mxu0 %v165_v18  ;;  %v343_v62 = vld [vmem:[%s5994_s1 + $0x9a8] sm:$0xff]  ;;  %v341_v4 = vld [vmem:[%s5994_s1 + $0x998] sm:$0xff] }
 0x14f   :  { %1898 = vmatpush.msrb.mxu1 %v199_v19  ;;  %1919 = vmatpush.msrb.mxu2 %v229_v20  ;;  %v407_v63 = vld [vmem:[%s5994_s1 + $0xba8] sm:$0xff]  ;;  %v405_v10 = vld [vmem:[%s5994_s1 + $0xb98] sm:$0xff] }
 0x150   :  { %1938 = vmatpush.msrb.mxu3 %v263_v21  ;;  %1880 = vmatpush.msrb.mxu0 %v163_v22  ;;  %v371_v9 = vld [vmem:[%s5994_s1 + $0xa88] sm:$0xff]  ;;  %v369_v12 = vld [vmem:[%s5994_s1 + $0xa78] sm:$0xff] }
 0x151   :  { %1899 = vmatpush.msrb.mxu1 %v197_v23  ;;  %1920 = vmatpush.msrb.mxu2 %v227_v24  ;;  %v339_v11 = vld [vmem:[%s5994_s1 + $0x988] sm:$0xff]  ;;  %v337_v15 = vld [vmem:[%s5994_s1 + $0x978] sm:$0xff] }
 0x152   :  { %1939 = vmatpush.msrb.mxu3 %v261_v25  ;;  %1801 = vmatmul.f32.vlgmr.msra.gmra.mxu0 %v2964_v48  ;;  %v417_v48 = vld [vmem:[%s5994_s1 + $0xbf8] sm:$0xff]  ;;  %v403_v13 = vld [vmem:[%s5994_s1 + $0xb88] sm:$0xff] }
 0x153   :  { %1841 = vmatmul.f32.vlgmr.msra.gmra.mxu2 %v2966_v49  ;;  %1945 = vmatpush.msra.mxu0 %v321_v26  ;;  %v317_v49 = vld [vmem:[%s5994_s1 + $0x8d8] sm:$0xff]  ;;  %v303_v14 = vld [vmem:[%s5994_s1 + $0x868] sm:$0xff] }
 0x154   :  { %1985 = vmatpush.msra.mxu2 %v385_v27  ;;  %1900 = vmatpush.msrb.mxu1 %v195_v29  ;;  %v367_v16 = vld [vmem:[%s5994_s1 + $0xa68] sm:$0xff]  ;;  %v401_v17 = vld [vmem:[%s5994_s1 + $0xb78] sm:$0xff] }
 0x155   :  { %1940 = vmatpush.msrb.mxu3 %v259_v31  ;;  %1821 = vmatmul.f32.vlgmr.msra.gmra.mxu1 %v2968_v50  ;;  %v415_v50 = vld [vmem:[%s5994_s1 + $0xbe8] sm:$0xff]  ;;  %v301_v18 = vld [vmem:[%s5994_s1 + $0x858] sm:$0xff] }
 0x156   :  { %1861 = vmatmul.f32.vlgmr.msra.gmra.mxu3 %v2970_v51  ;;  %1946 = vmatpush.msra.mxu0 %v319_v38  ;;  %v315_v51 = vld [vmem:[%s5994_s1 + $0x8c8] sm:$0xff]  ;;  %v365_v20 = vld [vmem:[%s5994_s1 + $0xa58] sm:$0xff] }
 0x157   :  { %1965 = vmatpush.msra.mxu1 %v353_v39  ;;  %1986 = vmatpush.msra.mxu2 %v383_v43  ;;  %v335_v19 = vld [vmem:[%s5994_s1 + $0x968] sm:$0xff]  ;;  %v333_v23 = vld [vmem:[%s5994_s1 + $0x958] sm:$0xff] }
 0x158   :  { %2005 = vmatpush.msra.mxu3 %v417_v48  ;;  %1947 = vmatpush.msra.mxu0 %v317_v49  ;;  %v399_v21 = vld [vmem:[%s5994_s1 + $0xb68] sm:$0xff]  ;;  %v397_v25 = vld [vmem:[%s5994_s1 + $0xb58] sm:$0xff] }
 0x159   :  { %1966 = vmatpush.msra.mxu1 %v351_v44  ;;  %1987 = vmatpush.msra.mxu2 %v381_v46  ;;  %v299_v22 = vld [vmem:[%s5994_s1 + $0x848] sm:$0xff]  ;;  %v297_v26 = vld [vmem:[%s5994_s1 + $0x838] sm:$0xff] }
 0x15a   :  { %2006 = vmatpush.msra.mxu3 %v415_v50  ;;  %1948 = vmatpush.msra.mxu0 %v315_v51  ;;  %v363_v24 = vld [vmem:[%s5994_s1 + $0xa48] sm:$0xff]  ;;  %v361_v29 = vld [vmem:[%s5994_s1 + $0xa38] sm:$0xff] }
 0x15b   :  { %1967 = vmatpush.msra.mxu1 %v349_v47  ;;  %1988 = vmatpush.msra.mxu2 %v379_v52  ;;  %v331_v27 = vld [vmem:[%s5994_s1 + $0x948] sm:$0xff]  ;;  %v329_v39 = vld [vmem:[%s5994_s1 + $0x938] sm:$0xff] }
 0x15c   :  { %2007 = vmatpush.msra.mxu3 %v413_v53  ;;  %1921 = vmatmul.f32.vlgmr.msrb.gmra.mxu2 %v3008_v0  ;;  %v409_v0 = vld [vmem:[%s5994_s1 + $0xbb8] sm:$0xff]  ;;  %v395_v31 = vld [vmem:[%s5994_s1 + $0xb48] sm:$0xff] }
 0x15d   :  { %1949 = vmatpush.msra.mxu0 %v313_v54  ;;  %1968 = vmatpush.msra.mxu1 %v347_v55  ;;  %v295_v38 = vld [vmem:[%s5994_s1 + $0x828] sm:$0xff]  ;;  %v393_v48 = vld [vmem:[%s5994_s1 + $0xb38] sm:$0xff] }
 0x15e   :  { %1989 = vmatpush.msra.mxu2 %v377_v56  ;;  %2008 = vmatpush.msra.mxu3 %v411_v57  ;;  %v359_v43 = vld [vmem:[%s5994_s1 + $0xa28] sm:$0xff]  ;;  %v293_v49 = vld [vmem:[%s5994_s1 + $0x818] sm:$0xff] }
 0x15f   :  { %1881 = vmatmul.f32.vlgmr.msrb.gmra.mxu0 %v3010_v1  ;;  %1941 = vmatmul.f32.vlgmr.msrb.gmra.mxu3 %v3012_v2  ;;  %v373_v1 = vld [vmem:[%s5994_s1 + $0xa98] sm:$0xff]  ;;  %v307_v2 = vld [vmem:[%s5994_s1 + $0x888] sm:$0xff] }
 0x160   :  { %1950 = vmatpush.msra.mxu0 %v311_v58  ;;  %1969 = vmatpush.msra.mxu1 %v345_v59  ;;  %v327_v44 = vld [vmem:[%s5994_s1 + $0x928] sm:$0xff]  ;;  %v357_v46 = vld [vmem:[%s5994_s1 + $0xa18] sm:$0xff] }
 0x161   :  { %1990 = vmatpush.msra.mxu2 %v375_v60  ;;  %2009 = vmatpush.msra.mxu3 %v409_v0  ;;  %v391_v50 = vld [vmem:[%s5994_s1 + $0xb28] sm:$0xff]  ;;  %v325_v47 = vld [vmem:[%s5994_s1 + $0x918] sm:$0xff] }
 0x162   :  { %1901 = vmatmul.f32.vlgmr.msrb.gmra.mxu1 %v3014_v3  ;;  %1951 = vmatpush.msra.mxu0 %v309_v61  ;;  %v305_v3 = vld [vmem:[%s5994_s1 + $0x878] sm:$0xff]  ;;  %v291_v51 = vld [vmem:[%s5994_s1 + $0x808] sm:$0xff] }
 0x163   :  { %1970 = vmatpush.msra.mxu1 %v343_v62  ;;  %1991 = vmatpush.msra.mxu2 %v373_v1  ;;  %v355_v52 = vld [vmem:[%s5994_s1 + $0xa08] sm:$0xff]  ;;  %v389_v53 = vld [vmem:[%s5994_s1 + $0xb18] sm:$0xff] }
 0x164   :  { %2010 = vmatpush.msra.mxu3 %v407_v63  ;;  %1952 = vmatpush.msra.mxu0 %v307_v2  ;;  %v449_v54 = vld [vmem:[%s5994_s1 + $0xcf8] sm:$0xff]  ;;  %v323_v56 = vld [vmem:[%s5994_s1 + $0x908] sm:$0xff] }
 0x165   :  { %1971 = vmatpush.msra.mxu1 %v341_v4  ;;  %1992 = vmatpush.msra.mxu2 %v371_v9  ;;  %v513_v55 = vld [vmem:[%s5994_s1 + $0xef8] sm:$0xff]  ;;  %v387_v57 = vld [vmem:[%s5994_s1 + $0xb08] sm:$0xff] }
 0x166   :  { %2011 = vmatpush.msra.mxu3 %v405_v10  ;;  %1953 = vmatpush.msra.mxu0 %v305_v3  ;;  %v447_v58 = vld [vmem:[%s5994_s1 + $0xce8] sm:$0xff]  ;;  %v481_v59 = vld [vmem:[%s5994_s1 + $0xdf8] sm:$0xff] }
 0x167   :  { %1972 = vmatpush.msra.mxu1 %v339_v11  ;;  %1993 = vmatpush.msra.mxu2 %v369_v12  ;;  %v511_v60 = vld [vmem:[%s5994_s1 + $0xee8] sm:$0xff]  ;;  %v509_v61 = vld [vmem:[%s5994_s1 + $0xed8] sm:$0xff] }
 0x168   :  { %2012 = vmatpush.msra.mxu3 %v403_v13  ;;  %1954 = vmatpush.msra.mxu0 %v303_v14  ;;  %v479_v0 = vld [vmem:[%s5994_s1 + $0xde8] sm:$0xff]  ;;  %v477_v62 = vld [vmem:[%s5994_s1 + $0xdd8] sm:$0xff] }
 0x169   :  { %1973 = vmatpush.msra.mxu1 %v337_v15  ;;  %1994 = vmatpush.msra.mxu2 %v367_v16  ;;  %v507_v1 = vld [vmem:[%s5994_s1 + $0xec8] sm:$0xff]  ;;  %v541_v63 = vld [vmem:[%s5994_s1 + $0xfd8] sm:$0xff] }
 0x16a   :  { %2013 = vmatpush.msra.mxu3 %v401_v17  ;;  %1955 = vmatpush.msra.mxu0 %v301_v18  ;;  %v441_v2 = vld [vmem:[%s5994_s1 + $0xcb8] sm:$0xff]  ;;  %v475_v4 = vld [vmem:[%s5994_s1 + $0xdc8] sm:$0xff] }
 0x16b   :  { %1974 = vmatpush.msra.mxu1 %v335_v19  ;;  %1995 = vmatpush.msra.mxu2 %v365_v20  ;;  %v505_v9 = vld [vmem:[%s5994_s1 + $0xeb8] sm:$0xff]  ;;  %v539_v10 = vld [vmem:[%s5994_s1 + $0xfc8] sm:$0xff] }
 0x16c   :  { %2014 = vmatpush.msra.mxu3 %v399_v21  ;;  %1956 = vmatpush.msra.mxu0 %v299_v22  ;;  %v439_v3 = vld [vmem:[%s5994_s1 + $0xca8] sm:$0xff]  ;;  %v473_v11 = vld [vmem:[%s5994_s1 + $0xdb8] sm:$0xff] }
 0x16d   :  { %1975 = vmatpush.msra.mxu1 %v333_v23  ;;  %1996 = vmatpush.msra.mxu2 %v363_v24  ;;  %v503_v12 = vld [vmem:[%s5994_s1 + $0xea8] sm:$0xff]  ;;  %v537_v13 = vld [vmem:[%s5994_s1 + $0xfb8] sm:$0xff] }
 0x16e   :  { %2015 = vmatpush.msra.mxu3 %v397_v25  ;;  %1957 = vmatpush.msra.mxu0 %v297_v26  ;;  %v437_v14 = vld [vmem:[%s5994_s1 + $0xc98] sm:$0xff]  ;;  %v471_v15 = vld [vmem:[%s5994_s1 + $0xda8] sm:$0xff] }
 0x16f   :  { %1976 = vmatpush.msra.mxu1 %v331_v27  ;;  %1997 = vmatpush.msra.mxu2 %v361_v29  ;;  %v501_v16 = vld [vmem:[%s5994_s1 + $0xe98] sm:$0xff]  ;;  %v535_v17 = vld [vmem:[%s5994_s1 + $0xfa8] sm:$0xff] }
 0x170   :  { %2016 = vmatpush.msra.mxu3 %v395_v31  ;;  %1958 = vmatpush.msra.mxu0 %v295_v38  ;;  %v435_v18 = vld [vmem:[%s5994_s1 + $0xc88] sm:$0xff]  ;;  %v469_v19 = vld [vmem:[%s5994_s1 + $0xd98] sm:$0xff] }
 0x171   :  { %1977 = vmatpush.msra.mxu1 %v329_v39  ;;  %1998 = vmatpush.msra.mxu2 %v359_v43  ;;  %v499_v20 = vld [vmem:[%s5994_s1 + $0xe88] sm:$0xff]  ;;  %v533_v21 = vld [vmem:[%s5994_s1 + $0xf98] sm:$0xff] }
 0x172   :  { %2017 = vmatpush.msra.mxu3 %v393_v48  ;;  %1959 = vmatpush.msra.mxu0 %v293_v49  ;;  %v433_v22 = vld [vmem:[%s5994_s1 + $0xc78] sm:$0xff]  ;;  %v467_v23 = vld [vmem:[%s5994_s1 + $0xd88] sm:$0xff] }
 0x173   :  { %1978 = vmatpush.msra.mxu1 %v327_v44  ;;  %1999 = vmatpush.msra.mxu2 %v357_v46  ;;  %v497_v24 = vld [vmem:[%s5994_s1 + $0xe78] sm:$0xff]  ;;  %v531_v25 = vld [vmem:[%s5994_s1 + $0xf88] sm:$0xff] }
 0x174   :  { %2018 = vmatpush.msra.mxu3 %v391_v50  ;;  %1960 = vmatpush.msra.mxu0 %v291_v51  ;;  %v431_v26 = vld [vmem:[%s5994_s1 + $0xc68] sm:$0xff]  ;;  %v465_v27 = vld [vmem:[%s5994_s1 + $0xd78] sm:$0xff] }
 0x175   :  { %1979 = vmatpush.msra.mxu1 %v325_v47  ;;  %2000 = vmatpush.msra.mxu2 %v355_v52  ;;  %v495_v29 = vld [vmem:[%s5994_s1 + $0xe68] sm:$0xff]  ;;  %v529_v31 = vld [vmem:[%s5994_s1 + $0xf78] sm:$0xff] }
 0x176   :  { %2019 = vmatpush.msra.mxu3 %v389_v53  ;;  %1961 = vmatmul.f32.vlgmr.msra.gmra.mxu0 %v3092_v28  ;;  %v545_v28 = vld [vmem:[%s5994_s1 + $0xff8] sm:$0xff]  ;;  %v463_v39 = vld [vmem:[%s5994_s1 + $0xd68] sm:$0xff] }
 0x177   :  { %2001 = vmatmul.f32.vlgmr.msra.gmra.mxu2 %v3097_v30  ;;  %2025 = vmatpush.msrb.mxu0 %v449_v54  ;;  %v445_v30 = vld [vmem:[%s5994_s1 + $0xcd8] sm:$0xff]  ;;  %v527_v48 = vld [vmem:[%s5994_s1 + $0xf68] sm:$0xff] }
 0x178   :  { %2065 = vmatpush.msrb.mxu2 %v513_v55  ;;  %1980 = vmatpush.msra.mxu1 %v323_v56  ;;  %v429_v38 = vld [vmem:[%s5994_s1 + $0xc58] sm:$0xff]  ;;  %v427_v49 = vld [vmem:[%s5994_s1 + $0xc48] sm:$0xff] }
 0x179   :  { %2020 = vmatpush.msra.mxu3 %v387_v57  ;;  %1981 = vmatmul.f32.vlgmr.msra.gmra.mxu1 %v3102_v32  ;;  %v543_v32 = vld [vmem:[%s5994_s1 + $0xfe8] sm:$0xff]  ;;  %v493_v43 = vld [vmem:[%s5994_s1 + $0xe58] sm:$0xff] }
 0x17a   :  { %2021 = vmatmul.f32.vlgmr.msra.gmra.mxu3 %v3104_v33  ;;  %2026 = vmatpush.msrb.mxu0 %v447_v58  ;;  %v443_v33 = vld [vmem:[%s5994_s1 + $0xcc8] sm:$0xff]  ;;  %v461_v44 = vld [vmem:[%s5994_s1 + $0xd58] sm:$0xff] }
 0x17b   :  { %2045 = vmatpush.msrb.mxu1 %v481_v59  ;;  %2066 = vmatpush.msrb.mxu2 %v511_v60  ;;  %v491_v46 = vld [vmem:[%s5994_s1 + $0xe48] sm:$0xff]  ;;  %v525_v50 = vld [vmem:[%s5994_s1 + $0xf58] sm:$0xff] }
 0x17c   :  { %2085 = vmatpush.msrb.mxu3 %v545_v28  ;;  %2027 = vmatpush.msrb.mxu0 %v445_v30  ;;  %v425_v51 = vld [vmem:[%s5994_s1 + $0xc38] sm:$0xff]  ;;  %v459_v47 = vld [vmem:[%s5994_s1 + $0xd48] sm:$0xff] }
 0x17d   :  { %2046 = vmatpush.msrb.mxu1 %v479_v0  ;;  %2067 = vmatpush.msrb.mxu2 %v509_v61  ;;  %v489_v52 = vld [vmem:[%s5994_s1 + $0xe38] sm:$0xff]  ;;  %v523_v53 = vld [vmem:[%s5994_s1 + $0xf48] sm:$0xff] }
 0x17e   :  { %2086 = vmatpush.msrb.mxu3 %v543_v32  ;;  %2028 = vmatpush.msrb.mxu0 %v443_v33  ;;  %v423_v54 = vld [vmem:[%s5994_s1 + $0xc28] sm:$0xff]  ;;  %v457_v55 = vld [vmem:[%s5994_s1 + $0xd38] sm:$0xff] }
 0x17f   :  { %2047 = vmatpush.msrb.mxu1 %v477_v62  ;;  %2068 = vmatpush.msrb.mxu2 %v507_v1  ;;  %v487_v56 = vld [vmem:[%s5994_s1 + $0xe28] sm:$0xff]  ;;  %v521_v57 = vld [vmem:[%s5994_s1 + $0xf38] sm:$0xff] }
 0x180   :  { %2087 = vmatpush.msrb.mxu3 %v541_v63  ;;  %2029 = vmatpush.msrb.mxu0 %v441_v2  ;;  %v421_v58 = vld [vmem:[%s5994_s1 + $0xc18] sm:$0xff]  ;;  %v455_v59 = vld [vmem:[%s5994_s1 + $0xd28] sm:$0xff] }
 0x181   :  { %2048 = vmatpush.msrb.mxu1 %v475_v4  ;;  %2069 = vmatpush.msrb.mxu2 %v505_v9  ;;  %v485_v60 = vld [vmem:[%s5994_s1 + $0xe18] sm:$0xff]  ;;  %v519_v28 = vld [vmem:[%s5994_s1 + $0xf28] sm:$0xff] }
 0x182   :  { %2088 = vmatpush.msrb.mxu3 %v539_v10  ;;  %2030 = vmatpush.msrb.mxu0 %v439_v3  ;;  %v419_v30 = vld [vmem:[%s5994_s1 + $0xc08] sm:$0xff]  ;;  %v453_v0 = vld [vmem:[%s5994_s1 + $0xd18] sm:$0xff] }
 0x183   :  { %2049 = vmatpush.msrb.mxu1 %v473_v11  ;;  %2070 = vmatpush.msrb.mxu2 %v503_v12  ;;  %v483_v61 = vld [vmem:[%s5994_s1 + $0xe08] sm:$0xff]  ;;  %v517_v32 = vld [vmem:[%s5994_s1 + $0xf18] sm:$0xff] }
 0x184   :  { %2089 = vmatpush.msrb.mxu3 %v537_v13  ;;  %2031 = vmatpush.msrb.mxu0 %v437_v14  ;;  %v577_v33 = vld [vmem:[%s5994_s1 + $0x10f8] sm:$0xff]  ;;  %v451_v1 = vld [vmem:[%s5994_s1 + $0xd08] sm:$0xff] }
 0x185   :  { %2050 = vmatpush.msrb.mxu1 %v471_v15  ;;  %2071 = vmatpush.msrb.mxu2 %v501_v16  ;;  %v641_v62 = vld [vmem:[%s5994_s1 + $0x12f8] sm:$0xff]  ;;  %v515_v63 = vld [vmem:[%s5994_s1 + $0xf08] sm:$0xff] }
 0x186   :  { %2090 = vmatpush.msrb.mxu3 %v535_v17  ;;  %2032 = vmatpush.msrb.mxu0 %v435_v18  ;;  %v575_v2 = vld [vmem:[%s5994_s1 + $0x10e8] sm:$0xff]  ;;  %v609_v4 = vld [vmem:[%s5994_s1 + $0x11f8] sm:$0xff] }
 0x187   :  { %2051 = vmatpush.msrb.mxu1 %v469_v19  ;;  %2072 = vmatpush.msrb.mxu2 %v499_v20  ;;  %v639_v9 = vld [vmem:[%s5994_s1 + $0x12e8] sm:$0xff]  ;;  %v637_v3 = vld [vmem:[%s5994_s1 + $0x12d8] sm:$0xff] }
 0x188   :  { %2091 = vmatpush.msrb.mxu3 %v533_v21  ;;  %2033 = vmatpush.msrb.mxu0 %v433_v22  ;;  %v607_v10 = vld [vmem:[%s5994_s1 + $0x11e8] sm:$0xff]  ;;  %v605_v11 = vld [vmem:[%s5994_s1 + $0x11d8] sm:$0xff] }
 0x189   :  { %2052 = vmatpush.msrb.mxu1 %v467_v23  ;;  %2073 = vmatpush.msrb.mxu2 %v497_v24  ;;  %v635_v12 = vld [vmem:[%s5994_s1 + $0x12c8] sm:$0xff]  ;;  %v669_v13 = vld [vmem:[%s5994_s1 + $0x13d8] sm:$0xff] }
 0x18a   :  { %2092 = vmatpush.msrb.mxu3 %v531_v25  ;;  %2034 = vmatpush.msrb.mxu0 %v431_v26  ;;  %v569_v14 = vld [vmem:[%s5994_s1 + $0x10b8] sm:$0xff]  ;;  %v603_v15 = vld [vmem:[%s5994_s1 + $0x11c8] sm:$0xff] }
 0x18b   :  { %2053 = vmatpush.msrb.mxu1 %v465_v27  ;;  %2074 = vmatpush.msrb.mxu2 %v495_v29  ;;  %v633_v16 = vld [vmem:[%s5994_s1 + $0x12b8] sm:$0xff]  ;;  %v667_v17 = vld [vmem:[%s5994_s1 + $0x13c8] sm:$0xff] }
 0x18c   :  { %2093 = vmatpush.msrb.mxu3 %v529_v31  ;;  %2035 = vmatpush.msrb.mxu0 %v429_v38  ;;  %v567_v18 = vld [vmem:[%s5994_s1 + $0x10a8] sm:$0xff]  ;;  %v601_v19 = vld [vmem:[%s5994_s1 + $0x11b8] sm:$0xff] }
 0x18d   :  { %2054 = vmatpush.msrb.mxu1 %v463_v39  ;;  %2075 = vmatpush.msrb.mxu2 %v493_v43  ;;  %v631_v20 = vld [vmem:[%s5994_s1 + $0x12a8] sm:$0xff]  ;;  %v665_v21 = vld [vmem:[%s5994_s1 + $0x13b8] sm:$0xff] }
 0x18e   :  { %2094 = vmatpush.msrb.mxu3 %v527_v48  ;;  %2036 = vmatpush.msrb.mxu0 %v427_v49  ;;  %v565_v22 = vld [vmem:[%s5994_s1 + $0x1098] sm:$0xff]  ;;  %v599_v23 = vld [vmem:[%s5994_s1 + $0x11a8] sm:$0xff] }
 0x18f   :  { %2055 = vmatpush.msrb.mxu1 %v461_v44  ;;  %2076 = vmatpush.msrb.mxu2 %v491_v46  ;;  %v629_v24 = vld [vmem:[%s5994_s1 + $0x1298] sm:$0xff]  ;;  %v663_v25 = vld [vmem:[%s5994_s1 + $0x13a8] sm:$0xff] }
 0x190   :  { %2095 = vmatpush.msrb.mxu3 %v525_v50  ;;  %2037 = vmatpush.msrb.mxu0 %v425_v51  ;;  %v563_v26 = vld [vmem:[%s5994_s1 + $0x1088] sm:$0xff]  ;;  %v597_v27 = vld [vmem:[%s5994_s1 + $0x1198] sm:$0xff] }
 0x191   :  { %2056 = vmatpush.msrb.mxu1 %v459_v47  ;;  %2077 = vmatpush.msrb.mxu2 %v489_v52  ;;  %v627_v29 = vld [vmem:[%s5994_s1 + $0x1288] sm:$0xff]  ;;  %v661_v31 = vld [vmem:[%s5994_s1 + $0x1398] sm:$0xff] }
 0x192   :  { %2096 = vmatpush.msrb.mxu3 %v523_v53  ;;  %2038 = vmatpush.msrb.mxu0 %v423_v54  ;;  %v561_v38 = vld [vmem:[%s5994_s1 + $0x1078] sm:$0xff]  ;;  %v595_v39 = vld [vmem:[%s5994_s1 + $0x1188] sm:$0xff] }
 0x193   :  { %2057 = vmatpush.msrb.mxu1 %v457_v55  ;;  %2078 = vmatpush.msrb.mxu2 %v487_v56  ;;  %v625_v43 = vld [vmem:[%s5994_s1 + $0x1278] sm:$0xff]  ;;  %v659_v48 = vld [vmem:[%s5994_s1 + $0x1388] sm:$0xff] }
 0x194   :  { %2097 = vmatpush.msrb.mxu3 %v521_v57  ;;  %2039 = vmatpush.msrb.mxu0 %v421_v58  ;;  %v559_v49 = vld [vmem:[%s5994_s1 + $0x1068] sm:$0xff]  ;;  %v593_v44 = vld [vmem:[%s5994_s1 + $0x1178] sm:$0xff] }
 0x195   :  { %2058 = vmatpush.msrb.mxu1 %v455_v59  ;;  %2079 = vmatpush.msrb.mxu2 %v485_v60  ;;  %v623_v46 = vld [vmem:[%s5994_s1 + $0x1268] sm:$0xff]  ;;  %v657_v50 = vld [vmem:[%s5994_s1 + $0x1378] sm:$0xff] }
 0x196   :  { %2098 = vmatpush.msrb.mxu3 %v519_v28  ;;  %2040 = vmatpush.msrb.mxu0 %v419_v30  ;;  %v557_v51 = vld [vmem:[%s5994_s1 + $0x1058] sm:$0xff]  ;;  %v591_v47 = vld [vmem:[%s5994_s1 + $0x1168] sm:$0xff] }
 0x197   :  { %2059 = vmatpush.msrb.mxu1 %v453_v0  ;;  %2080 = vmatpush.msrb.mxu2 %v483_v61  ;;  %v621_v52 = vld [vmem:[%s5994_s1 + $0x1258] sm:$0xff]  ;;  %v655_v53 = vld [vmem:[%s5994_s1 + $0x1368] sm:$0xff] }
 0x198   :  { %2099 = vmatpush.msrb.mxu3 %v517_v32  ;;  %2041 = vmatmul.f32.vlgmr.msrb.gmra.mxu0 %v3288_v40  ;;  %v673_v40 = vld [vmem:[%s5994_s1 + $0x13f8] sm:$0xff]  ;;  %v555_v54 = vld [vmem:[%s5994_s1 + $0x1048] sm:$0xff] }
 0x199   :  { %2081 = vmatmul.f32.vlgmr.msrb.gmra.mxu2 %v3290_v41  ;;  %2105 = vmatpush.msra.mxu0 %v577_v33  ;;  %v573_v41 = vld [vmem:[%s5994_s1 + $0x10d8] sm:$0xff]  ;;  %v619_v56 = vld [vmem:[%s5994_s1 + $0x1248] sm:$0xff] }
 0x19a   :  { %2145 = vmatpush.msra.mxu2 %v641_v62  ;;  %2060 = vmatpush.msrb.mxu1 %v451_v1  ;;  %v589_v55 = vld [vmem:[%s5994_s1 + $0x1158] sm:$0xff]  ;;  %v587_v59 = vld [vmem:[%s5994_s1 + $0x1148] sm:$0xff] }
 0x19b   :  { %2100 = vmatpush.msrb.mxu3 %v515_v63  ;;  %2061 = vmatmul.f32.vlgmr.msrb.gmra.mxu1 %v3292_v42  ;;  %v671_v42 = vld [vmem:[%s5994_s1 + $0x13e8] sm:$0xff]  ;;  %v653_v57 = vld [vmem:[%s5994_s1 + $0x1358] sm:$0xff] }
 0x19c   :  { %2101 = vmatmul.f32.vlgmr.msrb.gmra.mxu3 %v3300_v45  ;;  %2106 = vmatpush.msra.mxu0 %v575_v2  ;;  %v571_v45 = vld [vmem:[%s5994_s1 + $0x10c8] sm:$0xff]  ;;  %v553_v58 = vld [vmem:[%s5994_s1 + $0x1038] sm:$0xff] }
 0x19d   :  { %2125 = vmatpush.msra.mxu1 %v609_v4  ;;  %2146 = vmatpush.msra.mxu2 %v639_v9  ;;  %v617_v60 = vld [vmem:[%s5994_s1 + $0x1238] sm:$0xff]  ;;  %v651_v28 = vld [vmem:[%s5994_s1 + $0x1348] sm:$0xff] }
 0x19e   :  { %2165 = vmatpush.msra.mxu3 %v673_v40  ;;  %2107 = vmatpush.msra.mxu0 %v573_v41  ;;  %v551_v30 = vld [vmem:[%s5994_s1 + $0x1028] sm:$0xff]  ;;  %v585_v0 = vld [vmem:[%s5994_s1 + $0x1138] sm:$0xff] }
 0x19f   :  { %2126 = vmatpush.msra.mxu1 %v607_v10  ;;  %2147 = vmatpush.msra.mxu2 %v637_v3  ;;  %v615_v61 = vld [vmem:[%s5994_s1 + $0x1228] sm:$0xff]  ;;  %v649_v32 = vld [vmem:[%s5994_s1 + $0x1338] sm:$0xff] }
 0x1a0   :  { %2166 = vmatpush.msra.mxu3 %v671_v42  ;;  %2108 = vmatpush.msra.mxu0 %v571_v45  ;;  %v549_v33 = vld [vmem:[%s5994_s1 + $0x1018] sm:$0xff]  ;;  %v583_v62 = vld [vmem:[%s5994_s1 + $0x1128] sm:$0xff] }
 0x1a1   :  { %2127 = vmatpush.msra.mxu1 %v605_v11  ;;  %2148 = vmatpush.msra.mxu2 %v635_v12  ;;  %v613_v1 = vld [vmem:[%s5994_s1 + $0x1218] sm:$0xff]  ;;  %v647_v63 = vld [vmem:[%s5994_s1 + $0x1328] sm:$0xff] }
 0x1a2   :  { %2167 = vmatpush.msra.mxu3 %v669_v13  ;;  %2109 = vmatpush.msra.mxu0 %v569_v14  ;;  %v547_v2 = vld [vmem:[%s5994_s1 + $0x1008] sm:$0xff]  ;;  %v581_v4 = vld [vmem:[%s5994_s1 + $0x1118] sm:$0xff] }
 0x1a3   :  { %2128 = vmatpush.msra.mxu1 %v603_v15  ;;  %2149 = vmatpush.msra.mxu2 %v633_v16  ;;  %v611_v9 = vld [vmem:[%s5994_s1 + $0x1208] sm:$0xff]  ;;  %v645_v40 = vld [vmem:[%s5994_s1 + $0x1318] sm:$0xff] }
 0x1a4   :  { %2168 = vmatpush.msra.mxu3 %v667_v17  ;;  %2110 = vmatpush.msra.mxu0 %v567_v18  ;;  %v705_v41 = vld [vmem:[%s5994_s1 + $0x14f8] sm:$0xff]  ;;  %v579_v3 = vld [vmem:[%s5994_s1 + $0x1108] sm:$0xff] }
 0x1a5   :  { %2129 = vmatpush.msra.mxu1 %v601_v19  ;;  %2150 = vmatpush.msra.mxu2 %v631_v20  ;;  %v769_v10 = vld [vmem:[%s5994_s1 + $0x16f8] sm:$0xff]  ;;  %v643_v42 = vld [vmem:[%s5994_s1 + $0x1308] sm:$0xff] }
 0x1a6   :  { %2169 = vmatpush.msra.mxu3 %v665_v21  ;;  %2111 = vmatpush.msra.mxu0 %v565_v22  ;;  %v703_v45 = vld [vmem:[%s5994_s1 + $0x14e8] sm:$0xff]  ;;  %v737_v11 = vld [vmem:[%s5994_s1 + $0x15f8] sm:$0xff] }
 0x1a7   :  { %2130 = vmatpush.msra.mxu1 %v599_v23  ;;  %2151 = vmatpush.msra.mxu2 %v629_v24  ;;  %v767_v12 = vld [vmem:[%s5994_s1 + $0x16e8] sm:$0xff]  ;;  %v765_v14 = vld [vmem:[%s5994_s1 + $0x16d8] sm:$0xff] }
 0x1a8   :  { %2170 = vmatpush.msra.mxu3 %v663_v25  ;;  %2112 = vmatpush.msra.mxu0 %v563_v26  ;;  %v735_v13 = vld [vmem:[%s5994_s1 + $0x15e8] sm:$0xff]  ;;  %v733_v15 = vld [vmem:[%s5994_s1 + $0x15d8] sm:$0xff] }
 0x1a9   :  { %2131 = vmatpush.msra.mxu1 %v597_v27  ;;  %2152 = vmatpush.msra.mxu2 %v627_v29  ;;  %v763_v16 = vld [vmem:[%s5994_s1 + $0x16c8] sm:$0xff]  ;;  %v797_v17 = vld [vmem:[%s5994_s1 + $0x17d8] sm:$0xff] }
 0x1aa   :  { %2171 = vmatpush.msra.mxu3 %v661_v31  ;;  %2113 = vmatpush.msra.mxu0 %v561_v38  ;;  %v697_v18 = vld [vmem:[%s5994_s1 + $0x14b8] sm:$0xff]  ;;  %v731_v19 = vld [vmem:[%s5994_s1 + $0x15c8] sm:$0xff]  ;;  %v5321_v38 = vld [vmem:[%s5996_s2] ss:$4 sm:$0x3] }
 0x1ab   :  { %2132 = vmatpush.msra.mxu1 %v595_v39  ;;  %2153 = vmatpush.msra.mxu2 %v625_v43  ;;  %v761_v20 = vld [vmem:[%s5994_s1 + $0x16b8] sm:$0xff]  ;;  %v795_v21 = vld [vmem:[%s5994_s1 + $0x17c8] sm:$0xff] }
 0x1ac   :  { %2172 = vmatpush.msra.mxu3 %v659_v48  ;;  %2114 = vmatpush.msra.mxu0 %v559_v49  ;;  %v695_v22 = vld [vmem:[%s5994_s1 + $0x14a8] sm:$0xff]  ;;  %v729_v23 = vld [vmem:[%s5994_s1 + $0x15b8] sm:$0xff] }
 0x1ad   :  { %2133 = vmatpush.msra.mxu1 %v593_v44  ;;  %2154 = vmatpush.msra.mxu2 %v623_v46  ;;  %v759_v24 = vld [vmem:[%s5994_s1 + $0x16a8] sm:$0xff]  ;;  %v793_v25 = vld [vmem:[%s5994_s1 + $0x17b8] sm:$0xff] }
 0x1ae   :  { %2173 = vmatpush.msra.mxu3 %v657_v50  ;;  %2115 = vmatpush.msra.mxu0 %v557_v51  ;;  %v693_v26 = vld [vmem:[%s5994_s1 + $0x1498] sm:$0xff]  ;;  %v727_v27 = vld [vmem:[%s5994_s1 + $0x15a8] sm:$0xff]  ;;  %v1060_v50 = vperm.slane %v5321_v38, 0 }
 0x1af   :  { %2134 = vmatpush.msra.mxu1 %v591_v47  ;;  %2155 = vmatpush.msra.mxu2 %v621_v52  ;;  %v757_v29 = vld [vmem:[%s5994_s1 + $0x1698] sm:$0xff]  ;;  %v791_v31 = vld [vmem:[%s5994_s1 + $0x17a8] sm:$0xff]  ;;  %v1162_v52 = vpop.f32.mrf.mxu0 }
 0x1b0   :  { %2174 = vmatpush.msra.mxu3 %v655_v53  ;;  %2116 = vmatpush.msra.mxu0 %v555_v54  ;;  %v691_v39 = vld [vmem:[%s5994_s1 + $0x1488] sm:$0xff]  ;;  %v725_v43 = vld [vmem:[%s5994_s1 + $0x1598] sm:$0xff] }
 0x1b1   :  { %2135 = vmatpush.msra.mxu1 %v589_v55  ;;  %2156 = vmatpush.msra.mxu2 %v619_v56  ;;  %v755_v48 = vld [vmem:[%s5994_s1 + $0x1688] sm:$0xff]  ;;  %v789_v49 = vld [vmem:[%s5994_s1 + $0x1798] sm:$0xff] }
 0x1b2   :  { %2175 = vmatpush.msra.mxu3 %v653_v57  ;;  %2117 = vmatpush.msra.mxu0 %v553_v58  ;;  %v689_v44 = vld [vmem:[%s5994_s1 + $0x1478] sm:$0xff]  ;;  %v723_v46 = vld [vmem:[%s5994_s1 + $0x1588] sm:$0xff] }
 0x1b3   :  { %2136 = vmatpush.msra.mxu1 %v587_v59  ;;  %2157 = vmatpush.msra.mxu2 %v617_v60  ;;  %v753_v51 = vld [vmem:[%s5994_s1 + $0x1678] sm:$0xff]  ;;  %v787_v47 = vld [vmem:[%s5994_s1 + $0x1788] sm:$0xff]  ;;  %v1163_v59 = vadd.f32 %v1162_v52, %v1060_v50 }
 0x1b4   :  { %2176 = vmatpush.msra.mxu3 %v651_v28  ;;  %2118 = vmatpush.msra.mxu0 %v551_v30  ;;  %v687_v53 = vld [vmem:[%s5994_s1 + $0x1468] sm:$0xff]  ;;  %v721_v54 = vld [vmem:[%s5994_s1 + $0x1578] sm:$0xff]  ;;  %v1182_v30 = vpop.f32.mrf.mxu1 }
 0x1b5   :  { %2137 = vmatpush.msra.mxu1 %v585_v0  ;;  %2158 = vmatpush.msra.mxu2 %v615_v61  ;;  %v751_v55 = vld [vmem:[%s5994_s1 + $0x1668] sm:$0xff]  ;;  %v785_v56 = vld [vmem:[%s5994_s1 + $0x1778] sm:$0xff] }
 0x1b6   :  { %2177 = vmatpush.msra.mxu3 %v649_v32  ;;  %2119 = vmatpush.msra.mxu0 %v549_v33  ;;  %v685_v57 = vld [vmem:[%s5994_s1 + $0x1458] sm:$0xff]  ;;  %v719_v58 = vld [vmem:[%s5994_s1 + $0x1568] sm:$0xff] }
 0x1b7   :  { %2138 = vmatpush.msra.mxu1 %v583_v62  ;;  %2159 = vmatpush.msra.mxu2 %v613_v1  ;;  %v749_v60 = vld [vmem:[%s5994_s1 + $0x1658] sm:$0xff]  ;;  %v783_v28 = vld [vmem:[%s5994_s1 + $0x1768] sm:$0xff] }
 0x1b8   :  { %2178 = vmatpush.msra.mxu3 %v647_v63  ;;  %2120 = vmatpush.msra.mxu0 %v547_v2  ;;  %v683_v0 = vld [vmem:[%s5994_s1 + $0x1448] sm:$0xff]  ;;  %v717_v61 = vld [vmem:[%s5994_s1 + $0x1558] sm:$0xff]  ;;  %v1183_v63 = vadd.f32 %v1182_v30, %v1163_v59 }
 0x1b9   :  { %2139 = vmatpush.msra.mxu1 %v581_v4  ;;  %2160 = vmatpush.msra.mxu2 %v611_v9  ;;  %v747_v32 = vld [vmem:[%s5994_s1 + $0x1648] sm:$0xff]  ;;  %v781_v33 = vld [vmem:[%s5994_s1 + $0x1758] sm:$0xff]  ;;  %v1202_v9 = vpop.f32.mrf.mxu2 }
 0x1ba   :  { %2179 = vmatpush.msra.mxu3 %v645_v40  ;;  %2121 = vmatmul.f32.vlgmr.msra.gmra.mxu0 %v3495_v5  ;;  %v801_v5 = vld [vmem:[%s5994_s1 + $0x17f8] sm:$0xff]  ;;  %v715_v1 = vld [vmem:[%s5994_s1 + $0x1548] sm:$0xff] }
 0x1bb   :  { %2161 = vmatmul.f32.vlgmr.msra.gmra.mxu2 %v3497_v6  ;;  %2185 = vmatpush.msrb.mxu0 %v705_v41  ;;  %v701_v6 = vld [vmem:[%s5994_s1 + $0x14d8] sm:$0xff]  ;;  %v779_v4 = vld [vmem:[%s5994_s1 + $0x1748] sm:$0xff] }
 0x1bc   :  { %2225 = vmatpush.msrb.mxu2 %v769_v10  ;;  %2140 = vmatpush.msra.mxu1 %v579_v3  ;;  %v681_v62 = vld [vmem:[%s5994_s1 + $0x1438] sm:$0xff]  ;;  %v679_v40 = vld [vmem:[%s5994_s1 + $0x1428] sm:$0xff] }
 0x1bd   :  { %2180 = vmatpush.msra.mxu3 %v643_v42  ;;  %2141 = vmatmul.f32.vlgmr.msra.gmra.mxu1 %v3499_v7  ;;  %v799_v7 = vld [vmem:[%s5994_s1 + $0x17e8] sm:$0xff]  ;;  %v745_v2 = vld [vmem:[%s5994_s1 + $0x1638] sm:$0xff] }
 0x1be   :  { %2181 = vmatmul.f32.vlgmr.msra.gmra.mxu3 %v3501_v8  ;;  %2186 = vmatpush.msrb.mxu0 %v703_v45  ;;  %v699_v8 = vld [vmem:[%s5994_s1 + $0x14c8] sm:$0xff]  ;;  %v713_v41 = vld [vmem:[%s5994_s1 + $0x1538] sm:$0xff] }
 0x1bf   :  { %2205 = vmatpush.msrb.mxu1 %v737_v11  ;;  %2226 = vmatpush.msrb.mxu2 %v767_v12  ;;  %v743_v10 = vld [vmem:[%s5994_s1 + $0x1628] sm:$0xff]  ;;  %v777_v3 = vld [vmem:[%s5994_s1 + $0x1738] sm:$0xff]  ;;  %v1203_v11 = vadd.f32 %v1202_v9, %v1183_v63 }
 0x1c0   :  { %2245 = vmatpush.msrb.mxu3 %v801_v5  ;;  %2187 = vmatpush.msrb.mxu0 %v701_v6  ;;  %v677_v42 = vld [vmem:[%s5994_s1 + $0x1418] sm:$0xff]  ;;  %v711_v45 = vld [vmem:[%s5994_s1 + $0x1528] sm:$0xff]  ;;  %v1222_v6 = vpop.f32.mrf.mxu3 }
 0x1c1   :  { %2206 = vmatpush.msrb.mxu1 %v735_v13  ;;  %2227 = vmatpush.msrb.mxu2 %v765_v14  ;;  %v741_v12 = vld [vmem:[%s5994_s1 + $0x1618] sm:$0xff]  ;;  %v775_v5 = vld [vmem:[%s5994_s1 + $0x1728] sm:$0xff] }
 0x1c2   :  { %2246 = vmatpush.msrb.mxu3 %v799_v7  ;;  %2188 = vmatpush.msrb.mxu0 %v699_v8  ;;  %v675_v13 = vld [vmem:[%s5994_s1 + $0x1408] sm:$0xff]  ;;  %v709_v14 = vld [vmem:[%s5994_s1 + $0x1518] sm:$0xff] }
 0x1c3   :  { %2207 = vmatpush.msrb.mxu1 %v733_v15  ;;  %2228 = vmatpush.msrb.mxu2 %v763_v16  ;;  %v739_v7 = vld [vmem:[%s5994_s1 + $0x1608] sm:$0xff]  ;;  %v773_v8 = vld [vmem:[%s5994_s1 + $0x1718] sm:$0xff]  ;;  %v1223_v15 = vadd.f32 %v1222_v6, %v1203_v11 }
 0x1c4   :  { %2247 = vmatpush.msrb.mxu3 %v797_v17  ;;  %2189 = vmatpush.msrb.mxu0 %v697_v18  ;;  %v833_v16 = vld [vmem:[%s5994_s1 + $0x18f8] sm:$0xff]  ;;  %v1242_v18 = vpop.f32.mrf.mxu0  ;;  %v923_v50 = vld [vmem:[%s5994_s1 + $0x1bc8] sm:$0xff] }
 0x1c5   :  { %2208 = vmatpush.msrb.mxu1 %v731_v19  ;;  %2229 = vmatpush.msrb.mxu2 %v761_v20  ;;  %v897_v17 = vld [vmem:[%s5994_s1 + $0x1af8] sm:$0xff]  ;;  %v707_v19 = vld [vmem:[%s5994_s1 + $0x1508] sm:$0xff] }
 0x1c6   :  { %2248 = vmatpush.msrb.mxu3 %v795_v21  ;;  %2190 = vmatpush.msrb.mxu0 %v695_v22  ;;  %v771_v20 = vld [vmem:[%s5994_s1 + $0x1708] sm:$0xff]  ;;  %v865_v22 = vld [vmem:[%s5994_s1 + $0x19f8] sm:$0xff] }
 0x1c7   :  { %2209 = vmatpush.msrb.mxu1 %v729_v23  ;;  %2230 = vmatpush.msrb.mxu2 %v759_v24  ;;  %v831_v21 = vld [vmem:[%s5994_s1 + $0x18e8] sm:$0xff]  ;;  %v1243_v23 = vadd.f32 %v1242_v18, %v1223_v15  ;;  %v853_v30 = vld [vmem:[%s5994_s1 + $0x1998] sm:$0xff] }
 0x1c8   :  { %2249 = vmatpush.msrb.mxu3 %v793_v25  ;;  %2191 = vmatpush.msrb.mxu0 %v693_v26  ;;  %v895_v24 = vld [vmem:[%s5994_s1 + $0x1ae8] sm:$0xff]  ;;  %v829_v25 = vld [vmem:[%s5994_s1 + $0x18d8] sm:$0xff] }
 0x1c9   :  { %2210 = vmatpush.msrb.mxu1 %v727_v27  ;;  %2231 = vmatpush.msrb.mxu2 %v757_v29  ;;  %v863_v26 = vld [vmem:[%s5994_s1 + $0x19e8] sm:$0xff]  ;;  %v893_v27 = vld [vmem:[%s5994_s1 + $0x1ad8] sm:$0xff] }
 0x1ca   :  { %2250 = vmatpush.msrb.mxu3 %v791_v31  ;;  %2192 = vmatpush.msrb.mxu0 %v691_v39  ;;  %v861_v29 = vld [vmem:[%s5994_s1 + $0x19d8] sm:$0xff]  ;;  %v891_v39 = vld [vmem:[%s5994_s1 + $0x1ac8] sm:$0xff] }
 0x1cb   :  { %2211 = vmatpush.msrb.mxu1 %v725_v43  ;;  %2232 = vmatpush.msrb.mxu2 %v755_v48  ;;  %v925_v43 = vld [vmem:[%s5994_s1 + $0x1bd8] sm:$0xff]  ;;  %v1282_v48 = vpop.f32.mrf.mxu2  ;;  %v919_v59 = vld [vmem:[%s5994_s1 + $0x1ba8] sm:$0xff] }
 0x1cc   :  { %2251 = vmatpush.msrb.mxu3 %v789_v49  ;;  %2193 = vmatpush.msrb.mxu0 %v689_v44  ;;  %v825_v49 = vld [vmem:[%s5994_s1 + $0x18b8] sm:$0xff]  ;;  %v859_v44 = vld [vmem:[%s5994_s1 + $0x19c8] sm:$0xff] }
 0x1cd   :  { %2212 = vmatpush.msrb.mxu1 %v723_v46  ;;  %2233 = vmatpush.msrb.mxu2 %v753_v51  ;;  %v889_v46 = vld [vmem:[%s5994_s1 + $0x1ab8] sm:$0xff]  ;;  %v823_v51 = vld [vmem:[%s5994_s1 + $0x18a8] sm:$0xff] }
 0x1ce   :  { %2252 = vmatpush.msrb.mxu3 %v787_v47  ;;  %2194 = vmatpush.msrb.mxu0 %v687_v53  ;;  %v857_v47 = vld [vmem:[%s5994_s1 + $0x19b8] sm:$0xff]  ;;  %v887_v53 = vld [vmem:[%s5994_s1 + $0x1aa8] sm:$0xff] }
 0x1cf   :  { %2213 = vmatpush.msrb.mxu1 %v721_v54  ;;  %2234 = vmatpush.msrb.mxu2 %v751_v55  ;;  %v921_v54 = vld [vmem:[%s5994_s1 + $0x1bb8] sm:$0xff]  ;;  %v1302_v55 = vpop.f32.mrf.mxu3  ;;  %v815_v9 = vld [vmem:[%s5994_s1 + $0x1868] sm:$0xff] }
 0x1d0   :  { %2253 = vmatpush.msrb.mxu3 %v785_v56  ;;  %2195 = vmatpush.msrb.mxu0 %v685_v57  ;;  %v821_v56 = vld [vmem:[%s5994_s1 + $0x1898] sm:$0xff]  ;;  %v855_v57 = vld [vmem:[%s5994_s1 + $0x19a8] sm:$0xff] }
 0x1d1   :  { %2214 = vmatpush.msrb.mxu1 %v719_v58  ;;  %2235 = vmatpush.msrb.mxu2 %v749_v60  ;;  %v885_v58 = vld [vmem:[%s5994_s1 + $0x1a98] sm:$0xff]  ;;  %v1322_v60 = vpop.f32.mrf.mxu0  ;;  %v811_v6 = vld [vmem:[%s5994_s1 + $0x1848] sm:$0xff] }
 0x1d2   :  { %2254 = vmatpush.msrb.mxu3 %v783_v28  ;;  %2196 = vmatpush.msrb.mxu0 %v683_v0  ;;  %v819_v28 = vld [vmem:[%s5994_s1 + $0x1888] sm:$0xff]  ;;  %v881_v63 = vld [vmem:[%s5994_s1 + $0x1a78] sm:$0xff] }
 0x1d3   :  { %2215 = vmatpush.msrb.mxu1 %v717_v61  ;;  %2236 = vmatpush.msrb.mxu2 %v747_v32  ;;  %v883_v61 = vld [vmem:[%s5994_s1 + $0x1a88] sm:$0xff]  ;;  %v917_v32 = vld [vmem:[%s5994_s1 + $0x1b98] sm:$0xff] }
 0x1d4   :  { %2255 = vmatpush.msrb.mxu3 %v781_v33  ;;  %2197 = vmatpush.msrb.mxu0 %v681_v62  ;;  %v817_v33 = vld [vmem:[%s5994_s1 + $0x1878] sm:$0xff]  ;;  %v851_v62 = vld [vmem:[%s5994_s1 + $0x1988] sm:$0xff] }
 0x1d5   :  { %2216 = vmatpush.msrb.mxu1 %v715_v1  ;;  %2237 = vmatpush.msrb.mxu2 %v745_v2  ;;  %v915_v2 = vld [vmem:[%s5994_s1 + $0x1b88] sm:$0xff]  ;;  %v873_v18 = vld [vmem:[%s5994_s1 + $0x1a38] sm:$0xff] }
 0x1d6   :  { %2256 = vmatpush.msrb.mxu3 %v779_v4  ;;  %2198 = vmatpush.msrb.mxu0 %v679_v40  ;;  %v849_v40 = vld [vmem:[%s5994_s1 + $0x1978] sm:$0xff] }
 0x1d7   :  { %2217 = vmatpush.msrb.mxu1 %v713_v41  ;;  %2238 = vmatpush.msrb.mxu2 %v743_v10  ;;  %v879_v41 = vld [vmem:[%s5994_s1 + $0x1a68] sm:$0xff]  ;;  %v913_v10 = vld [vmem:[%s5994_s1 + $0x1b78] sm:$0xff]  ;;  %v1382_v15 = vpop.f32.mrf.mxu3 }
 0x1d8   :  { %2257 = vmatpush.msrb.mxu3 %v777_v3  ;;  %2199 = vmatpush.msrb.mxu0 %v677_v42  ;;  %v1362_v3 = vpop.f32.mrf.mxu2  ;;  %v813_v42 = vld [vmem:[%s5994_s1 + $0x1858] sm:$0xff] }
 0x1d9   :  { %2218 = vmatpush.msrb.mxu1 %v711_v45  ;;  %2239 = vmatpush.msrb.mxu2 %v741_v12  ;;  %v847_v45 = vld [vmem:[%s5994_s1 + $0x1968] sm:$0xff]  ;;  %v877_v12 = vld [vmem:[%s5994_s1 + $0x1a58] sm:$0xff] }
 0x1da   :  { %2258 = vmatpush.msrb.mxu3 %v775_v5  ;;  %2200 = vmatpush.msrb.mxu0 %v675_v13  ;;  %v911_v5 = vld [vmem:[%s5994_s1 + $0x1b68] sm:$0xff]  ;;  %v845_v13 = vld [vmem:[%s5994_s1 + $0x1958] sm:$0xff] }
 0x1db   :  { %2219 = vmatpush.msrb.mxu1 %v709_v14  ;;  %2240 = vmatpush.msrb.mxu2 %v739_v7  ;;  %v875_v7 = vld [vmem:[%s5994_s1 + $0x1a48] sm:$0xff] }
 0x1dc   :  { %2259 = vmatpush.msrb.mxu3 %v773_v8  ;;  %2201 = vmatmul.f32.vlgmr.msrb.gmra.mxu0 %v3702_v34  ;;  %v929_v34 = vld [vmem:[%s5994_s1 + $0x1bf8] sm:$0xff] }
 0x1dd   :  { %2241 = vmatmul.f32.vlgmr.msrb.gmra.mxu2 %v3704_v35  ;;  %2265 = vmatpush.msra.mxu0 %v833_v16  ;;  %v1262_v35 = vpop.f32.mrf.mxu1  ;;  %v909_v8 = vld [vmem:[%s5994_s1 + $0x1b58] sm:$0xff] }
 0x1de   :  { %2305 = vmatpush.msra.mxu2 %v897_v17  ;;  %2220 = vmatpush.msrb.mxu1 %v707_v19  ;;  %v1263_v31 = vadd.f32 %v1262_v35, %v1243_v23  ;;  %v809_v16 = vld [vmem:[%s5994_s1 + $0x1838] sm:$0xff]  ;;  %v843_v17 = vld [vmem:[%s5994_s1 + $0x1948] sm:$0xff] }
 0x1df   :  { %2260 = vmatpush.msrb.mxu3 %v771_v20  ;;  %2221 = vmatmul.f32.vlgmr.msrb.gmra.mxu1 %v3706_v36  ;;  %v927_v36 = vld [vmem:[%s5994_s1 + $0x1be8] sm:$0xff]  ;;  %v1402_v20 = vpop.f32.mrf.mxu0  ;;  %v805_v35 = vld [vmem:[%s5994_s1 + $0x1818] sm:$0xff] }
 0x1e0   :  { %2261 = vmatmul.f32.vlgmr.msrb.gmra.mxu3 %v3708_v37  ;;  %2266 = vmatpush.msra.mxu0 %v831_v21  ;;  %v827_v37 = vld [vmem:[%s5994_s1 + $0x18c8] sm:$0xff]  ;;  %v1283_v52 = vadd.f32 %v1282_v48, %v1263_v31  ;;  %v837_v31 = vld [vmem:[%s5994_s1 + $0x1918] sm:$0xff]  ;;  %v1442_v48 = vpop.f32.mrf.mxu2 }
 0x1e1   :  { %2285 = vmatpush.msra.mxu1 %v865_v22  ;;  %2306 = vmatpush.msra.mxu2 %v895_v24  ;;  %v907_v19 = vld [vmem:[%s5994_s1 + $0x1b48] sm:$0xff]  ;;  %v841_v22 = vld [vmem:[%s5994_s1 + $0x1938] sm:$0xff] }
 0x1e2   :  { %2325 = vmatpush.msra.mxu3 %v929_v34  ;;  %2267 = vmatpush.msra.mxu0 %v829_v25  ;;  %v1303_v0 = vadd.f32 %v1302_v55, %v1283_v52  ;;  %v807_v21 = vld [vmem:[%s5994_s1 + $0x1828] sm:$0xff]  ;;  %v905_v34 = vld [vmem:[%s5994_s1 + $0x1b38] sm:$0xff]  ;;  %v2580_v52 = vld.sshfl [vmem:[#allocation1] sm:$0xff pattern:$0x73625140] }
 0x1e3   :  { %2286 = vmatpush.msra.mxu1 %v863_v26  ;;  %2307 = vmatpush.msra.mxu2 %v893_v27  ;;  %v871_v24 = vld [vmem:[%s5994_s1 + $0x1a28] sm:$0xff]  ;;  %v869_v27 = vld [vmem:[%s5994_s1 + $0x1a18] sm:$0xff] }
 0x1e4   :  { %2326 = vmatpush.msra.mxu3 %v927_v36  ;;  %2268 = vmatpush.msra.mxu0 %v827_v37  ;;  %v1323_v1 = vadd.f32 %v1322_v60, %v1303_v0  ;;  %v839_v25 = vld [vmem:[%s5994_s1 + $0x1928] sm:$0xff] }
 0x1e5   :  { %2287 = vmatpush.msra.mxu1 %v861_v29  ;;  %2308 = vmatpush.msra.mxu2 %v891_v39  ;;  %v1342_v4 = vpop.f32.mrf.mxu1  ;;  %v903_v36 = vld [vmem:[%s5994_s1 + $0x1b28] sm:$0xff] }
 0x1e6   :  { %2327 = vmatpush.msra.mxu3 %v925_v43  ;;  %2269 = vmatpush.msra.mxu0 %v825_v49  ;;  %v1343_v11 = vadd.f32 %v1342_v4, %v1323_v1  ;;  %v803_v29 = vld [vmem:[%s5994_s1 + $0x1808] sm:$0xff]  ;;  %v901_v43 = vld [vmem:[%s5994_s1 + $0x1b18] sm:$0xff] }
 0x1e7   :  { %2288 = vmatpush.msra.mxu1 %v859_v44  ;;  %2309 = vmatpush.msra.mxu2 %v889_v46  ;;  %v867_v39 = vld [vmem:[%s5994_s1 + $0x1a08] sm:$0xff]  ;;  %v961_v44 = vld [vmem:[%s5994_s1 + $0x1cf8] sm:$0xff] }
 0x1e8   :  { %2328 = vmatpush.msra.mxu3 %v923_v50  ;;  %2270 = vmatpush.msra.mxu0 %v823_v51  ;;  %v1363_v14 = vadd.f32 %v1362_v3, %v1343_v11  ;;  %v1025_v46 = vld [vmem:[%s5994_s1 + $0x1ef8] sm:$0xff]  ;;  %v835_v50 = vld [vmem:[%s5994_s1 + $0x1908] sm:$0xff] }
 0x1e9   :  { %2289 = vmatpush.msra.mxu1 %v857_v47  ;;  %2310 = vmatpush.msra.mxu2 %v887_v53  ;;  %v899_v51 = vld [vmem:[%s5994_s1 + $0x1b08] sm:$0xff]  ;;  %v2581_v53 = vld.sshfl [vmem:[#allocation1 + $0x10] sm:$0xff pattern:$0x73625140]  ;;  %v989_v1 = vld [vmem:[%s5994_s1 + $0x1dd8] sm:$0xff] }
 0x1ea   :  { %2329 = vmatpush.msra.mxu3 %v921_v54  ;;  %2271 = vmatpush.msra.mxu0 %v821_v56  ;;  %v1383_v23 = vadd.f32 %v1382_v15, %v1363_v14  ;;  %v1462_v54 = vpop.f32.mrf.mxu3  ;;  %v959_v55 = vld [vmem:[%s5994_s1 + $0x1ce8] sm:$0xff]  ;;  %v993_v56 = vld [vmem:[%s5994_s1 + $0x1df8] sm:$0xff] }
 0x1eb   :  { %2290 = vmatpush.msra.mxu1 %v855_v57  ;;  %2311 = vmatpush.msra.mxu2 %v885_v58  ;;  %v1023_v57 = vld [vmem:[%s5994_s1 + $0x1ee8] sm:$0xff]  ;;  %v1057_v58 = vld [vmem:[%s5994_s1 + $0x1ff8] sm:$0xff] }
 0x1ec   :  { %2330 = vmatpush.msra.mxu3 %v919_v59  ;;  %2272 = vmatpush.msra.mxu0 %v819_v28  ;;  %v1403_v26 = vadd.f32 %v1402_v20, %v1383_v23  ;;  %v1482_v59 = vpop.f32.mrf.mxu0  ;;  %v2582_v60 = vld.sshfl [vmem:[#allocation1 + $0x8] sm:$0xff pattern:$0x73625140]  ;;  %v2583_v28 = vld.sshfl [vmem:[#allocation1 + $0x18] sm:$0xff pattern:$0x73625140] }
 0x1ed   :  { %2291 = vmatpush.msra.mxu1 %v853_v30  ;;  %2312 = vmatpush.msra.mxu2 %v883_v61  ;;  %v1422_v37 = vpop.f32.mrf.mxu1  ;;  %v957_v30 = vld [vmem:[%s5994_s1 + $0x1cd8] sm:$0xff]  ;;  %v991_v0 = vld [vmem:[%s5994_s1 + $0x1de8] sm:$0xff] }
 0x1ee   :  { %2331 = vmatpush.msra.mxu3 %v917_v32  ;;  %2273 = vmatpush.msra.mxu0 %v817_v33  ;;  %v1423_v49 = vadd.f32 %v1422_v37, %v1403_v26  ;;  %v1021_v32 = vld [vmem:[%s5994_s1 + $0x1ed8] sm:$0xff]  ;;  %v1055_v33 = vld [vmem:[%s5994_s1 + $0x1fe8] sm:$0xff] }
 0x1ef   :  { %2292 = vmatpush.msra.mxu1 %v851_v62  ;;  %2313 = vmatpush.msra.mxu2 %v881_v63  ;;  %v955_v62 = vld [vmem:[%s5994_s1 + $0x1cc8] sm:$0xff]  ;;  %v1053_v4 = vld [vmem:[%s5994_s1 + $0x1fd8] sm:$0xff] }
 0x1f0   :  { %2332 = vmatpush.msra.mxu3 %v915_v2  ;;  %2274 = vmatpush.msra.mxu0 %v815_v9  ;;  %v1443_v47 = vadd.f32 %v1442_v48, %v1423_v49  ;;  %v1019_v2 = vld [vmem:[%s5994_s1 + $0x1ec8] sm:$0xff]  ;;  %v985_v11 = vld [vmem:[%s5994_s1 + $0x1db8] sm:$0xff] }
 0x1f1   :  { %2293 = vmatpush.msra.mxu1 %v849_v40  ;;  %2314 = vmatpush.msra.mxu2 %v879_v41  ;;  %v953_v40 = vld [vmem:[%s5994_s1 + $0x1cb8] sm:$0xff]  ;;  %v987_v41 = vld [vmem:[%s5994_s1 + $0x1dc8] sm:$0xff] }
 0x1f2   :  { %2333 = vmatpush.msra.mxu3 %v913_v10  ;;  %2275 = vmatpush.msra.mxu0 %v813_v42  ;;  %v1463_v61 = vadd.f32 %v1462_v54, %v1443_v47  ;;  %v1017_v10 = vld [vmem:[%s5994_s1 + $0x1eb8] sm:$0xff]  ;;  %v1051_v3 = vld [vmem:[%s5994_s1 + $0x1fc8] sm:$0xff]  ;;  %v1522_v42 = vpop.f32.mrf.mxu2 }
 0x1f3   :  { %2294 = vmatpush.msra.mxu1 %v847_v45  ;;  %2315 = vmatpush.msra.mxu2 %v877_v12  ;;  %v951_v45 = vld [vmem:[%s5994_s1 + $0x1ca8] sm:$0xff]  ;;  %v1045_v20 = vld [vmem:[%s5994_s1 + $0x1f98] sm:$0xff] }
 0x1f4   :  { %2334 = vmatpush.msra.mxu3 %v911_v5  ;;  %2276 = vmatpush.msra.mxu0 %v811_v6  ;;  %v1483_v63 = vadd.f32 %v1482_v59, %v1463_v61  ;;  %v1015_v5 = vld [vmem:[%s5994_s1 + $0x1ea8] sm:$0xff]  ;;  %v1049_v6 = vld [vmem:[%s5994_s1 + $0x1fb8] sm:$0xff] }
 0x1f5   :  { %2295 = vmatpush.msra.mxu1 %v845_v13  ;;  %2316 = vmatpush.msra.mxu2 %v875_v7  ;;  %v1502_v9 = vpop.f32.mrf.mxu1  ;;  %v949_v13 = vld [vmem:[%s5994_s1 + $0x1c98] sm:$0xff]  ;;  %v983_v14 = vld [vmem:[%s5994_s1 + $0x1da8] sm:$0xff] }
 0x1f6   :  { %2335 = vmatpush.msra.mxu3 %v909_v8  ;;  %2277 = vmatpush.msra.mxu0 %v809_v16  ;;  %v1503_v12 = vadd.f32 %v1502_v9, %v1483_v63  ;;  %v1013_v8 = vld [vmem:[%s5994_s1 + $0x1e98] sm:$0xff]  ;;  %v1047_v15 = vld [vmem:[%s5994_s1 + $0x1fa8] sm:$0xff]  ;;  %v1542_v16 = vpop.f32.mrf.mxu3 }
 0x1f7   :  { %2296 = vmatpush.msra.mxu1 %v843_v17  ;;  %2317 = vmatpush.msra.mxu2 %v873_v18  ;;  %v947_v17 = vld [vmem:[%s5994_s1 + $0x1c88] sm:$0xff]  ;;  %v981_v18 = vld [vmem:[%s5994_s1 + $0x1d98] sm:$0xff] }
 0x1f8   :  { %2336 = vmatpush.msra.mxu3 %v907_v19  ;;  %2278 = vmatpush.msra.mxu0 %v807_v21  ;;  %v1523_v7 = vadd.f32 %v1522_v42, %v1503_v12  ;;  %v1011_v19 = vld [vmem:[%s5994_s1 + $0x1e88] sm:$0xff]  ;;  %v1562_v21 = vpop.f32.mrf.mxu0  ;;  %v977_v26 = vld [vmem:[%s5994_s1 + $0x1d78] sm:$0xff]  ;;  %v2585_v12 = vld.sshfl [vmem:[#allocation1 + $0x30] sm:$0xff pattern:$0x73625140] }
 0x1f9   :  { %2297 = vmatpush.msra.mxu1 %v841_v22  ;;  %2318 = vmatpush.msra.mxu2 %v871_v24  ;;  %v945_v22 = vld [vmem:[%s5994_s1 + $0x1c78] sm:$0xff]  ;;  %v979_v23 = vld [vmem:[%s5994_s1 + $0x1d88] sm:$0xff] }
 0x1fa   :  { %2337 = vmatpush.msra.mxu3 %v905_v34  ;;  %2279 = vmatpush.msra.mxu0 %v805_v35  ;;  %v1543_v24 = vadd.f32 %v1542_v16, %v1523_v7  ;;  %v1009_v34 = vld [vmem:[%s5994_s1 + $0x1e78] sm:$0xff]  ;;  %v1043_v35 = vld [vmem:[%s5994_s1 + $0x1f88] sm:$0xff]  ;;  %v1602_v49 = vpop.f32.mrf.mxu2 }
 0x1fb   :  { %2298 = vmatpush.msra.mxu1 %v839_v25  ;;  %2319 = vmatpush.msra.mxu2 %v869_v27  ;;  %v943_v25 = vld [vmem:[%s5994_s1 + $0x1c68] sm:$0xff]  ;;  %v1041_v37 = vld [vmem:[%s5994_s1 + $0x1f78] sm:$0xff] }
 0x1fc   :  { %2338 = vmatpush.msra.mxu3 %v903_v36  ;;  %2280 = vmatpush.msra.mxu0 %v803_v29  ;;  %v1563_v27 = vadd.f32 %v1562_v21, %v1543_v24  ;;  %v1007_v36 = vld [vmem:[%s5994_s1 + $0x1e68] sm:$0xff]  ;;  %v1037_v47 = vld [vmem:[%s5994_s1 + $0x1f58] sm:$0xff] }
 0x1fd   :  { %2299 = vmatpush.msra.mxu1 %v837_v31  ;;  %2320 = vmatpush.msra.mxu2 %v867_v39  ;;  %v1582_v29 = vpop.f32.mrf.mxu1  ;;  %v941_v31 = vld [vmem:[%s5994_s1 + $0x1c58] sm:$0xff]  ;;  %v975_v39 = vld [vmem:[%s5994_s1 + $0x1d68] sm:$0xff] }
 0x1fe   :  { %2339 = vmatpush.msra.mxu3 %v901_v43  ;;  %2281 = vmatmul.f32.vlgmr.msra.gmra.mxu0 %v2580_v52  ;;  %v1005_v43 = vld [vmem:[%s5994_s1 + $0x1e58] sm:$0xff]  ;;  %v1039_v48 = vld [vmem:[%s5994_s1 + $0x1f68] sm:$0xff] }
 0x1ff   :  { %2321 = vmatmul.f32.vlgmr.msra.gmra.mxu2 %v2581_v53  ;;  %2345 = vmatpush.msrb.mxu0 %v961_v44  ;;  %v939_v44 = vld [vmem:[%s5994_s1 + $0x1c48] sm:$0xff]  ;;  %v937_v52 = vld [vmem:[%s5994_s1 + $0x1c38] sm:$0xff] }
 0x200   :  { %2385 = vmatpush.msrb.mxu2 %v1025_v46  ;;  %2300 = vmatpush.msra.mxu1 %v835_v50  ;;  %v973_v46 = vld [vmem:[%s5994_s1 + $0x1d58] sm:$0xff]  ;;  %v1583_v50 = vadd.f32 %v1582_v29, %v1563_v27  ;;  %v971_v53 = vld [vmem:[%s5994_s1 + $0x1d48] sm:$0xff]  ;;  %v2451_v27 = vld [vmem:[%s5997_s3 + $0x30] sm:$0xff] }
 0x201   :  { %2340 = vmatpush.msra.mxu3 %v899_v51  ;;  %2301 = vmatmul.f32.vlgmr.msra.gmra.mxu1 %v2582_v60  ;;  %v1003_v51 = vld [vmem:[%s5994_s1 + $0x1e48] sm:$0xff]  ;;  %v969_v59 = vld [vmem:[%s5994_s1 + $0x1d38] sm:$0xff]  ;;  %v5862_v29 = vld [vmem:[%s5996_s2 + $0x1] ss:$4 sm:$0x3] }
 0x202   :  { %2341 = vmatmul.f32.vlgmr.msra.gmra.mxu3 %v2583_v28  ;;  %2346 = vmatpush.msrb.mxu0 %v959_v55  ;;  %v1603_v54 = vadd.f32 %v1602_v49, %v1583_v50  ;;  %v1001_v55 = vld [vmem:[%s5994_s1 + $0x1e38] sm:$0xff]  ;;  %v999_v60 = vld [vmem:[%s5994_s1 + $0x1e28] sm:$0xff]  ;;  %v5874_v49 = vld [vmem:[%s5996_s2 + $0x2] ss:$4 sm:$0x3] }
 0x203   :  { %2365 = vmatpush.msrb.mxu1 %v993_v56  ;;  %2386 = vmatpush.msrb.mxu2 %v1023_v57  ;;  %v1035_v56 = vld [vmem:[%s5994_s1 + $0x1f48] sm:$0xff]  ;;  %v1622_v57 = vpop.f32.mrf.mxu3  ;;  %v1033_v28 = vld [vmem:[%s5994_s1 + $0x1f38] sm:$0xff]  ;;  %v2439_v50 = vperm.slane %v5874_v49, 0 }
 0x204   :  { %2405 = vmatpush.msrb.mxu3 %v1057_v58  ;;  %2347 = vmatpush.msrb.mxu0 %v957_v30  ;;  %v935_v58 = vld [vmem:[%s5994_s1 + $0x1c28] sm:$0xff]  ;;  %v1642_v30 = vpop.f32.mrf.mxu0  ;;  %v965_v63 = vld [vmem:[%s5994_s1 + $0x1d18] sm:$0xff] }
 0x205   :  { %2366 = vmatpush.msrb.mxu1 %v991_v0  ;;  %2387 = vmatpush.msrb.mxu2 %v1021_v32  ;;  %v933_v0 = vld [vmem:[%s5994_s1 + $0x1c18] sm:$0xff]  ;;  %v967_v61 = vld [vmem:[%s5994_s1 + $0x1d28] sm:$0xff]  ;;  %v1623_v32 = vadd.f32 %v1622_v57, %v1603_v54 }
 0x206   :  { %2406 = vmatpush.msrb.mxu3 %v1055_v33  ;;  %2348 = vmatpush.msrb.mxu0 %v955_v62  ;;  %v997_v33 = vld [vmem:[%s5994_s1 + $0x1e18] sm:$0xff]  ;;  %v1031_v62 = vld [vmem:[%s5994_s1 + $0x1f28] sm:$0xff] }
 0x207   :  { %2367 = vmatpush.msrb.mxu1 %v989_v1  ;;  %2388 = vmatpush.msrb.mxu2 %v1019_v2  ;;  %v931_v1 = vld [vmem:[%s5994_s1 + $0x1c08] sm:$0xff]  ;;  %v1643_v2 = vadd.f32 %v1642_v30, %v1623_v32  ;;  %v1029_v9 = vld [vmem:[%s5994_s1 + $0x1f18] sm:$0xff] }
 0x208   :  { %2407 = vmatpush.msrb.mxu3 %v1053_v4  ;;  %2349 = vmatpush.msrb.mxu0 %v953_v40  ;;  %v995_v4 = vld [vmem:[%s5994_s1 + $0x1e08] sm:$0xff]  ;;  %v1662_v40 = vpop.f32.mrf.mxu1 }
 0x209   :  { %2368 = vmatpush.msrb.mxu1 %v987_v41  ;;  %2389 = vmatpush.msrb.mxu2 %v1017_v10  ;;  %v2460_v41 = vld [vmem:[%s5997_s3 + $0x78] sm:$0xff]  ;;  %v963_v10 = vld [vmem:[%s5994_s1 + $0x1d08] sm:$0xff] }
 0x20a   :  { %2408 = vmatpush.msrb.mxu3 %v1051_v3  ;;  %2350 = vmatpush.msrb.mxu0 %v951_v45  ;;  %v1682_v3 = vpop.f32.mrf.mxu2  ;;  %v1027_v42 = vld [vmem:[%s5994_s1 + $0x1f08] sm:$0xff]  ;;  %v1663_v45 = vadd.f32 %v1662_v40, %v1643_v2  ;;  %v2476_v40 = vld [vmem:[%s5997_s3 + $0xf8] sm:$0xff] }
 0x20b   :  { %2369 = vmatpush.msrb.mxu1 %v985_v11  ;;  %2390 = vmatpush.msrb.mxu2 %v1015_v5  ;;  %v2584_v11 = vld.sshfl [vmem:[#allocation1 + $0x20] sm:$0xff pattern:$0x73625140]  ;;  %v2459_v5 = vld [vmem:[%s5997_s3 + $0x70] sm:$0xff]  ;;  %v1702_v7 = vpop.f32.mrf.mxu3 }
 0x20c   :  { %2409 = vmatpush.msrb.mxu3 %v1049_v6  ;;  %2351 = vmatpush.msrb.mxu0 %v949_v13  ;;  %v1683_v6 = vadd.f32 %v1682_v3, %v1663_v45  ;;  %v2586_v13 = vld.sshfl [vmem:[#allocation1 + $0x28] sm:$0xff pattern:$0x73625140]  ;;  %v1722_v16 = vpop.f32.mrf.mxu0 }
 0x20d   :  { %2370 = vmatpush.msrb.mxu1 %v983_v14  ;;  %2391 = vmatpush.msrb.mxu2 %v1013_v8  ;;  %v2458_v14 = vld [vmem:[%s5997_s3 + $0x68] sm:$0xff]  ;;  %v2587_v8 = vld.sshfl [vmem:[#allocation1 + $0x38] sm:$0xff pattern:$0x73625140] }
 0x20e   :  { %2410 = vmatpush.msrb.mxu3 %v1047_v15  ;;  %2352 = vmatpush.msrb.mxu0 %v947_v17  ;;  %v2457_v15 = vld [vmem:[%s5997_s3 + $0x60] sm:$0xff]  ;;  %v1703_v17 = vadd.f32 %v1702_v7, %v1683_v6  ;;  %v2474_v3 = vld [vmem:[%s5997_s3 + $0xe8] sm:$0xff] }
 0x20f   :  { %2371 = vmatpush.msrb.mxu1 %v981_v18  ;;  %2392 = vmatpush.msrb.mxu2 %v1011_v19  ;;  %v2456_v18 = vld [vmem:[%s5997_s3 + $0x58] sm:$0xff] }
 0x210   :  { %2411 = vmatpush.msrb.mxu3 %v1045_v20  ;;  %2353 = vmatpush.msrb.mxu0 %v945_v22  ;;  %v1723_v19 = vadd.f32 %v1722_v16, %v1703_v17  ;;  %v2455_v20 = vld [vmem:[%s5997_s3 + $0x50] sm:$0xff]  ;;  %v1742_v21 = vpop.f32.mrf.mxu1  ;;  %v2454_v22 = vld [vmem:[%s5997_s3 + $0x48] sm:$0xff] }
 0x211   :  { %2372 = vmatpush.msrb.mxu1 %v979_v23  ;;  %2393 = vmatpush.msrb.mxu2 %v1009_v34  ;;  %v2453_v34 = vld [vmem:[%s5997_s3 + $0x40] sm:$0xff] }
 0x212   :  { %2412 = vmatpush.msrb.mxu3 %v1043_v35  ;;  %2354 = vmatpush.msrb.mxu0 %v943_v25  ;;  %v1762_v23 = vpop.f32.mrf.mxu2  ;;  %v1743_v24 = vadd.f32 %v1742_v21, %v1723_v19  ;;  %v2452_v25 = vld [vmem:[%s5997_s3 + $0x38] sm:$0xff] }
 0x213   :  { %2373 = vmatpush.msrb.mxu1 %v977_v26  ;;  %2394 = vmatpush.msrb.mxu2 %v1007_v36  ;;  %v1782_v26 = vpop.f32.mrf.mxu3 }
 0x214   :  { %2413 = vmatpush.msrb.mxu3 %v1041_v37  ;;  %2355 = vmatpush.msrb.mxu0 %v941_v31  ;;  %v1763_v35 = vadd.f32 %v1762_v23, %v1743_v24  ;;  %v2450_v37 = vld [vmem:[%s5997_s3 + $0x28] sm:$0xff]  ;;  %v2449_v31 = vld [vmem:[%s5997_s3 + $0x20] sm:$0xff]  ;;  %v1802_v54 = vpop.f32.mrf.mxu0 }
 0x215   :  { %2374 = vmatpush.msrb.mxu1 %v975_v39  ;;  %2395 = vmatpush.msrb.mxu2 %v1005_v43  ;;  %v2430_v43 = vperm.slane %v5862_v29, 0  ;;  %v2469_v24 = vld [vmem:[%s5997_s3 + $0xc0] sm:$0xff] }
 0x216   :  { %2414 = vmatpush.msrb.mxu3 %v1039_v48  ;;  %2356 = vmatpush.msrb.mxu0 %v939_v44  ;;  %v1783_v36 = vadd.f32 %v1782_v26, %v1763_v35  ;;  %v2448_v48 = vld [vmem:[%s5997_s3 + $0x18] sm:$0xff]  ;;  %v2447_v44 = vld [vmem:[%s5997_s3 + $0x10] sm:$0xff] }
 0x217   :  { %2375 = vmatpush.msrb.mxu1 %v973_v46  ;;  %2396 = vmatpush.msrb.mxu2 %v1003_v51  ;;  %v2446_v51 = vld [vmem:[%s5997_s3 + $0x8] sm:$0xff]  ;;  %v2468_v35 = vld [vmem:[%s5997_s3 + $0xb8] sm:$0xff]  ;;  %v2467_v26 = vld [vmem:[%s5997_s3 + $0xb0] sm:$0xff] }
 0x218   :  { %2415 = vmatpush.msrb.mxu3 %v1037_v47  ;;  %2357 = vmatpush.msrb.mxu0 %v937_v52  ;;  %v2425_v39 = vmax.f32 %v1783_v36, 0.0  ;;  %v2445_v47 = vld [vmem:[%s5997_s3] sm:$0xff] }
 0x219   :  { %2376 = vmatpush.msrb.mxu1 %v971_v53  ;;  %2397 = vmatpush.msrb.mxu2 %v1001_v55  ;;  %v1061_v53 = vperm.slane %v5321_v38, 1 }
 0x21a   :  { %2416 = vmatpush.msrb.mxu3 %v1035_v56  ;;  %2358 = vmatpush.msrb.mxu0 %v935_v58  ;;  %v2434_v46 = vmul.f32 %v2430_v43, %v2425_v39  ;;  %v1822_v56 = vpop.f32.mrf.mxu1  ;;  %v1842_v58 = vpop.f32.mrf.mxu2  ;;  %v2465_v39 = vld [vmem:[%s5997_s3 + $0xa0] sm:$0xff] }
 0x21b   :  { %2377 = vmatpush.msrb.mxu1 %v969_v59  ;;  %2398 = vmatpush.msrb.mxu2 %v999_v60  ;;  %v1803_v55 = vadd.f32 %v1802_v54, %v1061_v53  ;;  %v1862_v60 = vpop.f32.mrf.mxu3  ;;  %v2461_v54 = vld [vmem:[%s5997_s3 + $0x80] sm:$0xff] }
 0x21c   :  { %2417 = vmatpush.msrb.mxu3 %v1033_v28  ;;  %2359 = vmatpush.msrb.mxu0 %v933_v0  ;;  %v2443_v52 = vadd.f32 %v2439_v50, %v2434_v46  ;;  %v1882_v30 = vpop.f32.mrf.mxu0  ;;  %v2463_v50 = vld [vmem:[%s5997_s3 + $0x90] sm:$0xff] }
 0x21d   :  { %2378 = vmatpush.msrb.mxu1 %v967_v61  ;;  %2399 = vmatpush.msrb.mxu2 %v997_v33  ;;  %v1823_v57 = vadd.f32 %v1822_v56, %v1803_v55 }
 0x21e   :  { %2418 = vmatpush.msrb.mxu3 %v1031_v62  ;;  %2360 = vmatpush.msrb.mxu0 %v931_v1 }
 0x21f   :  { %2379 = vmatpush.msrb.mxu1 %v965_v63  ;;  %2400 = vmatpush.msrb.mxu2 %v995_v4  ;;  %v1843_v59 = vadd.f32 %v1842_v58, %v1823_v57 }
 0x220   :  { %2419 = vmatpush.msrb.mxu3 %v1029_v9  ;;  %2361 = vmatmul.f32.vlgmr.msrb.gmra.mxu0 %v2584_v11  ;;  %v2473_v11 = vld [vmem:[%s5997_s3 + $0xe0] sm:$0xff] }
 0x221   :  { %2401 = vmatmul.f32.vlgmr.msrb.gmra.mxu2 %v2585_v12  ;;  %2481 = vmatpush.msra.mxu0 %v2460_v41  ;;  %v1863_v28 = vadd.f32 %v1862_v60, %v1843_v59  ;;  %v2475_v41 = vld [vmem:[%s5997_s3 + $0xf0] sm:$0xff] }
 0x222   :  { %2380 = vmatpush.msrb.mxu1 %v963_v10  ;;  %2420 = vmatpush.msrb.mxu3 %v1027_v42  ;;  %v1902_v61 = vpop.f32.mrf.mxu1  ;;  %v1922_v33 = vpop.f32.mrf.mxu2 }
 0x223   :  { %2381 = vmatmul.f32.vlgmr.msrb.gmra.mxu1 %v2586_v13  ;;  %2421 = vmatmul.f32.vlgmr.msrb.gmra.mxu3 %v2587_v8  ;;  %v1883_v0 = vadd.f32 %v1882_v30, %v1863_v28  ;;  %v1942_v1 = vpop.f32.mrf.mxu3  ;;  %v2471_v13 = vld [vmem:[%s5997_s3 + $0xd0] sm:$0xff]  ;;  %v2470_v8 = vld [vmem:[%s5997_s3 + $0xc8] sm:$0xff] }
 0x224   :  { %2482 = vmatpush.msra.mxu0 %v2459_v5  ;;  %v1962_v63 = vpop.f32.mrf.mxu0  ;;  %2501 = vmatpush.msra.mxu1 %v2476_v40  ;;  %v2472_v5 = vld [vmem:[%s5997_s3 + $0xd8] sm:$0xff] }
 0x225   :  { %v1903_v32 = vadd.f32 %v1902_v61, %v1883_v0  ;;  %v2533_v40 = vld [vmem:[%s5999_s5 + $0x58] sm:$0xff] }
 0x226   :  { %2483 = vmatpush.msra.mxu0 %v2458_v14  ;;  %2502 = vmatpush.msra.mxu1 %v2475_v41 }
 0x227   :  { %v1923_v62 = vadd.f32 %v1922_v33, %v1903_v32  ;;  %v2537_v33 = vld [vmem:[%s5999_s5 + $0x78] sm:$0xff] }
 0x228   :  { %2484 = vmatpush.msra.mxu0 %v2457_v15  ;;  %2503 = vmatpush.msra.mxu1 %v2474_v3 }
 0x229   :  { %v1943_v2 = vadd.f32 %v1942_v1, %v1923_v62  ;;  %v2536_v62 = vld [vmem:[%s5999_s5 + $0x70] sm:$0xff]  ;;  %2542 = vmatpush.msra.mxu2 %v2537_v33 }
 0x22a   :  { %2485 = vmatpush.msra.mxu0 %v2456_v18  ;;  %v1982_v38 = vpop.f32.mrf.mxu1  ;;  %v2002_v9 = vpop.f32.mrf.mxu2  ;;  %2504 = vmatpush.msra.mxu1 %v2473_v11 }
 0x22b   :  { %v1963_v4 = vadd.f32 %v1962_v63, %v1943_v2  ;;  %v2022_v45 = vpop.f32.mrf.mxu3  ;;  %v2535_v63 = vld [vmem:[%s5999_s5 + $0x68] sm:$0xff]  ;;  %2543 = vmatpush.msra.mxu2 %v2536_v62 }
 0x22c   :  { %2486 = vmatpush.msra.mxu0 %v2455_v20  ;;  %v2042_v12 = vpop.f32.mrf.mxu0  ;;  %2505 = vmatpush.msra.mxu1 %v2472_v5  ;;  %v2530_v5 = vld [vmem:[%s5999_s5 + $0x40] sm:$0xff] }
 0x22d   :  { %v1983_v10 = vadd.f32 %v1982_v38, %v1963_v4  ;;  %v2534_v4 = vld [vmem:[%s5999_s5 + $0x60] sm:$0xff]  ;;  %2544 = vmatpush.msra.mxu2 %v2535_v63 }
 0x22e   :  { %2487 = vmatpush.msra.mxu0 %v2454_v22  ;;  %2506 = vmatpush.msra.mxu1 %v2471_v13  ;;  %v2529_v13 = vld [vmem:[%s5999_s5 + $0x38] sm:$0xff] }
 0x22f   :  { %v2003_v42 = vadd.f32 %v2002_v9, %v1983_v10  ;;  %2545 = vmatpush.msra.mxu2 %v2534_v4  ;;  %v2532_v10 = vld [vmem:[%s5999_s5 + $0x50] sm:$0xff] }
 0x230   :  { %2488 = vmatpush.msra.mxu0 %v2453_v34  ;;  %2507 = vmatpush.msra.mxu1 %v2470_v8  ;;  %v2525_v8 = vld [vmem:[%s5999_s5 + $0x18] sm:$0xff] }
 0x231   :  { %v2023_v6 = vadd.f32 %v2022_v45, %v2003_v42  ;;  %v2431_v42 = vperm.slane %v5862_v29, 1  ;;  %2546 = vmatpush.msra.mxu2 %v2533_v40  ;;  %v2531_v45 = vld [vmem:[%s5999_s5 + $0x48] sm:$0xff] }
 0x232   :  { %2489 = vmatpush.msra.mxu0 %v2452_v25  ;;  %v2062_v7 = vpop.f32.mrf.mxu1  ;;  %v2082_v15 = vpop.f32.mrf.mxu2  ;;  %2508 = vmatpush.msra.mxu1 %v2469_v24  ;;  %v2575_v24 = vld [vmem:[%s6000_s6] ss:$0 sm:$0xff] }
 0x233   :  { %v2043_v14 = vadd.f32 %v2042_v12, %v2023_v6  ;;  %v2102_v18 = vpop.f32.mrf.mxu3  ;;  %v2440_v12 = vperm.slane %v5874_v49, 1  ;;  %2547 = vmatpush.msra.mxu2 %v2532_v10  ;;  %v2527_v49 = vld [vmem:[%s5999_s5 + $0x28] sm:$0xff] }
 0x234   :  { %2490 = vmatpush.msra.mxu0 %v2451_v27  ;;  %2509 = vmatpush.msra.mxu1 %v2468_v35 }
 0x235   :  { %v2063_v16 = vadd.f32 %v2062_v7, %v2043_v14  ;;  %2548 = vmatpush.msra.mxu2 %v2531_v45  ;;  %v2528_v14 = vld [vmem:[%s5999_s5 + $0x30] sm:$0xff]  ;;  %v2526_v7 = vld [vmem:[%s5999_s5 + $0x20] sm:$0xff] }
 0x236   :  { %2491 = vmatpush.msra.mxu0 %v2450_v37  ;;  %2510 = vmatpush.msra.mxu1 %v2467_v26  ;;  %v2466_v37 = vld [vmem:[%s5997_s3 + $0xa8] sm:$0xff] }
 0x237   :  { %v2083_v17 = vadd.f32 %v2082_v15, %v2063_v16  ;;  %v2122_v19 = vpop.f32.mrf.mxu0  ;;  %2549 = vmatpush.msra.mxu2 %v2530_v5  ;;  %v2524_v15 = vld [vmem:[%s5999_s5 + $0x10] sm:$0xff]  ;;  %v2523_v16 = vld [vmem:[%s5999_s5 + $0x8] sm:$0xff] }
 0x238   :  { %2492 = vmatpush.msra.mxu0 %v2449_v31  ;;  %2511 = vmatpush.msra.mxu1 %v2466_v37 }
 0x239   :  { %v2103_v20 = vadd.f32 %v2102_v18, %v2083_v17  ;;  %2550 = vmatpush.msra.mxu2 %v2529_v13  ;;  %v2522_v17 = vld [vmem:[%s5999_s5] sm:$0xff] }
 0x23a   :  { %2493 = vmatpush.msra.mxu0 %v2448_v48  ;;  %v2142_v22 = vpop.f32.mrf.mxu1  ;;  %2512 = vmatpush.msra.mxu1 %v2465_v39  ;;  %v2574_v18 = vld [vmem:[%s5998_s4] ss:$0 sm:$0xff] }
 0x23b   :  { %v2123_v21 = vadd.f32 %v2122_v19, %v2103_v20  ;;  %2551 = vmatpush.msra.mxu2 %v2528_v14 }
 0x23c   :  { %2494 = vmatpush.msra.mxu0 %v2447_v44  ;;  %v2464_v44 = vld [vmem:[%s5997_s3 + $0x98] sm:$0xff] }
 0x23d   :  { %v2143_v34 = vadd.f32 %v2142_v22, %v2123_v21  ;;  %2513 = vmatpush.msra.mxu1 %v2464_v44  ;;  %2552 = vmatpush.msra.mxu2 %v2527_v49 }
 0x23e   :  { %2495 = vmatpush.msra.mxu0 %v2446_v51  ;;  %v2162_v23 = vpop.f32.mrf.mxu2 }
 0x23f   :  { %v2163_v25 = vadd.f32 %v2162_v23, %v2143_v34  ;;  %2514 = vmatpush.msra.mxu1 %v2463_v50  ;;  %2553 = vmatpush.msra.mxu2 %v2526_v7 }
 0x240   :  { %2496 = vmatpush.msra.mxu0 %v2445_v47  ;;  %v2462_v47 = vld [vmem:[%s5997_s3 + $0x88] sm:$0xff] }
 0x241   :  { %2497 = vmatmul.f32.vlgmr.msra.gmra.mxu0 %v2443_v52  ;;  %v2182_v27 = vpop.f32.mrf.mxu3  ;;  %2515 = vmatpush.msra.mxu1 %v2462_v47 }
 0x242   :  { %v2183_v31 = vadd.f32 %v2182_v27, %v2163_v25  ;;  %2554 = vmatpush.msra.mxu2 %v2525_v8 }
 0x243   :  { %2516 = vmatpush.msra.mxu1 %v2461_v54 }
 0x244   :  { %2555 = vmatpush.msra.mxu2 %v2524_v15 }
 0x246   :  { %2556 = vmatpush.msra.mxu2 %v2523_v16 }
 0x248   :  { %2557 = vmatpush.msra.mxu2 %v2522_v17 }
 0x259   :  { %v2202_v36 = vpop.f32.mrf.mxu0 }
 0x25a   :  { %v2203_v43 = vadd.f32 %v2202_v36, %v2183_v31 }
 0x25c   :  { %v2222_v48 = vpop.f32.mrf.mxu1 }
 0x25d   :  { %v2223_v51 = vadd.f32 %v2222_v48, %v2203_v43 }
 0x260   :  { %v2242_v46 = vpop.f32.mrf.mxu2 }
 0x261   :  { %v2243_v52 = vadd.f32 %v2242_v46, %v2223_v51 }
 0x263   :  { %v2262_v53 = vpop.f32.mrf.mxu3 }
 0x264   :  { %v2263_v56 = vadd.f32 %v2262_v53, %v2243_v52 }
 0x27b   :  { %v2282_v55 = vpop.f32.mrf.mxu0 }
 0x27c   :  { %v2283_v57 = vadd.f32 %v2282_v55, %v2263_v56 }
 0x27e   :  { %v2302_v58 = vpop.f32.mrf.mxu1 }
 0x27f   :  { %v2303_v60 = vadd.f32 %v2302_v58, %v2283_v57 }
 0x282   :  { %v2322_v59 = vpop.f32.mrf.mxu2 }
 0x283   :  { %v2323_v28 = vadd.f32 %v2322_v59, %v2303_v60 }
 0x285   :  { %v2342_v30 = vpop.f32.mrf.mxu3 }
 0x286   :  { %v2343_v0 = vadd.f32 %v2342_v30, %v2323_v28 }
 0x29d   :  { %v2362_v61 = vpop.f32.mrf.mxu0 }
 0x29e   :  { %v2363_v32 = vadd.f32 %v2362_v61, %v2343_v0 }
 0x2a0   :  { %v2382_v1 = vpop.f32.mrf.mxu1 }
 0x2a1   :  { %v2383_v2 = vadd.f32 %v2382_v1, %v2363_v32 }
 0x2a4   :  { %v2402_v38 = vpop.f32.mrf.mxu2 }
 0x2a5   :  { %v2403_v9 = vadd.f32 %v2402_v38, %v2383_v2 }
 0x2a6   :  { %v2422_v41 = vpop.f32.mrf.mxu3 }
 0x2a7   :  { %v2423_v3 = vadd.f32 %v2422_v41, %v2403_v9 }
 0x2a9   :  { %v2426_v11 = vmax.f32 %v2423_v3, 0.0 }
 0x2ab   :  { %v2435_v6 = vmul.f32 %v2431_v42, %v2426_v11 }
 0x2ad   :  { %v2444_v29 = vadd.f32 %v2440_v12, %v2435_v6 }
 0x2af   :  { %2517 = vmatmul.f32.vlgmr.msra.gmra.mxu1 %v2444_v29 }
 0x2be   :  { %v2498_v19 = vpop.f32.mrf.mxu0 }
 0x2bf   :  { %v2499_v20 = vadd.f32 %v2574_v18, %v2498_v19 }
 0x32c   :  { %v2518_v21 = vpop.f32.mrf.mxu1 }
 0x32d   :  { %v2519_v22 = vadd.f32 %v2518_v21, %v2499_v20 }
 0x32f   :  { %v2521_v23 = vmax.f32 %v2519_v22, 0.0 }
 0x331   :  { %2558 = vmatmul.f32.vlgmr.msra.gmra.mxu2 %v2521_v23 }
 0x3b4   :  { %v2559_v34 = vpop.f32.mrf.mxu2 }
 0x3b5   :  { %v2560_v35 = vadd.f32 %v2575_v24, %v2559_v34 }
 0x3b7   :  { %v2562_v25 = vsub.f32 0.0, %v2560_v35 }
 0x3b9   :  { %v2563_v26 = vmul.f32 1.442695, %v2562_v25 }
 0x3bb   :  { %2576 = vpow2.f32 %v2563_v26 }
 0x3c1   :  { %v2577_v27 = vpop.eup %2576 }
 0x3c2   :  { %v2565_v36 = vadd.f32 1.0, %v2577_v27 }
 0x3c4   :  { %2578 = vrcp.f32 %v2565_v36 }
 0x3ca   :  { %v2579_v37 = vpop.eup %2578 }
 0x3cb   :  { %2567 = vst [vmem:[%s6001_s7] sm:$0x3] %v2579_v37 }

</bundles_post_ra>
